<compile_context>
chip_gen: v7x
topology: tpu7x:2x2x1
jax: 0.10.0
libtpu: 0.0.40
codegen_flags: <defaults>
</compile_context>

<pallas_src>
import functools
import math

import jax
import jax.numpy as jnp
from jax.experimental import pallas as pl
from jax.experimental.pallas import tpu as pltpu

D_IN = 768
D_HID = 3072

_SQRT2 = math.sqrt(2.0)
_SQRT_2_OVER_PI = math.sqrt(2.0 / math.pi)


def _gelu_exact(x):
    # torch.nn.functional.gelu default: 0.5 * x * (1 + erf(x / sqrt(2)))
    return 0.5 * x * (1.0 + jax.lax.erf(x / _SQRT2))


def _gelu_tanh(x):
    # tanh approximation: tanh lowers to the EUP (separate VLIW slot), keeping
    # the VALU free so the MXU stays the binding unit on v6e/v7x.
    return 0.5 * x * (1.0 + jnp.tanh(_SQRT_2_OVER_PI * (x + 0.044715 * x * x * x)))


# -----------------------------------------------------------------------------
# One-time (import-time) probe: can resident weights be single-buffered via
# pipeline_mode=pl.Buffered(1)?  Resolved once here so the hot path has no
# try/except and no host sync.  The fallback (default double-buffering) is
# still correct and fits VMEM comfortably because the hidden dim is chunked.
# -----------------------------------------------------------------------------
def _probe_single_buffer_support():
    if not hasattr(pl, "Buffered"):
        return False
    try:
        def k(x_ref, w_ref, o_ref):
            o_ref[...] = x_ref[...] + w_ref[...]

        f = pl.pallas_call(
            k,
            out_shape=jax.ShapeDtypeStruct((8, 128), jnp.float32),
            grid=(1,),
            in_specs=[
                pl.BlockSpec((8, 128), lambda i: (0, 0)),
                pl.BlockSpec((8, 128), lambda i: (0, 0),
                             pipeline_mode=pl.Buffered(1)),
            ],
            out_specs=pl.BlockSpec((8, 128), lambda i: (0, 0)),
        )
        jax.jit(f).lower(jax.ShapeDtypeStruct((8, 128), jnp.float32),
                         jax.ShapeDtypeStruct((8, 128), jnp.float32))
        return True
    except Exception:
        return False


_SINGLE_BUFFER_WEIGHTS = _probe_single_buffer_support()


def mlp_kernel(x_ref, w1_ref, b1_ref, w2_ref, b2_ref, o_ref, acc_ref, *,
               exact_gelu, hc):
    # x_ref:  (tm, 768)  input dtype (cast to bf16 in-kernel)
    # w1_ref: (768, 3072) bf16    b1_ref: (1, 3072) f32
    # w2_ref: (3072, 768) bf16    b2_ref: (1, 768)  f32
    # o_ref:  (tm, 768)           acc_ref: (tm, 768) f32 scratch
    x = x_ref[...].astype(jnp.bfloat16)

    n_chunks = D_HID // hc
    for c in range(n_chunks):          # fully unrolled; static ref slices are free
        c0 = c * hc
        h = jnp.dot(x, w1_ref[:, c0:c0 + hc],
                    preferred_element_type=jnp.float32)        # f32 acc on MXU
        h = h + b1_ref[:, c0:c0 + hc]                          # f32 epilogue
        h = _gelu_exact(h) if exact_gelu else _gelu_tanh(h)
        # dropout (p=0.1) -> identity in eval mode
        part = jnp.dot(h.astype(jnp.bfloat16), w2_ref[c0:c0 + hc, :],
                       preferred_element_type=jnp.float32)
        if c == 0:
            acc_ref[...] = part
        else:
            acc_ref[...] += part

    # dropout (p=0.1) -> identity in eval mode
    o_ref[...] = (acc_ref[...] + b2_ref[...]).astype(o_ref.dtype)


def _resident_spec(shape):
    # Constant index_map -> the block never changes across the grid; request a
    # single buffer (when supported) so the resident weight is not pointlessly
    # double-buffered in VMEM.
    if _SINGLE_BUFFER_WEIGHTS:
        return pl.BlockSpec(shape, lambda i: (0, 0), pipeline_mode=pl.Buffered(1))
    return pl.BlockSpec(shape, lambda i: (0, 0))


def _choose_tm(M):
    """Row tile: multiple of 8, <=512.  For large M use 512 (>=4 tiles); for
    medium M aim for ~4 tiles so the v7x megacore split of the row grid keeps
    both TensorCores busy and each core still double-buffers its x/out tiles."""
    if M >= 2048:
        return 512
    if M >= 32:
        tm = ((pl.cdiv(M, 4) + 7) // 8) * 8
        return min(tm, 512)
    return max(8, ((M + 7) // 8) * 8)


@functools.partial(jax.jit,
                   static_argnames=("tm", "hc", "exact_gelu", "out_dtype"))
def _mlp_pallas(x2d, w1, b1, w2, b2, *, tm, hc, exact_gelu, out_dtype):
    M = x2d.shape[0]
    n_tiles = pl.cdiv(M, tm)           # ragged edge handled by Pallas masking

    cost = pl.CostEstimate(
        flops=4 * M * D_IN * D_HID,                      # two matmuls
        transcendentals=M * D_HID,                       # one tanh/erf per hidden
        bytes_accessed=(x2d.size * x2d.dtype.itemsize
                        + w1.size * 2 + w2.size * 2
                        + b1.size * 4 + b2.size * 4
                        + M * D_IN * out_dtype.itemsize),
    )

    return pl.pallas_call(
        functools.partial(mlp_kernel, exact_gelu=exact_gelu, hc=hc),
        out_shape=jax.ShapeDtypeStruct((M, D_IN), out_dtype),
        grid_spec=pltpu.PrefetchScalarGridSpec(
            num_scalar_prefetch=0,
            grid=(n_tiles,),
            in_specs=[
                pl.BlockSpec((tm, D_IN), lambda i: (i, 0)),   # x row tile
                _resident_spec((D_IN, D_HID)),                # W1 (resident)
                _resident_spec((1, D_HID)),                   # b1
                _resident_spec((D_HID, D_IN)),                # W2 (resident)
                _resident_spec((1, D_IN)),                    # b2
            ],
            out_specs=pl.BlockSpec((tm, D_IN), lambda i: (i, 0)),
            scratch_shapes=[pltpu.VMEM((tm, D_IN), jnp.float32)],  # f32 accumulator
        ),
        compiler_params=pltpu.CompilerParams(
            dimension_semantics=("parallel",),
            vmem_limit_bytes=48 * 1024 * 1024,   # safe on v7x (64 MiB/TC physical)
        ),
        cost_estimate=cost,
    )(x2d, w1, b1, w2, b2)


def prepare_params(w1, b1, w2, b2):
    """One-time conversion to the kernel's resident dtypes/layout.

    Call this once per parameter set and reuse the result: it avoids paying a
    ~19 MiB f32->bf16 HBM pass for the weights on every forward call."""
    return (jnp.asarray(w1, jnp.bfloat16),
            jnp.asarray(b1, jnp.float32).reshape(1, D_HID),
            jnp.asarray(w2, jnp.bfloat16),
            jnp.asarray(b2, jnp.float32).reshape(1, D_IN))


def mlp_forward(x, w1, b1, w2, b2, *, tm=None, hc=1024, exact_gelu=False,
                out_dtype=None):
    """x: (B, N, 768) -> (B, N, 768).

    Weights should be pre-converted once with `prepare_params` (bf16 W1/W2,
    (1, D) f32 biases); raw f32 params are accepted but converted per call."""
    B, N, D = x.shape
    assert D == D_IN
    if (w1.dtype != jnp.bfloat16 or w2.dtype != jnp.bfloat16
            or b1.shape != (1, D_HID) or b2.shape != (1, D_IN)):
        # Slow path (per-call cast); prefer calling prepare_params once outside.
        w1, b1, w2, b2 = prepare_params(w1, b1, w2, b2)

    M = B * N
    if tm is None:
        tm = _choose_tm(M)
    assert tm > 0 and tm % 8 == 0, "row tile must be a positive multiple of 8"
    assert D_HID % hc == 0 and hc % 128 == 0, "hidden chunk must divide 3072, x128"

    if out_dtype is None:
        out_dtype = x.dtype
    out_dtype = jax.dtypes.canonicalize_dtype(out_dtype)

    out2d = _mlp_pallas(x.reshape(M, D_IN), w1, b1, w2, b2,
                        tm=tm, hc=hc, exact_gelu=exact_gelu, out_dtype=out_dtype)
    return out2d.reshape(B, N, D_IN)


def init_params(key):
    """Deterministic init matching the module's _init_weights:
    xavier_uniform_ for weights, normal(std=1e-6) for biases (f32)."""
    k1, k2, k3, k4 = jax.random.split(key, 4)
    lim1 = (6.0 / (D_IN + D_HID)) ** 0.5
    lim2 = (6.0 / (D_HID + D_IN)) ** 0.5
    # Stored directly in (in, out) layout used by the kernel (x @ W).
    w1 = jax.random.uniform(k1, (D_IN, D_HID), jnp.float32, -lim1, lim1)
    w2 = jax.random.uniform(k2, (D_HID, D_IN), jnp.float32, -lim2, lim2)
    b1 = 1e-6 * jax.random.normal(k3, (D_HID,), jnp.float32)
    b2 = 1e-6 * jax.random.normal(k4, (D_IN,), jnp.float32)
    return w1, b1, w2, b2


def mlp_reference(x, w1, b1, w2, b2, *, match_kernel=False):
    if match_kernel:
        # Same precision path as the kernel (bf16 operands, f32 acc, tanh GELU).
        xb = x.reshape(-1, D_IN).astype(jnp.bfloat16)
        h = jnp.dot(xb, w1.astype(jnp.bfloat16),
                    preferred_element_type=jnp.float32) + b1
        h = _gelu_tanh(h)
        o = jnp.dot(h.astype(jnp.bfloat16), w2.astype(jnp.bfloat16),
                    preferred_element_type=jnp.float32) + b2
        return o.reshape(x.shape).astype(x.dtype)
    # Exact f32 / erf reference (PyTorch semantics).
    h = jnp.einsum("bnd,dh->bnh", x, w1,
                   preferred_element_type=jnp.float32) + b1
    h = _gelu_exact(h)
    o = jnp.einsum("bnh,hd->bnd", h, w2,
                   preferred_element_type=jnp.float32) + b2
    return o


if __name__ == "__main__":
    key = jax.random.PRNGKey(0)
    kx, kp = jax.random.split(key)

    # small shapes: batch=2, seq=8, feature dim fixed at 768 by the module
    B, N = 2, 8
    x = jax.random.normal(kx, (B, N, D_IN), jnp.float32)
    w1, b1, w2, b2 = init_params(kp)                 # PyTorch-style f32 init
    params = prepare_params(w1, b1, w2, b2)          # one-time bf16 conversion

    out = mlp_forward(x, *params)
    out = jax.block_until_ready(out)
    assert out.shape == (B, N, D_IN)

    # Tight check against a reference using the kernel's precision path ...
    ref_match = mlp_reference(x, w1, b1, w2, b2, match_kernel=True)
    assert jnp.allclose(out, ref_match, atol=2e-3, rtol=2e-3), \
        "mismatch vs matched-precision reference"
    # ... and a sanity check against the exact f32/erf (PyTorch) reference,
    # with tolerance relaxed for bf16 matmuls + tanh-GELU approximation.
    ref_exact = mlp_reference(x, w1, b1, w2, b2, match_kernel=False)
    assert jnp.allclose(out, ref_exact, atol=8e-2, rtol=8e-2), \
        "mismatch vs exact f32 reference"

    print("KERNEL_OK")
</pallas_src>

<mosaic_0001>
module attributes {stable_mosaic.version = 11 : i64} {
  func.func @mlp_kernel(%arg0: i32, %arg1: memref<16x768xf32, #tpu.memory_space<vmem>>, %arg2: memref<768x3072xbf16, #tpu.memory_space<vmem>>, %arg3: memref<1x3072xf32, #tpu.memory_space<vmem>>, %arg4: memref<3072x768xbf16, #tpu.memory_space<vmem>>, %arg5: memref<1x768xf32, #tpu.memory_space<vmem>>, %arg6: memref<16x768xf32, #tpu.memory_space<vmem>>, %arg7: memref<16x768xf32, #tpu.memory_space<vmem>>) attributes {dimension_semantics = [#tpu.dimension_semantics<parallel>], iteration_bounds = array<i64: 1>, scalar_prefetch = 0 : i64, scratch_operands = 1 : i64, tpu.core_type = #tpu.core_type<tc>, window_params = [{transform_indices = @transform_0, window_bounds = array<i64: 16, 768>}, {pipeline_mode = #tpu.pipeline_mode<synchronous>, transform_indices = @transform_1, window_bounds = array<i64: 768, 3072>}, {pipeline_mode = #tpu.pipeline_mode<synchronous>, transform_indices = @transform_2, window_bounds = array<i64: 1, 3072>}, {pipeline_mode = #tpu.pipeline_mode<synchronous>, transform_indices = @transform_3, window_bounds = array<i64: 3072, 768>}, {pipeline_mode = #tpu.pipeline_mode<synchronous>, transform_indices = @transform_4, window_bounds = array<i64: 1, 768>}, {transform_indices = @transform_5, window_bounds = array<i64: 16, 768>}]} {
    %c0 = arith.constant 0 : index
    %c0_0 = arith.constant 0 : index
    %0 = vector.load %arg1[%c0, %c0_0] : memref<16x768xf32, #tpu.memory_space<vmem>>, vector<16x768xf32>
    %1 = arith.truncf %0 : vector<16x768xf32> to vector<16x768xbf16>
    %c0_1 = arith.constant 0 : index
    %c0_2 = arith.constant 0 : index
    %2 = vector.load %arg2[%c0_1, %c0_2] : memref<768x3072xbf16, #tpu.memory_space<vmem>>, vector<768x1024xbf16>
    %cst = arith.constant dense<0.000000e+00> : vector<16x1024xf32>
    %3 = tpu.matmul %1, %2, %cst {dimension_numbers = #tpu.dot_dimension_numbers<[1], [0], [0], [1], [0, 0, 1, 1], [], []>} : vector<16x768xbf16>, vector<768x1024xbf16>, vector<16x1024xf32> -> vector<16x1024xf32>
    %c0_3 = arith.constant 0 : index
    %c0_4 = arith.constant 0 : index
    %4 = vector.load %arg3[%c0_3, %c0_4] : memref<1x3072xf32, #tpu.memory_space<vmem>>, vector<1x1024xf32>
    %5 = vector.broadcast %4 : vector<1x1024xf32> to vector<16x1024xf32>
    %6 = arith.addf %3, %5 : vector<16x1024xf32>
    %cst_5 = arith.constant 5.000000e-01 : f32
    %7 = vector.broadcast %cst_5 : f32 to vector<16x1024xf32>
    %8 = arith.mulf %7, %6 : vector<16x1024xf32>
    %cst_6 = arith.constant 4.471500e-02 : f32
    %9 = vector.broadcast %cst_6 : f32 to vector<16x1024xf32>
    %10 = arith.mulf %9, %6 : vector<16x1024xf32>
    %11 = arith.mulf %10, %6 : vector<16x1024xf32>
    %12 = arith.mulf %11, %6 : vector<16x1024xf32>
    %13 = arith.addf %6, %12 : vector<16x1024xf32>
    %cst_7 = arith.constant 0.797884583 : f32
    %14 = vector.broadcast %cst_7 : f32 to vector<16x1024xf32>
    %15 = arith.mulf %14, %13 : vector<16x1024xf32>
    %16 = math.tanh %15 : vector<16x1024xf32>
    %cst_8 = arith.constant 1.000000e+00 : f32
    %17 = vector.broadcast %cst_8 : f32 to vector<16x1024xf32>
    %18 = arith.addf %17, %16 : vector<16x1024xf32>
    %19 = arith.mulf %8, %18 : vector<16x1024xf32>
    %20 = arith.truncf %19 : vector<16x1024xf32> to vector<16x1024xbf16>
    %c0_9 = arith.constant 0 : index
    %c0_10 = arith.constant 0 : index
    %21 = vector.load %arg4[%c0_9, %c0_10] : memref<3072x768xbf16, #tpu.memory_space<vmem>>, vector<1024x768xbf16>
    %cst_11 = arith.constant dense<0.000000e+00> : vector<16x768xf32>
    %22 = tpu.matmul %20, %21, %cst_11 {dimension_numbers = #tpu.dot_dimension_numbers<[1], [0], [0], [1], [0, 0, 1, 1], [], []>} : vector<16x1024xbf16>, vector<1024x768xbf16>, vector<16x768xf32> -> vector<16x768xf32>
    %c0_12 = arith.constant 0 : index
    %c0_13 = arith.constant 0 : index
    %23 = vector.load %arg7[%c0_12, %c0_13] : memref<16x768xf32, #tpu.memory_space<vmem>>, vector<16x768xf32>
    tpu.vector_store %arg7[%c0_12, %c0_13], %22 {strides = array<i32>} : memref<16x768xf32, #tpu.memory_space<vmem>>, vector<16x768xf32>,
    %c0_14 = arith.constant 0 : index
    %c1024 = arith.constant 1024 : index
    %24 = vector.load %arg2[%c0_14, %c1024] : memref<768x3072xbf16, #tpu.memory_space<vmem>>, vector<768x1024xbf16>
    %cst_15 = arith.constant dense<0.000000e+00> : vector<16x1024xf32>
    %25 = tpu.matmul %1, %24, %cst_15 {dimension_numbers = #tpu.dot_dimension_numbers<[1], [0], [0], [1], [0, 0, 1, 1], [], []>} : vector<16x768xbf16>, vector<768x1024xbf16>, vector<16x1024xf32> -> vector<16x1024xf32>
    %c0_16 = arith.constant 0 : index
    %c1024_17 = arith.constant 1024 : index
    %26 = vector.load %arg3[%c0_16, %c1024_17] : memref<1x3072xf32, #tpu.memory_space<vmem>>, vector<1x1024xf32>
    %27 = vector.broadcast %26 : vector<1x1024xf32> to vector<16x1024xf32>
    %28 = arith.addf %25, %27 : vector<16x1024xf32>
    %cst_18 = arith.constant 5.000000e-01 : f32
    %29 = vector.broadcast %cst_18 : f32 to vector<16x1024xf32>
    %30 = arith.mulf %29, %28 : vector<16x1024xf32>
    %cst_19 = arith.constant 4.471500e-02 : f32
    %31 = vector.broadcast %cst_19 : f32 to vector<16x1024xf32>
    %32 = arith.mulf %31, %28 : vector<16x1024xf32>
    %33 = arith.mulf %32, %28 : vector<16x1024xf32>
    %34 = arith.mulf %33, %28 : vector<16x1024xf32>
    %35 = arith.addf %28, %34 : vector<16x1024xf32>
    %cst_20 = arith.constant 0.797884583 : f32
    %36 = vector.broadcast %cst_20 : f32 to vector<16x1024xf32>
    %37 = arith.mulf %36, %35 : vector<16x1024xf32>
    %38 = math.tanh %37 : vector<16x1024xf32>
    %cst_21 = arith.constant 1.000000e+00 : f32
    %39 = vector.broadcast %cst_21 : f32 to vector<16x1024xf32>
    %40 = arith.addf %39, %38 : vector<16x1024xf32>
    %41 = arith.mulf %30, %40 : vector<16x1024xf32>
    %42 = arith.truncf %41 : vector<16x1024xf32> to vector<16x1024xbf16>
    %c1024_22 = arith.constant 1024 : index
    %c0_23 = arith.constant 0 : index
    %43 = vector.load %arg4[%c1024_22, %c0_23] : memref<3072x768xbf16, #tpu.memory_space<vmem>>, vector<1024x768xbf16>
    %cst_24 = arith.constant dense<0.000000e+00> : vector<16x768xf32>
    %44 = tpu.matmul %42, %43, %cst_24 {dimension_numbers = #tpu.dot_dimension_numbers<[1], [0], [0], [1], [0, 0, 1, 1], [], []>} : vector<16x1024xbf16>, vector<1024x768xbf16>, vector<16x768xf32> -> vector<16x768xf32>
    %c0_25 = arith.constant 0 : index
    %c0_26 = arith.constant 0 : index
    %45 = vector.load %arg7[%c0_25, %c0_26] : memref<16x768xf32, #tpu.memory_space<vmem>>, vector<16x768xf32>
    %46 = arith.addf %45, %44 : vector<16x768xf32>
    %c0_27 = arith.constant 0 : index
    %c0_28 = arith.constant 0 : index
    %47 = vector.load %arg7[%c0_27, %c0_28] : memref<16x768xf32, #tpu.memory_space<vmem>>, vector<16x768xf32>
    tpu.vector_store %arg7[%c0_27, %c0_28], %46 {strides = array<i32>} : memref<16x768xf32, #tpu.memory_space<vmem>>, vector<16x768xf32>,
    %c0_29 = arith.constant 0 : index
    %c2048 = arith.constant 2048 : index
    %48 = vector.load %arg2[%c0_29, %c2048] : memref<768x3072xbf16, #tpu.memory_space<vmem>>, vector<768x1024xbf16>
    %cst_30 = arith.constant dense<0.000000e+00> : vector<16x1024xf32>
    %49 = tpu.matmul %1, %48, %cst_30 {dimension_numbers = #tpu.dot_dimension_numbers<[1], [0], [0], [1], [0, 0, 1, 1], [], []>} : vector<16x768xbf16>, vector<768x1024xbf16>, vector<16x1024xf32> -> vector<16x1024xf32>
    %c0_31 = arith.constant 0 : index
    %c2048_32 = arith.constant 2048 : index
    %50 = vector.load %arg3[%c0_31, %c2048_32] : memref<1x3072xf32, #tpu.memory_space<vmem>>, vector<1x1024xf32>
    %51 = vector.broadcast %50 : vector<1x1024xf32> to vector<16x1024xf32>
    %52 = arith.addf %49, %51 : vector<16x1024xf32>
    %cst_33 = arith.constant 5.000000e-01 : f32
    %53 = vector.broadcast %cst_33 : f32 to vector<16x1024xf32>
    %54 = arith.mulf %53, %52 : vector<16x1024xf32>
    %cst_34 = arith.constant 4.471500e-02 : f32
    %55 = vector.broadcast %cst_34 : f32 to vector<16x1024xf32>
    %56 = arith.mulf %55, %52 : vector<16x1024xf32>
    %57 = arith.mulf %56, %52 : vector<16x1024xf32>
    %58 = arith.mulf %57, %52 : vector<16x1024xf32>
    %59 = arith.addf %52, %58 : vector<16x1024xf32>
    %cst_35 = arith.constant 0.797884583 : f32
    %60 = vector.broadcast %cst_35 : f32 to vector<16x1024xf32>
    %61 = arith.mulf %60, %59 : vector<16x1024xf32>
    %62 = math.tanh %61 : vector<16x1024xf32>
    %cst_36 = arith.constant 1.000000e+00 : f32
    %63 = vector.broadcast %cst_36 : f32 to vector<16x1024xf32>
    %64 = arith.addf %63, %62 : vector<16x1024xf32>
    %65 = arith.mulf %54, %64 : vector<16x1024xf32>
    %66 = arith.truncf %65 : vector<16x1024xf32> to vector<16x1024xbf16>
    %c2048_37 = arith.constant 2048 : index
    %c0_38 = arith.constant 0 : index
    %67 = vector.load %arg4[%c2048_37, %c0_38] : memref<3072x768xbf16, #tpu.memory_space<vmem>>, vector<1024x768xbf16>
    %cst_39 = arith.constant dense<0.000000e+00> : vector<16x768xf32>
    %68 = tpu.matmul %66, %67, %cst_39 {dimension_numbers = #tpu.dot_dimension_numbers<[1], [0], [0], [1], [0, 0, 1, 1], [], []>} : vector<16x1024xbf16>, vector<1024x768xbf16>, vector<16x768xf32> -> vector<16x768xf32>
    %c0_40 = arith.constant 0 : index
    %c0_41 = arith.constant 0 : index
    %69 = vector.load %arg7[%c0_40, %c0_41] : memref<16x768xf32, #tpu.memory_space<vmem>>, vector<16x768xf32>
    %70 = arith.addf %69, %68 : vector<16x768xf32>
    %c0_42 = arith.constant 0 : index
    %c0_43 = arith.constant 0 : index
    %71 = vector.load %arg7[%c0_42, %c0_43] : memref<16x768xf32, #tpu.memory_space<vmem>>, vector<16x768xf32>
    tpu.vector_store %arg7[%c0_42, %c0_43], %70 {strides = array<i32>} : memref<16x768xf32, #tpu.memory_space<vmem>>, vector<16x768xf32>,
    %c0_44 = arith.constant 0 : index
    %c0_45 = arith.constant 0 : index
    %72 = vector.load %arg7[%c0_44, %c0_45] : memref<16x768xf32, #tpu.memory_space<vmem>>, vector<16x768xf32>
    %c0_46 = arith.constant 0 : index
    %c0_47 = arith.constant 0 : index
    %73 = vector.load %arg5[%c0_46, %c0_47] : memref<1x768xf32, #tpu.memory_space<vmem>>, vector<1x768xf32>
    %74 = vector.broadcast %73 : vector<1x768xf32> to vector<16x768xf32>
    %75 = arith.addf %72, %74 : vector<16x768xf32>
    %c0_48 = arith.constant 0 : index
    %c0_49 = arith.constant 0 : index
    %76 = vector.load %arg6[%c0_48, %c0_49] : memref<16x768xf32, #tpu.memory_space<vmem>>, vector<16x768xf32>
    tpu.vector_store %arg6[%c0_48, %c0_49], %75 {strides = array<i32>} : memref<16x768xf32, #tpu.memory_space<vmem>>, vector<16x768xf32>,
    return
  }
  func.func @transform_0(%arg0: i32) -> (i32, i32) {
    %c0_i32 = arith.constant 0 : i32
    %c0_i32_0 = arith.constant 0 : i32
    return %arg0, %c0_i32 : i32, i32
  }
  func.func @transform_1(%arg0: i32) -> (i32, i32) {
    %c0_i32 = arith.constant 0 : i32
    %c0_i32_0 = arith.constant 0 : i32
    %c0_i32_1 = arith.constant 0 : i32
    return %c0_i32, %c0_i32_0 : i32, i32
  }
  func.func @transform_2(%arg0: i32) -> (i32, i32) {
    %c0_i32 = arith.constant 0 : i32
    %c0_i32_0 = arith.constant 0 : i32
    %c0_i32_1 = arith.constant 0 : i32
    return %c0_i32, %c0_i32_0 : i32, i32
  }
  func.func @transform_3(%arg0: i32) -> (i32, i32) {
    %c0_i32 = arith.constant 0 : i32
    %c0_i32_0 = arith.constant 0 : i32
    %c0_i32_1 = arith.constant 0 : i32
    return %c0_i32, %c0_i32_0 : i32, i32
  }
  func.func @transform_4(%arg0: i32) -> (i32, i32) {
    %c0_i32 = arith.constant 0 : i32
    %c0_i32_0 = arith.constant 0 : i32
    %c0_i32_1 = arith.constant 0 : i32
    return %c0_i32, %c0_i32_0 : i32, i32
  }
  func.func @transform_5(%arg0: i32) -> (i32, i32) {
    %c0_i32 = arith.constant 0 : i32
    %c0_i32_0 = arith.constant 0 : i32
    return %arg0, %c0_i32 : i32, i32
  }
}

</mosaic_0001>

<bundles_post_ra>
// kernel: _mlp_pallas.1
= control target key start
LH: loop header
LB: loop body
LE: loop exit
PB: predicated region body
PF: predicated region fallthrough
CT: control target
= control target key end

     0   :  { %10 = vsyncpa [#allocation4], 0  ;;  %s22944_s0 = inlined_call_operand.hbm [shape: f32[16,768], index: 0, kind: input, shape index: {}]   ;;  %s22945_s1 = inlined_call_operand.hbm [shape: bf16[768,3072], index: 1, kind: input, shape index: {}]   ;;  %s22946_s2 = inlined_call_operand.hbm [shape: f32[1,3072], index: 2, kind: input, shape index: {}]   ;;  %s22947_s3 = inlined_call_operand.hbm [shape: bf16[3072,768], index: 3, kind: input, shape index: {}]   ;;  %s22948_s4 = inlined_call_operand.hbm [shape: f32[1,768], index: 4, kind: input, shape index: {}]   ;;  %s22949_s5 = inlined_call_operand.hbm [shape: f32[16,768], index: 5, kind: output, shape index: {}]  }
   0x1   :  { %11 = vsyncpa [#allocation7], 0 }
   0x2   :  { %12 = vsyncpa [#allocation10], 0 }
   0x3   :  { %13 = vsyncpa [#allocation5], 0  ;;  %s22335_s18 = smov [#allocation6]   ;;  %s22195_s22 = scalar_lea.hbm %s22945_s1, 147456 }
   0x4   :  { %s31_s19 = sshll.u32 %s22335_s18, 4  ;;  %p22196_p0 = scmp.ne.s32.totalorder %s22945_s1, %s22195_s22  ;;  %s32_s19 = int_to_ptr.vmem [resolvable:$true] %s31_s19 }
   0x5   :  { %p22199_p1 = scmp.lt.u32.totalorder %s22195_s22, %s22945_s1 }
   0x7   :  { %p22201_p2 = pnand %p22199_p1, %p22196_p0 }
   0x9   :  { %22204 = shalt.err (!%p22201_p2)
}
   0xa   :  { %s22205_s27 = scalar_lea.vmem %s32_s19, 147456  ;;  %p22210_p4 = scmp.lt.s32.totalorder %s32_s19, %s32_s19 }
   0xb   :  { %p22206_p3 = scmp.ne.s32.totalorder %s32_s19, %s22205_s27  ;;  %p22211_p5 = scmp.lt.s32.totalorder %s22205_s27, %s22205_s27 }
   0xd   :  { %p22212_p6 = por %p22211_p5, %p22210_p4 }
   0xf   :  { %p22213_p7 = pnand %p22212_p6, %p22206_p3 }
  0x11   :  { %22216 = shalt.err (!%p22213_p7)
}
  0x12   :  { %s22336_s28 = smov 1536   ;;  %s22337_s29 = smov 96  }
  0x13   :  { %37 = dma.hbm_to_vmem [thread:$0]  %s22945_s1, 147456, %s32_s19, [#allocation7], %s22336_s28, %s22336_s28, %s22337_s29  }
  0x14   :  { %s22338_s7 = smov [#allocation9]   ;;  %s22217_s11 = scalar_lea.hbm %s22947_s3, 147456 }
  0x15   :  { %s53_s8 = sshll.u32 %s22338_s7, 4  ;;  %p22218_p8 = scmp.ne.s32.totalorder %s22947_s3, %s22217_s11  ;;  %s54_s8 = int_to_ptr.vmem [resolvable:$true] %s53_s8 }
  0x16   :  { %p22221_p9 = scmp.lt.u32.totalorder %s22217_s11, %s22947_s3 }
  0x18   :  { %p22223_p10 = pnand %p22221_p9, %p22218_p8 }
  0x1a   :  { %22226 = shalt.err (!%p22223_p10)
}
  0x1b   :  { %s22227_s16 = scalar_lea.vmem %s54_s8, 147456  ;;  %p22232_p12 = scmp.lt.s32.totalorder %s54_s8, %s54_s8 }
  0x1c   :  { %p22228_p11 = scmp.ne.s32.totalorder %s54_s8, %s22227_s16  ;;  %p22233_p13 = scmp.lt.s32.totalorder %s22227_s16, %s22227_s16 }
  0x1e   :  { %p22234_p0 = por %p22233_p13, %p22232_p12 }
  0x20   :  { %p22235_p1 = pnand %p22234_p0, %p22228_p11 }
  0x22   :  { %22238 = shalt.err (!%p22235_p1)
}
  0x23   :  { %s22339_s1 = smov 384   ;;  %s22340_s17 = smov 24  }
  0x24   :  { %59 = dma.hbm_to_vmem [thread:$0]  %s22947_s3, 147456, %s54_s8, [#allocation10], %s22339_s1, %s22339_s1, %s22340_s17  }
  0x25   :  { %s22341_s20 = smov [#allocation3]   ;;  %s22239_s24 = scalar_lea.hbm %s22944_s0, 1536 }
  0x26   :  { %s19_s21 = sshll.u32 %s22341_s20, 4  ;;  %p22240_p2 = scmp.ne.s32.totalorder %s22944_s0, %s22239_s24  ;;  %s20_s21 = int_to_ptr.vmem [resolvable:$true] %s19_s21 }
  0x27   :  { %p22243_p3 = scmp.lt.u32.totalorder %s22239_s24, %s22944_s0 }
  0x29   :  { %p22245_p4 = pnand %p22243_p3, %p22240_p2 }
  0x2b   :  { %22248 = shalt.err (!%p22245_p4)
}
  0x2c   :  { %s22249_s29 = scalar_lea.vmem %s20_s21, 1536  ;;  %p22254_p6 = scmp.lt.s32.totalorder %s20_s21, %s20_s21 }
  0x2d   :  { %p22250_p5 = scmp.ne.s32.totalorder %s20_s21, %s22249_s29  ;;  %p22255_p7 = scmp.lt.s32.totalorder %s22249_s29, %s22249_s29 }
  0x2f   :  { %p22256_p8 = por %p22255_p7, %p22254_p6 }
  0x31   :  { %p22257_p9 = pnand %p22256_p8, %p22250_p5 }
  0x33   :  { %22260 = shalt.err (!%p22257_p9)
}
  0x34   :  { %s22342_s3 = smov 768   ;;  %s22343_s30 = smov 48  }
  0x35   :  { %25 = dma.hbm_to_vmem [thread:$0]  %s22944_s0, 1536, %s20_s21, [#allocation4], %s22342_s3, %s22342_s3, %s22343_s30  }
  0x36   :  { %s22344_s8 = smov [#allocation8]   ;;  %s22345_s10 = smov [#allocation11]  }
  0x37   :  { %s44_s9 = sshll.u32 %s22344_s8, 4  ;;  %s66_s11 = sshll.u32 %s22345_s10, 4  ;;  %s45_s9 = int_to_ptr.vmem [resolvable:$true] %s44_s9  ;;  %s67_s11 = int_to_ptr.vmem [resolvable:$true] %s66_s11 }
  0x38   :  { %s22261_s14 = scalar_lea.hbm %s22946_s2, 384 }
  0x39   :  { %p22262_p10 = scmp.ne.s32.totalorder %s22946_s2, %s22261_s14  ;;  %p22265_p11 = scmp.lt.u32.totalorder %s22261_s14, %s22946_s2 }
  0x3b   :  { %p22267_p12 = pnand %p22265_p11, %p22262_p10 }
  0x3d   :  { %22270 = shalt.err (!%p22267_p12)
}
  0x3e   :  { %s22271_s0 = scalar_lea.vmem %s45_s9, 384  ;;  %p22276_p0 = scmp.lt.s32.totalorder %s45_s9, %s45_s9 }
  0x3f   :  { %p22272_p13 = scmp.ne.s32.totalorder %s45_s9, %s22271_s0  ;;  %p22277_p1 = scmp.lt.s32.totalorder %s22271_s0, %s22271_s0 }
  0x41   :  { %p22278_p2 = por %p22277_p1, %p22276_p0 }
  0x43   :  { %p22279_p3 = pnand %p22278_p2, %p22272_p13 }
  0x45   :  { %22282 = shalt.err (!%p22279_p3)
}
  0x46   :  { %47 = dma.hbm_to_vmem [thread:$0]  %s22946_s2, 384, %s45_s9, [#allocation7]  }
  0x47   :  { %s22283_s22 = scalar_lea.hbm %s22948_s4, 96 }
  0x48   :  { %p22284_p4 = scmp.ne.s32.totalorder %s22948_s4, %s22283_s22  ;;  %p22287_p5 = scmp.lt.u32.totalorder %s22283_s22, %s22948_s4 }
  0x4a   :  { %p22289_p6 = pnand %p22287_p5, %p22284_p4 }
  0x4c   :  { %22292 = shalt.err (!%p22289_p6)
}
  0x4d   :  { %s22293_s27 = scalar_lea.vmem %s67_s11, 96  ;;  %p22298_p8 = scmp.lt.s32.totalorder %s67_s11, %s67_s11 }
  0x4e   :  { %p22294_p7 = scmp.ne.s32.totalorder %s67_s11, %s22293_s27  ;;  %p22299_p9 = scmp.lt.s32.totalorder %s22293_s27, %s22293_s27 }
  0x50   :  { %p22300_p10 = por %p22299_p9, %p22298_p8 }
  0x52   :  { %p22301_p11 = pnand %p22300_p10, %p22294_p7 }
  0x54   :  { %22304 = shalt.err (!%p22301_p11)
}
  0x55   :  { %69 = dma.hbm_to_vmem [thread:$0]  %s22948_s4, 96, %s67_s11, [#allocation10]  }
  0x56   :  { %22327 = dma.done.wait [#allocation4], 1536  }
  0x57   :  { %22328 = vsyncadd [#allocation4], 4294965760 }
  0x58   :  { %22329 = dma.done.wait [#allocation7], 147840  }
  0x59   :  { %22330 = vsyncadd [#allocation7], 4294819456 }
  0x5a   :  { %22331 = dma.done.wait [#allocation10], 147552  }
  0x5b   :  { %22332 = vsyncadd [#allocation10], 4294819744  ;;  %v103_v0 = vld [vmem:[#allocation6] sm:$0xff]  ;;  %v86_v17 = vld [vmem:[#allocation3 + $0x8] sm:$0xff]  ;;  %s22346_s4 = smov [#allocation12]  }
  0x5c   :  { %v107_v1 = vld [vmem:[#allocation6 + $0x60] sm:$0xff]  ;;  %v92_v18 = vld [vmem:[#allocation3 + $0x38] sm:$0xff]  ;;  %s17762_s29 = sshll.u32 %s22346_s4, 4  ;;  %s17763_s29 = int_to_ptr.vmem [resolvable:$true] %s17762_s29 }
  0x5d   :  { %v111_v2 = vld [vmem:[#allocation6 + $0xc0] sm:$0xff]  ;;  %v17777_v3 = vcombine.high %v103_v0, %v107_v1  ;;  %v17776_v4 = vcombine.low %v103_v0, %v107_v1  ;;  %v22440_v20 = vpack.c.bf16 %v92_v18, %v86_v17  ;;  %v105_v0 = vld [vmem:[#allocation6 + $0x10] sm:$0xff]  ;;  %v88_v17 = vld [vmem:[#allocation3 + $0x18] sm:$0xff]  ;;  %s22305_s6 = scalar_lea.vmem %s17763_s29, 1536  ;;  %p22310_p13 = scmp.lt.s32.totalorder %s17763_s29, %s17763_s29 }
  0x5e   :  { %v115_v5 = vld [vmem:[#allocation6 + $0x120] sm:$0xff]  ;;  %v109_v1 = vld [vmem:[#allocation6 + $0x70] sm:$0xff]  ;;  %v94_v18 = vld [vmem:[#allocation3 + $0x48] sm:$0xff]  ;;  %p22306_p12 = scmp.ne.s32.totalorder %s17763_s29, %s22305_s6  ;;  %p22311_p0 = scmp.lt.s32.totalorder %s22305_s6, %s22305_s6 }
  0x5f   :  { %v17785_v6 = vcombine.high %v111_v2, %v115_v5  ;;  %v119_v7 = vld [vmem:[#allocation6 + $0x180] sm:$0xff]  ;;  %2449 = vmatprep.subr.bf16.mxu1 %v17777_v3  ;;  %v17784_v9 = vcombine.low %v111_v2, %v115_v5  ;;  %2481 = vmatprep.mubr.bf16.mxu1 %v22440_v20  ;;  %v17781_v2 = vcombine.high %v105_v0, %v109_v1 }
  0x60   :  { %v123_v8 = vld [vmem:[#allocation6 + $0x1e0] sm:$0xff]  ;;  %2450 = vmatpush1.bf16.msra.mxu1 %v17776_v4  ;;  %2739 = vmatprep.mubr.bf16.mxu0 %v22440_v20  ;;  %v17780_v3 = vcombine.low %v105_v0, %v109_v1  ;;  %v165_v0 = vld [vmem:[#allocation6 + $0x5b0] sm:$0xff]  ;;  %p22312_p1 = por %p22311_p0, %p22310_p13 }
  0x61   :  { %2451 = vmatprep.subr.bf16.mxu1 %v17785_v6  ;;  %v17793_v10 = vcombine.high %v119_v7, %v123_v8  ;;  %v127_v11 = vld [vmem:[#allocation6 + $0x240] sm:$0xff]  ;;  %v17792_v13 = vcombine.low %v119_v7, %v123_v8  ;;  %2707 = vmatprep.subr.bf16.mxu0 %v17781_v2  ;;  %v113_v8 = vld [vmem:[#allocation6 + $0xd0] sm:$0xff] }
  0x62   :  { %v131_v12 = vld [vmem:[#allocation6 + $0x2a0] sm:$0xff]  ;;  %2708 = vmatpush1.bf16.msra.mxu0 %v17780_v3  ;;  %p22313_p2 = pnand %p22312_p1, %p22306_p12 }
  0x63   :  { %v17801_v14 = vcombine.high %v127_v11, %v131_v12  ;;  %v135_v15 = vld [vmem:[#allocation6 + $0x300] sm:$0xff]  ;;  %v17800_v19 = vcombine.low %v127_v11, %v131_v12  ;;  %v91_v11 = vld [vmem:[#allocation3 + $0x30] sm:$0xff] }
  0x64   :  { %2452 = vmatpush1.bf16.msra.mxu1 %v17784_v9  ;;  %v139_v16 = vld [vmem:[#allocation6 + $0x360] sm:$0xff]  ;;  %v117_v9 = vld [vmem:[#allocation6 + $0x130] sm:$0xff] }
  0x65   :  { %2453 = vmatprep.subr.bf16.mxu1 %v17793_v10  ;;  %v17809_v21 = vcombine.high %v135_v15, %v139_v16  ;;  %v143_v22 = vld [vmem:[#allocation6 + $0x3c0] sm:$0xff]  ;;  %v17808_v24 = vcombine.low %v135_v15, %v139_v16  ;;  %v17789_v12 = vcombine.high %v113_v8, %v117_v9 }
  0x66   :  { %v147_v23 = vld [vmem:[#allocation6 + $0x420] sm:$0xff] }
  0x67   :  { %v17817_v25 = vcombine.high %v143_v22, %v147_v23  ;;  %v151_v26 = vld [vmem:[#allocation6 + $0x480] sm:$0xff]  ;;  %v17816_v28 = vcombine.low %v143_v22, %v147_v23  ;;  %2709 = vmatprep.subr.bf16.mxu0 %v17789_v12  ;;  %v125_v22 = vld [vmem:[#allocation6 + $0x1f0] sm:$0xff] }
  0x68   :  { %2454 = vmatpush1.bf16.msra.mxu1 %v17792_v13  ;;  %v155_v27 = vld [vmem:[#allocation6 + $0x4e0] sm:$0xff]  ;;  %v17788_v13 = vcombine.low %v113_v8, %v117_v9  ;;  %v173_v8 = vld [vmem:[#allocation6 + $0x670] sm:$0xff] }
  0x69   :  { %2455 = vmatprep.subr.bf16.mxu1 %v17801_v14  ;;  %v17825_v29 = vcombine.high %v151_v26, %v155_v27  ;;  %v159_v30 = vld [vmem:[#allocation6 + $0x540] sm:$0xff]  ;;  %v17824_v32 = vcombine.low %v151_v26, %v155_v27 }
  0x6a   :  { %v163_v31 = vld [vmem:[#allocation6 + $0x5a0] sm:$0xff]  ;;  %2710 = vmatpush1.bf16.msra.mxu0 %v17788_v13 }
  0x6b   :  { %v17833_v33 = vcombine.high %v159_v30, %v163_v31  ;;  %v167_v34 = vld [vmem:[#allocation6 + $0x600] sm:$0xff]  ;;  %v17832_v36 = vcombine.low %v159_v30, %v163_v31  ;;  %v129_v31 = vld [vmem:[#allocation6 + $0x250] sm:$0xff] }
  0x6c   :  { %2456 = vmatpush1.bf16.msra.mxu1 %v17800_v19  ;;  %v171_v35 = vld [vmem:[#allocation6 + $0x660] sm:$0xff] }
  0x6d   :  { %2457 = vmatprep.subr.bf16.mxu1 %v17809_v21  ;;  %v175_v37 = vld [vmem:[#allocation6 + $0x6c0] sm:$0xff]  ;;  %v17841_v38 = vcombine.high %v167_v34, %v171_v35  ;;  %v17840_v40 = vcombine.low %v167_v34, %v171_v35  ;;  %v121_v21 = vld [vmem:[#allocation6 + $0x190] sm:$0xff] }
  0x6e   :  { %v179_v39 = vld [vmem:[#allocation6 + $0x720] sm:$0xff]  ;;  %v17797_v23 = vcombine.high %v121_v21, %v125_v22 }
  0x6f   :  { %v183_v41 = vld [vmem:[#allocation6 + $0x780] sm:$0xff]  ;;  %v17849_v43 = vcombine.high %v175_v37, %v179_v39  ;;  %v17848_v44 = vcombine.low %v175_v37, %v179_v39  ;;  %v137_v39 = vld [vmem:[#allocation6 + $0x310] sm:$0xff] }
  0x70   :  { %2458 = vmatpush1.bf16.msra.mxu1 %v17808_v24  ;;  %v187_v42 = vld [vmem:[#allocation6 + $0x7e0] sm:$0xff]  ;;  %2711 = vmatprep.subr.bf16.mxu0 %v17797_v23 }
  0x71   :  { %2459 = vmatprep.subr.bf16.mxu1 %v17817_v25  ;;  %v191_v45 = vld [vmem:[#allocation6 + $0x840] sm:$0xff]  ;;  %v17857_v47 = vcombine.high %v183_v41, %v187_v42  ;;  %v17856_v48 = vcombine.low %v183_v41, %v187_v42  ;;  %v17796_v25 = vcombine.low %v121_v21, %v125_v22 }
  0x72   :  { %v195_v46 = vld [vmem:[#allocation6 + $0x8a0] sm:$0xff] }
  0x73   :  { %v199_v49 = vld [vmem:[#allocation6 + $0x900] sm:$0xff]  ;;  %v17865_v51 = vcombine.high %v191_v45, %v195_v46  ;;  %v17864_v52 = vcombine.low %v191_v45, %v195_v46  ;;  %2712 = vmatpush1.bf16.msra.mxu0 %v17796_v25  ;;  %v185_v25 = vld [vmem:[#allocation6 + $0x790] sm:$0xff] }
  0x74   :  { %2460 = vmatpush1.bf16.msra.mxu1 %v17816_v28  ;;  %v203_v50 = vld [vmem:[#allocation6 + $0x960] sm:$0xff]  ;;  %v22446_v28 = vpack.c.bf16 %v94_v18, %v88_v17 }
  0x75   :  { %2461 = vmatprep.subr.bf16.mxu1 %v17825_v29  ;;  %v207_v53 = vld [vmem:[#allocation6 + $0x9c0] sm:$0xff]  ;;  %v17873_v55 = vcombine.high %v199_v49, %v203_v50  ;;  %v17872_v56 = vcombine.low %v199_v49, %v203_v50 }
  0x76   :  { %v211_v54 = vld [vmem:[#allocation6 + $0xa20] sm:$0xff] }
  0x77   :  { %v215_v57 = vld [vmem:[#allocation6 + $0xa80] sm:$0xff]  ;;  %v17881_v59 = vcombine.high %v207_v53, %v211_v54  ;;  %v17880_v60 = vcombine.low %v207_v53, %v211_v54 }
  0x78   :  { %2462 = vmatpush1.bf16.msra.mxu1 %v17824_v32  ;;  %v219_v58 = vld [vmem:[#allocation6 + $0xae0] sm:$0xff]  ;;  %v133_v32 = vld [vmem:[#allocation6 + $0x2b0] sm:$0xff] }
  0x79   :  { %2463 = vmatprep.subr.bf16.mxu1 %v17833_v33  ;;  %v223_v61 = vld [vmem:[#allocation6 + $0xb40] sm:$0xff]  ;;  %v17889_v63 = vcombine.high %v215_v57, %v219_v58  ;;  %v17888_v4 = vcombine.low %v215_v57, %v219_v58  ;;  %v17805_v33 = vcombine.high %v129_v31, %v133_v32  ;;  %v17804_v34 = vcombine.low %v129_v31, %v133_v32 }
  0x7a   :  { %v227_v62 = vld [vmem:[#allocation6 + $0xba0] sm:$0xff] }
  0x7b   :  { %v231_v5 = vld [vmem:[#allocation6 + $0xc00] sm:$0xff]  ;;  %v17897_v7 = vcombine.high %v223_v61, %v227_v62  ;;  %v17896_v14 = vcombine.low %v223_v61, %v227_v62  ;;  %2713 = vmatprep.subr.bf16.mxu0 %v17805_v33 }
  0x7c   :  { %2464 = vmatpush1.bf16.msra.mxu1 %v17832_v36  ;;  %v235_v6 = vld [vmem:[#allocation6 + $0xc60] sm:$0xff]  ;;  %2714 = vmatpush1.bf16.msra.mxu0 %v17804_v34  ;;  %v193_v34 = vld [vmem:[#allocation6 + $0x850] sm:$0xff] }
  0x7d   :  { %2465 = vmatprep.subr.bf16.mxu1 %v17841_v38  ;;  %v85_v10 = vld [vmem:[#allocation3] sm:$0xff]  ;;  %v17905_v19 = vcombine.high %v231_v5, %v235_v6  ;;  %v17904_v26 = vcombine.low %v231_v5, %v235_v6 }
  0x7e   :  { %v239_v15 = vld [vmem:[#allocation6 + $0xcc0] sm:$0xff]  ;;  %v22444_v24 = vpack.c.bf16 %v91_v11, %v85_v10 }
  0x7f   :  { %v243_v16 = vld [vmem:[#allocation6 + $0xd20] sm:$0xff] }
  0x80   :  { %2466 = vmatpush1.bf16.msra.mxu1 %v17840_v40  ;;  %v247_v27 = vld [vmem:[#allocation6 + $0xd80] sm:$0xff]  ;;  %v17913_v29 = vcombine.high %v239_v15, %v243_v16  ;;  %v17912_v35 = vcombine.low %v239_v15, %v243_v16  ;;  %v141_v40 = vld [vmem:[#allocation6 + $0x370] sm:$0xff] }
  0x81   :  { %2467 = vmatprep.subr.bf16.mxu1 %v17849_v43  ;;  %v251_v30 = vld [vmem:[#allocation6 + $0xde0] sm:$0xff]  ;;  %v17813_v41 = vcombine.high %v137_v39, %v141_v40  ;;  %v17812_v42 = vcombine.low %v137_v39, %v141_v40  ;;  %v177_v15 = vld [vmem:[#allocation6 + $0x6d0] sm:$0xff] }
  0x82   :  { %v255_v36 = vld [vmem:[#allocation6 + $0xe40] sm:$0xff]  ;;  %v17921_v38 = vcombine.high %v247_v27, %v251_v30  ;;  %v17920_v43 = vcombine.low %v247_v27, %v251_v30  ;;  %v181_v16 = vld [vmem:[#allocation6 + $0x730] sm:$0xff] }
  0x83   :  { %v259_v37 = vld [vmem:[#allocation6 + $0xea0] sm:$0xff]  ;;  %2715 = vmatprep.subr.bf16.mxu0 %v17813_v41  ;;  %v17853_v17 = vcombine.high %v177_v15, %v181_v16  ;;  %v17852_v18 = vcombine.low %v177_v15, %v181_v16 }
  0x84   :  { %2468 = vmatpush1.bf16.msra.mxu1 %v17848_v44  ;;  %v263_v44 = vld [vmem:[#allocation6 + $0xf00] sm:$0xff]  ;;  %v17929_v46 = vcombine.high %v255_v36, %v259_v37  ;;  %2716 = vmatpush1.bf16.msra.mxu0 %v17812_v42  ;;  %v201_v42 = vld [vmem:[#allocation6 + $0x910] sm:$0xff] }
  0x85   :  { %2469 = vmatprep.subr.bf16.mxu1 %v17857_v47  ;;  %v267_v45 = vld [vmem:[#allocation6 + $0xf60] sm:$0xff]  ;;  %v145_v47 = vld [vmem:[#allocation6 + $0x3d0] sm:$0xff] }
  0x86   :  { %v275_v53 = vld [vmem:[#allocation6 + $0x1020] sm:$0xff]  ;;  %v17937_v54 = vcombine.high %v263_v44, %v267_v45 }
  0x87   :  { %v283_v61 = vld [vmem:[#allocation6 + $0x10e0] sm:$0xff] }
  0x88   :  { %2470 = vmatpush1.bf16.msra.mxu1 %v17856_v48  ;;  %v149_v48 = vld [vmem:[#allocation6 + $0x430] sm:$0xff]  ;;  %v291_v5 = vld [vmem:[#allocation6 + $0x11a0] sm:$0xff] }
  0x89   :  { %2471 = vmatprep.subr.bf16.mxu1 %v17865_v51  ;;  %v17821_v49 = vcombine.high %v145_v47, %v149_v48  ;;  %v17820_v50 = vcombine.low %v145_v47, %v149_v48  ;;  %v17928_v51 = vcombine.low %v255_v36, %v259_v37  ;;  %v295_v12 = vld [vmem:[#allocation6 + $0x1200] sm:$0xff] }
  0x8a   :  { %v299_v13 = vld [vmem:[#allocation6 + $0x1260] sm:$0xff] }
  0x8b   :  { %2717 = vmatprep.subr.bf16.mxu0 %v17821_v49  ;;  %v303_v21 = vld [vmem:[#allocation6 + $0x12c0] sm:$0xff]  ;;  %v17969_v23 = vcombine.high %v295_v12, %v299_v13  ;;  %v17968_v30 = vcombine.low %v295_v12, %v299_v13 }
  0x8c   :  { %2472 = vmatpush1.bf16.msra.mxu1 %v17864_v52  ;;  %v271_v52 = vld [vmem:[#allocation6 + $0xfc0] sm:$0xff]  ;;  %2718 = vmatpush1.bf16.msra.mxu0 %v17820_v50  ;;  %v209_v50 = vld [vmem:[#allocation6 + $0x9d0] sm:$0xff] }
  0x8d   :  { %2473 = vmatprep.subr.bf16.mxu1 %v17873_v55  ;;  %v153_v55 = vld [vmem:[#allocation6 + $0x490] sm:$0xff]  ;;  %v17945_v62 = vcombine.high %v271_v52, %v275_v53  ;;  %v17944_v3 = vcombine.low %v271_v52, %v275_v53  ;;  %v307_v22 = vld [vmem:[#allocation6 + $0x1320] sm:$0xff] }
  0x8e   :  { %v311_v31 = vld [vmem:[#allocation6 + $0x1380] sm:$0xff]  ;;  %v17977_v33 = vcombine.high %v303_v21, %v307_v22 }
  0x8f   :  { %v315_v32 = vld [vmem:[#allocation6 + $0x13e0] sm:$0xff] }
  0x90   :  { %2474 = vmatpush1.bf16.msra.mxu1 %v17872_v56  ;;  %v157_v56 = vld [vmem:[#allocation6 + $0x4f0] sm:$0xff]  ;;  %v319_v39 = vld [vmem:[#allocation6 + $0x1440] sm:$0xff]  ;;  %v17985_v41 = vcombine.high %v311_v31, %v315_v32 }
  0x91   :  { %2475 = vmatprep.subr.bf16.mxu1 %v17881_v59  ;;  %v17829_v57 = vcombine.high %v153_v55, %v157_v56  ;;  %v17828_v58 = vcombine.low %v153_v55, %v157_v56  ;;  %v17936_v59 = vcombine.low %v263_v44, %v267_v45  ;;  %v323_v40 = vld [vmem:[#allocation6 + $0x14a0] sm:$0xff] }
  0x92   :  { %v327_v47 = vld [vmem:[#allocation6 + $0x1500] sm:$0xff]  ;;  %v17993_v49 = vcombine.high %v319_v39, %v323_v40 }
  0x93   :  { %2719 = vmatprep.subr.bf16.mxu0 %v17829_v57  ;;  %v331_v48 = vld [vmem:[#allocation6 + $0x1560] sm:$0xff] }
  0x94   :  { %2476 = vmatpush1.bf16.msra.mxu1 %v17880_v60  ;;  %v279_v60 = vld [vmem:[#allocation6 + $0x1080] sm:$0xff]  ;;  %2720 = vmatpush1.bf16.msra.mxu0 %v17828_v58  ;;  %v18001_v57 = vcombine.high %v327_v47, %v331_v48  ;;  %v217_v58 = vld [vmem:[#allocation6 + $0xa90] sm:$0xff] }
  0x95   :  { %2477 = vmatprep.subr.bf16.mxu1 %v17889_v63  ;;  %v161_v63 = vld [vmem:[#allocation6 + $0x550] sm:$0xff]  ;;  %v17953_v6 = vcombine.high %v279_v60, %v283_v61  ;;  %v17952_v11 = vcombine.low %v279_v60, %v283_v61  ;;  %v335_v55 = vld [vmem:[#allocation6 + $0x15c0] sm:$0xff] }
  0x96   :  { %v17837_v1 = vcombine.high %v161_v63, %v165_v0  ;;  %v17836_v2 = vcombine.low %v161_v63, %v165_v0  ;;  %v339_v56 = vld [vmem:[#allocation6 + $0x1620] sm:$0xff] }
  0x97   :  { %v343_v63 = vld [vmem:[#allocation6 + $0x1680] sm:$0xff] }
  0x98   :  { %2478 = vmatpush1.bf16.msra.mxu1 %v17888_v4  ;;  %v287_v4 = vld [vmem:[#allocation6 + $0x1140] sm:$0xff]  ;;  %2721 = vmatprep.subr.bf16.mxu0 %v17837_v1  ;;  %v18009_v1 = vcombine.high %v335_v55, %v339_v56 }
  0x99   :  { %2479 = vmatprep.subr.bf16.mxu1 %v17897_v7  ;;  %v169_v7 = vld [vmem:[#allocation6 + $0x610] sm:$0xff]  ;;  %2722 = vmatpush1.bf16.msra.mxu0 %v17836_v2  ;;  %v347_v0 = vld [vmem:[#allocation6 + $0x16e0] sm:$0xff] }
  0x9a   :  { %v17845_v9 = vcombine.high %v169_v7, %v173_v8  ;;  %v17844_v10 = vcombine.low %v169_v7, %v173_v8  ;;  %v225_v2 = vld [vmem:[#allocation6 + $0xb50] sm:$0xff]  ;;  %v351_v7 = vld [vmem:[#allocation6 + $0x1740] sm:$0xff] }
  0x9b   :  { %v355_v8 = vld [vmem:[#allocation6 + $0x17a0] sm:$0xff] }
  0x9c   :  { %2480 = vmatpush1.bf16.msra.mxu1 %v17896_v14  ;;  %2723 = vmatprep.subr.bf16.mxu0 %v17845_v9  ;;  %v17961_v14 = vcombine.high %v287_v4, %v291_v5  ;;  %v18017_v9 = vcombine.high %v343_v63, %v347_v0  ;;  %v359_v15 = vld [vmem:[#allocation6 + $0x1800] sm:$0xff] }
  0x9d   :  { %2492 = vmatprep.subr.bf16.mxu1 %v17905_v19  ;;  %2724 = vmatpush1.bf16.msra.mxu0 %v17844_v10  ;;  %v17960_v19 = vcombine.low %v287_v4, %v291_v5  ;;  %v233_v10 = vld [vmem:[#allocation6 + $0xc10] sm:$0xff]  ;;  %v363_v16 = vld [vmem:[#allocation6 + $0x1860] sm:$0xff] }
  0x9e   :  { %2725 = vmatprep.subr.bf16.mxu0 %v17853_v17  ;;  %v18025_v17 = vcombine.high %v351_v7, %v355_v8 }
  0x9f   :  { %2482 = vmatmul.mubr.bf16.vlgmr.msra.gmra.mrb[0].mxu1 %v22444_v24 }
  0xa0   :  { %2493 = vmatpush1.bf16.msra.mxu1 %v17904_v26  ;;  %2524 = vmatprep.mubr.bf16.mxu1 %v22446_v28  ;;  %v189_v26 = vld [vmem:[#allocation6 + $0x7f0] sm:$0xff] }
  0xa1   :  { %2494 = vmatprep.subr.bf16.mxu1 %v17913_v29  ;;  %2726 = vmatpush1.bf16.msra.mxu0 %v17852_v18  ;;  %v17861_v27 = vcombine.high %v185_v25, %v189_v26  ;;  %v17860_v29 = vcombine.low %v185_v25, %v189_v26  ;;  %v241_v18 = vld [vmem:[#allocation6 + $0xcd0] sm:$0xff]  ;;  %v18024_v26 = vcombine.low %v351_v7, %v355_v8  ;;  %v407_v8 = vld [vmem:[#allocation6 + $0x1c80] sm:$0xff] }
  0xa3   :  { %2727 = vmatprep.subr.bf16.mxu0 %v17861_v27  ;;  %v367_v27 = vld [vmem:[#allocation6 + $0x18c0] sm:$0xff] }
  0xa4   :  { %2495 = vmatpush1.bf16.msra.mxu1 %v17912_v35  ;;  %v197_v35 = vld [vmem:[#allocation6 + $0x8b0] sm:$0xff] }
  0xa5   :  { %2496 = vmatprep.subr.bf16.mxu1 %v17921_v38  ;;  %2728 = vmatpush1.bf16.msra.mxu0 %v17860_v29  ;;  %v17869_v36 = vcombine.high %v193_v34, %v197_v35  ;;  %v17868_v37 = vcombine.low %v193_v34, %v197_v35  ;;  %v17976_v38 = vcombine.low %v303_v21, %v307_v22  ;;  %v87_v21 = vld [vmem:[#allocation3 + $0x10] sm:$0xff]  ;;  %v93_v22 = vld [vmem:[#allocation3 + $0x40] sm:$0xff] }
  0xa6   :  { %v371_v29 = vld [vmem:[#allocation6 + $0x1920] sm:$0xff]  ;;  %v253_v34 = vld [vmem:[#allocation6 + $0xdf0] sm:$0xff] }
  0xa7   :  { %2729 = vmatprep.subr.bf16.mxu0 %v17869_v36  ;;  %v22452_v36 = vpack.c.bf16 %v93_v22, %v87_v21  ;;  %v301_v21 = vld [vmem:[#allocation6 + $0x1270] sm:$0xff] }
  0xa8   :  { %2497 = vmatpush1.bf16.msra.mxu1 %v17920_v43  ;;  %v205_v43 = vld [vmem:[#allocation6 + $0x970] sm:$0xff] }
  0xa9   :  { %2498 = vmatprep.subr.bf16.mxu1 %v17929_v46  ;;  %2730 = vmatpush1.bf16.msra.mxu0 %v17868_v37  ;;  %v17877_v44 = vcombine.high %v201_v42, %v205_v43  ;;  %v17876_v45 = vcombine.low %v201_v42, %v205_v43  ;;  %v17984_v46 = vcombine.low %v311_v31, %v315_v32  ;;  %v96_v31 = vld [vmem:[#allocation3 + $0x58] sm:$0xff]  ;;  %v257_v43 = vld [vmem:[#allocation6 + $0xe50] sm:$0xff] }
  0xaa   :  { %v18033_v32 = vcombine.high %v359_v15, %v363_v16  ;;  %v18041_v42 = vcombine.high %v367_v27, %v371_v29 }
  0xab   :  { %2731 = vmatprep.subr.bf16.mxu0 %v17877_v44  ;;  %v261_v44 = vld [vmem:[#allocation6 + $0xeb0] sm:$0xff] }
  0xac   :  { %2499 = vmatpush1.bf16.msra.mxu1 %v17928_v51  ;;  %v213_v51 = vld [vmem:[#allocation6 + $0xa30] sm:$0xff] }
  0xad   :  { %2500 = vmatprep.subr.bf16.mxu1 %v17937_v54  ;;  %2732 = vmatpush1.bf16.msra.mxu0 %v17876_v45  ;;  %v17885_v52 = vcombine.high %v209_v50, %v213_v51  ;;  %v17884_v53 = vcombine.low %v209_v50, %v213_v51  ;;  %v17992_v54 = vcombine.low %v319_v39, %v323_v40  ;;  %v375_v39 = vld [vmem:[#allocation6 + $0x1980] sm:$0xff]  ;;  %v265_v51 = vld [vmem:[#allocation6 + $0xf10] sm:$0xff] }
  0xae   :  { %v379_v40 = vld [vmem:[#allocation6 + $0x19e0] sm:$0xff]  ;;  %v17933_v45 = vcombine.high %v257_v43, %v261_v44 }
  0xaf   :  { %2733 = vmatprep.subr.bf16.mxu0 %v17885_v52  ;;  %v18049_v50 = vcombine.high %v375_v39, %v379_v40  ;;  %v269_v52 = vld [vmem:[#allocation6 + $0xf70] sm:$0xff] }
  0xb0   :  { %2501 = vmatpush1.bf16.msra.mxu1 %v17936_v59  ;;  %v221_v59 = vld [vmem:[#allocation6 + $0xaf0] sm:$0xff] }
  0xb1   :  { %2502 = vmatprep.subr.bf16.mxu1 %v17945_v62  ;;  %2734 = vmatpush1.bf16.msra.mxu0 %v17884_v53  ;;  %v17893_v60 = vcombine.high %v217_v58, %v221_v59  ;;  %v17892_v61 = vcombine.low %v217_v58, %v221_v59  ;;  %v18000_v62 = vcombine.low %v327_v47, %v331_v48  ;;  %v383_v48 = vld [vmem:[#allocation6 + $0x1a40] sm:$0xff]  ;;  %v273_v59 = vld [vmem:[#allocation6 + $0xfd0] sm:$0xff] }
  0xb2   :  { %v18040_v47 = vcombine.low %v367_v27, %v371_v29  ;;  %v17941_v53 = vcombine.high %v265_v51, %v269_v52  ;;  %v427_v27 = vld [vmem:[#allocation6 + $0x1e60] sm:$0xff] }
  0xb3   :  { %2735 = vmatprep.subr.bf16.mxu0 %v17893_v60  ;;  %v277_v60 = vld [vmem:[#allocation6 + $0x1030] sm:$0xff] }
  0xb4   :  { %2503 = vmatpush1.bf16.msra.mxu1 %v17944_v3  ;;  %v229_v3 = vld [vmem:[#allocation6 + $0xbb0] sm:$0xff] }
  0xb5   :  { %2504 = vmatprep.subr.bf16.mxu1 %v17953_v6  ;;  %2736 = vmatpush1.bf16.msra.mxu0 %v17892_v61  ;;  %v17901_v4 = vcombine.high %v225_v2, %v229_v3  ;;  %v17900_v5 = vcombine.low %v225_v2, %v229_v3  ;;  %v18008_v6 = vcombine.low %v335_v55, %v339_v56  ;;  %v391_v56 = vld [vmem:[#allocation6 + $0x1b00] sm:$0xff]  ;;  %v281_v3 = vld [vmem:[#allocation6 + $0x1090] sm:$0xff] }
  0xb6   :  { %v18048_v55 = vcombine.low %v375_v39, %v379_v40  ;;  %v17949_v61 = vcombine.high %v273_v59, %v277_v60  ;;  %v313_v39 = vld [vmem:[#allocation6 + $0x1390] sm:$0xff] }
  0xb7   :  { %2737 = vmatprep.subr.bf16.mxu0 %v17901_v4  ;;  %v285_v4 = vld [vmem:[#allocation6 + $0x10f0] sm:$0xff] }
  0xb8   :  { %2505 = vmatpush1.bf16.msra.mxu1 %v17952_v11  ;;  %v237_v11 = vld [vmem:[#allocation6 + $0xc70] sm:$0xff] }
  0xb9   :  { %2506 = vmatprep.subr.bf16.mxu1 %v17961_v14  ;;  %2738 = vmatpush1.bf16.msra.mxu0 %v17900_v5  ;;  %v17909_v12 = vcombine.high %v233_v10, %v237_v11  ;;  %v17908_v13 = vcombine.low %v233_v10, %v237_v11  ;;  %v18016_v14 = vcombine.low %v343_v63, %v347_v0  ;;  %v399_v0 = vld [vmem:[#allocation6 + $0x1bc0] sm:$0xff]  ;;  %v289_v11 = vld [vmem:[#allocation6 + $0x1150] sm:$0xff] }
  0xba   :  { %v17957_v5 = vcombine.high %v281_v3, %v285_v4  ;;  %v317_v40 = vld [vmem:[#allocation6 + $0x13f0] sm:$0xff] }
  0xbb   :  { %2750 = vmatprep.subr.bf16.mxu0 %v17909_v12  ;;  %v293_v12 = vld [vmem:[#allocation6 + $0x11b0] sm:$0xff] }
  0xbc   :  { %2507 = vmatpush1.bf16.msra.mxu1 %v17960_v19  ;;  %2740 = vmatmul.mubr.bf16.vlgmr.msra.gmra.mrb[0].mxu0 %v22444_v24  ;;  %v245_v19 = vld [vmem:[#allocation6 + $0xd30] sm:$0xff] }
  0xbd   :  { %2508 = vmatprep.subr.bf16.mxu1 %v17969_v23  ;;  %2751 = vmatpush1.bf16.msra.mxu0 %v17908_v13  ;;  %v17917_v23 = vcombine.high %v241_v18, %v245_v19  ;;  %v17916_v25 = vcombine.low %v241_v18, %v245_v19  ;;  %v17965_v13 = vcombine.high %v289_v11, %v293_v12  ;;  %v297_v19 = vld [vmem:[#allocation6 + $0x1210] sm:$0xff] }
  0xbe   :  { %2782 = vmatprep.mubr.bf16.mxu0 %v22446_v28  ;;  %v17973_v22 = vcombine.high %v297_v19, %v301_v21 }
  0xbf   :  { %2752 = vmatprep.subr.bf16.mxu0 %v17917_v23  ;;  %v17972_v23 = vcombine.low %v297_v19, %v301_v21 }
  0xc0   :  { %2509 = vmatpush1.bf16.msra.mxu1 %v17968_v30  ;;  %v90_v30 = vld [vmem:[#allocation3 + $0x28] sm:$0xff] }
  0xc1   :  { %2510 = vmatprep.subr.bf16.mxu1 %v17977_v33  ;;  %v249_v33 = vld [vmem:[#allocation6 + $0xd90] sm:$0xff]  ;;  %2753 = vmatpush1.bf16.msra.mxu0 %v17916_v25 }
  0xc2   :  { %v17925_v35 = vcombine.high %v249_v33, %v253_v34  ;;  %v17924_v37 = vcombine.low %v249_v33, %v253_v34 }
  0xc4   :  { %2511 = vmatpush1.bf16.msra.mxu1 %v17976_v38  ;;  %v18032_v38 = vcombine.low %v359_v15, %v363_v16  ;;  %2754 = vmatprep.subr.bf16.mxu0 %v17925_v35  ;;  %v415_v16 = vld [vmem:[#allocation6 + $0x1d40] sm:$0xff] }
  0xc5   :  { %2512 = vmatprep.subr.bf16.mxu1 %v17985_v41  ;;  %v22454_v41 = vpack.c.bf16 %v96_v31, %v90_v30  ;;  %2755 = vmatpush1.bf16.msra.mxu0 %v17924_v37  ;;  %v305_v30 = vld [vmem:[#allocation6 + $0x12d0] sm:$0xff]  ;;  %v431_v35 = vld [vmem:[#allocation6 + $0x1ec0] sm:$0xff] }
  0xc6   :  { %2756 = vmatprep.subr.bf16.mxu0 %v17933_v45  ;;  %v309_v31 = vld [vmem:[#allocation6 + $0x1330] sm:$0xff]  ;;  %v435_v37 = vld [vmem:[#allocation6 + $0x1f20] sm:$0xff] }
  0xc7   :  { %v17980_v33 = vcombine.low %v305_v30, %v309_v31  ;;  %v439_v45 = vld [vmem:[#allocation6 + $0x1f80] sm:$0xff] }
  0xc8   :  { %2513 = vmatpush1.bf16.msra.mxu1 %v17984_v46  ;;  %v17932_v46 = vcombine.low %v257_v43, %v261_v44  ;;  %v17988_v43 = vcombine.low %v313_v39, %v317_v40 }
  0xc9   :  { %2514 = vmatprep.subr.bf16.mxu1 %v17993_v49  ;;  %v387_v49 = vld [vmem:[#allocation6 + $0x1aa0] sm:$0xff] }
  0xca   :  { %2757 = vmatpush1.bf16.msra.mxu0 %v17932_v46  ;;  %v18057_v58 = vcombine.high %v383_v48, %v387_v49  ;;  %v18056_v63 = vcombine.low %v383_v48, %v387_v49  ;;  %v443_v46 = vld [vmem:[#allocation6 + $0x1fe0] sm:$0xff]  ;;  %v321_v48 = vld [vmem:[#allocation6 + $0x1450] sm:$0xff] }
  0xcb   :  { %2758 = vmatprep.subr.bf16.mxu0 %v17941_v53  ;;  %v325_v49 = vld [vmem:[#allocation6 + $0x14b0] sm:$0xff]  ;;  %v447_v53 = vld [vmem:[#allocation6 + $0x2040] sm:$0xff] }
  0xcc   :  { %2515 = vmatpush1.bf16.msra.mxu1 %v17992_v54  ;;  %v17940_v54 = vcombine.low %v265_v51, %v269_v52  ;;  %v17996_v51 = vcombine.low %v321_v48, %v325_v49  ;;  %v18104_v52 = vcombine.low %v431_v35, %v435_v37 }
  0xcd   :  { %2516 = vmatprep.subr.bf16.mxu1 %v18001_v57  ;;  %v395_v57 = vld [vmem:[#allocation6 + $0x1b60] sm:$0xff] }
  0xce   :  { %2759 = vmatpush1.bf16.msra.mxu0 %v17940_v54  ;;  %v18065_v2 = vcombine.high %v391_v56, %v395_v57  ;;  %v18064_v7 = vcombine.low %v391_v56, %v395_v57  ;;  %v451_v54 = vld [vmem:[#allocation6 + $0x20a0] sm:$0xff]  ;;  %v329_v56 = vld [vmem:[#allocation6 + $0x1510] sm:$0xff] }
  0xcf   :  { %2760 = vmatprep.subr.bf16.mxu0 %v17949_v61  ;;  %v333_v57 = vld [vmem:[#allocation6 + $0x1570] sm:$0xff]  ;;  %v455_v61 = vld [vmem:[#allocation6 + $0x2100] sm:$0xff] }
  0xd0   :  { %2517 = vmatpush1.bf16.msra.mxu1 %v18000_v62  ;;  %v17948_v62 = vcombine.low %v273_v59, %v277_v60  ;;  %v18004_v59 = vcombine.low %v329_v56, %v333_v57  ;;  %v18112_v60 = vcombine.low %v439_v45, %v443_v46 }
  0xd1   :  { %2518 = vmatprep.subr.bf16.mxu1 %v18009_v1  ;;  %v403_v1 = vld [vmem:[#allocation6 + $0x1c20] sm:$0xff] }
  0xd2   :  { %2761 = vmatpush1.bf16.msra.mxu0 %v17948_v62  ;;  %v18073_v10 = vcombine.high %v399_v0, %v403_v1  ;;  %v18072_v15 = vcombine.low %v399_v0, %v403_v1  ;;  %v459_v62 = vld [vmem:[#allocation6 + $0x2160] sm:$0xff]  ;;  %v337_v0 = vld [vmem:[#allocation6 + $0x15d0] sm:$0xff] }
  0xd3   :  { %2762 = vmatprep.subr.bf16.mxu0 %v17957_v5  ;;  %v341_v1 = vld [vmem:[#allocation6 + $0x1630] sm:$0xff]  ;;  %v463_v5 = vld [vmem:[#allocation6 + $0x21c0] sm:$0xff] }
  0xd4   :  { %2519 = vmatpush1.bf16.msra.mxu1 %v18008_v6  ;;  %v17956_v6 = vcombine.low %v281_v3, %v285_v4  ;;  %v18012_v3 = vcombine.low %v337_v0, %v341_v1  ;;  %v18120_v4 = vcombine.low %v447_v53, %v451_v54 }
  0xd5   :  { %2520 = vmatprep.subr.bf16.mxu1 %v18017_v9  ;;  %v411_v9 = vld [vmem:[#allocation6 + $0x1ce0] sm:$0xff] }
  0xd6   :  { %2763 = vmatpush1.bf16.msra.mxu0 %v17956_v6  ;;  %v18081_v18 = vcombine.high %v407_v8, %v411_v9  ;;  %v18080_v25 = vcombine.low %v407_v8, %v411_v9  ;;  %v467_v6 = vld [vmem:[#allocation6 + $0x2220] sm:$0xff]  ;;  %v345_v8 = vld [vmem:[#allocation6 + $0x1690] sm:$0xff] }
  0xd7   :  { %2764 = vmatprep.subr.bf16.mxu0 %v17965_v13  ;;  %v349_v9 = vld [vmem:[#allocation6 + $0x16f0] sm:$0xff]  ;;  %v471_v13 = vld [vmem:[#allocation6 + $0x2280] sm:$0xff]  ;;  %v18136_v21 = vcombine.low %v463_v5, %v467_v6 }
  0xd8   :  { %2521 = vmatpush1.bf16.msra.mxu1 %v18016_v14  ;;  %v17964_v14 = vcombine.low %v289_v11, %v293_v12  ;;  %v18020_v11 = vcombine.low %v345_v8, %v349_v9  ;;  %v18128_v12 = vcombine.low %v455_v61, %v459_v62 }
  0xd9   :  { %2522 = vmatprep.subr.bf16.mxu1 %v18025_v17  ;;  %v419_v17 = vld [vmem:[#allocation6 + $0x1da0] sm:$0xff] }
  0xda   :  { %2765 = vmatpush1.bf16.msra.mxu0 %v17964_v14  ;;  %v18089_v29 = vcombine.high %v415_v16, %v419_v17  ;;  %v18088_v34 = vcombine.low %v415_v16, %v419_v17  ;;  %v475_v14 = vld [vmem:[#allocation6 + $0x22e0] sm:$0xff]  ;;  %v353_v16 = vld [vmem:[#allocation6 + $0x1750] sm:$0xff] }
  0xdb   :  { %2766 = vmatprep.subr.bf16.mxu0 %v17973_v22  ;;  %v357_v17 = vld [vmem:[#allocation6 + $0x17b0] sm:$0xff]  ;;  %v479_v22 = vld [vmem:[#allocation6 + $0x2340] sm:$0xff] }
  0xdc   :  { %2523 = vmatpush1.bf16.msra.mxu1 %v18024_v26  ;;  %v423_v26 = vld [vmem:[#allocation6 + $0x1e00] sm:$0xff]  ;;  %v18028_v19 = vcombine.low %v353_v16, %v357_v17 }
  0xdd   :  { %2535 = vmatprep.subr.bf16.mxu1 %v18033_v32  ;;  %v17981_v32 = vcombine.high %v305_v30, %v309_v31  ;;  %v18096_v44 = vcombine.low %v423_v26, %v427_v27  ;;  %v18144_v31 = vcombine.low %v471_v13, %v475_v14 }
  0xde   :  { %2767 = vmatpush1.bf16.msra.mxu0 %v17972_v23  ;;  %v483_v23 = vld [vmem:[#allocation6 + $0x23a0] sm:$0xff] }
  0xdf   :  { %2525 = vmatmul.mubr.bf16.vlgmr.msra.gmra.mrb[0].mxu1 %v22452_v36  ;;  %2768 = vmatprep.subr.bf16.mxu0 %v17981_v32  ;;  %v104_v32 = vld [vmem:[#allocation6 + $0x8] sm:$0xff] }
  0xe0   :  { %2536 = vmatpush1.bf16.msra.mxu1 %v18032_v38  ;;  %2567 = vmatprep.mubr.bf16.mxu1 %v22454_v41  ;;  %v18097_v38 = vcombine.high %v423_v26, %v427_v27  ;;  %v361_v26 = vld [vmem:[#allocation6 + $0x1810] sm:$0xff] }
  0xe1   :  { %2537 = vmatprep.subr.bf16.mxu1 %v18041_v42  ;;  %v17989_v42 = vcombine.high %v313_v39, %v317_v40  ;;  %v365_v27 = vld [vmem:[#allocation6 + $0x1870] sm:$0xff] }
  0xe2   :  { %2769 = vmatpush1.bf16.msra.mxu0 %v17980_v33  ;;  %v18036_v30 = vcombine.low %v361_v26, %v365_v27  ;;  %v108_v33 = vld [vmem:[#allocation6 + $0x68] sm:$0xff]  ;;  %v95_v39 = vld [vmem:[#allocation3 + $0x50] sm:$0xff] }
  0xe3   :  { %2770 = vmatprep.subr.bf16.mxu0 %v17989_v42 }
  0xe4   :  { %2538 = vmatpush1.bf16.msra.mxu1 %v18040_v47  ;;  %v18105_v47 = vcombine.high %v431_v35, %v435_v37  ;;  %v369_v35 = vld [vmem:[#allocation6 + $0x18d0] sm:$0xff] }
  0xe5   :  { %2539 = vmatprep.subr.bf16.mxu1 %v18049_v50  ;;  %v17997_v50 = vcombine.high %v321_v48, %v325_v49  ;;  %v373_v37 = vld [vmem:[#allocation6 + $0x1930] sm:$0xff] }
  0xe6   :  { %2771 = vmatpush1.bf16.msra.mxu0 %v17988_v43  ;;  %v18045_v40 = vcombine.high %v369_v35, %v373_v37  ;;  %v18044_v42 = vcombine.low %v369_v35, %v373_v37  ;;  %v18152_v43 = vcombine.low %v479_v22, %v483_v23  ;;  %v381_v48 = vld [vmem:[#allocation6 + $0x19f0] sm:$0xff] }
  0xe7   :  { %2772 = vmatprep.subr.bf16.mxu0 %v17997_v50  ;;  %v425_v35 = vld [vmem:[#allocation6 + $0x1e10] sm:$0xff] }
  0xe8   :  { %2540 = vmatpush1.bf16.msra.mxu1 %v18048_v55  ;;  %v18113_v55 = vcombine.high %v439_v45, %v443_v46  ;;  %v116_v45 = vld [vmem:[#allocation6 + $0x128] sm:$0xff]  ;;  %v17779_v46 = vcombine.high %v104_v32, %v108_v33  ;;  %v429_v37 = vld [vmem:[#allocation6 + $0x1e70] sm:$0xff] }
  0xe9   :  { %2541 = vmatprep.subr.bf16.mxu1 %v18057_v58  ;;  %v18005_v58 = vcombine.high %v329_v56, %v333_v57  ;;  %v385_v56 = vld [vmem:[#allocation6 + $0x1a50] sm:$0xff] }
  0xea   :  { %2773 = vmatpush1.bf16.msra.mxu0 %v17996_v51  ;;  %v389_v57 = vld [vmem:[#allocation6 + $0x1ab0] sm:$0xff] }
  0xeb   :  { %2774 = vmatprep.subr.bf16.mxu0 %v18005_v58  ;;  %v18061_v58 = vcombine.high %v385_v56, %v389_v57 }
  0xec   :  { %2542 = vmatpush1.bf16.msra.mxu1 %v18056_v63  ;;  %v18121_v63 = vcombine.high %v447_v53, %v451_v54  ;;  %v120_v53 = vld [vmem:[#allocation6 + $0x188] sm:$0xff] }
  0xed   :  { %2543 = vmatprep.subr.bf16.mxu1 %v18065_v2  ;;  %v18013_v2 = vcombine.high %v337_v0, %v341_v1  ;;  %v124_v54 = vld [vmem:[#allocation6 + $0x1e8] sm:$0xff]  ;;  %v393_v0 = vld [vmem:[#allocation6 + $0x1b10] sm:$0xff] }
  0xee   :  { %2775 = vmatpush1.bf16.msra.mxu0 %v18004_v59  ;;  %v18060_v59 = vcombine.low %v385_v56, %v389_v57  ;;  %v397_v1 = vld [vmem:[#allocation6 + $0x1b70] sm:$0xff] }
  0xef   :  { %2776 = vmatprep.subr.bf16.mxu0 %v18013_v2  ;;  %v18069_v2 = vcombine.high %v393_v0, %v397_v1 }
  0xf0   :  { %2544 = vmatpush1.bf16.msra.mxu1 %v18064_v7  ;;  %v18129_v7 = vcombine.high %v455_v61, %v459_v62  ;;  %v128_v61 = vld [vmem:[#allocation6 + $0x248] sm:$0xff] }
  0xf1   :  { %2545 = vmatprep.subr.bf16.mxu1 %v18073_v10  ;;  %v18021_v10 = vcombine.high %v345_v8, %v349_v9  ;;  %v132_v62 = vld [vmem:[#allocation6 + $0x2a8] sm:$0xff]  ;;  %v401_v8 = vld [vmem:[#allocation6 + $0x1bd0] sm:$0xff] }
  0xf2   :  { %2777 = vmatpush1.bf16.msra.mxu0 %v18012_v3  ;;  %v18068_v3 = vcombine.low %v393_v0, %v397_v1  ;;  %v405_v9 = vld [vmem:[#allocation6 + $0x1c30] sm:$0xff] }
  0xf3   :  { %2778 = vmatprep.subr.bf16.mxu0 %v18021_v10  ;;  %v18077_v10 = vcombine.high %v401_v8, %v405_v9 }
  0xf4   :  { %2546 = vmatpush1.bf16.msra.mxu1 %v18072_v15  ;;  %v18137_v15 = vcombine.high %v463_v5, %v467_v6  ;;  %v136_v5 = vld [vmem:[#allocation6 + $0x308] sm:$0xff] }
  0xf5   :  { %2547 = vmatprep.subr.bf16.mxu1 %v18081_v18  ;;  %v18029_v18 = vcombine.high %v353_v16, %v357_v17  ;;  %v140_v6 = vld [vmem:[#allocation6 + $0x368] sm:$0xff]  ;;  %v409_v16 = vld [vmem:[#allocation6 + $0x1c90] sm:$0xff] }
  0xf6   :  { %2779 = vmatpush1.bf16.msra.mxu0 %v18020_v11  ;;  %v18076_v11 = vcombine.low %v401_v8, %v405_v9  ;;  %v413_v17 = vld [vmem:[#allocation6 + $0x1cf0] sm:$0xff] }
  0xf7   :  { %2780 = vmatprep.subr.bf16.mxu0 %v18029_v18  ;;  %v18085_v18 = vcombine.high %v409_v16, %v413_v17 }
  0xf8   :  { %2548 = vmatpush1.bf16.msra.mxu1 %v18080_v25  ;;  %v18145_v25 = vcombine.high %v471_v13, %v475_v14  ;;  %v144_v13 = vld [vmem:[#allocation6 + $0x3c8] sm:$0xff] }
  0xf9   :  { %2549 = vmatprep.subr.bf16.mxu1 %v18089_v29  ;;  %v18037_v29 = vcombine.high %v361_v26, %v365_v27  ;;  %v148_v14 = vld [vmem:[#allocation6 + $0x428] sm:$0xff]  ;;  %v417_v26 = vld [vmem:[#allocation6 + $0x1d50] sm:$0xff] }
  0xfa   :  { %2781 = vmatpush1.bf16.msra.mxu0 %v18028_v19  ;;  %v18084_v19 = vcombine.low %v409_v16, %v413_v17  ;;  %v421_v27 = vld [vmem:[#allocation6 + $0x1db0] sm:$0xff] }
  0xfb   :  { %2793 = vmatprep.subr.bf16.mxu0 %v18037_v29  ;;  %v18093_v29 = vcombine.high %v417_v26, %v421_v27 }
  0xfc   :  { %2550 = vmatpush1.bf16.msra.mxu1 %v18088_v34  ;;  %v18153_v34 = vcombine.high %v479_v22, %v483_v23  ;;  %v152_v22 = vld [vmem:[#allocation6 + $0x488] sm:$0xff] }
  0xfd   :  { %2551 = vmatprep.subr.bf16.mxu1 %v18097_v38  ;;  %2783 = vmatmul.mubr.bf16.vlgmr.msra.gmra.mrb[0].mxu0 %v22452_v36  ;;  %v89_v38 = vld [vmem:[#allocation3 + $0x20] sm:$0xff]  ;;  %v156_v23 = vld [vmem:[#allocation6 + $0x4e8] sm:$0xff] }
  0xfe   :  { %2794 = vmatpush1.bf16.msra.mxu0 %v18036_v30  ;;  %2825 = vmatprep.mubr.bf16.mxu0 %v22454_v41  ;;  %v22460_v50 = vpack.c.bf16 %v95_v39, %v89_v38  ;;  %v18092_v30 = vcombine.low %v417_v26, %v421_v27  ;;  %v18101_v38 = vcombine.high %v425_v35, %v429_v37 }
  0xff   :  { %2795 = vmatprep.subr.bf16.mxu0 %v18045_v40  ;;  %v18100_v39 = vcombine.low %v425_v35, %v429_v37  ;;  %v17826_v40 = vcombine.low %v152_v22, %v156_v23 }
 0x100   :  { %2552 = vmatpush1.bf16.msra.mxu1 %v18096_v44  ;;  %v112_v44 = vld [vmem:[#allocation6 + $0xc8] sm:$0xff] }
 0x101   :  { %2553 = vmatprep.subr.bf16.mxu1 %v18105_v47  ;;  %v377_v47 = vld [vmem:[#allocation6 + $0x1990] sm:$0xff] }
 0x102   :  { %2796 = vmatpush1.bf16.msra.mxu0 %v18044_v42  ;;  %v18053_v49 = vcombine.high %v377_v47, %v381_v48  ;;  %v18052_v51 = vcombine.low %v377_v47, %v381_v48  ;;  %v168_v42 = vld [vmem:[#allocation6 + $0x608] sm:$0xff] }
 0x104   :  { %2554 = vmatpush1.bf16.msra.mxu1 %v18104_v52  ;;  %v17778_v52 = vcombine.low %v104_v32, %v108_v33  ;;  %2797 = vmatprep.subr.bf16.mxu0 %v18053_v49  ;;  %v160_v32 = vld [vmem:[#allocation6 + $0x548] sm:$0xff] }
 0x105   :  { %2555 = vmatprep.subr.bf16.mxu1 %v18113_v55  ;;  %v17787_v55 = vcombine.high %v112_v44, %v116_v45  ;;  %v164_v33 = vld [vmem:[#allocation6 + $0x5a8] sm:$0xff] }
 0x106   :  { %2798 = vmatpush1.bf16.msra.mxu0 %v18052_v51  ;;  %v17834_v49 = vcombine.low %v160_v32, %v164_v33  ;;  %v176_v51 = vld [vmem:[#allocation6 + $0x6c8] sm:$0xff] }
 0x107   :  { %2799 = vmatprep.subr.bf16.mxu0 %v18061_v58 }
 0x108   :  { %2556 = vmatpush1.bf16.msra.mxu1 %v18112_v60  ;;  %v17786_v60 = vcombine.low %v112_v44, %v116_v45  ;;  %v17835_v44 = vcombine.high %v160_v32, %v164_v33  ;;  %v433_v45 = vld [vmem:[#allocation6 + $0x1ed0] sm:$0xff] }
 0x109   :  { %2557 = vmatprep.subr.bf16.mxu1 %v18121_v63  ;;  %v17795_v63 = vcombine.high %v120_v53, %v124_v54  ;;  %v481_v33 = vld [vmem:[#allocation6 + $0x2350] sm:$0xff] }
 0x10a   :  { %2800 = vmatpush1.bf16.msra.mxu0 %v18060_v59  ;;  %v184_v59 = vld [vmem:[#allocation6 + $0x788] sm:$0xff] }
 0x10b   :  { %2801 = vmatprep.subr.bf16.mxu0 %v18069_v2 }
 0x10c   :  { %2558 = vmatpush1.bf16.msra.mxu1 %v18120_v4  ;;  %v17794_v4 = vcombine.low %v120_v53, %v124_v54  ;;  %v441_v54 = vld [vmem:[#allocation6 + $0x1f90] sm:$0xff] }
 0x10d   :  { %2559 = vmatprep.subr.bf16.mxu1 %v18129_v7  ;;  %v17803_v7 = vcombine.high %v128_v61, %v132_v62 }
 0x10e   :  { %2802 = vmatpush1.bf16.msra.mxu0 %v18068_v3  ;;  %v192_v3 = vld [vmem:[#allocation6 + $0x848] sm:$0xff] }
 0x10f   :  { %2803 = vmatprep.subr.bf16.mxu0 %v18077_v10 }
 0x110   :  { %2560 = vmatpush1.bf16.msra.mxu1 %v18128_v12  ;;  %v17802_v12 = vcombine.low %v128_v61, %v132_v62  ;;  %v449_v62 = vld [vmem:[#allocation6 + $0x2050] sm:$0xff] }
 0x111   :  { %2561 = vmatprep.subr.bf16.mxu1 %v18137_v15  ;;  %v17811_v15 = vcombine.high %v136_v5, %v140_v6 }
 0x112   :  { %2804 = vmatpush1.bf16.msra.mxu0 %v18076_v11  ;;  %v200_v11 = vld [vmem:[#allocation6 + $0x908] sm:$0xff] }
 0x113   :  { %2805 = vmatprep.subr.bf16.mxu0 %v18085_v18 }
 0x114   :  { %2562 = vmatpush1.bf16.msra.mxu1 %v18136_v21  ;;  %v17810_v21 = vcombine.low %v136_v5, %v140_v6  ;;  %v457_v6 = vld [vmem:[#allocation6 + $0x2110] sm:$0xff] }
 0x115   :  { %2563 = vmatprep.subr.bf16.mxu1 %v18145_v25  ;;  %v17819_v25 = vcombine.high %v144_v13, %v148_v14 }
 0x116   :  { %2806 = vmatpush1.bf16.msra.mxu0 %v18084_v19  ;;  %v208_v19 = vld [vmem:[#allocation6 + $0x9c8] sm:$0xff] }
 0x117   :  { %2807 = vmatprep.subr.bf16.mxu0 %v18093_v29 }
 0x118   :  { %2564 = vmatpush1.bf16.msra.mxu1 %v18144_v31  ;;  %v17818_v31 = vcombine.low %v144_v13, %v148_v14  ;;  %v465_v14 = vld [vmem:[#allocation6 + $0x21d0] sm:$0xff] }
 0x119   :  { %2565 = vmatprep.subr.bf16.mxu1 %v18153_v34  ;;  %v17827_v34 = vcombine.high %v152_v22, %v156_v23  ;;  %v473_v23 = vld [vmem:[#allocation6 + $0x2290] sm:$0xff] }
 0x11a   :  { %2808 = vmatpush1.bf16.msra.mxu0 %v18092_v30  ;;  %v216_v30 = vld [vmem:[#allocation6 + $0xa88] sm:$0xff] }
 0x11b   :  { %2809 = vmatprep.subr.bf16.mxu0 %v18101_v38 }
 0x11c   :  { %2566 = vmatpush1.bf16.msra.mxu1 %v18152_v43  ;;  %v172_v43 = vld [vmem:[#allocation6 + $0x668] sm:$0xff] }
 0x11d   :  { %2578 = vmatprep.subr.bf16.mxu1 %v17779_v46  ;;  %v437_v46 = vld [vmem:[#allocation6 + $0x1f30] sm:$0xff]  ;;  %v17843_v53 = vcombine.high %v168_v42, %v172_v43  ;;  %v17842_v58 = vcombine.low %v168_v42, %v172_v43 }
 0x11e   :  { %2810 = vmatpush1.bf16.msra.mxu0 %v18100_v39  ;;  %v18109_v47 = vcombine.high %v433_v45, %v437_v46  ;;  %v18108_v48 = vcombine.low %v433_v45, %v437_v46  ;;  %v224_v39 = vld [vmem:[#allocation6 + $0xb48] sm:$0xff]  ;;  %v20370_v43 = vld [vmem:[#allocation9 + $0x4] ss:$24 sps:$4 sm:$0xff]  }
 0x11f   :  { %2568 = vmatmul.mubr.bf16.vlgmr.msra.gmra.mrb[0].mxu1 %v22460_v50  ;;  %v232_v46 = vld [vmem:[#allocation6 + $0xc08] sm:$0xff] }
 0x120   :  { %2579 = vmatpush1.bf16.msra.mxu1 %v17778_v52  ;;  %2610 = vmatprep.mubr.bf16.mxu1 %v22440_v20  ;;  %v180_v52 = vld [vmem:[#allocation6 + $0x728] sm:$0xff] }
 0x121   :  { %2580 = vmatprep.subr.bf16.mxu1 %v17787_v55  ;;  %2811 = vmatprep.subr.bf16.mxu0 %v18109_v47  ;;  %v445_v55 = vld [vmem:[#allocation6 + $0x1ff0] sm:$0xff]  ;;  %v17851_v61 = vcombine.high %v176_v51, %v180_v52  ;;  %v17850_v2 = vcombine.low %v176_v51, %v180_v52  ;;  %v236_v47 = vld [vmem:[#allocation6 + $0xc68] sm:$0xff] }
 0x122   :  { %2812 = vmatpush1.bf16.msra.mxu0 %v18108_v48  ;;  %v18117_v56 = vcombine.high %v441_v54, %v445_v55  ;;  %v18116_v57 = vcombine.low %v441_v54, %v445_v55  ;;  %v20371_v51 = vld [vmem:[#allocation9 + $0x30] ss:$24 sps:$4 sm:$0xff]   ;;  %v17907_v55 = vcombine.high %v232_v46, %v236_v47 }
 0x123   :  { %v244_v54 = vld [vmem:[#allocation6 + $0xd28] sm:$0xff] }
 0x124   :  { %2581 = vmatpush1.bf16.msra.mxu1 %v17786_v60  ;;  %v188_v60 = vld [vmem:[#allocation6 + $0x7e8] sm:$0xff]  ;;  %2813 = vmatprep.subr.bf16.mxu0 %v18117_v56  ;;  %v20376_v56 = vld [vmem:[#allocation9 + $0x64] ss:$24 sps:$4 sm:$0xff]  }
 0x125   :  { %2582 = vmatprep.subr.bf16.mxu1 %v17795_v63  ;;  %v453_v63 = vld [vmem:[#allocation6 + $0x20b0] sm:$0xff]  ;;  %v17859_v5 = vcombine.high %v184_v59, %v188_v60  ;;  %v17858_v10 = vcombine.low %v184_v59, %v188_v60  ;;  %v248_v59 = vld [vmem:[#allocation6 + $0xd88] sm:$0xff] }
 0x126   :  { %2814 = vmatpush1.bf16.msra.mxu0 %v18116_v57  ;;  %v18125_v0 = vcombine.high %v449_v62, %v453_v63  ;;  %v18124_v1 = vcombine.low %v449_v62, %v453_v63  ;;  %v20374_v57 = vld [vmem:[#allocation9 + $0x60] ss:$24 sps:$4 sm:$0xff]   ;;  %v252_v60 = vld [vmem:[#allocation6 + $0xde8] sm:$0xff] }
 0x127   :  { %v20379_v62 = vld [vmem:[#allocation9 + $0x94] ss:$24 sps:$4 sm:$0xff]   ;;  %v20377_v63 = vld [vmem:[#allocation9 + $0x90] ss:$24 sps:$4 sm:$0xff]  }
 0x128   :  { %2583 = vmatpush1.bf16.msra.mxu1 %v17794_v4  ;;  %v196_v4 = vld [vmem:[#allocation6 + $0x8a8] sm:$0xff]  ;;  %2815 = vmatprep.subr.bf16.mxu0 %v18125_v0 }
 0x129   :  { %2584 = vmatprep.subr.bf16.mxu1 %v17803_v7  ;;  %v461_v7 = vld [vmem:[#allocation6 + $0x2170] sm:$0xff]  ;;  %v17867_v13 = vcombine.high %v192_v3, %v196_v4  ;;  %v17866_v18 = vcombine.low %v192_v3, %v196_v4  ;;  %v17923_v3 = vcombine.high %v248_v59, %v252_v60 }
 0x12a   :  { %2816 = vmatpush1.bf16.msra.mxu0 %v18124_v1  ;;  %v18133_v8 = vcombine.high %v457_v6, %v461_v7  ;;  %v18132_v9 = vcombine.low %v457_v6, %v461_v7  ;;  %v256_v1 = vld [vmem:[#allocation6 + $0xe48] sm:$0xff]  ;;  %v20382_v4 = vld [vmem:[#allocation9 + $0xc4] ss:$24 sps:$4 sm:$0xff]   ;;  %v17922_v6 = vcombine.low %v248_v59, %v252_v60  ;;  %v20404_v59 = vld [vmem:[#allocation9 + $0x240] ss:$24 sps:$4 sm:$0xff]  }
 0x12b   :  { %v264_v7 = vld [vmem:[#allocation6 + $0xf08] sm:$0xff] }
 0x12c   :  { %2585 = vmatpush1.bf16.msra.mxu1 %v17802_v12  ;;  %v204_v12 = vld [vmem:[#allocation6 + $0x968] sm:$0xff]  ;;  %2817 = vmatprep.subr.bf16.mxu0 %v18133_v8 }
 0x12d   :  { %2586 = vmatprep.subr.bf16.mxu1 %v17811_v15  ;;  %v469_v15 = vld [vmem:[#allocation6 + $0x2230] sm:$0xff]  ;;  %v17875_v22 = vcombine.high %v200_v11, %v204_v12  ;;  %v17874_v29 = vcombine.low %v200_v11, %v204_v12  ;;  %v268_v8 = vld [vmem:[#allocation6 + $0xf68] sm:$0xff] }
 0x12e   :  { %2818 = vmatpush1.bf16.msra.mxu0 %v18132_v9  ;;  %v18141_v16 = vcombine.high %v465_v14, %v469_v15  ;;  %v18140_v17 = vcombine.low %v465_v14, %v469_v15  ;;  %v20383_v11 = vld [vmem:[#allocation9 + $0xf0] ss:$24 sps:$4 sm:$0xff]   ;;  %v17939_v15 = vcombine.high %v264_v7, %v268_v8 }
 0x12f   :  { %v276_v14 = vld [vmem:[#allocation6 + $0x1028] sm:$0xff] }
 0x130   :  { %2587 = vmatpush1.bf16.msra.mxu1 %v17810_v21  ;;  %v212_v21 = vld [vmem:[#allocation6 + $0xa28] sm:$0xff]  ;;  %2819 = vmatprep.subr.bf16.mxu0 %v18141_v16  ;;  %v20388_v16 = vld [vmem:[#allocation9 + $0x124] ss:$24 sps:$4 sm:$0xff]  }
 0x131   :  { %2588 = vmatprep.subr.bf16.mxu1 %v17819_v25  ;;  %v477_v25 = vld [vmem:[#allocation6 + $0x22f0] sm:$0xff]  ;;  %v17883_v32 = vcombine.high %v208_v19, %v212_v21  ;;  %v17882_v38 = vcombine.low %v208_v19, %v212_v21  ;;  %v280_v19 = vld [vmem:[#allocation6 + $0x1088] sm:$0xff] }
 0x132   :  { %2820 = vmatpush1.bf16.msra.mxu0 %v18140_v17  ;;  %v18149_v26 = vcombine.high %v473_v23, %v477_v25  ;;  %v18148_v27 = vcombine.low %v473_v23, %v477_v25  ;;  %v20386_v17 = vld [vmem:[#allocation9 + $0x120] ss:$24 sps:$4 sm:$0xff]   ;;  %v284_v21 = vld [vmem:[#allocation6 + $0x10e8] sm:$0xff] }
 0x133   :  { %v20391_v23 = vld [vmem:[#allocation9 + $0x154] ss:$24 sps:$4 sm:$0xff]   ;;  %v20389_v25 = vld [vmem:[#allocation9 + $0x150] ss:$24 sps:$4 sm:$0xff]  }
 0x134   :  { %2589 = vmatpush1.bf16.msra.mxu1 %v17818_v31  ;;  %v220_v31 = vld [vmem:[#allocation6 + $0xae8] sm:$0xff]  ;;  %2821 = vmatprep.subr.bf16.mxu0 %v18149_v26 }
 0x135   :  { %2590 = vmatprep.subr.bf16.mxu1 %v17827_v34  ;;  %v485_v34 = vld [vmem:[#allocation6 + $0x23b0] sm:$0xff]  ;;  %v17891_v42 = vcombine.high %v216_v30, %v220_v31  ;;  %v17890_v45 = vcombine.low %v216_v30, %v220_v31  ;;  %v17955_v30 = vcombine.high %v280_v19, %v284_v21 }
 0x136   :  { %2822 = vmatpush1.bf16.msra.mxu0 %v18148_v27  ;;  %v18157_v35 = vcombine.high %v481_v33, %v485_v34  ;;  %v18156_v37 = vcombine.low %v481_v33, %v485_v34  ;;  %v288_v27 = vld [vmem:[#allocation6 + $0x1148] sm:$0xff]  ;;  %v20394_v31 = vld [vmem:[#allocation9 + $0x184] ss:$24 sps:$4 sm:$0xff]   ;;  %v17954_v33 = vcombine.low %v280_v19, %v284_v21 }
 0x137   :  { %v296_v34 = vld [vmem:[#allocation6 + $0x1208] sm:$0xff] }
 0x138   :  { %2591 = vmatpush1.bf16.msra.mxu1 %v17826_v40  ;;  %v228_v40 = vld [vmem:[#allocation6 + $0xba8] sm:$0xff]  ;;  %2823 = vmatprep.subr.bf16.mxu0 %v18157_v35 }
 0x139   :  { %2592 = vmatprep.subr.bf16.mxu1 %v17835_v44  ;;  %v20368_v44 = vld [vmem:[#allocation9] ss:$24 sps:$4 sm:$0xff]   ;;  %v17899_v48 = vcombine.high %v224_v39, %v228_v40  ;;  %v17898_v52 = vcombine.low %v224_v39, %v228_v40  ;;  %v300_v35 = vld [vmem:[#allocation6 + $0x1268] sm:$0xff] }
 0x13a   :  { %2824 = vmatpush1.bf16.msra.mxu0 %v18156_v37  ;;  %v20395_v39 = vld [vmem:[#allocation9 + $0x1b0] ss:$24 sps:$4 sm:$0xff]  }
 0x13b   :  { %5421 = vmatprep.subr.bf16.mxu0 %v20370_v43  ;;  %v308_v43 = vld [vmem:[#allocation6 + $0x1328] sm:$0xff] }
 0x13c   :  { %2593 = vmatpush1.bf16.msra.mxu1 %v17834_v49  ;;  %v20373_v49 = vld [vmem:[#allocation9 + $0x34] ss:$24 sps:$4 sm:$0xff]  }
 0x13d   :  { %2594 = vmatprep.subr.bf16.mxu1 %v17843_v53  ;;  %2826 = vmatmul.mubr.bf16.vlgmr.msra.gmra.mrb[0].mxu0 %v22460_v50  ;;  %v240_v53 = vld [vmem:[#allocation6 + $0xcc8] sm:$0xff] }
 0x13e   :  { %5422 = vmatpush1.bf16.msra.mxu0 %v20368_v44  ;;  %v17914_v0 = vcombine.low %v240_v53, %v244_v54  ;;  %v17971_v44 = vcombine.high %v296_v34, %v300_v35  ;;  %v360_v19 = vld [vmem:[#allocation6 + $0x1808] sm:$0xff] }
 0x13f   :  { %5423 = vmatprep.subr.bf16.mxu0 %v20373_v49  ;;  %v316_v49 = vld [vmem:[#allocation6 + $0x13e8] sm:$0xff] }
 0x140   :  { %2595 = vmatpush1.bf16.msra.mxu1 %v17842_v58  ;;  %v17906_v58 = vcombine.low %v232_v46, %v236_v47  ;;  %v20398_v46 = vld [vmem:[#allocation9 + $0x1e0] ss:$24 sps:$4 sm:$0xff]   ;;  %v17970_v47 = vcombine.low %v296_v34, %v300_v35  ;;  %v364_v21 = vld [vmem:[#allocation6 + $0x1868] sm:$0xff] }
 0x141   :  { %2596 = vmatprep.subr.bf16.mxu1 %v17851_v61  ;;  %v17915_v61 = vcombine.high %v240_v53, %v244_v54  ;;  %v20401_v53 = vld [vmem:[#allocation9 + $0x210] ss:$24 sps:$4 sm:$0xff]  }
 0x142   :  { %5424 = vmatpush1.bf16.msra.mxu0 %v20371_v51  ;;  %v384_v34 = vld [vmem:[#allocation6 + $0x1a48] sm:$0xff] }
 0x143   :  { %5425 = vmatprep.subr.bf16.mxu0 %v20376_v56  ;;  %v324_v56 = vld [vmem:[#allocation6 + $0x14a8] sm:$0xff] }
 0x144   :  { %2597 = vmatpush1.bf16.msra.mxu1 %v17850_v2  ;;  %v260_v2 = vld [vmem:[#allocation6 + $0xea8] sm:$0xff] }
 0x145   :  { %2598 = vmatprep.subr.bf16.mxu1 %v17859_v5  ;;  %v20380_v5 = vld [vmem:[#allocation9 + $0xc0] ss:$24 sps:$4 sm:$0xff]   ;;  %v17931_v9 = vcombine.high %v256_v1, %v260_v2  ;;  %v17930_v12 = vcombine.low %v256_v1, %v260_v2  ;;  %v20407_v1 = vld [vmem:[#allocation9 + $0x270] ss:$24 sps:$4 sm:$0xff]  }
 0x146   :  { %5426 = vmatpush1.bf16.msra.mxu0 %v20374_v57  ;;  %v388_v35 = vld [vmem:[#allocation6 + $0x1aa8] sm:$0xff] }
 0x147   :  { %5427 = vmatprep.subr.bf16.mxu0 %v20379_v62  ;;  %v332_v62 = vld [vmem:[#allocation6 + $0x1568] sm:$0xff] }
 0x148   :  { %2599 = vmatpush1.bf16.msra.mxu1 %v17858_v10  ;;  %v20385_v10 = vld [vmem:[#allocation9 + $0xf4] ss:$24 sps:$4 sm:$0xff]  }
 0x149   :  { %2600 = vmatprep.subr.bf16.mxu1 %v17867_v13  ;;  %v272_v13 = vld [vmem:[#allocation6 + $0xfc8] sm:$0xff] }
 0x14a   :  { %5428 = vmatpush1.bf16.msra.mxu0 %v20377_v63  ;;  %v17946_v26 = vcombine.low %v272_v13, %v276_v14 }
 0x14b   :  { %5429 = vmatprep.subr.bf16.mxu0 %v20382_v4  ;;  %v340_v4 = vld [vmem:[#allocation6 + $0x1628] sm:$0xff] }
 0x14c   :  { %2601 = vmatpush1.bf16.msra.mxu1 %v17866_v18  ;;  %v17938_v18 = vcombine.low %v264_v7, %v268_v8  ;;  %v20410_v7 = vld [vmem:[#allocation9 + $0x2a0] ss:$24 sps:$4 sm:$0xff]  }
 0x14d   :  { %2602 = vmatprep.subr.bf16.mxu1 %v17875_v22  ;;  %v17947_v22 = vcombine.high %v272_v13, %v276_v14  ;;  %v20413_v13 = vld [vmem:[#allocation9 + $0x2d0] ss:$24 sps:$4 sm:$0xff]  }
 0x14e   :  { %5430 = vmatpush1.bf16.msra.mxu0 %v20380_v5 }
 0x14f   :  { %5431 = vmatprep.subr.bf16.mxu0 %v20385_v10  ;;  %v348_v10 = vld [vmem:[#allocation6 + $0x16e8] sm:$0xff] }
 0x150   :  { %2603 = vmatpush1.bf16.msra.mxu1 %v17874_v29  ;;  %v292_v29 = vld [vmem:[#allocation6 + $0x11a8] sm:$0xff] }
 0x151   :  { %2604 = vmatprep.subr.bf16.mxu1 %v17883_v32  ;;  %v20392_v32 = vld [vmem:[#allocation9 + $0x180] ss:$24 sps:$4 sm:$0xff]   ;;  %v17963_v37 = vcombine.high %v288_v27, %v292_v29  ;;  %v17962_v40 = vcombine.low %v288_v27, %v292_v29  ;;  %v18035_v27 = vcombine.high %v360_v19, %v364_v21  ;;  %v18034_v29 = vcombine.low %v360_v19, %v364_v21 }
 0x152   :  { %5432 = vmatpush1.bf16.msra.mxu0 %v20383_v11 }
 0x153   :  { %5433 = vmatprep.subr.bf16.mxu0 %v20388_v16  ;;  %v356_v16 = vld [vmem:[#allocation6 + $0x17a8] sm:$0xff] }
 0x154   :  { %2605 = vmatpush1.bf16.msra.mxu1 %v17882_v38  ;;  %v20397_v38 = vld [vmem:[#allocation9 + $0x1b4] ss:$24 sps:$4 sm:$0xff]  }
 0x155   :  { %2606 = vmatprep.subr.bf16.mxu1 %v17891_v42  ;;  %v304_v42 = vld [vmem:[#allocation6 + $0x12c8] sm:$0xff] }
 0x156   :  { %5434 = vmatpush1.bf16.msra.mxu0 %v20386_v17  ;;  %v17979_v51 = vcombine.high %v304_v42, %v308_v43  ;;  %v17978_v54 = vcombine.low %v304_v42, %v308_v43  ;;  %v18059_v42 = vcombine.high %v384_v34, %v388_v35  ;;  %v18058_v43 = vcombine.low %v384_v34, %v388_v35 }
 0x157   :  { %5435 = vmatprep.subr.bf16.mxu0 %v20391_v23 }
 0x158   :  { %2607 = vmatpush1.bf16.msra.mxu1 %v17890_v45  ;;  %v20400_v45 = vld [vmem:[#allocation9 + $0x1e4] ss:$24 sps:$4 sm:$0xff]  }
 0x159   :  { %2608 = vmatprep.subr.bf16.mxu1 %v17899_v48  ;;  %v312_v48 = vld [vmem:[#allocation6 + $0x1388] sm:$0xff] }
 0x15a   :  { %5436 = vmatpush1.bf16.msra.mxu0 %v20389_v25  ;;  %v17987_v57 = vcombine.high %v312_v48, %v316_v49  ;;  %v17986_v60 = vcombine.low %v312_v48, %v316_v49  ;;  %v368_v25 = vld [vmem:[#allocation6 + $0x18c8] sm:$0xff] }
 0x15b   :  { %5437 = vmatprep.subr.bf16.mxu0 %v20394_v31  ;;  %v380_v31 = vld [vmem:[#allocation6 + $0x19e8] sm:$0xff] }
 0x15c   :  { %2609 = vmatpush1.bf16.msra.mxu1 %v17898_v52  ;;  %v20403_v52 = vld [vmem:[#allocation9 + $0x214] ss:$24 sps:$4 sm:$0xff]  }
 0x15d   :  { %2621 = vmatprep.subr.bf16.mxu1 %v17907_v55  ;;  %v320_v55 = vld [vmem:[#allocation6 + $0x1448] sm:$0xff] }
 0x15e   :  { %5438 = vmatpush1.bf16.msra.mxu0 %v20392_v32  ;;  %v17995_v63 = vcombine.high %v320_v55, %v324_v56  ;;  %v17994_v2 = vcombine.low %v320_v55, %v324_v56  ;;  %v408_v48 = vld [vmem:[#allocation6 + $0x1c88] sm:$0xff] }
 0x15f   :  { %2611 = vmatmul.mubr.bf16.vlgmr.msra.gmra.mrb[4].mxu1 %v22444_v24  ;;  %5439 = vmatprep.subr.bf16.mxu0 %v20397_v38  ;;  %v412_v49 = vld [vmem:[#allocation6 + $0x1ce8] sm:$0xff] }
 0x160   :  { %2622 = vmatpush1.bf16.msra.mxu1 %v17906_v58  ;;  %2653 = vmatprep.mubr.bf16.mxu1 %v22446_v28  ;;  %v20406_v58 = vld [vmem:[#allocation9 + $0x244] ss:$24 sps:$4 sm:$0xff]   ;;  %v18083_v55 = vcombine.high %v408_v48, %v412_v49  ;;  %v18082_v56 = vcombine.low %v408_v48, %v412_v49 }
 0x161   :  { %2623 = vmatprep.subr.bf16.mxu1 %v17915_v61  ;;  %v328_v61 = vld [vmem:[#allocation6 + $0x1508] sm:$0xff]  ;;  %v142_v48 = vld [vmem:[#allocation6 + $0x378] sm:$0xff] }
 0x162   :  { %5440 = vmatpush1.bf16.msra.mxu0 %v20395_v39  ;;  %v18003_v5 = vcombine.high %v328_v61, %v332_v62  ;;  %v18002_v8 = vcombine.low %v328_v61, %v332_v62  ;;  %v392_v39 = vld [vmem:[#allocation6 + $0x1b08] sm:$0xff] }
 0x163   :  { %5441 = vmatprep.subr.bf16.mxu0 %v20400_v45  ;;  %v404_v45 = vld [vmem:[#allocation6 + $0x1c28] sm:$0xff] }
 0x164   :  { %2624 = vmatpush1.bf16.msra.mxu1 %v17914_v0  ;;  %v20409_v0 = vld [vmem:[#allocation9 + $0x274] ss:$24 sps:$4 sm:$0xff]  }
 0x165   :  { %2625 = vmatprep.subr.bf16.mxu1 %v17923_v3  ;;  %v336_v3 = vld [vmem:[#allocation6 + $0x15c8] sm:$0xff] }
 0x166   :  { %5442 = vmatpush1.bf16.msra.mxu0 %v20398_v46  ;;  %v18011_v11 = vcombine.high %v336_v3, %v340_v4  ;;  %v18010_v14 = vcombine.low %v336_v3, %v340_v4  ;;  %v432_v61 = vld [vmem:[#allocation6 + $0x1ec8] sm:$0xff] }
 0x167   :  { %5443 = vmatprep.subr.bf16.mxu0 %v20403_v52  ;;  %v436_v62 = vld [vmem:[#allocation6 + $0x1f28] sm:$0xff] }
 0x168   :  { %2626 = vmatpush1.bf16.msra.mxu1 %v17922_v6  ;;  %v20412_v6 = vld [vmem:[#allocation9 + $0x2a4] ss:$24 sps:$4 sm:$0xff]   ;;  %v18107_v3 = vcombine.high %v432_v61, %v436_v62  ;;  %v18106_v4 = vcombine.low %v432_v61, %v436_v62 }
 0x169   :  { %2627 = vmatprep.subr.bf16.mxu1 %v17931_v9  ;;  %v344_v9 = vld [vmem:[#allocation6 + $0x1688] sm:$0xff]  ;;  %v158_v61 = vld [vmem:[#allocation6 + $0x4f8] sm:$0xff] }
 0x16a   :  { %5444 = vmatpush1.bf16.msra.mxu0 %v20401_v53  ;;  %v18019_v17 = vcombine.high %v344_v9, %v348_v10  ;;  %v416_v53 = vld [vmem:[#allocation6 + $0x1d48] sm:$0xff] }
 0x16b   :  { %5445 = vmatprep.subr.bf16.mxu0 %v20406_v58  ;;  %v428_v58 = vld [vmem:[#allocation6 + $0x1e68] sm:$0xff] }
 0x16c   :  { %2628 = vmatpush1.bf16.msra.mxu1 %v17930_v12  ;;  %v20415_v12 = vld [vmem:[#allocation9 + $0x2d4] ss:$24 sps:$4 sm:$0xff]  }
 0x16d   :  { %2629 = vmatprep.subr.bf16.mxu1 %v17939_v15  ;;  %v352_v15 = vld [vmem:[#allocation6 + $0x1748] sm:$0xff] }
 0x16e   :  { %5446 = vmatpush1.bf16.msra.mxu0 %v20404_v59  ;;  %v18026_v23 = vcombine.low %v352_v15, %v356_v16 }
 0x16f   :  { %5447 = vmatprep.subr.bf16.mxu0 %v20409_v0 }
 0x170   :  { %2630 = vmatpush1.bf16.msra.mxu1 %v17938_v18  ;;  %v18018_v18 = vcombine.low %v344_v9, %v348_v10  ;;  %v456_v9 = vld [vmem:[#allocation6 + $0x2108] sm:$0xff] }
 0x171   :  { %2631 = vmatprep.subr.bf16.mxu1 %v17947_v22  ;;  %v18027_v22 = vcombine.high %v352_v15, %v356_v16  ;;  %v460_v10 = vld [vmem:[#allocation6 + $0x2168] sm:$0xff] }
 0x172   :  { %5448 = vmatpush1.bf16.msra.mxu0 %v20407_v1  ;;  %v440_v1 = vld [vmem:[#allocation6 + $0x1f88] sm:$0xff]  ;;  %v18131_v15 = vcombine.high %v456_v9, %v460_v10  ;;  %v18130_v16 = vcombine.low %v456_v9, %v460_v10 }
 0x173   :  { %5449 = vmatprep.subr.bf16.mxu0 %v20412_v6  ;;  %v452_v6 = vld [vmem:[#allocation6 + $0x20a8] sm:$0xff] }
 0x174   :  { %2632 = vmatpush1.bf16.msra.mxu1 %v17946_v26  ;;  %v372_v26 = vld [vmem:[#allocation6 + $0x1928] sm:$0xff] }
 0x175   :  { %2633 = vmatprep.subr.bf16.mxu1 %v17955_v30  ;;  %v376_v30 = vld [vmem:[#allocation6 + $0x1988] sm:$0xff]  ;;  %v18043_v32 = vcombine.high %v368_v25, %v372_v26 }
 0x176   :  { %5450 = vmatpush1.bf16.msra.mxu0 %v20410_v7  ;;  %v18050_v38 = vcombine.low %v376_v30, %v380_v31 }
 0x177   :  { %5451 = vmatprep.subr.bf16.mxu0 %v20415_v12 }
 0x178   :  { %2634 = vmatpush1.bf16.msra.mxu1 %v17954_v33  ;;  %v18042_v33 = vcombine.low %v368_v25, %v372_v26 }
 0x179   :  { %2635 = vmatprep.subr.bf16.mxu1 %v17963_v37  ;;  %v18051_v37 = vcombine.high %v376_v30, %v380_v31 }
 0x17a   :  { %5452 = vmatpush1.bf16.msra.mxu0 %v20413_v13  ;;  %v464_v13 = vld [vmem:[#allocation6 + $0x21c8] sm:$0xff] }
 0x17c   :  { %2636 = vmatpush1.bf16.msra.mxu1 %v17962_v40  ;;  %v396_v40 = vld [vmem:[#allocation6 + $0x1b68] sm:$0xff] }
 0x17d   :  { %2637 = vmatprep.subr.bf16.mxu1 %v17971_v44  ;;  %v400_v44 = vld [vmem:[#allocation6 + $0x1bc8] sm:$0xff]  ;;  %v18067_v46 = vcombine.high %v392_v39, %v396_v40 }
 0x17e   :  { %v18074_v52 = vcombine.low %v400_v44, %v404_v45 }
 0x180   :  { %2638 = vmatpush1.bf16.msra.mxu1 %v17970_v47  ;;  %v18066_v47 = vcombine.low %v392_v39, %v396_v40 }
 0x181   :  { %2639 = vmatprep.subr.bf16.mxu1 %v17979_v51  ;;  %v18075_v51 = vcombine.high %v400_v44, %v404_v45  ;;  %v489_v45 = vlaneseq }
 0x184   :  { %2640 = vmatpush1.bf16.msra.mxu1 %v17978_v54  ;;  %v420_v54 = vld [vmem:[#allocation6 + $0x1da8] sm:$0xff] }
 0x185   :  { %2641 = vmatprep.subr.bf16.mxu1 %v17987_v57  ;;  %v424_v57 = vld [vmem:[#allocation6 + $0x1e08] sm:$0xff]  ;;  %v18091_v59 = vcombine.high %v416_v53, %v420_v54 }
 0x186   :  { %v18098_v0 = vcombine.low %v424_v57, %v428_v58 }
 0x188   :  { %2642 = vmatpush1.bf16.msra.mxu1 %v17986_v60  ;;  %v18090_v60 = vcombine.low %v416_v53, %v420_v54  ;;  %v146_v53 = vld [vmem:[#allocation6 + $0x3d8] sm:$0xff] }
 0x189   :  { %2643 = vmatprep.subr.bf16.mxu1 %v17995_v63  ;;  %v18099_v63 = vcombine.high %v424_v57, %v428_v58  ;;  %v150_v54 = vld [vmem:[#allocation6 + $0x438] sm:$0xff] }
 0x18a   :  { %v17823_v62 = vcombine.high %v146_v53, %v150_v54 }
 0x18c   :  { %2644 = vmatpush1.bf16.msra.mxu1 %v17994_v2  ;;  %v444_v2 = vld [vmem:[#allocation6 + $0x1fe8] sm:$0xff] }
 0x18d   :  { %2645 = vmatprep.subr.bf16.mxu1 %v18003_v5  ;;  %v448_v5 = vld [vmem:[#allocation6 + $0x2048] sm:$0xff]  ;;  %v18115_v7 = vcombine.high %v440_v1, %v444_v2 }
 0x18e   :  { %v18122_v12 = vcombine.low %v448_v5, %v452_v6 }
 0x190   :  { %2646 = vmatpush1.bf16.msra.mxu1 %v18002_v8  ;;  %v18114_v8 = vcombine.low %v440_v1, %v444_v2  ;;  %v17822_v1 = vcombine.low %v146_v53, %v150_v54  ;;  %v162_v2 = vld [vmem:[#allocation6 + $0x558] sm:$0xff] }
 0x191   :  { %2647 = vmatprep.subr.bf16.mxu1 %v18011_v11  ;;  %v18123_v11 = vcombine.high %v448_v5, %v452_v6  ;;  %v198_v53 = vld [vmem:[#allocation6 + $0x8b8] sm:$0xff] }
 0x194   :  { %2648 = vmatpush1.bf16.msra.mxu1 %v18010_v14  ;;  %v468_v14 = vld [vmem:[#allocation6 + $0x2228] sm:$0xff] }
 0x195   :  { %2649 = vmatprep.subr.bf16.mxu1 %v18019_v17  ;;  %v472_v17 = vld [vmem:[#allocation6 + $0x2288] sm:$0xff]  ;;  %v18139_v19 = vcombine.high %v464_v13, %v468_v14  ;;  %v18138_v21 = vcombine.low %v464_v13, %v468_v14 }
 0x198   :  { %2650 = vmatpush1.bf16.msra.mxu1 %v18018_v18  ;;  %v476_v18 = vld [vmem:[#allocation6 + $0x22e8] sm:$0xff] }
 0x199   :  { %2651 = vmatprep.subr.bf16.mxu1 %v18027_v22  ;;  %v480_v22 = vld [vmem:[#allocation6 + $0x2348] sm:$0xff]  ;;  %v18147_v25 = vcombine.high %v472_v17, %v476_v18  ;;  %v18146_v26 = vcombine.low %v472_v17, %v476_v18 }
 0x19c   :  { %2652 = vmatpush1.bf16.msra.mxu1 %v18026_v23  ;;  %v484_v23 = vld [vmem:[#allocation6 + $0x23a8] sm:$0xff] }
 0x19d   :  { %2664 = vmatprep.subr.bf16.mxu1 %v18035_v27  ;;  %v106_v27 = vld [vmem:[#allocation6 + $0x18] sm:$0xff]  ;;  %v18155_v30 = vcombine.high %v480_v22, %v484_v23  ;;  %v18154_v31 = vcombine.low %v480_v22, %v484_v23 }
 0x19f   :  { %2654 = vmatmul.mubr.bf16.vlgmr.msra.gmra.mrb[4].mxu1 %v22452_v36 }
 0x1a0   :  { %2665 = vmatpush1.bf16.msra.mxu1 %v18034_v29  ;;  %2696 = vmatprep.mubr.bf16.mxu1 %v22454_v41  ;;  %v110_v29 = vld [vmem:[#allocation6 + $0x78] sm:$0xff] }
 0x1a1   :  { %2666 = vmatprep.subr.bf16.mxu1 %v18043_v32  ;;  %v114_v32 = vld [vmem:[#allocation6 + $0xd8] sm:$0xff]  ;;  %v17783_v34 = vcombine.high %v106_v27, %v110_v29  ;;  %v17782_v35 = vcombine.low %v106_v27, %v110_v29 }
 0x1a2   :  { %v182_v27 = vld [vmem:[#allocation6 + $0x738] sm:$0xff] }
 0x1a4   :  { %2667 = vmatpush1.bf16.msra.mxu1 %v18042_v33  ;;  %v118_v33 = vld [vmem:[#allocation6 + $0x138] sm:$0xff] }
 0x1a5   :  { %2668 = vmatprep.subr.bf16.mxu1 %v18051_v37  ;;  %v122_v37 = vld [vmem:[#allocation6 + $0x198] sm:$0xff]  ;;  %v17791_v39 = vcombine.high %v114_v32, %v118_v33  ;;  %v17790_v40 = vcombine.low %v114_v32, %v118_v33 }
 0x1a8   :  { %2669 = vmatpush1.bf16.msra.mxu1 %v18050_v38  ;;  %v126_v38 = vld [vmem:[#allocation6 + $0x1f8] sm:$0xff] }
 0x1a9   :  { %2670 = vmatprep.subr.bf16.mxu1 %v18059_v42  ;;  %v130_v42 = vld [vmem:[#allocation6 + $0x258] sm:$0xff]  ;;  %v17799_v44 = vcombine.high %v122_v37, %v126_v38 }
 0x1ac   :  { %2671 = vmatpush1.bf16.msra.mxu1 %v18058_v43  ;;  %v134_v43 = vld [vmem:[#allocation6 + $0x2b8] sm:$0xff] }
 0x1ad   :  { %2672 = vmatprep.subr.bf16.mxu1 %v18067_v46  ;;  %v17798_v46 = vcombine.low %v122_v37, %v126_v38  ;;  %v17807_v49 = vcombine.high %v130_v42, %v134_v43 }
 0x1b0   :  { %2673 = vmatpush1.bf16.msra.mxu1 %v18066_v47  ;;  %v138_v47 = vld [vmem:[#allocation6 + $0x318] sm:$0xff] }
 0x1b1   :  { %2674 = vmatprep.subr.bf16.mxu1 %v18075_v51  ;;  %v22471_v51 = vshrl.u32 %v489_v45, 7  ;;  %v17814_v58 = vcombine.low %v138_v47, %v142_v48 }
 0x1b3   :  { %v22476_v57 = vsub.s32 0, %v22471_v51 }
 0x1b4   :  { %2675 = vmatpush1.bf16.msra.mxu1 %v18074_v52  ;;  %v17806_v52 = vcombine.low %v130_v42, %v134_v43 }
 0x1b5   :  { %2676 = vmatprep.subr.bf16.mxu1 %v18083_v55  ;;  %v17815_v55 = vcombine.high %v138_v47, %v142_v48 }
 0x1b8   :  { %2677 = vmatpush1.bf16.msra.mxu1 %v18082_v56  ;;  %v22473_v56 = vld [vmem:[#allocation8] sm:$0xff] }
 0x1b9   :  { %2678 = vmatprep.subr.bf16.mxu1 %v18091_v59  ;;  %v22479_v59 = vsub.s32 1, %v22471_v51 }
 0x1bc   :  { %2679 = vmatpush1.bf16.msra.mxu1 %v18090_v60  ;;  %v154_v60 = vld [vmem:[#allocation6 + $0x498] sm:$0xff] }
 0x1bd   :  { %2680 = vmatprep.subr.bf16.mxu1 %v18099_v63  ;;  %v492_v63 = vrot.slane %v22473_v56, %v22476_v57  ;;  %v17830_v10 = vcombine.low %v154_v60, %v158_v61 }
 0x1c0   :  { %2681 = vmatpush1.bf16.msra.mxu1 %v18098_v0  ;;  %v496_v0 = vrot.slane %v22473_v56, %v22479_v59 }
 0x1c1   :  { %2682 = vmatprep.subr.bf16.mxu1 %v18107_v3  ;;  %v166_v3 = vld [vmem:[#allocation6 + $0x5b8] sm:$0xff] }
 0x1c4   :  { %2683 = vmatpush1.bf16.msra.mxu1 %v18106_v4  ;;  %v17831_v4 = vcombine.high %v154_v60, %v158_v61  ;;  %v202_v60 = vld [vmem:[#allocation6 + $0x918] sm:$0xff] }
 0x1c5   :  { %2684 = vmatprep.subr.bf16.mxu1 %v18115_v7  ;;  %v206_v61 = vld [vmem:[#allocation6 + $0x978] sm:$0xff] }
 0x1c8   :  { %2685 = vmatpush1.bf16.msra.mxu1 %v18114_v8 }
 0x1c9   :  { %2686 = vmatprep.subr.bf16.mxu1 %v18123_v11  ;;  %v170_v11 = vld [vmem:[#allocation6 + $0x618] sm:$0xff] }
 0x1cc   :  { %2687 = vmatpush1.bf16.msra.mxu1 %v18122_v12 }
 0x1cd   :  { %2688 = vmatprep.subr.bf16.mxu1 %v18131_v15  ;;  %v17839_v15 = vcombine.high %v162_v2, %v166_v3 }
 0x1d0   :  { %2689 = vmatpush1.bf16.msra.mxu1 %v18130_v16  ;;  %v174_v16 = vld [vmem:[#allocation6 + $0x678] sm:$0xff] }
 0x1d1   :  { %2690 = vmatprep.subr.bf16.mxu1 %v18139_v19  ;;  %v17846_v38 = vcombine.low %v170_v11, %v174_v16 }
 0x1d4   :  { %2691 = vmatpush1.bf16.msra.mxu1 %v18138_v21 }
 0x1d5   :  { %2692 = vmatprep.subr.bf16.mxu1 %v18147_v25  ;;  %v17838_v25 = vcombine.low %v162_v2, %v166_v3  ;;  %v17879_v3 = vcombine.high %v202_v60, %v206_v61 }
 0x1d8   :  { %2693 = vmatpush1.bf16.msra.mxu1 %v18146_v26  ;;  %v178_v26 = vld [vmem:[#allocation6 + $0x6d8] sm:$0xff] }
 0x1d9   :  { %2694 = vmatprep.subr.bf16.mxu1 %v18155_v30  ;;  %v17855_v45 = vcombine.high %v178_v26, %v182_v27 }
 0x1dc   :  { %2695 = vmatpush1.bf16.msra.mxu1 %v18154_v31  ;;  %v17847_v31 = vcombine.high %v170_v11, %v174_v16  ;;  %v17878_v11 = vcombine.low %v202_v60, %v206_v61  ;;  %v218_v16 = vld [vmem:[#allocation6 + $0xa98] sm:$0xff] }
 0x1dd   :  { %2836 = vmatprep.subr.bf16.mxu1 %v17783_v34  ;;  %v258_v60 = vld [vmem:[#allocation6 + $0xe58] sm:$0xff] }
 0x1de   :  { %v262_v61 = vld [vmem:[#allocation6 + $0xeb8] sm:$0xff] }
 0x1df   :  { %2697 = vmatmul.mubr.bf16.vlgmr.msra.gmra.mrb[4].mxu1 %v22460_v50 }
 0x1e0   :  { %2837 = vmatpush1.bf16.msra.mxu1 %v17782_v35  ;;  %2868 = vmatprep.mubr.bf16.mxu1 %v22440_v20 }
 0x1e1   :  { %2838 = vmatprep.subr.bf16.mxu1 %v17791_v39  ;;  %v186_v39 = vld [vmem:[#allocation6 + $0x798] sm:$0xff] }
 0x1e4   :  { %2839 = vmatpush1.bf16.msra.mxu1 %v17790_v40  ;;  %v190_v40 = vld [vmem:[#allocation6 + $0x7f8] sm:$0xff] }
 0x1e5   :  { %2840 = vmatprep.subr.bf16.mxu1 %v17799_v44 }
 0x1e8   :  { %2841 = vmatpush1.bf16.msra.mxu1 %v17798_v46 }
 0x1e9   :  { %2842 = vmatprep.subr.bf16.mxu1 %v17807_v49  ;;  %v17854_v49 = vcombine.low %v178_v26, %v182_v27 }
 0x1ec   :  { %2843 = vmatpush1.bf16.msra.mxu1 %v17806_v52  ;;  %v194_v52 = vld [vmem:[#allocation6 + $0x858] sm:$0xff] }
 0x1ed   :  { %2844 = vmatprep.subr.bf16.mxu1 %v17815_v55  ;;  %v17863_v55 = vcombine.high %v186_v39, %v190_v40 }
 0x1f0   :  { %2845 = vmatpush1.bf16.msra.mxu1 %v17814_v58  ;;  %v17862_v58 = vcombine.low %v186_v39, %v190_v40  ;;  %v20419_v39 = vld [vmem:[#allocation9 + $0x330] ss:$24 sps:$4 sm:$0xff]   ;;  %v20421_v40 = vld [vmem:[#allocation9 + $0x334] ss:$24 sps:$4 sm:$0xff]  }
 0x1f1   :  { %2846 = vmatprep.subr.bf16.mxu1 %v17823_v62  ;;  %v17871_v62 = vcombine.high %v194_v52, %v198_v53 }
 0x1f2   :  { %v2569_v5 = vpop.f32.mrb[0].mxu1 }
 0x1f3   :  { %v22485_v6 = vadd.f32 %v2569_v5, %v492_v63  ;;  %v2571_v7 = vpop.f32.mrb[1].mxu1 }
 0x1f4   :  { %v22487_v8 = vadd.f32 %v2571_v7, %v496_v0  ;;  %v2573_v9 = vpop.f32.mrb[2].mxu1  ;;  %2847 = vmatpush1.bf16.msra.mxu1 %v17822_v1  ;;  %v214_v1 = vld [vmem:[#allocation6 + $0xa38] sm:$0xff] }
 0x1f5   :  { %v2981_v12 = vmul.f32 0.044715, %v22485_v6  ;;  %v22490_v13 = vadd.f32 %v2573_v9, %v492_v63  ;;  %v2575_v14 = vpop.f32.mrb[3].mxu1  ;;  %2848 = vmatprep.subr.bf16.mxu1 %v17831_v4  ;;  %v17870_v63 = vcombine.low %v194_v52, %v198_v53  ;;  %v250_v52 = vld [vmem:[#allocation6 + $0xd98] sm:$0xff]  ;;  %v20427_v53 = vld [vmem:[#allocation9 + $0x394] ss:$24 sps:$4 sm:$0xff]  }
 0x1f6   :  { %v2982_v17 = vmul.f32 0.044715, %v22487_v8  ;;  %v22493_v18 = vadd.f32 %v2575_v14, %v496_v0  ;;  %v210_v0 = vld [vmem:[#allocation6 + $0x9d8] sm:$0xff] }
 0x1f7   :  { %v2997_v19 = vmul.f32 %v22485_v6, %v2981_v12  ;;  %v2989_v21 = vmul.f32 0.044715, %v22490_v13  ;;  %v2965_v12 = vmul.f32 0.5, %v22485_v6  ;;  %v2973_v14 = vmul.f32 0.5, %v22490_v13 }
 0x1f8   :  { %v2998_v22 = vmul.f32 %v22487_v8, %v2982_v17  ;;  %v2990_v23 = vmul.f32 0.044715, %v22493_v18  ;;  %2849 = vmatpush1.bf16.msra.mxu1 %v17830_v10  ;;  %v222_v17 = vld [vmem:[#allocation6 + $0xaf8] sm:$0xff] }
 0x1f9   :  { %v3013_v29 = vmul.f32 %v22485_v6, %v2997_v19  ;;  %v3005_v30 = vmul.f32 %v22490_v13, %v2989_v21  ;;  %2850 = vmatprep.subr.bf16.mxu1 %v17839_v15  ;;  %v17887_v19 = vcombine.high %v210_v0, %v214_v1  ;;  %v2966_v21 = vmul.f32 0.5, %v22487_v8 }
 0x1fa   :  { %v3014_v32 = vmul.f32 %v22487_v8, %v2998_v22  ;;  %v3006_v33 = vmul.f32 %v22493_v18, %v2990_v23  ;;  %v2974_v22 = vmul.f32 0.5, %v22493_v18 }
 0x1fb   :  { %v3029_v34 = vadd.f32 %v22485_v6, %v3013_v29  ;;  %v3021_v35 = vmul.f32 %v22490_v13, %v3005_v30  ;;  %v17886_v30 = vcombine.low %v210_v0, %v214_v1  ;;  %v226_v6 = vld [vmem:[#allocation6 + $0xb58] sm:$0xff] }
 0x1fc   :  { %v3022_v37 = vmul.f32 %v22493_v18, %v3006_v33  ;;  %2851 = vmatpush1.bf16.msra.mxu1 %v17838_v25  ;;  %v3030_v42 = vadd.f32 %v22487_v8, %v3014_v32  ;;  %v17895_v33 = vcombine.high %v218_v16, %v222_v17  ;;  %v17894_v8 = vcombine.low %v218_v16, %v222_v17  ;;  %v20431_v0 = vld [vmem:[#allocation9 + $0x3c0] ss:$24 sps:$4 sm:$0xff]   ;;  %v20445_v17 = vld [vmem:[#allocation9 + $0x424] ss:$24 sps:$4 sm:$0xff]  }
 0x1fd   :  { %v3045_v43 = vmul.f32 0.7978846, %v3029_v34  ;;  %v3037_v44 = vadd.f32 %v22490_v13, %v3021_v35  ;;  %2852 = vmatprep.subr.bf16.mxu1 %v17847_v31  ;;  %v230_v13 = vld [vmem:[#allocation6 + $0xbb8] sm:$0xff] }
 0x1fe   :  { %v3038_v46 = vadd.f32 %v22493_v18, %v3022_v37  ;;  %v3046_v47 = vmul.f32 0.7978846, %v3030_v42  ;;  %v20416_v34 = vld [vmem:[#allocation9 + $0x300] ss:$24 sps:$4 sm:$0xff]   ;;  %v20418_v35 = vld [vmem:[#allocation9 + $0x304] ss:$24 sps:$4 sm:$0xff]   ;;  %v17902_v42 = vcombine.low %v226_v6, %v230_v13 }
 0x1ff   :  { %22096 = vtanh.f32 %v3045_v43  ;;  %v3053_v48 = vmul.f32 0.7978846, %v3037_v44  ;;  %5464 = vmatprep.subr.bf16.mxu0 %v20418_v35  ;;  %v234_v18 = vld [vmem:[#allocation6 + $0xc18] sm:$0xff] }
 0x200   :  { %2853 = vmatpush1.bf16.msra.mxu1 %v17846_v38  ;;  %v3054_v54 = vmul.f32 0.7978846, %v3038_v46  ;;  %22098 = vtanh.f32 %v3046_v47  ;;  %v238_v37 = vld [vmem:[#allocation6 + $0xc78] sm:$0xff]  ;;  %v17903_v38 = vcombine.high %v226_v6, %v230_v13 }
 0x201   :  { %22100 = vtanh.f32 %v3053_v48  ;;  %2854 = vmatprep.subr.bf16.mxu1 %v17855_v45  ;;  %v242_v43 = vld [vmem:[#allocation6 + $0xcd8] sm:$0xff]  ;;  %v17911_v45 = vcombine.high %v234_v18, %v238_v37  ;;  %v17910_v48 = vcombine.low %v234_v18, %v238_v37 }
 0x202   :  { %22102 = vtanh.f32 %v3054_v54  ;;  %v246_v44 = vld [vmem:[#allocation6 + $0xd38] sm:$0xff] }
 0x203   :  { %v20422_v46 = vld [vmem:[#allocation9 + $0x360] ss:$24 sps:$4 sm:$0xff]   ;;  %v20424_v47 = vld [vmem:[#allocation9 + $0x364] ss:$24 sps:$4 sm:$0xff]  }
 0x204   :  { %2855 = vmatpush1.bf16.msra.mxu1 %v17854_v49  ;;  %v17919_v49 = vcombine.high %v242_v43, %v246_v44  ;;  %v254_v54 = vld [vmem:[#allocation6 + $0xdf8] sm:$0xff] }
 0x205   :  { %2856 = vmatprep.subr.bf16.mxu1 %v17863_v55  ;;  %v20425_v55 = vld [vmem:[#allocation9 + $0x390] ss:$24 sps:$4 sm:$0xff]   ;;  %v17926_v1 = vcombine.low %v250_v52, %v254_v54  ;;  %v286_v18 = vld [vmem:[#allocation6 + $0x10f8] sm:$0xff] }
 0x208   :  { %2857 = vmatpush1.bf16.msra.mxu1 %v17862_v58  ;;  %v17918_v58 = vcombine.low %v242_v43, %v246_v44 }
 0x209   :  { %v22097_v2 = vpop.eup %22096  ;;  %2858 = vmatprep.subr.bf16.mxu1 %v17871_v62  ;;  %v20433_v62 = vld [vmem:[#allocation9 + $0x3c4] ss:$24 sps:$4 sm:$0xff]  }
 0x20a   :  { %v22099_v4 = vpop.eup %22098  ;;  %v3077_v5 = vadd.f32 1.0, %v22097_v2  ;;  %v266_v2 = vld [vmem:[#allocation6 + $0xf18] sm:$0xff] }
 0x20b   :  { %v22101_v7 = vpop.eup %22100  ;;  %v3078_v9 = vadd.f32 1.0, %v22099_v4  ;;  %v20439_v4 = vld [vmem:[#allocation9 + $0x3f4] ss:$24 sps:$4 sm:$0xff]  }
 0x20c   :  { %v22103_v10 = vpop.eup %22102  ;;  %2859 = vmatpush1.bf16.msra.mxu1 %v17870_v63  ;;  %v3085_v15 = vadd.f32 1.0, %v22101_v7  ;;  %v3093_v25 = vmul.f32 %v3077_v5, %v2965_v12  ;;  %v17927_v63 = vcombine.high %v250_v52, %v254_v54  ;;  %v17935_v5 = vcombine.high %v258_v60, %v262_v61  ;;  %v270_v7 = vld [vmem:[#allocation6 + $0xf78] sm:$0xff] }
 0x20d   :  { %2860 = vmatprep.subr.bf16.mxu1 %v17879_v3  ;;  %v3086_v23 = vadd.f32 1.0, %v22103_v10  ;;  %v3094_v27 = vmul.f32 %v3078_v9, %v2966_v21  ;;  %v22522_v3 = vsub.s32 4, %v22471_v51  ;;  %v20437_v9 = vld [vmem:[#allocation9 + $0x3f0] ss:$24 sps:$4 sm:$0xff]   ;;  %v22525_v10 = vsub.s32 5, %v22471_v51  ;;  %v278_v21 = vld [vmem:[#allocation6 + $0x1038] sm:$0xff] }
 0x20e   :  { %v3101_v26 = vmul.f32 %v3085_v15, %v2973_v14  ;;  %v17934_v14 = vcombine.low %v258_v60, %v262_v61  ;;  %v274_v15 = vld [vmem:[#allocation6 + $0xfd8] sm:$0xff]  ;;  %v17942_v6 = vcombine.low %v266_v2, %v270_v7 }
 0x20f   :  { %v3102_v29 = vmul.f32 %v3086_v23, %v2974_v22  ;;  %v512_v12 = vrot.slane %v22473_v56, %v22525_v10  ;;  %v17951_v35 = vcombine.high %v274_v15, %v278_v21  ;;  %v20457_v54 = vld [vmem:[#allocation9 + $0x484] ss:$24 sps:$4 sm:$0xff]   ;;  %v20455_v60 = vld [vmem:[#allocation9 + $0x480] ss:$24 sps:$4 sm:$0xff]  }
 0x210   :  { %2861 = vmatpush1.bf16.msra.mxu1 %v17878_v11  ;;  %v22513_v31 = vpack.c.bf16 %v3101_v26, %v3093_v25  ;;  %v508_v11 = vrot.slane %v22473_v56, %v22522_v3  ;;  %v2827_v16 = vpop.f32.mrb[0].mxu0  ;;  %v20443_v25 = vld [vmem:[#allocation9 + $0x420] ss:$24 sps:$4 sm:$0xff]  }
 0x211   :  { %2862 = vmatprep.subr.bf16.mxu1 %v17887_v19  ;;  %v22515_v32 = vpack.c.bf16 %v3102_v29, %v3094_v27  ;;  %v17943_v19 = vcombine.high %v266_v2, %v270_v7  ;;  %v2829_v23 = vpop.f32.mrb[1].mxu0  ;;  %v298_v7 = vld [vmem:[#allocation6 + $0x1218] sm:$0xff] }
 0x212   :  { %v22531_v22 = vadd.f32 %v2827_v16, %v508_v11  ;;  %v22533_v26 = vadd.f32 %v2829_v23, %v512_v12  ;;  %v2831_v27 = vpop.f32.mrb[2].mxu0  ;;  %v20467_v23 = vld [vmem:[#allocation9 + $0x4e0] ss:$24 sps:$4 sm:$0xff]  }
 0x213   :  { %5453 = vmatprep.mubr.bf16.mxu0 %v22515_v32  ;;  %v22536_v56 = vadd.f32 %v2831_v27, %v508_v11  ;;  %v20461_v11 = vld [vmem:[#allocation9 + $0x4b0] ss:$24 sps:$4 sm:$0xff]  }
 0x214   :  { %2863 = vmatpush1.bf16.msra.mxu1 %v17886_v30  ;;  %5454 = vmatmul.mubr.bf16.vlgmr.msra.gmra.mrb[4].mxu0 %v22513_v31  ;;  %v2985_v29 = vmul.f32 0.044715, %v22531_v22  ;;  %v2833_v30 = vpop.f32.mrb[3].mxu0  ;;  %v2986_v13 = vmul.f32 0.044715, %v22533_v26 }
 0x215   :  { %2864 = vmatprep.subr.bf16.mxu1 %v17895_v33  ;;  %5465 = vmatpush1.bf16.msra.mxu0 %v20416_v34  ;;  %v22539_v33 = vadd.f32 %v2833_v30, %v512_v12  ;;  %v20451_v34 = vld [vmem:[#allocation9 + $0x454] ss:$24 sps:$4 sm:$0xff]  }
 0x216   :  { %5466 = vmatprep.subr.bf16.mxu0 %v20421_v40  ;;  %v3001_v37 = vmul.f32 %v22531_v22, %v2985_v29  ;;  %v3002_v40 = vmul.f32 %v22533_v26, %v2986_v13  ;;  %v314_v29 = vld [vmem:[#allocation6 + $0x1398] sm:$0xff]  ;;  %v20475_v30 = vld [vmem:[#allocation9 + $0x514] ss:$24 sps:$4 sm:$0xff]   ;;  %v20473_v13 = vld [vmem:[#allocation9 + $0x510] ss:$24 sps:$4 sm:$0xff]  }
 0x218   :  { %2865 = vmatpush1.bf16.msra.mxu1 %v17894_v8  ;;  %v282_v8 = vld [vmem:[#allocation6 + $0x1098] sm:$0xff]  ;;  %v3017_v43 = vmul.f32 %v22531_v22, %v3001_v37 }
 0x219   :  { %2866 = vmatprep.subr.bf16.mxu1 %v17903_v38  ;;  %5467 = vmatpush1.bf16.msra.mxu0 %v20419_v39  ;;  %v2993_v38 = vmul.f32 0.044715, %v22536_v56  ;;  %v20449_v39 = vld [vmem:[#allocation9 + $0x450] ss:$24 sps:$4 sm:$0xff]  }
 0x21a   :  { %5468 = vmatprep.subr.bf16.mxu0 %v20424_v47  ;;  %v3033_v52 = vadd.f32 %v22531_v22, %v3017_v43 }
 0x21b   :  { %v3009_v44 = vmul.f32 %v22536_v56, %v2993_v38  ;;  %v326_v38 = vld [vmem:[#allocation6 + $0x14b8] sm:$0xff] }
 0x21c   :  { %2867 = vmatpush1.bf16.msra.mxu1 %v17902_v42  ;;  %v2994_v42 = vmul.f32 0.044715, %v22539_v33  ;;  %v3049_v61 = vmul.f32 0.7978846, %v3033_v52  ;;  %v330_v52 = vld [vmem:[#allocation6 + $0x1518] sm:$0xff] }
 0x21d   :  { %2879 = vmatprep.subr.bf16.mxu1 %v17911_v45  ;;  %5469 = vmatpush1.bf16.msra.mxu0 %v20422_v46  ;;  %v17950_v45 = vcombine.low %v274_v15, %v278_v21  ;;  %v3018_v46 = vmul.f32 %v22533_v26, %v3002_v40  ;;  %v310_v21 = vld [vmem:[#allocation6 + $0x1338] sm:$0xff] }
 0x21e   :  { %5470 = vmatprep.subr.bf16.mxu0 %v20427_v53  ;;  %v3010_v47 = vmul.f32 %v22539_v33, %v2994_v42  ;;  %v3025_v53 = vmul.f32 %v22536_v56, %v3009_v44  ;;  %22104 = vtanh.f32 %v3049_v61  ;;  %v20481_v40 = vld [vmem:[#allocation9 + $0x544] ss:$24 sps:$4 sm:$0xff]   ;;  %v2970_v44 = vmul.f32 0.5, %v22533_v26 }
 0x21f   :  { %2869 = vmatmul.mubr.bf16.vlgmr.msra.gmra.mrb[8].mxu1 %v22444_v24  ;;  %v2977_v61 = vmul.f32 0.5, %v22536_v56 }
 0x220   :  { %2880 = vmatpush1.bf16.msra.mxu1 %v17910_v48  ;;  %2911 = vmatprep.mubr.bf16.mxu1 %v22446_v28  ;;  %v17959_v48 = vcombine.high %v282_v8, %v286_v18 }
 0x221   :  { %2881 = vmatprep.subr.bf16.mxu1 %v17919_v49  ;;  %5471 = vmatpush1.bf16.msra.mxu0 %v20425_v55  ;;  %v290_v49 = vld [vmem:[#allocation6 + $0x1158] sm:$0xff] }
 0x222   :  { %5472 = vmatprep.subr.bf16.mxu0 %v20433_v62  ;;  %v294_v55 = vld [vmem:[#allocation6 + $0x11b8] sm:$0xff]  ;;  %v3041_v62 = vadd.f32 %v22536_v56, %v3025_v53 }
 0x223   :  { %v17967_v2 = vcombine.high %v290_v49, %v294_v55  ;;  %v17966_v15 = vcombine.low %v290_v49, %v294_v55  ;;  %v334_v53 = vld [vmem:[#allocation6 + $0x1578] sm:$0xff]  ;;  %v20485_v55 = vld [vmem:[#allocation9 + $0x570] ss:$24 sps:$4 sm:$0xff]  }
 0x224   :  { %2882 = vmatpush1.bf16.msra.mxu1 %v17918_v58  ;;  %v3026_v58 = vmul.f32 %v22539_v33, %v3010_v47  ;;  %v2969_v47 = vmul.f32 0.5, %v22531_v22  ;;  %v18006_v56 = vcombine.low %v330_v52, %v334_v53 }
 0x225   :  { %2883 = vmatprep.subr.bf16.mxu1 %v17927_v63  ;;  %5473 = vmatpush1.bf16.msra.mxu0 %v20431_v0  ;;  %v17958_v63 = vcombine.low %v282_v8, %v286_v18  ;;  %v3034_v0 = vadd.f32 %v22533_v26, %v3018_v46 }
 0x226   :  { %5474 = vmatprep.subr.bf16.mxu0 %v20439_v4  ;;  %v3057_v4 = vmul.f32 0.7978846, %v3041_v62 }
 0x227   :  { %v3050_v12 = vmul.f32 0.7978846, %v3034_v0  ;;  %v338_v0 = vld [vmem:[#allocation6 + $0x15d8] sm:$0xff] }
 0x228   :  { %2884 = vmatpush1.bf16.msra.mxu1 %v17926_v1  ;;  %v3042_v1 = vadd.f32 %v22539_v33, %v3026_v58  ;;  %22106 = vtanh.f32 %v3057_v4 }
 0x229   :  { %2885 = vmatprep.subr.bf16.mxu1 %v17935_v5  ;;  %5475 = vmatpush1.bf16.msra.mxu0 %v20437_v9  ;;  %v20463_v5 = vld [vmem:[#allocation9 + $0x4b4] ss:$24 sps:$4 sm:$0xff]   ;;  %v302_v9 = vld [vmem:[#allocation6 + $0x1278] sm:$0xff]  ;;  %22108 = vtanh.f32 %v3050_v12 }
 0x22a   :  { %5476 = vmatprep.subr.bf16.mxu0 %v20445_v17  ;;  %v17975_v16 = vcombine.high %v298_v7, %v302_v9  ;;  %v306_v17 = vld [vmem:[#allocation6 + $0x12d8] sm:$0xff] }
 0x22b   :  { %v17983_v27 = vcombine.high %v306_v17, %v310_v21  ;;  %v17982_v8 = vcombine.low %v306_v17, %v310_v21  ;;  %v346_v12 = vld [vmem:[#allocation6 + $0x1698] sm:$0xff]  ;;  %v20497_v17 = vld [vmem:[#allocation9 + $0x5d0] ss:$24 sps:$4 sm:$0xff]  }
 0x22c   :  { %2886 = vmatpush1.bf16.msra.mxu1 %v17934_v14  ;;  %v3058_v14 = vmul.f32 0.7978846, %v3042_v1  ;;  %v342_v1 = vld [vmem:[#allocation6 + $0x1638] sm:$0xff] }
 0x22d   :  { %2887 = vmatprep.subr.bf16.mxu1 %v17943_v19  ;;  %5477 = vmatpush1.bf16.msra.mxu0 %v20443_v25  ;;  %v20469_v19 = vld [vmem:[#allocation9 + $0x4e4] ss:$24 sps:$4 sm:$0xff]   ;;  %v17974_v25 = vcombine.low %v298_v7, %v302_v9  ;;  %v20491_v7 = vld [vmem:[#allocation9 + $0x5a0] ss:$24 sps:$4 sm:$0xff]  }
 0x22e   :  { %5478 = vmatprep.subr.bf16.mxu0 %v20451_v34  ;;  %22110 = vtanh.f32 %v3058_v14  ;;  %v322_v34 = vld [vmem:[#allocation6 + $0x1458] sm:$0xff] }
 0x22f   :  { %v17999_v49 = vcombine.high %v322_v34, %v326_v38  ;;  %v17998_v22 = vcombine.low %v322_v34, %v326_v38  ;;  %v350_v14 = vld [vmem:[#allocation6 + $0x16f8] sm:$0xff] }
 0x230   :  { %2888 = vmatpush1.bf16.msra.mxu1 %v17942_v6  ;;  %v318_v6 = vld [vmem:[#allocation6 + $0x13f8] sm:$0xff]  ;;  %v18023_v21 = vcombine.high %v346_v12, %v350_v14 }
 0x231   :  { %2889 = vmatprep.subr.bf16.mxu1 %v17951_v35  ;;  %5479 = vmatpush1.bf16.msra.mxu0 %v20449_v39  ;;  %v22105_v35 = vpop.eup %22104  ;;  %v17991_v37 = vcombine.high %v314_v29, %v318_v6  ;;  %v20479_v39 = vld [vmem:[#allocation9 + $0x540] ss:$24 sps:$4 sm:$0xff]  }
 0x232   :  { %5480 = vmatprep.subr.bf16.mxu0 %v20457_v54  ;;  %v22107_v18 = vpop.eup %22106  ;;  %v20487_v54 = vld [vmem:[#allocation9 + $0x574] ss:$24 sps:$4 sm:$0xff]   ;;  %v3081_v62 = vadd.f32 1.0, %v22105_v35 }
 0x233   :  { %v22109_v42 = vpop.eup %22108  ;;  %v3089_v26 = vadd.f32 1.0, %v22107_v18  ;;  %v374_v18 = vld [vmem:[#allocation6 + $0x1938] sm:$0xff] }
 0x234   :  { %2890 = vmatpush1.bf16.msra.mxu1 %v17950_v45  ;;  %v2978_v45 = vmul.f32 0.5, %v22539_v33  ;;  %v3082_v46 = vadd.f32 1.0, %v22109_v42 }
 0x235   :  { %2891 = vmatprep.subr.bf16.mxu1 %v17959_v48  ;;  %5481 = vmatpush1.bf16.msra.mxu0 %v20455_v60  ;;  %v17990_v48 = vcombine.low %v314_v29, %v318_v6  ;;  %v3105_v4 = vmul.f32 %v3089_v26, %v2977_v61  ;;  %v18022_v29 = vcombine.low %v346_v12, %v350_v14  ;;  %v362_v6 = vld [vmem:[#allocation6 + $0x1818] sm:$0xff] }
 0x236   :  { %5482 = vmatprep.subr.bf16.mxu0 %v20463_v5  ;;  %v3098_v60 = vmul.f32 %v3082_v46, %v2970_v44  ;;  %v18007_v5 = vcombine.high %v330_v52, %v334_v53  ;;  %v386_v44 = vld [vmem:[#allocation6 + $0x1a58] sm:$0xff] }
 0x237   :  { %v410_v61 = vld [vmem:[#allocation6 + $0x1c98] sm:$0xff] }
 0x238   :  { %2892 = vmatpush1.bf16.msra.mxu1 %v17958_v63  ;;  %v22111_v43 = vpop.eup %22110  ;;  %v3097_v63 = vmul.f32 %v3081_v62, %v2969_v47  ;;  %v414_v62 = vld [vmem:[#allocation6 + $0x1cf8] sm:$0xff] }
 0x239   :  { %2893 = vmatprep.subr.bf16.mxu1 %v17967_v2  ;;  %5483 = vmatpush1.bf16.msra.mxu0 %v20461_v11  ;;  %v3090_v58 = vadd.f32 1.0, %v22111_v43  ;;  %v20493_v2 = vld [vmem:[#allocation9 + $0x5a4] ss:$24 sps:$4 sm:$0xff]  }
 0x23a   :  { %5484 = vmatprep.subr.bf16.mxu0 %v20469_v19  ;;  %v22561_v11 = vpack.c.bf16 %v3105_v4, %v3097_v63  ;;  %v18014_v19 = vcombine.low %v338_v0, %v342_v1  ;;  %v418_v63 = vld [vmem:[#allocation6 + $0x1d58] sm:$0xff] }
 0x23b   :  { %v3106_v33 = vmul.f32 %v3090_v58, %v2978_v45  ;;  %v390_v45 = vld [vmem:[#allocation6 + $0x1ab8] sm:$0xff] }
 0x23c   :  { %2894 = vmatpush1.bf16.msra.mxu1 %v17966_v15  ;;  %v20499_v15 = vld [vmem:[#allocation9 + $0x5d4] ss:$24 sps:$4 sm:$0xff]   ;;  %v18063_v47 = vcombine.high %v386_v44, %v390_v45  ;;  %v18062_v52 = vcombine.low %v386_v44, %v390_v45  ;;  %v430_v4 = vld [vmem:[#allocation6 + $0x1e78] sm:$0xff] }
 0x23d   :  { %2895 = vmatprep.subr.bf16.mxu1 %v17975_v16  ;;  %5485 = vmatpush1.bf16.msra.mxu0 %v20467_v23  ;;  %v22559_v9 = vpack.c.bf16 %v3106_v33, %v3098_v60  ;;  %v18015_v16 = vcombine.high %v338_v0, %v342_v1  ;;  %v20505_v23 = vld [vmem:[#allocation9 + $0x604] ss:$24 sps:$4 sm:$0xff]   ;;  %v18087_v33 = vcombine.high %v410_v61, %v414_v62 }
 0x23e   :  { %5486 = vmatprep.subr.bf16.mxu0 %v20475_v30  ;;  %v18086_v0 = vcombine.low %v410_v61, %v414_v62  ;;  %v438_v12 = vld [vmem:[#allocation6 + $0x1f38] sm:$0xff]  ;;  %v22568_v62 = vsub.s32 2, %v22471_v51 }
 0x23f   :  { %v486_v44 = vld [vmem:[#allocation6 + $0x23b8] sm:$0xff] }
 0x240   :  { %2896 = vmatpush1.bf16.msra.mxu1 %v17974_v25  ;;  %v354_v25 = vld [vmem:[#allocation6 + $0x1758] sm:$0xff] }
 0x241   :  { %2897 = vmatprep.subr.bf16.mxu1 %v17983_v27  ;;  %5487 = vmatpush1.bf16.msra.mxu0 %v20473_v13  ;;  %v358_v27 = vld [vmem:[#allocation6 + $0x17b8] sm:$0xff] }
 0x242   :  { %5488 = vmatprep.subr.bf16.mxu0 %v20481_v40  ;;  %v18031_v30 = vcombine.high %v354_v25, %v358_v27  ;;  %v366_v13 = vld [vmem:[#allocation6 + $0x1878] sm:$0xff]  ;;  %v18030_v34 = vcombine.low %v354_v25, %v358_v27 }
 0x243   :  { %v18039_v35 = vcombine.high %v362_v6, %v366_v13  ;;  %v382_v40 = vld [vmem:[#allocation6 + $0x19f8] sm:$0xff] }
 0x244   :  { %2898 = vmatpush1.bf16.msra.mxu1 %v17982_v8  ;;  %v370_v8 = vld [vmem:[#allocation6 + $0x18d8] sm:$0xff] }
 0x245   :  { %2899 = vmatprep.subr.bf16.mxu1 %v17991_v37  ;;  %5489 = vmatpush1.bf16.msra.mxu0 %v20479_v39  ;;  %v18038_v37 = vcombine.low %v362_v6, %v366_v13  ;;  %v18047_v38 = vcombine.high %v370_v8, %v374_v18  ;;  %v378_v39 = vld [vmem:[#allocation6 + $0x1998] sm:$0xff]  ;;  %v18046_v42 = vcombine.low %v370_v8, %v374_v18 }
 0x246   :  { %5490 = vmatprep.subr.bf16.mxu0 %v20487_v54  ;;  %v18055_v43 = vcombine.high %v378_v39, %v382_v40  ;;  %v18054_v46 = vcombine.low %v378_v39, %v382_v40  ;;  %v402_v54 = vld [vmem:[#allocation6 + $0x1bd8] sm:$0xff] }
 0x247   :  { %v454_v25 = vld [vmem:[#allocation6 + $0x20b8] sm:$0xff] }
 0x248   :  { %2900 = vmatpush1.bf16.msra.mxu1 %v17990_v48  ;;  %v394_v48 = vld [vmem:[#allocation6 + $0x1b18] sm:$0xff] }
 0x249   :  { %2901 = vmatprep.subr.bf16.mxu1 %v17999_v49  ;;  %5491 = vmatpush1.bf16.msra.mxu0 %v20485_v55  ;;  %v398_v49 = vld [vmem:[#allocation6 + $0x1b78] sm:$0xff] }
 0x24a   :  { %5492 = vmatprep.subr.bf16.mxu0 %v20493_v2  ;;  %v18071_v53 = vcombine.high %v394_v48, %v398_v49  ;;  %v406_v55 = vld [vmem:[#allocation6 + $0x1c38] sm:$0xff]  ;;  %v18070_v58 = vcombine.low %v394_v48, %v398_v49 }
 0x24b   :  { %v18079_v60 = vcombine.high %v402_v54, %v406_v55  ;;  %v18078_v26 = vcombine.low %v402_v54, %v406_v55  ;;  %v426_v2 = vld [vmem:[#allocation6 + $0x1e18] sm:$0xff] }
 0x24c   :  { %2902 = vmatpush1.bf16.msra.mxu1 %v17998_v22  ;;  %v422_v22 = vld [vmem:[#allocation6 + $0x1db8] sm:$0xff]  ;;  %v18102_v14 = vcombine.low %v426_v2, %v430_v4 }
 0x24d   :  { %2903 = vmatprep.subr.bf16.mxu1 %v18007_v5  ;;  %5493 = vmatpush1.bf16.msra.mxu0 %v20491_v7  ;;  %v18095_v1 = vcombine.high %v418_v63, %v422_v22  ;;  %v18094_v5 = vcombine.low %v418_v63, %v422_v22  ;;  %v18103_v7 = vcombine.high %v426_v2, %v430_v4  ;;  %v462_v6 = vld [vmem:[#allocation6 + $0x2178] sm:$0xff]  ;;  %v20460_v63 = vld [vmem:[#allocation9 + $0xfc] ss:$24 sps:$4 sm:$0xff]   ;;  %v22573_v22 = vld [vmem:[#allocation8] sm:$0xff] }
 0x24e   :  { %5494 = vmatprep.subr.bf16.mxu0 %v20499_v15  ;;  %v470_v8 = vld [vmem:[#allocation6 + $0x2238] sm:$0xff]  ;;  %v20458_v2 = vld [vmem:[#allocation9 + $0xf8] ss:$24 sps:$4 sm:$0xff]  }
 0x24f   :  { %v478_v39 = vld [vmem:[#allocation6 + $0x22f8] sm:$0xff] }
 0x250   :  { %2904 = vmatpush1.bf16.msra.mxu1 %v18006_v56  ;;  %v434_v56 = vld [vmem:[#allocation6 + $0x1ed8] sm:$0xff] }
 0x251   :  { %2905 = vmatprep.subr.bf16.mxu1 %v18015_v16  ;;  %5495 = vmatpush1.bf16.msra.mxu0 %v20497_v17  ;;  %v18111_v15 = vcombine.high %v434_v56, %v438_v12  ;;  %v442_v16 = vld [vmem:[#allocation6 + $0x1f98] sm:$0xff] }
 0x252   :  { %5507 = vmatprep.subr.bf16.mxu0 %v20505_v23  ;;  %v446_v17 = vld [vmem:[#allocation6 + $0x1ff8] sm:$0xff] }
 0x253   :  { %v450_v23 = vld [vmem:[#allocation6 + $0x2058] sm:$0xff]  ;;  %v18118_v27 = vcombine.low %v442_v16, %v446_v17 }
 0x254   :  { %2906 = vmatpush1.bf16.msra.mxu1 %v18014_v19  ;;  %v18110_v19 = vcombine.low %v434_v56, %v438_v12  ;;  %v18126_v13 = vcombine.low %v450_v23, %v454_v25  ;;  %v20430_v48 = vld [vmem:[#allocation9 + $0xc] ss:$24 sps:$4 sm:$0xff]   ;;  %v20428_v49 = vld [vmem:[#allocation9 + $0x8] ss:$24 sps:$4 sm:$0xff]  }
 0x255   :  { %2907 = vmatprep.subr.bf16.mxu1 %v18023_v21  ;;  %v18119_v21 = vcombine.high %v442_v16, %v446_v17  ;;  %v20442_v54 = vld [vmem:[#allocation9 + $0x6c] ss:$24 sps:$4 sm:$0xff]   ;;  %v20440_v55 = vld [vmem:[#allocation9 + $0x68] ss:$24 sps:$4 sm:$0xff]  }
 0x256   :  { %v20454_v61 = vld [vmem:[#allocation9 + $0xcc] ss:$24 sps:$4 sm:$0xff]  }
 0x257   :  { %v20466_v4 = vld [vmem:[#allocation9 + $0x12c] ss:$24 sps:$4 sm:$0xff]  }
 0x258   :  { %2908 = vmatpush1.bf16.msra.mxu1 %v18022_v29  ;;  %v18127_v29 = vcombine.high %v450_v23, %v454_v25 }
 0x259   :  { %2909 = vmatprep.subr.bf16.mxu1 %v18031_v30  ;;  %v458_v30 = vld [vmem:[#allocation6 + $0x2118] sm:$0xff] }
 0x25a   :  { %v18134_v18 = vcombine.low %v458_v30, %v462_v6 }
 0x25c   :  { %2910 = vmatpush1.bf16.msra.mxu1 %v18030_v34  ;;  %v18135_v34 = vcombine.high %v458_v30, %v462_v6 }
 0x25d   :  { %2922 = vmatprep.subr.bf16.mxu1 %v18039_v35  ;;  %v466_v35 = vld [vmem:[#allocation6 + $0x21d8] sm:$0xff] }
 0x25e   :  { %v18142_v40 = vcombine.low %v466_v35, %v470_v8 }
 0x25f   :  { %2912 = vmatmul.mubr.bf16.vlgmr.msra.gmra.mrb[8].mxu1 %v22452_v36 }
 0x260   :  { %2923 = vmatpush1.bf16.msra.mxu1 %v18038_v37  ;;  %2954 = vmatprep.mubr.bf16.mxu1 %v22454_v41  ;;  %v18143_v37 = vcombine.high %v466_v35, %v470_v8  ;;  %v20478_v8 = vld [vmem:[#allocation9 + $0x18c] ss:$24 sps:$4 sm:$0xff]  }
 0x261   :  { %2924 = vmatprep.subr.bf16.mxu1 %v18047_v38  ;;  %v474_v38 = vld [vmem:[#allocation6 + $0x2298] sm:$0xff] }
 0x262   :  { %v18150_v45 = vcombine.low %v474_v38, %v478_v39 }
 0x264   :  { %2925 = vmatpush1.bf16.msra.mxu1 %v18046_v42  ;;  %v482_v42 = vld [vmem:[#allocation6 + $0x2358] sm:$0xff] }
 0x265   :  { %2926 = vmatprep.subr.bf16.mxu1 %v18055_v43  ;;  %v18151_v43 = vcombine.high %v474_v38, %v478_v39 }
 0x268   :  { %2927 = vmatpush1.bf16.msra.mxu1 %v18054_v46  ;;  %v18159_v46 = vcombine.high %v482_v42, %v486_v44 }
 0x269   :  { %2928 = vmatprep.subr.bf16.mxu1 %v18063_v47  ;;  %v18158_v47 = vcombine.low %v482_v42, %v486_v44  ;;  %v20476_v42 = vld [vmem:[#allocation9 + $0x188] ss:$24 sps:$4 sm:$0xff]  }
 0x26c   :  { %2929 = vmatpush1.bf16.msra.mxu1 %v18062_v52  ;;  %v20436_v52 = vld [vmem:[#allocation9 + $0x3c] ss:$24 sps:$4 sm:$0xff]  }
 0x26d   :  { %2930 = vmatprep.subr.bf16.mxu1 %v18071_v53  ;;  %v20434_v53 = vld [vmem:[#allocation9 + $0x38] ss:$24 sps:$4 sm:$0xff]  }
 0x270   :  { %2931 = vmatpush1.bf16.msra.mxu1 %v18070_v58  ;;  %v20448_v58 = vld [vmem:[#allocation9 + $0x9c] ss:$24 sps:$4 sm:$0xff]  }
 0x271   :  { %2932 = vmatprep.subr.bf16.mxu1 %v18079_v60  ;;  %v20446_v60 = vld [vmem:[#allocation9 + $0x98] ss:$24 sps:$4 sm:$0xff]  }
 0x274   :  { %2933 = vmatpush1.bf16.msra.mxu1 %v18078_v26  ;;  %v20452_v26 = vld [vmem:[#allocation9 + $0xc8] ss:$24 sps:$4 sm:$0xff]  }
 0x275   :  { %2934 = vmatprep.subr.bf16.mxu1 %v18087_v33  ;;  %v22571_v33 = vsub.s32 3, %v22471_v51 }
 0x278   :  { %2935 = vmatpush1.bf16.msra.mxu1 %v18086_v0  ;;  %v500_v0 = vrot.slane %v22573_v22, %v22568_v62 }
 0x279   :  { %2936 = vmatprep.subr.bf16.mxu1 %v18095_v1  ;;  %v504_v1 = vrot.slane %v22573_v22, %v22571_v33 }
 0x27c   :  { %2937 = vmatpush1.bf16.msra.mxu1 %v18094_v5 }
 0x27d   :  { %2938 = vmatprep.subr.bf16.mxu1 %v18103_v7 }
 0x280   :  { %2939 = vmatpush1.bf16.msra.mxu1 %v18102_v14 }
 0x281   :  { %2940 = vmatprep.subr.bf16.mxu1 %v18111_v15  ;;  %v20464_v15 = vld [vmem:[#allocation9 + $0x128] ss:$24 sps:$4 sm:$0xff]  }
 0x284   :  { %2941 = vmatpush1.bf16.msra.mxu1 %v18110_v19 }
 0x285   :  { %2942 = vmatprep.subr.bf16.mxu1 %v18119_v21  ;;  %v20472_v21 = vld [vmem:[#allocation9 + $0x15c] ss:$24 sps:$4 sm:$0xff]  }
 0x288   :  { %2943 = vmatpush1.bf16.msra.mxu1 %v18118_v27 }
 0x289   :  { %2944 = vmatprep.subr.bf16.mxu1 %v18127_v29 }
 0x28c   :  { %2945 = vmatpush1.bf16.msra.mxu1 %v18126_v13  ;;  %v20470_v13 = vld [vmem:[#allocation9 + $0x158] ss:$24 sps:$4 sm:$0xff]  }
 0x28d   :  { %2946 = vmatprep.subr.bf16.mxu1 %v18135_v34 }
 0x290   :  { %2947 = vmatpush1.bf16.msra.mxu1 %v18134_v18 }
 0x291   :  { %2948 = vmatprep.subr.bf16.mxu1 %v18143_v37 }
 0x294   :  { %2949 = vmatpush1.bf16.msra.mxu1 %v18142_v40 }
 0x295   :  { %2950 = vmatprep.subr.bf16.mxu1 %v18151_v43 }
 0x298   :  { %2951 = vmatpush1.bf16.msra.mxu1 %v18150_v45 }
 0x299   :  { %2952 = vmatprep.subr.bf16.mxu1 %v18159_v46  ;;  %v20484_v46 = vld [vmem:[#allocation9 + $0x1bc] ss:$24 sps:$4 sm:$0xff]  }
 0x29c   :  { %2953 = vmatpush1.bf16.msra.mxu1 %v18158_v47 }
 0x29d   :  { %5593 = vmatprep.subr.bf16.mxu1 %v20430_v48 }
 0x29f   :  { %2955 = vmatmul.mubr.bf16.vlgmr.msra.gmra.mrb[8].mxu1 %v22460_v50 }
 0x2a0   :  { %5594 = vmatpush1.bf16.msra.mxu1 %v20428_v49  ;;  %5625 = vmatprep.mubr.bf16.mxu1 %v22515_v32 }
 0x2a1   :  { %5595 = vmatprep.subr.bf16.mxu1 %v20436_v52  ;;  %v20482_v52 = vld [vmem:[#allocation9 + $0x1b8] ss:$24 sps:$4 sm:$0xff]  }
 0x2a4   :  { %5596 = vmatpush1.bf16.msra.mxu1 %v20434_v53 }
 0x2a5   :  { %5597 = vmatprep.subr.bf16.mxu1 %v20442_v54  ;;  %v20490_v54 = vld [vmem:[#allocation9 + $0x1ec] ss:$24 sps:$4 sm:$0xff]  }
 0x2a8   :  { %5598 = vmatpush1.bf16.msra.mxu1 %v20440_v55  ;;  %v20488_v55 = vld [vmem:[#allocation9 + $0x1e8] ss:$24 sps:$4 sm:$0xff]  }
 0x2a9   :  { %5599 = vmatprep.subr.bf16.mxu1 %v20448_v58  ;;  %v20496_v58 = vld [vmem:[#allocation9 + $0x21c] ss:$24 sps:$4 sm:$0xff]  }
 0x2ac   :  { %5600 = vmatpush1.bf16.msra.mxu1 %v20446_v60  ;;  %v20494_v60 = vld [vmem:[#allocation9 + $0x218] ss:$24 sps:$4 sm:$0xff]  }
 0x2ad   :  { %5601 = vmatprep.subr.bf16.mxu1 %v20454_v61 }
 0x2b0   :  { %5602 = vmatpush1.bf16.msra.mxu1 %v20452_v26  ;;  %v20502_v26 = vld [vmem:[#allocation9 + $0x24c] ss:$24 sps:$4 sm:$0xff]  }
 0x2b1   :  { %5603 = vmatprep.subr.bf16.mxu1 %v20460_v63 }
 0x2b2   :  { %v2698_v5 = vpop.f32.mrb[4].mxu1 }
 0x2b3   :  { %v20084_v7 = vadd.f32 %v2698_v5, %v500_v0  ;;  %v2700_v56 = vpop.f32.mrb[5].mxu1  ;;  %v20500_v5 = vld [vmem:[#allocation9 + $0x248] ss:$24 sps:$4 sm:$0xff]  }
 0x2b4   :  { %v22579_v12 = vadd.f32 %v2700_v56, %v504_v1  ;;  %v2702_v14 = vpop.f32.mrb[6].mxu1  ;;  %5604 = vmatpush1.bf16.msra.mxu1 %v20458_v2 }
 0x2b5   :  { %v2983_v16 = vmul.f32 0.044715, %v20084_v7  ;;  %v20086_v17 = vadd.f32 %v2702_v14, %v500_v0  ;;  %v2704_v19 = vpop.f32.mrb[7].mxu1  ;;  %5605 = vmatprep.subr.bf16.mxu1 %v20466_v4  ;;  %v2967_v56 = vmul.f32 0.5, %v20084_v7 }
 0x2b6   :  { %v2984_v23 = vmul.f32 0.044715, %v22579_v12  ;;  %v20087_v25 = vadd.f32 %v2704_v19, %v504_v1 }
 0x2b7   :  { %v2999_v27 = vmul.f32 %v20084_v7, %v2983_v16  ;;  %v2991_v29 = vmul.f32 0.044715, %v20086_v17  ;;  %v2975_v14 = vmul.f32 0.5, %v20086_v17  ;;  %v2968_v16 = vmul.f32 0.5, %v22579_v12 }
 0x2b8   :  { %v3000_v30 = vmul.f32 %v22579_v12, %v2984_v23  ;;  %v2992_v6 = vmul.f32 0.044715, %v20087_v25  ;;  %5606 = vmatpush1.bf16.msra.mxu1 %v20464_v15  ;;  %v2976_v19 = vmul.f32 0.5, %v20087_v25  ;;  %v20508_v23 = vld [vmem:[#allocation9 + $0x27c] ss:$24 sps:$4 sm:$0xff]  }
 0x2b9   :  { %v3015_v34 = vmul.f32 %v20084_v7, %v2999_v27  ;;  %v3007_v35 = vmul.f32 %v20086_v17, %v2991_v29  ;;  %5607 = vmatprep.subr.bf16.mxu1 %v20472_v21 }
 0x2ba   :  { %v3016_v18 = vmul.f32 %v22579_v12, %v3000_v30  ;;  %v3008_v37 = vmul.f32 %v20087_v25, %v2992_v6 }
 0x2bb   :  { %v3031_v38 = vadd.f32 %v20084_v7, %v3015_v34  ;;  %v3023_v39 = vmul.f32 %v20086_v17, %v3007_v35  ;;  %v20511_v7 = vld [vmem:[#allocation9 + $0x634] ss:$24 sps:$4 sm:$0xff]  }
 0x2bc   :  { %v3024_v40 = vmul.f32 %v20087_v25, %v3008_v37  ;;  %5608 = vmatpush1.bf16.msra.mxu1 %v20470_v13  ;;  %v3032_v43 = vadd.f32 %v22579_v12, %v3016_v18  ;;  %v20506_v13 = vld [vmem:[#allocation9 + $0x278] ss:$24 sps:$4 sm:$0xff]   ;;  %v20512_v12 = vld [vmem:[#allocation9 + $0x2a8] ss:$24 sps:$4 sm:$0xff]   ;;  %v20520_v18 = vld [vmem:[#allocation9 + $0x2dc] ss:$24 sps:$4 sm:$0xff]  }
 0x2bd   :  { %v3047_v44 = vmul.f32 0.7978846, %v3031_v38  ;;  %v3039_v45 = vadd.f32 %v20086_v17, %v3023_v39  ;;  %5609 = vmatprep.subr.bf16.mxu1 %v20478_v8  ;;  %v20503_v8 = vld [vmem:[#allocation9 + $0x600] ss:$24 sps:$4 sm:$0xff]   ;;  %v20514_v17 = vld [vmem:[#allocation9 + $0x2ac] ss:$24 sps:$4 sm:$0xff]  }
 0x2be   :  { %v3040_v47 = vadd.f32 %v20087_v25, %v3024_v40  ;;  %v3048_v48 = vmul.f32 0.7978846, %v3032_v43  ;;  %v20509_v25 = vld [vmem:[#allocation9 + $0x630] ss:$24 sps:$4 sm:$0xff]   ;;  %v20517_v37 = vld [vmem:[#allocation9 + $0x664] ss:$24 sps:$4 sm:$0xff]  }
 0x2bf   :  { %22112 = vtanh.f32 %v3047_v44  ;;  %v3055_v49 = vmul.f32 0.7978846, %v3039_v45  ;;  %v20518_v38 = vld [vmem:[#allocation9 + $0x2d8] ss:$24 sps:$4 sm:$0xff]   ;;  %v20526_v40 = vld [vmem:[#allocation9 + $0x30c] ss:$24 sps:$4 sm:$0xff]  }
 0x2c0   :  { %5610 = vmatpush1.bf16.msra.mxu1 %v20476_v42  ;;  %v3056_v53 = vmul.f32 0.7978846, %v3040_v47  ;;  %22114 = vtanh.f32 %v3048_v48  ;;  %v20515_v39 = vld [vmem:[#allocation9 + $0x660] ss:$24 sps:$4 sm:$0xff]   ;;  %v20523_v42 = vld [vmem:[#allocation9 + $0x694] ss:$24 sps:$4 sm:$0xff]  }
 0x2c1   :  { %22116 = vtanh.f32 %v3055_v49  ;;  %5611 = vmatprep.subr.bf16.mxu1 %v20484_v46  ;;  %v20524_v43 = vld [vmem:[#allocation9 + $0x308] ss:$24 sps:$4 sm:$0xff]   ;;  %v20532_v45 = vld [vmem:[#allocation9 + $0x33c] ss:$24 sps:$4 sm:$0xff]   ;;  %v20530_v47 = vld [vmem:[#allocation9 + $0x338] ss:$24 sps:$4 sm:$0xff]  }
 0x2c2   :  { %22118 = vtanh.f32 %v3056_v53  ;;  %v20521_v44 = vld [vmem:[#allocation9 + $0x690] ss:$24 sps:$4 sm:$0xff]   ;;  %v20529_v46 = vld [vmem:[#allocation9 + $0x6c4] ss:$24 sps:$4 sm:$0xff]   ;;  %v20527_v48 = vld [vmem:[#allocation9 + $0x6c0] ss:$24 sps:$4 sm:$0xff]  }
 0x2c3   :  { %v20538_v49 = vld [vmem:[#allocation9 + $0x36c] ss:$24 sps:$4 sm:$0xff]   ;;  %v20536_v53 = vld [vmem:[#allocation9 + $0x368] ss:$24 sps:$4 sm:$0xff]  }
 0x2c4   :  { %5612 = vmatpush1.bf16.msra.mxu1 %v20482_v52  ;;  %v20535_v52 = vld [vmem:[#allocation9 + $0x6f4] ss:$24 sps:$4 sm:$0xff]  }
 0x2c5   :  { %5613 = vmatprep.subr.bf16.mxu1 %v20490_v54  ;;  %v20533_v54 = vld [vmem:[#allocation9 + $0x6f0] ss:$24 sps:$4 sm:$0xff]  }
 0x2c8   :  { %5614 = vmatpush1.bf16.msra.mxu1 %v20488_v55  ;;  %v20544_v55 = vld [vmem:[#allocation9 + $0x39c] ss:$24 sps:$4 sm:$0xff]  }
 0x2c9   :  { %v22113_v61 = vpop.eup %22112  ;;  %5615 = vmatprep.subr.bf16.mxu1 %v20496_v58  ;;  %v20541_v58 = vld [vmem:[#allocation9 + $0x724] ss:$24 sps:$4 sm:$0xff]  }
 0x2ca   :  { %v22115_v63 = vpop.eup %22114  ;;  %v3079_v0 = vadd.f32 1.0, %v22113_v61  ;;  %v20539_v61 = vld [vmem:[#allocation9 + $0x720] ss:$24 sps:$4 sm:$0xff]  }
 0x2cb   :  { %v22117_v1 = vpop.eup %22116  ;;  %v3080_v2 = vadd.f32 1.0, %v22115_v63  ;;  %v20547_v63 = vld [vmem:[#allocation9 + $0x754] ss:$24 sps:$4 sm:$0xff]  }
 0x2cc   :  { %v22119_v4 = vpop.eup %22118  ;;  %5616 = vmatpush1.bf16.msra.mxu1 %v20494_v60  ;;  %v3087_v15 = vadd.f32 1.0, %v22117_v1  ;;  %v3095_v27 = vmul.f32 %v3079_v0, %v2967_v56  ;;  %v20542_v60 = vld [vmem:[#allocation9 + $0x398] ss:$24 sps:$4 sm:$0xff]   ;;  %v20548_v0 = vld [vmem:[#allocation9 + $0x3c8] ss:$24 sps:$4 sm:$0xff]  }
 0x2cd   :  { %5617 = vmatprep.subr.bf16.mxu1 %v20502_v26  ;;  %v3088_v21 = vadd.f32 1.0, %v22119_v4  ;;  %v3096_v30 = vmul.f32 %v3080_v2, %v2968_v16  ;;  %v20550_v26 = vld [vmem:[#allocation9 + $0x3cc] ss:$24 sps:$4 sm:$0xff]   ;;  %v20545_v1 = vld [vmem:[#allocation9 + $0x750] ss:$24 sps:$4 sm:$0xff]  }
 0x2ce   :  { %v3103_v29 = vmul.f32 %v3087_v15, %v2975_v14  ;;  %v20556_v2 = vld [vmem:[#allocation9 + $0x3fc] ss:$24 sps:$4 sm:$0xff]   ;;  %v20551_v56 = vld [vmem:[#allocation9 + $0x780] ss:$24 sps:$4 sm:$0xff]   ;;  %v20562_v14 = vld [vmem:[#allocation9 + $0x42c] ss:$24 sps:$4 sm:$0xff]  }
 0x2cf   :  { %v3104_v6 = vmul.f32 %v3088_v21, %v2976_v19  ;;  %v20553_v4 = vld [vmem:[#allocation9 + $0x784] ss:$24 sps:$4 sm:$0xff]   ;;  %v20559_v15 = vld [vmem:[#allocation9 + $0x7b4] ss:$24 sps:$4 sm:$0xff]   ;;  %v20560_v16 = vld [vmem:[#allocation9 + $0x428] ss:$24 sps:$4 sm:$0xff]  }
 0x2d0   :  { %5618 = vmatpush1.bf16.msra.mxu1 %v20500_v5  ;;  %v22586_v34 = vpack.c.bf16 %v3103_v29, %v3095_v27  ;;  %v20554_v5 = vld [vmem:[#allocation9 + $0x3f8] ss:$24 sps:$4 sm:$0xff]   ;;  %v20568_v21 = vld [vmem:[#allocation9 + $0x45c] ss:$24 sps:$4 sm:$0xff]  }
 0x2d1   :  { %v22588_v35 = vpack.c.bf16 %v3104_v6, %v3096_v30  ;;  %5619 = vmatprep.subr.bf16.mxu1 %v20508_v23  ;;  %v20557_v19 = vld [vmem:[#allocation9 + $0x7b0] ss:$24 sps:$4 sm:$0xff]   ;;  %v20565_v23 = vld [vmem:[#allocation9 + $0x7e4] ss:$24 sps:$4 sm:$0xff]   ;;  %v20563_v29 = vld [vmem:[#allocation9 + $0x7e0] ss:$24 sps:$4 sm:$0xff]  }
 0x2d2   :  { %v20566_v27 = vld [vmem:[#allocation9 + $0x458] ss:$24 sps:$4 sm:$0xff]   ;;  %v20574_v30 = vld [vmem:[#allocation9 + $0x48c] ss:$24 sps:$4 sm:$0xff]  }
 0x2d3   :  { %5496 = vmatprep.mubr.bf16.mxu0 %v22588_v35  ;;  %v20571_v6 = vld [vmem:[#allocation9 + $0x814] ss:$24 sps:$4 sm:$0xff]  }
 0x2d4   :  { %5497 = vmatmul.mubr.bf16.vlgmr.msra.gmra.mrb[4].mxu0 %v22586_v34  ;;  %5620 = vmatpush1.bf16.msra.mxu1 %v20506_v13  ;;  %v20572_v13 = vld [vmem:[#allocation9 + $0x488] ss:$24 sps:$4 sm:$0xff]  }
 0x2d5   :  { %5508 = vmatpush1.bf16.msra.mxu0 %v20503_v8  ;;  %5539 = vmatprep.mubr.bf16.mxu0 %v22559_v9  ;;  %v20569_v8 = vld [vmem:[#allocation9 + $0x810] ss:$24 sps:$4 sm:$0xff]  }
 0x2d6   :  { %5509 = vmatprep.subr.bf16.mxu0 %v20511_v7  ;;  %5621 = vmatprep.subr.bf16.mxu1 %v20514_v17  ;;  %v20580_v7 = vld [vmem:[#allocation9 + $0x4bc] ss:$24 sps:$4 sm:$0xff]  }
 0x2d7   :  { %v20577_v17 = vld [vmem:[#allocation9 + $0x844] ss:$24 sps:$4 sm:$0xff]  }
 0x2d8   :  { %5622 = vmatpush1.bf16.msra.mxu1 %v20512_v12  ;;  %v20578_v12 = vld [vmem:[#allocation9 + $0x4b8] ss:$24 sps:$4 sm:$0xff]  }
 0x2d9   :  { %5510 = vmatpush1.bf16.msra.mxu0 %v20509_v25  ;;  %5623 = vmatprep.subr.bf16.mxu1 %v20520_v18  ;;  %v20575_v25 = vld [vmem:[#allocation9 + $0x840] ss:$24 sps:$4 sm:$0xff]   ;;  %v20586_v18 = vld [vmem:[#allocation9 + $0x4ec] ss:$24 sps:$4 sm:$0xff]  }
 0x2da   :  { %5511 = vmatprep.subr.bf16.mxu0 %v20517_v37  ;;  %v20583_v37 = vld [vmem:[#allocation9 + $0x874] ss:$24 sps:$4 sm:$0xff]  }
 0x2dc   :  { %5624 = vmatpush1.bf16.msra.mxu1 %v20518_v38  ;;  %v20584_v38 = vld [vmem:[#allocation9 + $0x4e8] ss:$24 sps:$4 sm:$0xff]  }
 0x2dd   :  { %5512 = vmatpush1.bf16.msra.mxu0 %v20515_v39  ;;  %5636 = vmatprep.subr.bf16.mxu1 %v20526_v40  ;;  %v20581_v39 = vld [vmem:[#allocation9 + $0x870] ss:$24 sps:$4 sm:$0xff]   ;;  %v20592_v40 = vld [vmem:[#allocation9 + $0x51c] ss:$24 sps:$4 sm:$0xff]  }
 0x2de   :  { %5513 = vmatprep.subr.bf16.mxu0 %v20523_v42  ;;  %v20589_v42 = vld [vmem:[#allocation9 + $0x8a4] ss:$24 sps:$4 sm:$0xff]  }
 0x2df   :  { %5626 = vmatmul.mubr.bf16.vlgmr.msra.gmra.mrb[12].mxu1 %v22513_v31 }
 0x2e0   :  { %5637 = vmatpush1.bf16.msra.mxu1 %v20524_v43  ;;  %5668 = vmatprep.mubr.bf16.mxu1 %v22588_v35  ;;  %v20590_v43 = vld [vmem:[#allocation9 + $0x518] ss:$24 sps:$4 sm:$0xff]  }
 0x2e1   :  { %5514 = vmatpush1.bf16.msra.mxu0 %v20521_v44  ;;  %5638 = vmatprep.subr.bf16.mxu1 %v20532_v45  ;;  %v20587_v44 = vld [vmem:[#allocation9 + $0x8a0] ss:$24 sps:$4 sm:$0xff]   ;;  %v20598_v45 = vld [vmem:[#allocation9 + $0x54c] ss:$24 sps:$4 sm:$0xff]  }
 0x2e2   :  { %5515 = vmatprep.subr.bf16.mxu0 %v20529_v46  ;;  %v20595_v46 = vld [vmem:[#allocation9 + $0x8d4] ss:$24 sps:$4 sm:$0xff]  }
 0x2e4   :  { %5639 = vmatpush1.bf16.msra.mxu1 %v20530_v47  ;;  %v20596_v47 = vld [vmem:[#allocation9 + $0x548] ss:$24 sps:$4 sm:$0xff]  }
 0x2e5   :  { %5516 = vmatpush1.bf16.msra.mxu0 %v20527_v48  ;;  %5640 = vmatprep.subr.bf16.mxu1 %v20538_v49  ;;  %v20593_v48 = vld [vmem:[#allocation9 + $0x8d0] ss:$24 sps:$4 sm:$0xff]   ;;  %v20601_v49 = vld [vmem:[#allocation9 + $0x57c] ss:$24 sps:$4 sm:$0xff]  }
 0x2e6   :  { %5517 = vmatprep.subr.bf16.mxu0 %v20535_v52  ;;  %v20649_v52 = vld [vmem:[#allocation9 + $0x904] ss:$24 sps:$4 sm:$0xff]  }
 0x2e8   :  { %5641 = vmatpush1.bf16.msra.mxu1 %v20536_v53  ;;  %v20599_v53 = vld [vmem:[#allocation9 + $0x578] ss:$24 sps:$4 sm:$0xff]  }
 0x2e9   :  { %5518 = vmatpush1.bf16.msra.mxu0 %v20533_v54  ;;  %5642 = vmatprep.subr.bf16.mxu1 %v20544_v55  ;;  %v20604_v54 = vld [vmem:[#allocation9 + $0x5ac] ss:$24 sps:$4 sm:$0xff]   ;;  %v20647_v55 = vld [vmem:[#allocation9 + $0x900] ss:$24 sps:$4 sm:$0xff]  }
 0x2ea   :  { %5519 = vmatprep.subr.bf16.mxu0 %v20541_v58  ;;  %v20655_v58 = vld [vmem:[#allocation9 + $0x934] ss:$24 sps:$4 sm:$0xff]  }
 0x2ec   :  { %5643 = vmatpush1.bf16.msra.mxu1 %v20542_v60  ;;  %v20602_v60 = vld [vmem:[#allocation9 + $0x5a8] ss:$24 sps:$4 sm:$0xff]  }
 0x2ed   :  { %5520 = vmatpush1.bf16.msra.mxu0 %v20539_v61  ;;  %5644 = vmatprep.subr.bf16.mxu1 %v20550_v26  ;;  %v20607_v61 = vld [vmem:[#allocation9 + $0x5dc] ss:$24 sps:$4 sm:$0xff]   ;;  %v20653_v26 = vld [vmem:[#allocation9 + $0x930] ss:$24 sps:$4 sm:$0xff]  }
 0x2ee   :  { %5521 = vmatprep.subr.bf16.mxu0 %v20547_v63  ;;  %v20661_v63 = vld [vmem:[#allocation9 + $0x964] ss:$24 sps:$4 sm:$0xff]  }
 0x2f0   :  { %5645 = vmatpush1.bf16.msra.mxu1 %v20548_v0  ;;  %v20605_v0 = vld [vmem:[#allocation9 + $0x5d8] ss:$24 sps:$4 sm:$0xff]  }
 0x2f1   :  { %5522 = vmatpush1.bf16.msra.mxu0 %v20545_v1  ;;  %5646 = vmatprep.subr.bf16.mxu1 %v20556_v2  ;;  %v20610_v1 = vld [vmem:[#allocation9 + $0x60c] ss:$24 sps:$4 sm:$0xff]   ;;  %v20659_v2 = vld [vmem:[#allocation9 + $0x960] ss:$24 sps:$4 sm:$0xff]  }
 0x2f2   :  { %5523 = vmatprep.subr.bf16.mxu0 %v20553_v4  ;;  %v20667_v4 = vld [vmem:[#allocation9 + $0x994] ss:$24 sps:$4 sm:$0xff]  }
 0x2f4   :  { %5647 = vmatpush1.bf16.msra.mxu1 %v20554_v5  ;;  %v20608_v5 = vld [vmem:[#allocation9 + $0x608] ss:$24 sps:$4 sm:$0xff]  }
 0x2f5   :  { %5524 = vmatpush1.bf16.msra.mxu0 %v20551_v56  ;;  %5648 = vmatprep.subr.bf16.mxu1 %v20562_v14  ;;  %v20613_v56 = vld [vmem:[#allocation9 + $0x63c] ss:$24 sps:$4 sm:$0xff]   ;;  %v20665_v14 = vld [vmem:[#allocation9 + $0x990] ss:$24 sps:$4 sm:$0xff]  }
 0x2f6   :  { %5525 = vmatprep.subr.bf16.mxu0 %v20559_v15  ;;  %v20673_v15 = vld [vmem:[#allocation9 + $0x9c4] ss:$24 sps:$4 sm:$0xff]  }
 0x2f8   :  { %5649 = vmatpush1.bf16.msra.mxu1 %v20560_v16  ;;  %v20611_v16 = vld [vmem:[#allocation9 + $0x638] ss:$24 sps:$4 sm:$0xff]  }
 0x2f9   :  { %5526 = vmatpush1.bf16.msra.mxu0 %v20557_v19  ;;  %5650 = vmatprep.subr.bf16.mxu1 %v20568_v21  ;;  %v20616_v19 = vld [vmem:[#allocation9 + $0x66c] ss:$24 sps:$4 sm:$0xff]   ;;  %v20671_v21 = vld [vmem:[#allocation9 + $0x9c0] ss:$24 sps:$4 sm:$0xff]  }
 0x2fa   :  { %5527 = vmatprep.subr.bf16.mxu0 %v20565_v23  ;;  %v20679_v23 = vld [vmem:[#allocation9 + $0x9f4] ss:$24 sps:$4 sm:$0xff]  }
 0x2fc   :  { %5651 = vmatpush1.bf16.msra.mxu1 %v20566_v27  ;;  %v20614_v27 = vld [vmem:[#allocation9 + $0x668] ss:$24 sps:$4 sm:$0xff]  }
 0x2fd   :  { %5528 = vmatpush1.bf16.msra.mxu0 %v20563_v29  ;;  %5652 = vmatprep.subr.bf16.mxu1 %v20574_v30  ;;  %v20619_v29 = vld [vmem:[#allocation9 + $0x69c] ss:$24 sps:$4 sm:$0xff]   ;;  %v20677_v30 = vld [vmem:[#allocation9 + $0x9f0] ss:$24 sps:$4 sm:$0xff]  }
 0x2fe   :  { %5529 = vmatprep.subr.bf16.mxu0 %v20571_v6  ;;  %v20685_v6 = vld [vmem:[#allocation9 + $0xa24] ss:$24 sps:$4 sm:$0xff]  }
 0x300   :  { %5653 = vmatpush1.bf16.msra.mxu1 %v20572_v13  ;;  %v20617_v13 = vld [vmem:[#allocation9 + $0x698] ss:$24 sps:$4 sm:$0xff]  }
 0x301   :  { %5530 = vmatpush1.bf16.msra.mxu0 %v20569_v8  ;;  %5654 = vmatprep.subr.bf16.mxu1 %v20580_v7  ;;  %v20622_v8 = vld [vmem:[#allocation9 + $0x6cc] ss:$24 sps:$4 sm:$0xff]   ;;  %v20683_v7 = vld [vmem:[#allocation9 + $0xa20] ss:$24 sps:$4 sm:$0xff]  }
 0x302   :  { %5531 = vmatprep.subr.bf16.mxu0 %v20577_v17  ;;  %v20691_v17 = vld [vmem:[#allocation9 + $0xa54] ss:$24 sps:$4 sm:$0xff]  }
 0x304   :  { %5655 = vmatpush1.bf16.msra.mxu1 %v20578_v12  ;;  %v20620_v12 = vld [vmem:[#allocation9 + $0x6c8] ss:$24 sps:$4 sm:$0xff]  }
 0x305   :  { %5532 = vmatpush1.bf16.msra.mxu0 %v20575_v25  ;;  %5656 = vmatprep.subr.bf16.mxu1 %v20586_v18  ;;  %v20625_v25 = vld [vmem:[#allocation9 + $0x6fc] ss:$24 sps:$4 sm:$0xff]   ;;  %v20689_v18 = vld [vmem:[#allocation9 + $0xa50] ss:$24 sps:$4 sm:$0xff]  }
 0x306   :  { %5533 = vmatprep.subr.bf16.mxu0 %v20583_v37  ;;  %v20697_v37 = vld [vmem:[#allocation9 + $0xa84] ss:$24 sps:$4 sm:$0xff]  }
 0x308   :  { %5657 = vmatpush1.bf16.msra.mxu1 %v20584_v38  ;;  %v20623_v38 = vld [vmem:[#allocation9 + $0x6f8] ss:$24 sps:$4 sm:$0xff]  }
 0x309   :  { %5534 = vmatpush1.bf16.msra.mxu0 %v20581_v39  ;;  %5658 = vmatprep.subr.bf16.mxu1 %v20592_v40  ;;  %v20628_v39 = vld [vmem:[#allocation9 + $0x72c] ss:$24 sps:$4 sm:$0xff]   ;;  %v20695_v40 = vld [vmem:[#allocation9 + $0xa80] ss:$24 sps:$4 sm:$0xff]  }
 0x30a   :  { %5535 = vmatprep.subr.bf16.mxu0 %v20589_v42  ;;  %v20703_v42 = vld [vmem:[#allocation9 + $0xab4] ss:$24 sps:$4 sm:$0xff]  }
 0x30c   :  { %5659 = vmatpush1.bf16.msra.mxu1 %v20590_v43  ;;  %v20626_v43 = vld [vmem:[#allocation9 + $0x728] ss:$24 sps:$4 sm:$0xff]  }
 0x30d   :  { %5536 = vmatpush1.bf16.msra.mxu0 %v20587_v44  ;;  %5660 = vmatprep.subr.bf16.mxu1 %v20598_v45  ;;  %v20631_v44 = vld [vmem:[#allocation9 + $0x75c] ss:$24 sps:$4 sm:$0xff]   ;;  %v20701_v45 = vld [vmem:[#allocation9 + $0xab0] ss:$24 sps:$4 sm:$0xff]  }
 0x30e   :  { %5537 = vmatprep.subr.bf16.mxu0 %v20595_v46  ;;  %v20709_v46 = vld [vmem:[#allocation9 + $0xae4] ss:$24 sps:$4 sm:$0xff]  }
 0x310   :  { %5661 = vmatpush1.bf16.msra.mxu1 %v20596_v47  ;;  %v20629_v47 = vld [vmem:[#allocation9 + $0x758] ss:$24 sps:$4 sm:$0xff]  }
 0x311   :  { %5538 = vmatpush1.bf16.msra.mxu0 %v20593_v48  ;;  %5662 = vmatprep.subr.bf16.mxu1 %v20601_v49  ;;  %v20634_v48 = vld [vmem:[#allocation9 + $0x78c] ss:$24 sps:$4 sm:$0xff]   ;;  %v20707_v49 = vld [vmem:[#allocation9 + $0xae0] ss:$24 sps:$4 sm:$0xff]  }
 0x312   :  { %5550 = vmatprep.subr.bf16.mxu0 %v20649_v52  ;;  %v20715_v52 = vld [vmem:[#allocation9 + $0xb14] ss:$24 sps:$4 sm:$0xff]  }
 0x314   :  { %5540 = vmatmul.mubr.bf16.vlgmr.msra.gmra.mrb[4].mxu0 %v22561_v11  ;;  %5663 = vmatpush1.bf16.msra.mxu1 %v20599_v53  ;;  %v20632_v53 = vld [vmem:[#allocation9 + $0x788] ss:$24 sps:$4 sm:$0xff]  }
 0x315   :  { %5664 = vmatprep.subr.bf16.mxu1 %v20604_v54  ;;  %5551 = vmatpush1.bf16.msra.mxu0 %v20647_v55  ;;  %v20637_v54 = vld [vmem:[#allocation9 + $0x7bc] ss:$24 sps:$4 sm:$0xff]   ;;  %v20713_v55 = vld [vmem:[#allocation9 + $0xb10] ss:$24 sps:$4 sm:$0xff]  }
 0x316   :  { %5552 = vmatprep.subr.bf16.mxu0 %v20655_v58  ;;  %v20721_v58 = vld [vmem:[#allocation9 + $0xb44] ss:$24 sps:$4 sm:$0xff]  }
 0x318   :  { %5665 = vmatpush1.bf16.msra.mxu1 %v20602_v60  ;;  %v20635_v60 = vld [vmem:[#allocation9 + $0x7b8] ss:$24 sps:$4 sm:$0xff]  }
 0x319   :  { %5666 = vmatprep.subr.bf16.mxu1 %v20607_v61  ;;  %5553 = vmatpush1.bf16.msra.mxu0 %v20653_v26  ;;  %v20640_v61 = vld [vmem:[#allocation9 + $0x7ec] ss:$24 sps:$4 sm:$0xff]   ;;  %v20719_v26 = vld [vmem:[#allocation9 + $0xb40] ss:$24 sps:$4 sm:$0xff]  }
 0x31a   :  { %5554 = vmatprep.subr.bf16.mxu0 %v20661_v63  ;;  %v20727_v63 = vld [vmem:[#allocation9 + $0xb74] ss:$24 sps:$4 sm:$0xff]  }
 0x31c   :  { %5667 = vmatpush1.bf16.msra.mxu1 %v20605_v0  ;;  %v20638_v0 = vld [vmem:[#allocation9 + $0x7e8] ss:$24 sps:$4 sm:$0xff]  }
 0x31d   :  { %5679 = vmatprep.subr.bf16.mxu1 %v20610_v1  ;;  %5555 = vmatpush1.bf16.msra.mxu0 %v20659_v2  ;;  %v20643_v1 = vld [vmem:[#allocation9 + $0x81c] ss:$24 sps:$4 sm:$0xff]   ;;  %v20725_v2 = vld [vmem:[#allocation9 + $0xb70] ss:$24 sps:$4 sm:$0xff]  }
 0x31e   :  { %5556 = vmatprep.subr.bf16.mxu0 %v20667_v4  ;;  %v20733_v4 = vld [vmem:[#allocation9 + $0xba4] ss:$24 sps:$4 sm:$0xff]  }
 0x31f   :  { %5669 = vmatmul.mubr.bf16.vlgmr.msra.gmra.mrb[12].mxu1 %v22586_v34 }
 0x320   :  { %5680 = vmatpush1.bf16.msra.mxu1 %v20608_v5  ;;  %5711 = vmatprep.mubr.bf16.mxu1 %v22559_v9  ;;  %v20641_v5 = vld [vmem:[#allocation9 + $0x818] ss:$24 sps:$4 sm:$0xff]  }
 0x321   :  { %5681 = vmatprep.subr.bf16.mxu1 %v20613_v56  ;;  %5557 = vmatpush1.bf16.msra.mxu0 %v20665_v14  ;;  %v20646_v56 = vld [vmem:[#allocation9 + $0x84c] ss:$24 sps:$4 sm:$0xff]   ;;  %v20731_v14 = vld [vmem:[#allocation9 + $0xba0] ss:$24 sps:$4 sm:$0xff]  }
 0x322   :  { %5558 = vmatprep.subr.bf16.mxu0 %v20673_v15  ;;  %v20739_v15 = vld [vmem:[#allocation9 + $0xbd4] ss:$24 sps:$4 sm:$0xff]  }
 0x324   :  { %5682 = vmatpush1.bf16.msra.mxu1 %v20611_v16  ;;  %v20644_v16 = vld [vmem:[#allocation9 + $0x848] ss:$24 sps:$4 sm:$0xff]  }
 0x325   :  { %5683 = vmatprep.subr.bf16.mxu1 %v20616_v19  ;;  %5559 = vmatpush1.bf16.msra.mxu0 %v20671_v21  ;;  %v20652_v19 = vld [vmem:[#allocation9 + $0x87c] ss:$24 sps:$4 sm:$0xff]   ;;  %v20737_v21 = vld [vmem:[#allocation9 + $0xbd0] ss:$24 sps:$4 sm:$0xff]  }
 0x326   :  { %5560 = vmatprep.subr.bf16.mxu0 %v20679_v23  ;;  %v20748_v23 = vld [vmem:[#allocation9 + $0x14] ss:$24 sps:$4 sm:$0xff]  }
 0x328   :  { %5684 = vmatpush1.bf16.msra.mxu1 %v20614_v27  ;;  %v20650_v27 = vld [vmem:[#allocation9 + $0x878] ss:$24 sps:$4 sm:$0xff]  }
 0x329   :  { %5685 = vmatprep.subr.bf16.mxu1 %v20619_v29  ;;  %5561 = vmatpush1.bf16.msra.mxu0 %v20677_v30  ;;  %v20658_v29 = vld [vmem:[#allocation9 + $0x8ac] ss:$24 sps:$4 sm:$0xff]   ;;  %v20656_v30 = vld [vmem:[#allocation9 + $0x8a8] ss:$24 sps:$4 sm:$0xff]  }
 0x32a   :  { %5562 = vmatprep.subr.bf16.mxu0 %v20685_v6  ;;  %v20664_v6 = vld [vmem:[#allocation9 + $0x8dc] ss:$24 sps:$4 sm:$0xff]  }
 0x32c   :  { %5686 = vmatpush1.bf16.msra.mxu1 %v20617_v13  ;;  %v20662_v13 = vld [vmem:[#allocation9 + $0x8d8] ss:$24 sps:$4 sm:$0xff]  }
 0x32d   :  { %5687 = vmatprep.subr.bf16.mxu1 %v20622_v8  ;;  %5563 = vmatpush1.bf16.msra.mxu0 %v20683_v7  ;;  %v20670_v8 = vld [vmem:[#allocation9 + $0x90c] ss:$24 sps:$4 sm:$0xff]   ;;  %v20668_v7 = vld [vmem:[#allocation9 + $0x908] ss:$24 sps:$4 sm:$0xff]  }
 0x32e   :  { %5564 = vmatprep.subr.bf16.mxu0 %v20691_v17  ;;  %v20676_v17 = vld [vmem:[#allocation9 + $0x93c] ss:$24 sps:$4 sm:$0xff]  }
 0x330   :  { %5688 = vmatpush1.bf16.msra.mxu1 %v20620_v12  ;;  %v20674_v12 = vld [vmem:[#allocation9 + $0x938] ss:$24 sps:$4 sm:$0xff]  }
 0x331   :  { %5689 = vmatprep.subr.bf16.mxu1 %v20625_v25  ;;  %5565 = vmatpush1.bf16.msra.mxu0 %v20689_v18  ;;  %v20682_v25 = vld [vmem:[#allocation9 + $0x96c] ss:$24 sps:$4 sm:$0xff]   ;;  %v20680_v18 = vld [vmem:[#allocation9 + $0x968] ss:$24 sps:$4 sm:$0xff]  }
 0x332   :  { %5566 = vmatprep.subr.bf16.mxu0 %v20697_v37  ;;  %v20688_v37 = vld [vmem:[#allocation9 + $0x99c] ss:$24 sps:$4 sm:$0xff]  }
 0x334   :  { %5690 = vmatpush1.bf16.msra.mxu1 %v20623_v38  ;;  %v20686_v38 = vld [vmem:[#allocation9 + $0x998] ss:$24 sps:$4 sm:$0xff]  }
 0x335   :  { %5691 = vmatprep.subr.bf16.mxu1 %v20628_v39  ;;  %5567 = vmatpush1.bf16.msra.mxu0 %v20695_v40  ;;  %v20694_v39 = vld [vmem:[#allocation9 + $0x9cc] ss:$24 sps:$4 sm:$0xff]   ;;  %v22600_v40 = vsub.s32 6, %v22471_v51 }
 0x336   :  { %5568 = vmatprep.subr.bf16.mxu0 %v20703_v42  ;;  %v20692_v42 = vld [vmem:[#allocation9 + $0x9c8] ss:$24 sps:$4 sm:$0xff]  }
 0x338   :  { %5692 = vmatpush1.bf16.msra.mxu1 %v20626_v43  ;;  %v22603_v43 = vsub.s32 7, %v22471_v51  ;;  %v20704_v51 = vld [vmem:[#allocation9 + $0xa28] ss:$24 sps:$4 sm:$0xff]  }
 0x339   :  { %5693 = vmatprep.subr.bf16.mxu1 %v20631_v44  ;;  %5569 = vmatpush1.bf16.msra.mxu0 %v20701_v45  ;;  %v20700_v44 = vld [vmem:[#allocation9 + $0x9fc] ss:$24 sps:$4 sm:$0xff]   ;;  %v516_v45 = vrot.slane %v22573_v22, %v22600_v40 }
 0x33a   :  { %5570 = vmatprep.subr.bf16.mxu0 %v20709_v46  ;;  %v520_v46 = vrot.slane %v22573_v22, %v22603_v43 }
 0x33c   :  { %5694 = vmatpush1.bf16.msra.mxu1 %v20629_v47  ;;  %v20698_v47 = vld [vmem:[#allocation9 + $0x9f8] ss:$24 sps:$4 sm:$0xff]  }
 0x33d   :  { %5695 = vmatprep.subr.bf16.mxu1 %v20634_v48  ;;  %5571 = vmatpush1.bf16.msra.mxu0 %v20707_v49  ;;  %v20706_v48 = vld [vmem:[#allocation9 + $0xa2c] ss:$24 sps:$4 sm:$0xff]  }
 0x33e   :  { %5572 = vmatprep.subr.bf16.mxu0 %v20715_v52 }
 0x340   :  { %5696 = vmatpush1.bf16.msra.mxu1 %v20632_v53 }
 0x341   :  { %5697 = vmatprep.subr.bf16.mxu1 %v20637_v54  ;;  %5573 = vmatpush1.bf16.msra.mxu0 %v20713_v55 }
 0x342   :  { %5574 = vmatprep.subr.bf16.mxu0 %v20721_v58 }
 0x344   :  { %5698 = vmatpush1.bf16.msra.mxu1 %v20635_v60 }
 0x345   :  { %5699 = vmatprep.subr.bf16.mxu1 %v20640_v61  ;;  %5575 = vmatpush1.bf16.msra.mxu0 %v20719_v26  ;;  %v20712_v26 = vld [vmem:[#allocation9 + $0xa5c] ss:$24 sps:$4 sm:$0xff]  }
 0x346   :  { %5576 = vmatprep.subr.bf16.mxu0 %v20727_v63 }
 0x348   :  { %5700 = vmatpush1.bf16.msra.mxu1 %v20638_v0 }
 0x349   :  { %5701 = vmatprep.subr.bf16.mxu1 %v20643_v1  ;;  %5577 = vmatpush1.bf16.msra.mxu0 %v20725_v2 }
 0x34a   :  { %5578 = vmatprep.subr.bf16.mxu0 %v20733_v4 }
 0x34c   :  { %5702 = vmatpush1.bf16.msra.mxu1 %v20641_v5  ;;  %v20710_v5 = vld [vmem:[#allocation9 + $0xa58] ss:$24 sps:$4 sm:$0xff]  }
 0x34d   :  { %5703 = vmatprep.subr.bf16.mxu1 %v20646_v56  ;;  %5579 = vmatpush1.bf16.msra.mxu0 %v20731_v14 }
 0x34e   :  { %5580 = vmatprep.subr.bf16.mxu0 %v20739_v15  ;;  %v20718_v15 = vld [vmem:[#allocation9 + $0xa8c] ss:$24 sps:$4 sm:$0xff]  }
 0x350   :  { %5704 = vmatpush1.bf16.msra.mxu1 %v20644_v16 }
 0x351   :  { %5705 = vmatprep.subr.bf16.mxu1 %v20652_v19  ;;  %5581 = vmatpush1.bf16.msra.mxu0 %v20737_v21 }
 0x352   :  { %5765 = vmatprep.subr.bf16.mxu0 %v20748_v23 }
 0x354   :  { %5706 = vmatpush1.bf16.msra.mxu1 %v20650_v27 }
 0x355   :  { %5707 = vmatprep.subr.bf16.mxu1 %v20658_v29  ;;  %v20716_v29 = vld [vmem:[#allocation9 + $0xa88] ss:$24 sps:$4 sm:$0xff]  }
 0x358   :  { %5708 = vmatpush1.bf16.msra.mxu1 %v20656_v30 }
 0x359   :  { %5709 = vmatprep.subr.bf16.mxu1 %v20664_v6 }
 0x35c   :  { %5710 = vmatpush1.bf16.msra.mxu1 %v20662_v13 }
 0x35d   :  { %5722 = vmatprep.subr.bf16.mxu1 %v20670_v8  ;;  %v20724_v8 = vld [vmem:[#allocation9 + $0xabc] ss:$24 sps:$4 sm:$0xff]  }
 0x35f   :  { %5712 = vmatmul.mubr.bf16.vlgmr.msra.gmra.mrb[12].mxu1 %v22561_v11 }
 0x360   :  { %5723 = vmatpush1.bf16.msra.mxu1 %v20668_v7 }
 0x361   :  { %5724 = vmatprep.subr.bf16.mxu1 %v20676_v17 }
 0x364   :  { %5725 = vmatpush1.bf16.msra.mxu1 %v20674_v12 }
 0x365   :  { %5726 = vmatprep.subr.bf16.mxu1 %v20682_v25  ;;  %v20722_v25 = vld [vmem:[#allocation9 + $0xab8] ss:$24 sps:$4 sm:$0xff]  }
 0x368   :  { %5727 = vmatpush1.bf16.msra.mxu1 %v20680_v18 }
 0x369   :  { %5728 = vmatprep.subr.bf16.mxu1 %v20688_v37  ;;  %v20730_v37 = vld [vmem:[#allocation9 + $0xaec] ss:$24 sps:$4 sm:$0xff]  }
 0x36c   :  { %5729 = vmatpush1.bf16.msra.mxu1 %v20686_v38  ;;  %v20728_v38 = vld [vmem:[#allocation9 + $0xae8] ss:$24 sps:$4 sm:$0xff]  }
 0x36d   :  { %5730 = vmatprep.subr.bf16.mxu1 %v20694_v39  ;;  %v20736_v39 = vld [vmem:[#allocation9 + $0xb1c] ss:$24 sps:$4 sm:$0xff]  }
 0x370   :  { %5731 = vmatpush1.bf16.msra.mxu1 %v20692_v42  ;;  %v20734_v42 = vld [vmem:[#allocation9 + $0xb18] ss:$24 sps:$4 sm:$0xff]  }
 0x371   :  { %5732 = vmatprep.subr.bf16.mxu1 %v20700_v44 }
 0x372   :  { %v2956_v49 = vpop.f32.mrb[8].mxu1 }
 0x373   :  { %v20092_v52 = vadd.f32 %v2956_v49, %v516_v45  ;;  %v2958_v53 = vpop.f32.mrb[9].mxu1 }
 0x374   :  { %v22609_v54 = vadd.f32 %v2958_v53, %v520_v46  ;;  %v2960_v55 = vpop.f32.mrb[10].mxu1  ;;  %5733 = vmatpush1.bf16.msra.mxu1 %v20698_v47 }
 0x375   :  { %v2987_v58 = vmul.f32 0.044715, %v20092_v52  ;;  %v20094_v60 = vadd.f32 %v2960_v55, %v516_v45  ;;  %v2962_v61 = vpop.f32.mrb[11].mxu1  ;;  %5734 = vmatprep.subr.bf16.mxu1 %v20706_v48  ;;  %v20742_v45 = vld [vmem:[#allocation9 + $0xb4c] ss:$24 sps:$4 sm:$0xff]  }
 0x376   :  { %v2988_v63 = vmul.f32 0.044715, %v22609_v54  ;;  %v20095_v0 = vadd.f32 %v2962_v61, %v520_v46  ;;  %v20740_v55 = vld [vmem:[#allocation9 + $0xb48] ss:$24 sps:$4 sm:$0xff]  }
 0x377   :  { %v3003_v22 = vmul.f32 %v20092_v52, %v2987_v58  ;;  %v2995_v1 = vmul.f32 0.044715, %v20094_v60  ;;  %v2979_v58 = vmul.f32 0.5, %v20094_v60 }
 0x378   :  { %v3004_v2 = vmul.f32 %v22609_v54, %v2988_v63  ;;  %v2996_v4 = vmul.f32 0.044715, %v20095_v0  ;;  %5735 = vmatpush1.bf16.msra.mxu1 %v20704_v51  ;;  %v2971_v51 = vmul.f32 0.5, %v20092_v52  ;;  %v2980_v63 = vmul.f32 0.5, %v20095_v0 }
 0x379   :  { %v3019_v56 = vmul.f32 %v20092_v52, %v3003_v22  ;;  %v3011_v14 = vmul.f32 %v20094_v60, %v2995_v1  ;;  %5736 = vmatprep.subr.bf16.mxu1 %v20712_v26  ;;  %v2972_v26 = vmul.f32 0.5, %v22609_v54  ;;  %v20745_v1 = vld [vmem:[#allocation9 + $0xb7c] ss:$24 sps:$4 sm:$0xff]  }
 0x37a   :  { %v3020_v16 = vmul.f32 %v22609_v54, %v3004_v2  ;;  %v3012_v19 = vmul.f32 %v20095_v0, %v2996_v4 }
 0x37b   :  { %v3035_v21 = vadd.f32 %v20092_v52, %v3019_v56  ;;  %v3027_v23 = vmul.f32 %v20094_v60, %v3011_v14  ;;  %v20743_v14 = vld [vmem:[#allocation9 + $0xb78] ss:$24 sps:$4 sm:$0xff]  }
 0x37c   :  { %v3028_v27 = vmul.f32 %v20095_v0, %v3012_v19  ;;  %5737 = vmatpush1.bf16.msra.mxu1 %v20710_v5  ;;  %v3036_v30 = vadd.f32 %v22609_v54, %v3020_v16  ;;  %v20746_v52 = vld [vmem:[#allocation9 + $0x10] ss:$24 sps:$4 sm:$0xff]   ;;  %v20754_v19 = vld [vmem:[#allocation9 + $0x44] ss:$24 sps:$4 sm:$0xff]  }
 0x37d   :  { %v3051_v6 = vmul.f32 0.7978846, %v3035_v21  ;;  %v3043_v13 = vadd.f32 %v20094_v60, %v3027_v23  ;;  %5738 = vmatprep.subr.bf16.mxu1 %v20718_v15  ;;  %v20751_v60 = vld [vmem:[#allocation9 + $0xbac] ss:$24 sps:$4 sm:$0xff]   ;;  %v20749_v54 = vld [vmem:[#allocation9 + $0xba8] ss:$24 sps:$4 sm:$0xff]  }
 0x37e   :  { %v3044_v7 = vadd.f32 %v20095_v0, %v3028_v27  ;;  %v3052_v17 = vmul.f32 0.7978846, %v3036_v30  ;;  %v20752_v0 = vld [vmem:[#allocation9 + $0x40] ss:$24 sps:$4 sm:$0xff]   ;;  %v20757_v21 = vld [vmem:[#allocation9 + $0xbdc] ss:$24 sps:$4 sm:$0xff]  }
 0x37f   :  { %22120 = vtanh.f32 %v3051_v6  ;;  %v3059_v12 = vmul.f32 0.7978846, %v3043_v13  ;;  %v20760_v23 = vld [vmem:[#allocation9 + $0x74] ss:$24 sps:$4 sm:$0xff]   ;;  %v20755_v30 = vld [vmem:[#allocation9 + $0xbd8] ss:$24 sps:$4 sm:$0xff]  }
 0x380   :  { %5739 = vmatpush1.bf16.msra.mxu1 %v20716_v29  ;;  %v3060_v18 = vmul.f32 0.7978846, %v3044_v7  ;;  %22122 = vtanh.f32 %v3052_v17  ;;  %v5949_v27 = vld [vmem:[#allocation6 + $0x20] sm:$0xff] }
 0x381   :  { %22124 = vtanh.f32 %v3059_v12  ;;  %5740 = vmatprep.subr.bf16.mxu1 %v20724_v8  ;;  %v5953_v29 = vld [vmem:[#allocation6 + $0x80] sm:$0xff]  ;;  %v20763_v8 = vld [vmem:[#allocation9 + $0xa4] ss:$24 sps:$4 sm:$0xff]  }
 0x382   :  { %22126 = vtanh.f32 %v3060_v18  ;;  %v20758_v6 = vld [vmem:[#allocation9 + $0x70] ss:$24 sps:$4 sm:$0xff]   ;;  %v18545_v13 = vcombine.high %v5949_v27, %v5953_v29  ;;  %v18544_v12 = vcombine.low %v5949_v27, %v5953_v29  ;;  %v20766_v18 = vld [vmem:[#allocation9 + $0xd4] ss:$24 sps:$4 sm:$0xff]  }
 0x383   :  { %v5957_v7 = vld [vmem:[#allocation6 + $0xe0] sm:$0xff] }
 0x384   :  { %5741 = vmatpush1.bf16.msra.mxu1 %v20722_v25  ;;  %v5961_v17 = vld [vmem:[#allocation6 + $0x140] sm:$0xff] }
 0x385   :  { %5742 = vmatprep.subr.bf16.mxu1 %v20730_v37  ;;  %v18553_v25 = vcombine.high %v5957_v7, %v5961_v17  ;;  %v5965_v37 = vld [vmem:[#allocation6 + $0x1a0] sm:$0xff] }
 0x386   :  { %v6009_v27 = vld [vmem:[#allocation6 + $0x5c0] sm:$0xff] }
 0x388   :  { %5743 = vmatpush1.bf16.msra.mxu1 %v20728_v38  ;;  %v5969_v38 = vld [vmem:[#allocation6 + $0x200] sm:$0xff] }
 0x389   :  { %v22121_v44 = vpop.eup %22120  ;;  %5744 = vmatprep.subr.bf16.mxu1 %v20736_v39  ;;  %v18552_v39 = vcombine.low %v5957_v7, %v5961_v17  ;;  %v6017_v7 = vld [vmem:[#allocation6 + $0x680] sm:$0xff] }
 0x38a   :  { %v22123_v46 = vpop.eup %22122  ;;  %v3083_v47 = vadd.f32 1.0, %v22121_v44  ;;  %v18561_v44 = vcombine.high %v5965_v37, %v5969_v38 }
 0x38b   :  { %v22125_v48 = vpop.eup %22124  ;;  %v3084_v49 = vadd.f32 1.0, %v22123_v46  ;;  %v5973_v46 = vld [vmem:[#allocation6 + $0x260] sm:$0xff] }
 0x38c   :  { %v22127_v53 = vpop.eup %22126  ;;  %5745 = vmatpush1.bf16.msra.mxu1 %v20734_v42  ;;  %v3091_v61 = vadd.f32 1.0, %v22125_v48  ;;  %v3099_v2 = vmul.f32 %v3083_v47, %v2971_v51  ;;  %v20764_v42 = vld [vmem:[#allocation9 + $0xd0] ss:$24 sps:$4 sm:$0xff]   ;;  %v18560_v48 = vcombine.low %v5965_v37, %v5969_v38 }
 0x38d   :  { %5746 = vmatprep.subr.bf16.mxu1 %v20742_v45  ;;  %v3092_v22 = vadd.f32 1.0, %v22127_v53  ;;  %v3100_v5 = vmul.f32 %v3084_v49, %v2972_v26  ;;  %v20769_v45 = vld [vmem:[#allocation9 + $0x104] ss:$24 sps:$4 sm:$0xff]   ;;  %v5977_v47 = vld [vmem:[#allocation6 + $0x2c0] sm:$0xff]  ;;  %v20767_v49 = vld [vmem:[#allocation9 + $0x100] ss:$24 sps:$4 sm:$0xff]  }
 0x38e   :  { %v3107_v4 = vmul.f32 %v3091_v61, %v2979_v58  ;;  %v18569_v53 = vcombine.high %v5973_v46, %v5977_v47  ;;  %v5981_v51 = vld [vmem:[#allocation6 + $0x320] sm:$0xff]  ;;  %v18568_v61 = vcombine.low %v5973_v46, %v5977_v47 }
 0x38f   :  { %v3108_v56 = vmul.f32 %v3092_v22, %v2980_v63  ;;  %v5985_v58 = vld [vmem:[#allocation6 + $0x380] sm:$0xff]  ;;  %v20775_v22 = vld [vmem:[#allocation9 + $0x164] ss:$24 sps:$4 sm:$0xff]  }
 0x390   :  { %5747 = vmatpush1.bf16.msra.mxu1 %v20740_v55  ;;  %v22616_v15 = vpack.c.bf16 %v3107_v4, %v3099_v2  ;;  %v20772_v55 = vld [vmem:[#allocation9 + $0x134] ss:$24 sps:$4 sm:$0xff]   ;;  %v20770_v26 = vld [vmem:[#allocation9 + $0x130] ss:$24 sps:$4 sm:$0xff]   ;;  %v18577_v63 = vcombine.high %v5981_v51, %v5985_v58  ;;  %v18576_v4 = vcombine.low %v5981_v51, %v5985_v58 }
 0x391   :  { %v22618_v16 = vpack.c.bf16 %v3108_v56, %v3100_v5  ;;  %5748 = vmatprep.subr.bf16.mxu1 %v20745_v1  ;;  %v5989_v1 = vld [vmem:[#allocation6 + $0x3e0] sm:$0xff]  ;;  %v20773_v5 = vld [vmem:[#allocation9 + $0x160] ss:$24 sps:$4 sm:$0xff]  }
 0x392   :  { %v5993_v2 = vld [vmem:[#allocation6 + $0x440] sm:$0xff] }
 0x393   :  { %5582 = vmatprep.mubr.bf16.mxu0 %v22618_v16  ;;  %5754 = vmatprep.mubr.bf16.mxu1 %v22618_v16  ;;  %v18585_v56 = vcombine.high %v5989_v1, %v5993_v2  ;;  %v6025_v37 = vld [vmem:[#allocation6 + $0x740] sm:$0xff] }
 0x394   :  { %5583 = vmatmul.mubr.bf16.vlgmr.msra.gmra.mrb[4].mxu0 %v22616_v15  ;;  %5749 = vmatpush1.bf16.msra.mxu1 %v20743_v14  ;;  %v20778_v14 = vld [vmem:[#allocation9 + $0x194] ss:$24 sps:$4 sm:$0xff]  }
 0x395   :  { %5766 = vmatpush1.bf16.msra.mxu0 %v20746_v52  ;;  %5797 = vmatprep.mubr.bf16.mxu0 %v22515_v32  ;;  %v20761_v32 = vld [vmem:[#allocation9 + $0xa0] ss:$24 sps:$4 sm:$0xff]   ;;  %v5997_v52 = vld [vmem:[#allocation6 + $0x4a0] sm:$0xff] }
 0x396   :  { %5750 = vmatprep.subr.bf16.mxu1 %v20751_v60  ;;  %5767 = vmatprep.subr.bf16.mxu0 %v20754_v19  ;;  %v6001_v60 = vld [vmem:[#allocation6 + $0x500] sm:$0xff]  ;;  %v18584_v19 = vcombine.low %v5989_v1, %v5993_v2 }
 0x397   :  { %v18592_v29 = vcombine.low %v5997_v52, %v6001_v60  ;;  %v6033_v46 = vld [vmem:[#allocation6 + $0x800] sm:$0xff] }
 0x398   :  { %5751 = vmatpush1.bf16.msra.mxu1 %v20749_v54  ;;  %v20776_v54 = vld [vmem:[#allocation9 + $0x190] ss:$24 sps:$4 sm:$0xff]  }
 0x399   :  { %5768 = vmatpush1.bf16.msra.mxu0 %v20752_v0  ;;  %5752 = vmatprep.subr.bf16.mxu1 %v20757_v21  ;;  %v18593_v0 = vcombine.high %v5997_v52, %v6001_v60  ;;  %v20781_v21 = vld [vmem:[#allocation9 + $0x1c4] ss:$24 sps:$4 sm:$0xff]   ;;  %v6041_v51 = vld [vmem:[#allocation6 + $0x8c0] sm:$0xff] }
 0x39a   :  { %5769 = vmatprep.subr.bf16.mxu0 %v20760_v23  ;;  %v6005_v23 = vld [vmem:[#allocation6 + $0x560] sm:$0xff] }
 0x39b   :  { %v18600_v17 = vcombine.low %v6005_v23, %v6009_v27  ;;  %v6049_v1 = vld [vmem:[#allocation6 + $0x980] sm:$0xff] }
 0x39c   :  { %5753 = vmatpush1.bf16.msra.mxu1 %v20755_v30  ;;  %v20779_v30 = vld [vmem:[#allocation9 + $0x1c0] ss:$24 sps:$4 sm:$0xff]   ;;  %v6057_v52 = vld [vmem:[#allocation6 + $0xa40] sm:$0xff] }
 0x39d   :  { %5770 = vmatpush1.bf16.msra.mxu0 %v20758_v6  ;;  %8295 = vmatprep.subr.bf16.mxu1 %v18545_v13  ;;  %v18601_v6 = vcombine.high %v6005_v23, %v6009_v27  ;;  %v20784_v13 = vld [vmem:[#allocation9 + $0x1f4] ss:$24 sps:$4 sm:$0xff]  }
 0x39e   :  { %5771 = vmatprep.subr.bf16.mxu0 %v20763_v8  ;;  %v6013_v8 = vld [vmem:[#allocation6 + $0x620] sm:$0xff] }
 0x39f   :  { %5755 = vmatmul.mubr.bf16.vlgmr.msra.gmra.mrb[12].mxu1 %v22616_v15  ;;  %v18608_v38 = vcombine.low %v6013_v8, %v6017_v7  ;;  %v6065_v23 = vld [vmem:[#allocation6 + $0xb00] sm:$0xff] }
 0x3a0   :  { %8296 = vmatpush1.bf16.msra.mxu1 %v18544_v12  ;;  %8327 = vmatprep.mubr.bf16.mxu1 %v22440_v20  ;;  %v20782_v12 = vld [vmem:[#allocation9 + $0x1f0] ss:$24 sps:$4 sm:$0xff]  }
 0x3a1   :  { %5772 = vmatpush1.bf16.msra.mxu0 %v20761_v32  ;;  %8297 = vmatprep.subr.bf16.mxu1 %v18553_v25  ;;  %v18609_v32 = vcombine.high %v6013_v8, %v6017_v7  ;;  %v20787_v25 = vld [vmem:[#allocation9 + $0x224] ss:$24 sps:$4 sm:$0xff]   ;;  %v6073_v8 = vld [vmem:[#allocation6 + $0xbc0] sm:$0xff] }
 0x3a2   :  { %5773 = vmatprep.subr.bf16.mxu0 %v20766_v18  ;;  %v6021_v18 = vld [vmem:[#allocation6 + $0x6e0] sm:$0xff] }
 0x3a3   :  { %v18616_v47 = vcombine.low %v6021_v18, %v6025_v37 }
 0x3a4   :  { %8298 = vmatpush1.bf16.msra.mxu1 %v18552_v39  ;;  %v20785_v39 = vld [vmem:[#allocation9 + $0x220] ss:$24 sps:$4 sm:$0xff]  }
 0x3a5   :  { %5774 = vmatpush1.bf16.msra.mxu0 %v20764_v42  ;;  %8299 = vmatprep.subr.bf16.mxu1 %v18561_v44  ;;  %v18617_v42 = vcombine.high %v6021_v18, %v6025_v37  ;;  %v20790_v44 = vld [vmem:[#allocation9 + $0x254] ss:$24 sps:$4 sm:$0xff]  }
 0x3a6   :  { %5775 = vmatprep.subr.bf16.mxu0 %v20769_v45  ;;  %v6029_v45 = vld [vmem:[#allocation6 + $0x7a0] sm:$0xff] }
 0x3a7   :  { %v18624_v58 = vcombine.low %v6029_v45, %v6033_v46  ;;  %v6081_v18 = vld [vmem:[#allocation6 + $0xc80] sm:$0xff] }
 0x3a8   :  { %8300 = vmatpush1.bf16.msra.mxu1 %v18560_v48  ;;  %v20788_v48 = vld [vmem:[#allocation9 + $0x250] ss:$24 sps:$4 sm:$0xff]  }
 0x3a9   :  { %5776 = vmatpush1.bf16.msra.mxu0 %v20767_v49  ;;  %8301 = vmatprep.subr.bf16.mxu1 %v18569_v53  ;;  %v18625_v49 = vcombine.high %v6029_v45, %v6033_v46  ;;  %v20793_v53 = vld [vmem:[#allocation9 + $0x284] ss:$24 sps:$4 sm:$0xff]  }
 0x3aa   :  { %5777 = vmatprep.subr.bf16.mxu0 %v20772_v55  ;;  %v6037_v55 = vld [vmem:[#allocation6 + $0x860] sm:$0xff] }
 0x3ab   :  { %v18632_v2 = vcombine.low %v6037_v55, %v6041_v51 }
 0x3ac   :  { %8302 = vmatpush1.bf16.msra.mxu1 %v18568_v61  ;;  %v20791_v61 = vld [vmem:[#allocation9 + $0x280] ss:$24 sps:$4 sm:$0xff]  }
 0x3ad   :  { %5778 = vmatpush1.bf16.msra.mxu0 %v20770_v26  ;;  %8303 = vmatprep.subr.bf16.mxu1 %v18577_v63  ;;  %v18633_v26 = vcombine.high %v6037_v55, %v6041_v51  ;;  %v20796_v63 = vld [vmem:[#allocation9 + $0x2b4] ss:$24 sps:$4 sm:$0xff]   ;;  %v20812_v55 = vld [vmem:[#allocation9 + $0x3d0] ss:$24 sps:$4 sm:$0xff]  }
 0x3ae   :  { %5779 = vmatprep.subr.bf16.mxu0 %v20775_v22  ;;  %v6045_v22 = vld [vmem:[#allocation6 + $0x920] sm:$0xff] }
 0x3af   :  { %v18640_v60 = vcombine.low %v6045_v22, %v6049_v1 }
 0x3b0   :  { %8304 = vmatpush1.bf16.msra.mxu1 %v18576_v4  ;;  %v20794_v4 = vld [vmem:[#allocation9 + $0x2b0] ss:$24 sps:$4 sm:$0xff]  }
 0x3b1   :  { %5780 = vmatpush1.bf16.msra.mxu0 %v20773_v5  ;;  %8305 = vmatprep.subr.bf16.mxu1 %v18585_v56  ;;  %v18641_v5 = vcombine.high %v6045_v22, %v6049_v1  ;;  %v20799_v56 = vld [vmem:[#allocation9 + $0x2e4] ss:$24 sps:$4 sm:$0xff]   ;;  %v20815_v22 = vld [vmem:[#allocation9 + $0x400] ss:$24 sps:$4 sm:$0xff]  }
 0x3b2   :  { %5781 = vmatprep.subr.bf16.mxu0 %v20778_v14  ;;  %v6053_v14 = vld [vmem:[#allocation6 + $0x9e0] sm:$0xff] }
 0x3b3   :  { %v18648_v27 = vcombine.low %v6053_v14, %v6057_v52 }
 0x3b4   :  { %8306 = vmatpush1.bf16.msra.mxu1 %v18584_v19  ;;  %v20797_v19 = vld [vmem:[#allocation9 + $0x2e0] ss:$24 sps:$4 sm:$0xff]  }
 0x3b5   :  { %5782 = vmatpush1.bf16.msra.mxu0 %v20776_v54  ;;  %8307 = vmatprep.subr.bf16.mxu1 %v18593_v0  ;;  %v18649_v54 = vcombine.high %v6053_v14, %v6057_v52  ;;  %v20802_v0 = vld [vmem:[#allocation9 + $0x314] ss:$24 sps:$4 sm:$0xff]   ;;  %v20818_v14 = vld [vmem:[#allocation9 + $0x430] ss:$24 sps:$4 sm:$0xff]  }
 0x3b6   :  { %5783 = vmatprep.subr.bf16.mxu0 %v20781_v21  ;;  %v6061_v21 = vld [vmem:[#allocation6 + $0xaa0] sm:$0xff] }
 0x3b7   :  { %v18656_v7 = vcombine.low %v6061_v21, %v6065_v23 }
 0x3b8   :  { %8308 = vmatpush1.bf16.msra.mxu1 %v18592_v29  ;;  %v20800_v29 = vld [vmem:[#allocation9 + $0x310] ss:$24 sps:$4 sm:$0xff]  }
 0x3b9   :  { %5784 = vmatpush1.bf16.msra.mxu0 %v20779_v30  ;;  %8309 = vmatprep.subr.bf16.mxu1 %v18601_v6  ;;  %v20805_v30 = vld [vmem:[#allocation9 + $0x344] ss:$24 sps:$4 sm:$0xff]   ;;  %v18657_v6 = vcombine.high %v6061_v21, %v6065_v23  ;;  %v20821_v21 = vld [vmem:[#allocation9 + $0x460] ss:$24 sps:$4 sm:$0xff]  }
 0x3ba   :  { %5785 = vmatprep.subr.bf16.mxu0 %v20784_v13  ;;  %v6069_v13 = vld [vmem:[#allocation6 + $0xb60] sm:$0xff] }
 0x3bb   :  { %v18664_v37 = vcombine.low %v6069_v13, %v6073_v8 }
 0x3bc   :  { %8310 = vmatpush1.bf16.msra.mxu1 %v18600_v17  ;;  %v20803_v17 = vld [vmem:[#allocation9 + $0x340] ss:$24 sps:$4 sm:$0xff]  }
 0x3bd   :  { %5786 = vmatpush1.bf16.msra.mxu0 %v20782_v12  ;;  %8311 = vmatprep.subr.bf16.mxu1 %v18609_v32  ;;  %v18665_v12 = vcombine.high %v6069_v13, %v6073_v8  ;;  %v20808_v32 = vld [vmem:[#allocation9 + $0x374] ss:$24 sps:$4 sm:$0xff]   ;;  %v20824_v13 = vld [vmem:[#allocation9 + $0x490] ss:$24 sps:$4 sm:$0xff]  }
 0x3be   :  { %5787 = vmatprep.subr.bf16.mxu0 %v20787_v25  ;;  %v6077_v25 = vld [vmem:[#allocation6 + $0xc20] sm:$0xff] }
 0x3bf   :  { %v18672_v45 = vcombine.low %v6077_v25, %v6081_v18 }
 0x3c0   :  { %8312 = vmatpush1.bf16.msra.mxu1 %v18608_v38  ;;  %v20806_v38 = vld [vmem:[#allocation9 + $0x370] ss:$24 sps:$4 sm:$0xff]  }
 0x3c1   :  { %5788 = vmatpush1.bf16.msra.mxu0 %v20785_v39  ;;  %8313 = vmatprep.subr.bf16.mxu1 %v18617_v42  ;;  %v18673_v39 = vcombine.high %v6077_v25, %v6081_v18  ;;  %v6085_v42 = vld [vmem:[#allocation6 + $0xce0] sm:$0xff]  ;;  %v20827_v25 = vld [vmem:[#allocation9 + $0x4c0] ss:$24 sps:$4 sm:$0xff]  }
 0x3c2   :  { %5789 = vmatprep.subr.bf16.mxu0 %v20790_v44  ;;  %v6089_v44 = vld [vmem:[#allocation6 + $0xd40] sm:$0xff] }
 0x3c3   :  { %v18681_v46 = vcombine.high %v6085_v42, %v6089_v44 }
 0x3c4   :  { %8314 = vmatpush1.bf16.msra.mxu1 %v18616_v47  ;;  %v20814_v47 = vld [vmem:[#allocation9 + $0x3d4] ss:$24 sps:$4 sm:$0xff]  }
 0x3c5   :  { %5790 = vmatpush1.bf16.msra.mxu0 %v20788_v48  ;;  %8315 = vmatprep.subr.bf16.mxu1 %v18625_v49  ;;  %v6093_v48 = vld [vmem:[#allocation6 + $0xda0] sm:$0xff] }
 0x3c6   :  { %5791 = vmatprep.subr.bf16.mxu0 %v20793_v53  ;;  %v6097_v49 = vld [vmem:[#allocation6 + $0xe00] sm:$0xff]  ;;  %v18680_v53 = vcombine.low %v6085_v42, %v6089_v44 }
 0x3c7   :  { %v18689_v51 = vcombine.high %v6093_v48, %v6097_v49  ;;  %v20830_v42 = vld [vmem:[#allocation9 + $0x4f0] ss:$24 sps:$4 sm:$0xff]  }
 0x3c8   :  { %8316 = vmatpush1.bf16.msra.mxu1 %v18624_v58  ;;  %v20817_v58 = vld [vmem:[#allocation9 + $0x404] ss:$24 sps:$4 sm:$0xff]  }
 0x3c9   :  { %5792 = vmatpush1.bf16.msra.mxu0 %v20791_v61  ;;  %8317 = vmatprep.subr.bf16.mxu1 %v18633_v26  ;;  %v6101_v61 = vld [vmem:[#allocation6 + $0xe60] sm:$0xff] }
 0x3ca   :  { %5793 = vmatprep.subr.bf16.mxu0 %v20796_v63  ;;  %v6105_v26 = vld [vmem:[#allocation6 + $0xec0] sm:$0xff]  ;;  %v18688_v63 = vcombine.low %v6093_v48, %v6097_v49  ;;  %v20833_v48 = vld [vmem:[#allocation9 + $0x520] ss:$24 sps:$4 sm:$0xff]  }
 0x3cb   :  { %v18697_v1 = vcombine.high %v6101_v61, %v6105_v26 }
 0x3cc   :  { %8318 = vmatpush1.bf16.msra.mxu1 %v18632_v2  ;;  %v20820_v2 = vld [vmem:[#allocation9 + $0x434] ss:$24 sps:$4 sm:$0xff]  }
 0x3cd   :  { %5794 = vmatpush1.bf16.msra.mxu0 %v20794_v4  ;;  %8319 = vmatprep.subr.bf16.mxu1 %v18641_v5  ;;  %v6109_v4 = vld [vmem:[#allocation6 + $0xf20] sm:$0xff] }
 0x3ce   :  { %5795 = vmatprep.subr.bf16.mxu0 %v20799_v56  ;;  %v6113_v5 = vld [vmem:[#allocation6 + $0xf80] sm:$0xff]  ;;  %v18696_v56 = vcombine.low %v6101_v61, %v6105_v26 }
 0x3cf   :  { %v18705_v52 = vcombine.high %v6109_v4, %v6113_v5  ;;  %v20836_v61 = vld [vmem:[#allocation9 + $0x550] ss:$24 sps:$4 sm:$0xff]  }
 0x3d0   :  { %8320 = vmatpush1.bf16.msra.mxu1 %v18640_v60  ;;  %v20823_v60 = vld [vmem:[#allocation9 + $0x464] ss:$24 sps:$4 sm:$0xff]  }
 0x3d1   :  { %5796 = vmatpush1.bf16.msra.mxu0 %v20797_v19  ;;  %8321 = vmatprep.subr.bf16.mxu1 %v18649_v54  ;;  %v6117_v19 = vld [vmem:[#allocation6 + $0xfe0] sm:$0xff] }
 0x3d2   :  { %5808 = vmatprep.subr.bf16.mxu0 %v20802_v0  ;;  %v6121_v54 = vld [vmem:[#allocation6 + $0x1040] sm:$0xff]  ;;  %v18704_v0 = vcombine.low %v6109_v4, %v6113_v5  ;;  %v20839_v4 = vld [vmem:[#allocation9 + $0x580] ss:$24 sps:$4 sm:$0xff]  }
 0x3d3   :  { %v18713_v23 = vcombine.high %v6117_v19, %v6121_v54 }
 0x3d4   :  { %5798 = vmatmul.mubr.bf16.vlgmr.msra.gmra.mrb[8].mxu0 %v22513_v31  ;;  %8322 = vmatpush1.bf16.msra.mxu1 %v18648_v27  ;;  %v20811_v31 = vld [vmem:[#allocation9 + $0x3a4] ss:$24 sps:$4 sm:$0xff]   ;;  %v20826_v27 = vld [vmem:[#allocation9 + $0x494] ss:$24 sps:$4 sm:$0xff]  }
 0x3d5   :  { %5809 = vmatpush1.bf16.msra.mxu0 %v20800_v29  ;;  %5840 = vmatprep.mubr.bf16.mxu0 %v22588_v35  ;;  %v20809_v35 = vld [vmem:[#allocation9 + $0x3a0] ss:$24 sps:$4 sm:$0xff]   ;;  %v6125_v29 = vld [vmem:[#allocation6 + $0x10a0] sm:$0xff] }
 0x3d6   :  { %5810 = vmatprep.subr.bf16.mxu0 %v20805_v30  ;;  %8323 = vmatprep.subr.bf16.mxu1 %v18657_v6  ;;  %v6129_v30 = vld [vmem:[#allocation6 + $0x1100] sm:$0xff]  ;;  %v18712_v6 = vcombine.low %v6117_v19, %v6121_v54 }
 0x3d7   :  { %v18721_v8 = vcombine.high %v6125_v29, %v6129_v30  ;;  %v20842_v19 = vld [vmem:[#allocation9 + $0x5b0] ss:$24 sps:$4 sm:$0xff]  }
 0x3d8   :  { %8324 = vmatpush1.bf16.msra.mxu1 %v18656_v7  ;;  %v20829_v7 = vld [vmem:[#allocation9 + $0x4c4] ss:$24 sps:$4 sm:$0xff]  }
 0x3d9   :  { %5811 = vmatpush1.bf16.msra.mxu0 %v20803_v17  ;;  %8325 = vmatprep.subr.bf16.mxu1 %v18665_v12  ;;  %v6133_v17 = vld [vmem:[#allocation6 + $0x1160] sm:$0xff] }
 0x3da   :  { %5812 = vmatprep.subr.bf16.mxu0 %v20808_v32  ;;  %v6137_v12 = vld [vmem:[#allocation6 + $0x11c0] sm:$0xff]  ;;  %v18720_v32 = vcombine.low %v6125_v29, %v6129_v30  ;;  %v20845_v29 = vld [vmem:[#allocation9 + $0x5e0] ss:$24 sps:$4 sm:$0xff]  }
 0x3db   :  { %v18729_v18 = vcombine.high %v6133_v17, %v6137_v12 }
 0x3dc   :  { %8326 = vmatpush1.bf16.msra.mxu1 %v18664_v37  ;;  %v20832_v37 = vld [vmem:[#allocation9 + $0x4f4] ss:$24 sps:$4 sm:$0xff]  }
 0x3dd   :  { %5813 = vmatpush1.bf16.msra.mxu0 %v20806_v38  ;;  %8338 = vmatprep.subr.bf16.mxu1 %v18673_v39  ;;  %v6141_v38 = vld [vmem:[#allocation6 + $0x1220] sm:$0xff] }
 0x3de   :  { %5814 = vmatprep.subr.bf16.mxu0 %v20811_v31  ;;  %v6145_v39 = vld [vmem:[#allocation6 + $0x1280] sm:$0xff]  ;;  %v18728_v31 = vcombine.low %v6133_v17, %v6137_v12  ;;  %v20853_v12 = vld [vmem:[#allocation9 + $0x644] ss:$24 sps:$4 sm:$0xff]  }
 0x3df   :  { %8328 = vmatmul.mubr.bf16.vlgmr.msra.gmra.mrb[16].mxu1 %v22444_v24  ;;  %v18737_v44 = vcombine.high %v6141_v38, %v6145_v39  ;;  %v20848_v17 = vld [vmem:[#allocation9 + $0x610] ss:$24 sps:$4 sm:$0xff]  }
 0x3e0   :  { %8339 = vmatpush1.bf16.msra.mxu1 %v18672_v45  ;;  %8370 = vmatprep.mubr.bf16.mxu1 %v22446_v28  ;;  %v20835_v45 = vld [vmem:[#allocation9 + $0x524] ss:$24 sps:$4 sm:$0xff]  }
 0x3e1   :  { %5815 = vmatpush1.bf16.msra.mxu0 %v20809_v35  ;;  %8340 = vmatprep.subr.bf16.mxu1 %v18681_v46  ;;  %v6149_v35 = vld [vmem:[#allocation6 + $0x12e0] sm:$0xff] }
 0x3e2   :  { %5816 = vmatprep.subr.bf16.mxu0 %v20814_v47  ;;  %v6153_v46 = vld [vmem:[#allocation6 + $0x1340] sm:$0xff]  ;;  %v18736_v47 = vcombine.low %v6141_v38, %v6145_v39  ;;  %v20851_v38 = vld [vmem:[#allocation9 + $0x640] ss:$24 sps:$4 sm:$0xff]  }
 0x3e3   :  { %v18745_v49 = vcombine.high %v6149_v35, %v6153_v46 }
 0x3e4   :  { %8341 = vmatpush1.bf16.msra.mxu1 %v18680_v53  ;;  %v20838_v53 = vld [vmem:[#allocation9 + $0x554] ss:$24 sps:$4 sm:$0xff]  }
 0x3e5   :  { %5817 = vmatpush1.bf16.msra.mxu0 %v20812_v55  ;;  %8342 = vmatprep.subr.bf16.mxu1 %v18689_v51  ;;  %v6157_v55 = vld [vmem:[#allocation6 + $0x13a0] sm:$0xff] }
 0x3e6   :  { %5818 = vmatprep.subr.bf16.mxu0 %v20817_v58  ;;  %v6161_v51 = vld [vmem:[#allocation6 + $0x1400] sm:$0xff]  ;;  %v18744_v58 = vcombine.low %v6149_v35, %v6153_v46 }
 0x3e7   :  { %v18753_v26 = vcombine.high %v6157_v55, %v6161_v51  ;;  %v20854_v35 = vld [vmem:[#allocation9 + $0x670] ss:$24 sps:$4 sm:$0xff]  }
 0x3e8   :  { %8343 = vmatpush1.bf16.msra.mxu1 %v18688_v63  ;;  %v20841_v63 = vld [vmem:[#allocation9 + $0x584] ss:$24 sps:$4 sm:$0xff]  }
 0x3e9   :  { %5819 = vmatpush1.bf16.msra.mxu0 %v20815_v22  ;;  %8344 = vmatprep.subr.bf16.mxu1 %v18697_v1  ;;  %v6165_v22 = vld [vmem:[#allocation6 + $0x1460] sm:$0xff] }
 0x3ea   :  { %5820 = vmatprep.subr.bf16.mxu0 %v20820_v2  ;;  %v6169_v1 = vld [vmem:[#allocation6 + $0x14c0] sm:$0xff]  ;;  %v18752_v2 = vcombine.low %v6157_v55, %v6161_v51 }
 0x3eb   :  { %v18761_v5 = vcombine.high %v6165_v22, %v6169_v1  ;;  %v20862_v55 = vld [vmem:[#allocation9 + $0x6d4] ss:$24 sps:$4 sm:$0xff]  }
 0x3ec   :  { %8345 = vmatpush1.bf16.msra.mxu1 %v18696_v56  ;;  %v20844_v56 = vld [vmem:[#allocation9 + $0x5b4] ss:$24 sps:$4 sm:$0xff]  }
 0x3ed   :  { %5821 = vmatpush1.bf16.msra.mxu0 %v20818_v14  ;;  %8346 = vmatprep.subr.bf16.mxu1 %v18705_v52  ;;  %v6173_v14 = vld [vmem:[#allocation6 + $0x1520] sm:$0xff] }
 0x3ee   :  { %5822 = vmatprep.subr.bf16.mxu0 %v20823_v60  ;;  %v6177_v52 = vld [vmem:[#allocation6 + $0x1580] sm:$0xff]  ;;  %v18760_v60 = vcombine.low %v6165_v22, %v6169_v1  ;;  %v20865_v22 = vld [vmem:[#allocation9 + $0x704] ss:$24 sps:$4 sm:$0xff]  }
 0x3ef   :  { %v18769_v54 = vcombine.high %v6173_v14, %v6177_v52  ;;  %v6221_v51 = vld [vmem:[#allocation6 + $0x19a0] sm:$0xff] }
 0x3f0   :  { %8347 = vmatpush1.bf16.msra.mxu1 %v18704_v0  ;;  %v20847_v0 = vld [vmem:[#allocation9 + $0x5e4] ss:$24 sps:$4 sm:$0xff]   ;;  %v6229_v1 = vld [vmem:[#allocation6 + $0x1a60] sm:$0xff] }
 0x3f1   :  { %5823 = vmatpush1.bf16.msra.mxu0 %v20821_v21  ;;  %8348 = vmatprep.subr.bf16.mxu1 %v18713_v23  ;;  %v6181_v21 = vld [vmem:[#allocation6 + $0x15e0] sm:$0xff] }
 0x3f2   :  { %5824 = vmatprep.subr.bf16.mxu0 %v20826_v27  ;;  %v6185_v23 = vld [vmem:[#allocation6 + $0x1640] sm:$0xff]  ;;  %v18768_v27 = vcombine.low %v6173_v14, %v6177_v52 }
 0x3f3   :  { %v18777_v30 = vcombine.high %v6181_v21, %v6185_v23  ;;  %v20868_v14 = vld [vmem:[#allocation9 + $0x734] ss:$24 sps:$4 sm:$0xff]  }
 0x3f4   :  { %8349 = vmatpush1.bf16.msra.mxu1 %v18712_v6  ;;  %v20850_v6 = vld [vmem:[#allocation9 + $0x614] ss:$24 sps:$4 sm:$0xff]  }
 0x3f5   :  { %5825 = vmatpush1.bf16.msra.mxu0 %v20824_v13  ;;  %8350 = vmatprep.subr.bf16.mxu1 %v18721_v8  ;;  %v6189_v13 = vld [vmem:[#allocation6 + $0x16a0] sm:$0xff] }
 0x3f6   :  { %5826 = vmatprep.subr.bf16.mxu0 %v20829_v7  ;;  %v6193_v8 = vld [vmem:[#allocation6 + $0x1700] sm:$0xff]  ;;  %v18776_v7 = vcombine.low %v6181_v21, %v6185_v23  ;;  %v20871_v21 = vld [vmem:[#allocation9 + $0x764] ss:$24 sps:$4 sm:$0xff]  }
 0x3f7   :  { %v6237_v52 = vld [vmem:[#allocation6 + $0x1b20] sm:$0xff] }
 0x3f8   :  { %8351 = vmatpush1.bf16.msra.mxu1 %v18720_v32  ;;  %v18785_v32 = vcombine.high %v6189_v13, %v6193_v8  ;;  %v6245_v23 = vld [vmem:[#allocation6 + $0x1be0] sm:$0xff] }
 0x3f9   :  { %5827 = vmatpush1.bf16.msra.mxu0 %v20827_v25  ;;  %8352 = vmatprep.subr.bf16.mxu1 %v18729_v18  ;;  %v6197_v25 = vld [vmem:[#allocation6 + $0x1760] sm:$0xff] }
 0x3fa   :  { %5828 = vmatprep.subr.bf16.mxu0 %v20832_v37  ;;  %v6201_v18 = vld [vmem:[#allocation6 + $0x17c0] sm:$0xff]  ;;  %v18784_v37 = vcombine.low %v6189_v13, %v6193_v8 }
 0x3fb   :  { %v18793_v39 = vcombine.high %v6197_v25, %v6201_v18  ;;  %v20874_v13 = vld [vmem:[#allocation9 + $0x794] ss:$24 sps:$4 sm:$0xff]  }
 0x3fc   :  { %8353 = vmatpush1.bf16.msra.mxu1 %v18728_v31  ;;  %v20856_v31 = vld [vmem:[#allocation9 + $0x674] ss:$24 sps:$4 sm:$0xff]  }
 0x3fd   :  { %5829 = vmatpush1.bf16.msra.mxu0 %v20830_v42  ;;  %8354 = vmatprep.subr.bf16.mxu1 %v18737_v44  ;;  %v6205_v42 = vld [vmem:[#allocation6 + $0x1820] sm:$0xff] }
 0x3fe   :  { %5830 = vmatprep.subr.bf16.mxu0 %v20835_v45  ;;  %v6209_v44 = vld [vmem:[#allocation6 + $0x1880] sm:$0xff]  ;;  %v18792_v45 = vcombine.low %v6197_v25, %v6201_v18  ;;  %v20877_v25 = vld [vmem:[#allocation9 + $0x7c4] ss:$24 sps:$4 sm:$0xff]  }
 0x3ff   :  { %v18801_v46 = vcombine.high %v6205_v42, %v6209_v44  ;;  %v6253_v8 = vld [vmem:[#allocation6 + $0x1ca0] sm:$0xff] }
 0x400   :  { %8355 = vmatpush1.bf16.msra.mxu1 %v18736_v47  ;;  %v6213_v47 = vld [vmem:[#allocation6 + $0x18e0] sm:$0xff] }
 0x401   :  { %5831 = vmatpush1.bf16.msra.mxu0 %v20833_v48  ;;  %8356 = vmatprep.subr.bf16.mxu1 %v18745_v49  ;;  %v6217_v48 = vld [vmem:[#allocation6 + $0x1940] sm:$0xff]  ;;  %v18800_v49 = vcombine.low %v6205_v42, %v6209_v44 }
 0x402   :  { %5832 = vmatprep.subr.bf16.mxu0 %v20838_v53  ;;  %v18809_v53 = vcombine.high %v6213_v47, %v6217_v48  ;;  %v6261_v18 = vld [vmem:[#allocation6 + $0x1d60] sm:$0xff] }
 0x403   :  { %v20880_v42 = vld [vmem:[#allocation9 + $0x7f4] ss:$24 sps:$4 sm:$0xff]  }
 0x404   :  { %8357 = vmatpush1.bf16.msra.mxu1 %v18744_v58  ;;  %v6225_v58 = vld [vmem:[#allocation6 + $0x1a00] sm:$0xff] }
 0x405   :  { %5833 = vmatpush1.bf16.msra.mxu0 %v20836_v61  ;;  %8358 = vmatprep.subr.bf16.mxu1 %v18753_v26  ;;  %v18808_v61 = vcombine.low %v6213_v47, %v6217_v48  ;;  %v20860_v26 = vld [vmem:[#allocation9 + $0x6d0] ss:$24 sps:$4 sm:$0xff]   ;;  %v20883_v47 = vld [vmem:[#allocation9 + $0x824] ss:$24 sps:$4 sm:$0xff]  }
 0x406   :  { %5834 = vmatprep.subr.bf16.mxu0 %v20841_v63  ;;  %v18817_v63 = vcombine.high %v6221_v51, %v6225_v58  ;;  %v6269_v44 = vld [vmem:[#allocation6 + $0x1e20] sm:$0xff] }
 0x407   :  { %v6277_v48 = vld [vmem:[#allocation6 + $0x1ee0] sm:$0xff] }
 0x408   :  { %8359 = vmatpush1.bf16.msra.mxu1 %v18752_v2  ;;  %v6233_v2 = vld [vmem:[#allocation6 + $0x1ac0] sm:$0xff] }
 0x409   :  { %5835 = vmatpush1.bf16.msra.mxu0 %v20839_v4  ;;  %8360 = vmatprep.subr.bf16.mxu1 %v18761_v5  ;;  %v18816_v4 = vcombine.low %v6221_v51, %v6225_v58  ;;  %v20863_v5 = vld [vmem:[#allocation9 + $0x700] ss:$24 sps:$4 sm:$0xff]   ;;  %v20886_v51 = vld [vmem:[#allocation9 + $0x854] ss:$24 sps:$4 sm:$0xff]  }
 0x40a   :  { %5836 = vmatprep.subr.bf16.mxu0 %v20844_v56  ;;  %v18825_v56 = vcombine.high %v6229_v1, %v6233_v2  ;;  %v6285_v58 = vld [vmem:[#allocation6 + $0x1fa0] sm:$0xff] }
 0x40c   :  { %8361 = vmatpush1.bf16.msra.mxu1 %v18760_v60  ;;  %v6241_v60 = vld [vmem:[#allocation6 + $0x1b80] sm:$0xff] }
 0x40d   :  { %5837 = vmatpush1.bf16.msra.mxu0 %v20842_v19  ;;  %8362 = vmatprep.subr.bf16.mxu1 %v18769_v54  ;;  %v18824_v19 = vcombine.low %v6229_v1, %v6233_v2  ;;  %v20866_v54 = vld [vmem:[#allocation9 + $0x730] ss:$24 sps:$4 sm:$0xff]   ;;  %v20889_v1 = vld [vmem:[#allocation9 + $0x884] ss:$24 sps:$4 sm:$0xff]  }
 0x40e   :  { %5838 = vmatprep.subr.bf16.mxu0 %v20847_v0  ;;  %v18833_v0 = vcombine.high %v6237_v52, %v6241_v60  ;;  %v6293_v2 = vld [vmem:[#allocation6 + $0x2060] sm:$0xff] }
 0x410   :  { %8363 = vmatpush1.bf16.msra.mxu1 %v18768_v27  ;;  %v6249_v27 = vld [vmem:[#allocation6 + $0x1c40] sm:$0xff] }
 0x411   :  { %5839 = vmatpush1.bf16.msra.mxu0 %v20845_v29  ;;  %8364 = vmatprep.subr.bf16.mxu1 %v18777_v30  ;;  %v18832_v29 = vcombine.low %v6237_v52, %v6241_v60  ;;  %v20869_v30 = vld [vmem:[#allocation9 + $0x760] ss:$24 sps:$4 sm:$0xff]   ;;  %v20892_v52 = vld [vmem:[#allocation9 + $0x8b4] ss:$24 sps:$4 sm:$0xff]  }
 0x412   :  { %5851 = vmatprep.subr.bf16.mxu0 %v20850_v6  ;;  %v18841_v6 = vcombine.high %v6245_v23, %v6249_v27  ;;  %v6301_v60 = vld [vmem:[#allocation6 + $0x2120] sm:$0xff] }
 0x414   :  { %5841 = vmatmul.mubr.bf16.vlgmr.msra.gmra.mrb[8].mxu0 %v22586_v34  ;;  %8365 = vmatpush1.bf16.msra.mxu1 %v18776_v7  ;;  %v20859_v34 = vld [vmem:[#allocation9 + $0x6a4] ss:$24 sps:$4 sm:$0xff]   ;;  %v6257_v7 = vld [vmem:[#allocation6 + $0x1d00] sm:$0xff] }
 0x415   :  { %5852 = vmatpush1.bf16.msra.mxu0 %v20848_v17  ;;  %5883 = vmatprep.mubr.bf16.mxu0 %v22559_v9  ;;  %v20857_v9 = vld [vmem:[#allocation9 + $0x6a0] ss:$24 sps:$4 sm:$0xff]   ;;  %v18840_v17 = vcombine.low %v6245_v23, %v6249_v27  ;;  %v20895_v23 = vld [vmem:[#allocation9 + $0x8e4] ss:$24 sps:$4 sm:$0xff]   ;;  %v6309_v27 = vld [vmem:[#allocation6 + $0x21e0] sm:$0xff] }
 0x416   :  { %5853 = vmatprep.subr.bf16.mxu0 %v20853_v12  ;;  %8366 = vmatprep.subr.bf16.mxu1 %v18785_v32  ;;  %v20872_v12 = vld [vmem:[#allocation9 + $0x790] ss:$24 sps:$4 sm:$0xff]   ;;  %v18849_v32 = vcombine.high %v6253_v8, %v6257_v7 }
 0x418   :  { %8367 = vmatpush1.bf16.msra.mxu1 %v18784_v37  ;;  %v6265_v37 = vld [vmem:[#allocation6 + $0x1dc0] sm:$0xff] }
 0x419   :  { %5854 = vmatpush1.bf16.msra.mxu0 %v20851_v38  ;;  %8368 = vmatprep.subr.bf16.mxu1 %v18793_v39  ;;  %v18848_v38 = vcombine.low %v6253_v8, %v6257_v7  ;;  %v20875_v39 = vld [vmem:[#allocation9 + $0x7c0] ss:$24 sps:$4 sm:$0xff]   ;;  %v20898_v8 = vld [vmem:[#allocation9 + $0x914] ss:$24 sps:$4 sm:$0xff]  }
 0x41a   :  { %5855 = vmatprep.subr.bf16.mxu0 %v20856_v31  ;;  %v18857_v31 = vcombine.high %v6261_v18, %v6265_v37  ;;  %v6317_v7 = vld [vmem:[#allocation6 + $0x22a0] sm:$0xff] }
 0x41c   :  { %8369 = vmatpush1.bf16.msra.mxu1 %v18792_v45  ;;  %v6273_v45 = vld [vmem:[#allocation6 + $0x1e80] sm:$0xff] }
 0x41d   :  { %5856 = vmatpush1.bf16.msra.mxu0 %v20854_v35  ;;  %8381 = vmatprep.subr.bf16.mxu1 %v18801_v46  ;;  %v18856_v35 = vcombine.low %v6261_v18, %v6265_v37  ;;  %v20878_v46 = vld [vmem:[#allocation9 + $0x7f0] ss:$24 sps:$4 sm:$0xff]  }
 0x41e   :  { %5857 = vmatprep.subr.bf16.mxu0 %v20859_v34  ;;  %v18865_v34 = vcombine.high %v6269_v44, %v6273_v45  ;;  %v6325_v37 = vld [vmem:[#allocation6 + $0x2360] sm:$0xff] }
 0x41f   :  { %8371 = vmatmul.mubr.bf16.vlgmr.msra.gmra.mrb[16].mxu1 %v22452_v36 }
 0x420   :  { %8382 = vmatpush1.bf16.msra.mxu1 %v18800_v49  ;;  %8413 = vmatprep.mubr.bf16.mxu1 %v22454_v41  ;;  %v6281_v49 = vld [vmem:[#allocation6 + $0x1f40] sm:$0xff] }
 0x421   :  { %5858 = vmatpush1.bf16.msra.mxu0 %v20857_v9  ;;  %8383 = vmatprep.subr.bf16.mxu1 %v18809_v53  ;;  %v18864_v9 = vcombine.low %v6269_v44, %v6273_v45  ;;  %v20881_v53 = vld [vmem:[#allocation9 + $0x820] ss:$24 sps:$4 sm:$0xff]   ;;  %v20904_v44 = vld [vmem:[#allocation9 + $0x974] ss:$24 sps:$4 sm:$0xff]  }
 0x422   :  { %5859 = vmatprep.subr.bf16.mxu0 %v20862_v55  ;;  %v18873_v55 = vcombine.high %v6277_v48, %v6281_v49  ;;  %v5950_v45 = vld [vmem:[#allocation6 + $0x28] sm:$0xff] }
 0x424   :  { %8384 = vmatpush1.bf16.msra.mxu1 %v18808_v61  ;;  %v6289_v61 = vld [vmem:[#allocation6 + $0x2000] sm:$0xff] }
 0x425   :  { %5860 = vmatpush1.bf16.msra.mxu0 %v20860_v26  ;;  %8385 = vmatprep.subr.bf16.mxu1 %v18817_v63  ;;  %v18872_v26 = vcombine.low %v6277_v48, %v6281_v49  ;;  %v20884_v63 = vld [vmem:[#allocation9 + $0x850] ss:$24 sps:$4 sm:$0xff]  }
 0x426   :  { %5861 = vmatprep.subr.bf16.mxu0 %v20865_v22  ;;  %v18881_v22 = vcombine.high %v6285_v58, %v6289_v61  ;;  %v5958_v48 = vld [vmem:[#allocation6 + $0xe8] sm:$0xff] }
 0x427   :  { %v5962_v49 = vld [vmem:[#allocation6 + $0x148] sm:$0xff] }
 0x428   :  { %8386 = vmatpush1.bf16.msra.mxu1 %v18816_v4  ;;  %v6297_v4 = vld [vmem:[#allocation6 + $0x20c0] sm:$0xff] }
 0x429   :  { %5862 = vmatpush1.bf16.msra.mxu0 %v20863_v5  ;;  %8387 = vmatprep.subr.bf16.mxu1 %v18825_v56  ;;  %v18880_v5 = vcombine.low %v6285_v58, %v6289_v61  ;;  %v20887_v56 = vld [vmem:[#allocation9 + $0x880] ss:$24 sps:$4 sm:$0xff]   ;;  %v5970_v58 = vld [vmem:[#allocation6 + $0x208] sm:$0xff]  ;;  %v18554_v61 = vcombine.low %v5958_v48, %v5962_v49 }
 0x42a   :  { %5863 = vmatprep.subr.bf16.mxu0 %v20868_v14  ;;  %v18889_v14 = vcombine.high %v6293_v2, %v6297_v4 }
 0x42c   :  { %8388 = vmatpush1.bf16.msra.mxu1 %v18824_v19  ;;  %v6305_v19 = vld [vmem:[#allocation6 + $0x2180] sm:$0xff] }
 0x42d   :  { %5864 = vmatpush1.bf16.msra.mxu0 %v20866_v54  ;;  %8389 = vmatprep.subr.bf16.mxu1 %v18833_v0  ;;  %v18888_v54 = vcombine.low %v6293_v2, %v6297_v4  ;;  %v20890_v0 = vld [vmem:[#allocation9 + $0x8b0] ss:$24 sps:$4 sm:$0xff]  }
 0x42e   :  { %5865 = vmatprep.subr.bf16.mxu0 %v20871_v21  ;;  %v18897_v21 = vcombine.high %v6301_v60, %v6305_v19  ;;  %v5978_v2 = vld [vmem:[#allocation6 + $0x2c8] sm:$0xff] }
 0x430   :  { %8390 = vmatpush1.bf16.msra.mxu1 %v18832_v29  ;;  %v6313_v29 = vld [vmem:[#allocation6 + $0x2240] sm:$0xff] }
 0x431   :  { %5866 = vmatpush1.bf16.msra.mxu0 %v20869_v30  ;;  %8391 = vmatprep.subr.bf16.mxu1 %v18841_v6  ;;  %v18896_v30 = vcombine.low %v6301_v60, %v6305_v19  ;;  %v20893_v6 = vld [vmem:[#allocation9 + $0x8e0] ss:$24 sps:$4 sm:$0xff]   ;;  %v5986_v60 = vld [vmem:[#allocation6 + $0x388] sm:$0xff] }
 0x432   :  { %5867 = vmatprep.subr.bf16.mxu0 %v20874_v13  ;;  %v18905_v13 = vcombine.high %v6309_v27, %v6313_v29 }
 0x434   :  { %8392 = vmatpush1.bf16.msra.mxu1 %v18840_v17  ;;  %v6321_v17 = vld [vmem:[#allocation6 + $0x2300] sm:$0xff] }
 0x435   :  { %5868 = vmatpush1.bf16.msra.mxu0 %v20872_v12  ;;  %8393 = vmatprep.subr.bf16.mxu1 %v18849_v32  ;;  %v18904_v12 = vcombine.low %v6309_v27, %v6313_v29  ;;  %v20896_v32 = vld [vmem:[#allocation9 + $0x910] ss:$24 sps:$4 sm:$0xff]   ;;  %v18913_v18 = vcombine.high %v6317_v7, %v6321_v17 }
 0x436   :  { %5869 = vmatprep.subr.bf16.mxu0 %v20877_v25  ;;  %v20901_v25 = vld [vmem:[#allocation9 + $0x944] ss:$24 sps:$4 sm:$0xff]   ;;  %v5994_v27 = vld [vmem:[#allocation6 + $0x448] sm:$0xff] }
 0x438   :  { %8394 = vmatpush1.bf16.msra.mxu1 %v18848_v38  ;;  %v6329_v38 = vld [vmem:[#allocation6 + $0x23c0] sm:$0xff] }
 0x439   :  { %5870 = vmatpush1.bf16.msra.mxu0 %v20875_v39  ;;  %8395 = vmatprep.subr.bf16.mxu1 %v18857_v31  ;;  %v18912_v39 = vcombine.low %v6317_v7, %v6321_v17  ;;  %v20899_v31 = vld [vmem:[#allocation9 + $0x940] ss:$24 sps:$4 sm:$0xff]   ;;  %v6002_v7 = vld [vmem:[#allocation6 + $0x508] sm:$0xff] }
 0x43a   :  { %5871 = vmatprep.subr.bf16.mxu0 %v20880_v42  ;;  %v18921_v42 = vcombine.high %v6325_v37, %v6329_v38 }
 0x43c   :  { %8396 = vmatpush1.bf16.msra.mxu1 %v18856_v35  ;;  %v5954_v35 = vld [vmem:[#allocation6 + $0x88] sm:$0xff] }
 0x43d   :  { %5872 = vmatpush1.bf16.msra.mxu0 %v20878_v46  ;;  %8397 = vmatprep.subr.bf16.mxu1 %v18865_v34  ;;  %v18920_v46 = vcombine.low %v6325_v37, %v6329_v38  ;;  %v20902_v34 = vld [vmem:[#allocation9 + $0x970] ss:$24 sps:$4 sm:$0xff]  }
 0x43e   :  { %5873 = vmatprep.subr.bf16.mxu0 %v20883_v47  ;;  %v18547_v47 = vcombine.high %v5950_v45, %v5954_v35  ;;  %v6010_v37 = vld [vmem:[#allocation6 + $0x5c8] sm:$0xff] }
 0x440   :  { %8398 = vmatpush1.bf16.msra.mxu1 %v18864_v9  ;;  %v18546_v9 = vcombine.low %v5950_v45, %v5954_v35  ;;  %v6018_v45 = vld [vmem:[#allocation6 + $0x688] sm:$0xff] }
 0x441   :  { %5874 = vmatpush1.bf16.msra.mxu0 %v20881_v53  ;;  %8399 = vmatprep.subr.bf16.mxu1 %v18873_v55  ;;  %v18555_v53 = vcombine.high %v5958_v48, %v5962_v49  ;;  %v20910_v55 = vld [vmem:[#allocation9 + $0x9d4] ss:$24 sps:$4 sm:$0xff]  }
 0x442   :  { %5875 = vmatprep.subr.bf16.mxu0 %v20886_v51  ;;  %v5966_v51 = vld [vmem:[#allocation6 + $0x1a8] sm:$0xff] }
 0x443   :  { %v18562_v4 = vcombine.low %v5966_v51, %v5970_v58  ;;  %v6026_v48 = vld [vmem:[#allocation6 + $0x748] sm:$0xff] }
 0x444   :  { %8400 = vmatpush1.bf16.msra.mxu1 %v18872_v26  ;;  %v20908_v26 = vld [vmem:[#allocation9 + $0x9d0] ss:$24 sps:$4 sm:$0xff]  }
 0x445   :  { %5876 = vmatpush1.bf16.msra.mxu0 %v20884_v63  ;;  %8401 = vmatprep.subr.bf16.mxu1 %v18881_v22  ;;  %v18563_v63 = vcombine.high %v5966_v51, %v5970_v58  ;;  %v20913_v22 = vld [vmem:[#allocation9 + $0xa04] ss:$24 sps:$4 sm:$0xff]   ;;  %v6034_v51 = vld [vmem:[#allocation6 + $0x808] sm:$0xff] }
 0x446   :  { %5877 = vmatprep.subr.bf16.mxu0 %v20889_v1  ;;  %v5974_v1 = vld [vmem:[#allocation6 + $0x268] sm:$0xff] }
 0x447   :  { %v18570_v19 = vcombine.low %v5974_v1, %v5978_v2 }
 0x448   :  { %8402 = vmatpush1.bf16.msra.mxu1 %v18880_v5  ;;  %v20911_v5 = vld [vmem:[#allocation9 + $0xa00] ss:$24 sps:$4 sm:$0xff]  }
 0x449   :  { %5878 = vmatpush1.bf16.msra.mxu0 %v20887_v56  ;;  %8403 = vmatprep.subr.bf16.mxu1 %v18889_v14  ;;  %v18571_v56 = vcombine.high %v5974_v1, %v5978_v2  ;;  %v20916_v14 = vld [vmem:[#allocation9 + $0xa34] ss:$24 sps:$4 sm:$0xff]  }
 0x44a   :  { %5879 = vmatprep.subr.bf16.mxu0 %v20892_v52  ;;  %v5982_v52 = vld [vmem:[#allocation6 + $0x328] sm:$0xff] }
 0x44b   :  { %v18578_v29 = vcombine.low %v5982_v52, %v5986_v60  ;;  %v6042_v1 = vld [vmem:[#allocation6 + $0x8c8] sm:$0xff] }
 0x44c   :  { %8404 = vmatpush1.bf16.msra.mxu1 %v18888_v54  ;;  %v20914_v54 = vld [vmem:[#allocation9 + $0xa30] ss:$24 sps:$4 sm:$0xff]  }
 0x44d   :  { %5880 = vmatpush1.bf16.msra.mxu0 %v20890_v0  ;;  %8405 = vmatprep.subr.bf16.mxu1 %v18897_v21  ;;  %v18579_v0 = vcombine.high %v5982_v52, %v5986_v60  ;;  %v20919_v21 = vld [vmem:[#allocation9 + $0xa64] ss:$24 sps:$4 sm:$0xff]   ;;  %v6050_v52 = vld [vmem:[#allocation6 + $0x988] sm:$0xff] }
 0x44e   :  { %5881 = vmatprep.subr.bf16.mxu0 %v20895_v23  ;;  %v5990_v23 = vld [vmem:[#allocation6 + $0x3e8] sm:$0xff] }
 0x44f   :  { %v18586_v17 = vcombine.low %v5990_v23, %v5994_v27 }
 0x450   :  { %8406 = vmatpush1.bf16.msra.mxu1 %v18896_v30  ;;  %v20917_v30 = vld [vmem:[#allocation9 + $0xa60] ss:$24 sps:$4 sm:$0xff]  }
 0x451   :  { %5882 = vmatpush1.bf16.msra.mxu0 %v20893_v6  ;;  %8407 = vmatprep.subr.bf16.mxu1 %v18905_v13  ;;  %v18587_v6 = vcombine.high %v5990_v23, %v5994_v27  ;;  %v20922_v13 = vld [vmem:[#allocation9 + $0xa94] ss:$24 sps:$4 sm:$0xff]   ;;  %v5951_v27 = vld [vmem:[#allocation6 + $0x30] sm:$0xff] }
 0x452   :  { %5894 = vmatprep.subr.bf16.mxu0 %v20898_v8  ;;  %v5998_v8 = vld [vmem:[#allocation6 + $0x4a8] sm:$0xff] }
 0x453   :  { %v18594_v38 = vcombine.low %v5998_v8, %v6002_v7  ;;  %v6058_v23 = vld [vmem:[#allocation6 + $0xa48] sm:$0xff] }
 0x454   :  { %5884 = vmatmul.mubr.bf16.vlgmr.msra.gmra.mrb[8].mxu0 %v22561_v11  ;;  %8408 = vmatpush1.bf16.msra.mxu1 %v18904_v12  ;;  %v20907_v11 = vld [vmem:[#allocation9 + $0x9a4] ss:$24 sps:$4 sm:$0xff]   ;;  %v20920_v12 = vld [vmem:[#allocation9 + $0xa90] ss:$24 sps:$4 sm:$0xff]  }
 0x455   :  { %5895 = vmatpush1.bf16.msra.mxu0 %v20896_v32  ;;  %5926 = vmatprep.mubr.bf16.mxu0 %v22618_v16  ;;  %v20905_v16 = vld [vmem:[#allocation9 + $0x9a0] ss:$24 sps:$4 sm:$0xff]   ;;  %v18595_v32 = vcombine.high %v5998_v8, %v6002_v7  ;;  %v6062_v7 = vld [vmem:[#allocation6 + $0xaa8] sm:$0xff] }
 0x456   :  { %5896 = vmatprep.subr.bf16.mxu0 %v20901_v25  ;;  %8409 = vmatprep.subr.bf16.mxu1 %v18913_v18  ;;  %v20925_v25 = vld [vmem:[#allocation9 + $0xac4] ss:$24 sps:$4 sm:$0xff]   ;;  %v6006_v18 = vld [vmem:[#allocation6 + $0x568] sm:$0xff] }
 0x457   :  { %v18602_v35 = vcombine.low %v6006_v18, %v6010_v37 }
 0x458   :  { %8410 = vmatpush1.bf16.msra.mxu1 %v18912_v39  ;;  %v20923_v39 = vld [vmem:[#allocation9 + $0xac0] ss:$24 sps:$4 sm:$0xff]  }
 0x459   :  { %5897 = vmatpush1.bf16.msra.mxu0 %v20899_v31  ;;  %8411 = vmatprep.subr.bf16.mxu1 %v18921_v42  ;;  %v18603_v31 = vcombine.high %v6006_v18, %v6010_v37  ;;  %v20928_v42 = vld [vmem:[#allocation9 + $0xaf4] ss:$24 sps:$4 sm:$0xff]  }
 0x45a   :  { %5898 = vmatprep.subr.bf16.mxu0 %v20904_v44  ;;  %v6014_v44 = vld [vmem:[#allocation6 + $0x628] sm:$0xff] }
 0x45b   :  { %v18610_v49 = vcombine.low %v6014_v44, %v6018_v45 }
 0x45c   :  { %8412 = vmatpush1.bf16.msra.mxu1 %v18920_v46  ;;  %v20926_v46 = vld [vmem:[#allocation9 + $0xaf0] ss:$24 sps:$4 sm:$0xff]  }
 0x45d   :  { %5899 = vmatpush1.bf16.msra.mxu0 %v20902_v34  ;;  %8424 = vmatprep.subr.bf16.mxu1 %v18547_v47  ;;  %v18611_v34 = vcombine.high %v6014_v44, %v6018_v45  ;;  %v20931_v47 = vld [vmem:[#allocation9 + $0xb24] ss:$24 sps:$4 sm:$0xff]  }
 0x45e   :  { %5900 = vmatprep.subr.bf16.mxu0 %v20907_v11  ;;  %v6022_v11 = vld [vmem:[#allocation6 + $0x6e8] sm:$0xff]  ;;  %v5971_v44 = vld [vmem:[#allocation6 + $0x210] sm:$0xff] }
 0x45f   :  { %8414 = vmatmul.mubr.bf16.vlgmr.msra.gmra.mrb[16].mxu1 %v22460_v50  ;;  %v18618_v58 = vcombine.low %v6022_v11, %v6026_v48 }
 0x460   :  { %8425 = vmatpush1.bf16.msra.mxu1 %v18546_v9  ;;  %8456 = vmatprep.mubr.bf16.mxu1 %v22440_v20  ;;  %v20929_v9 = vld [vmem:[#allocation9 + $0xb20] ss:$24 sps:$4 sm:$0xff]  }
 0x461   :  { %5901 = vmatpush1.bf16.msra.mxu0 %v20905_v16  ;;  %8426 = vmatprep.subr.bf16.mxu1 %v18555_v53  ;;  %v18619_v16 = vcombine.high %v6022_v11, %v6026_v48  ;;  %v20934_v53 = vld [vmem:[#allocation9 + $0xb54] ss:$24 sps:$4 sm:$0xff]   ;;  %v5975_v48 = vld [vmem:[#allocation6 + $0x270] sm:$0xff] }
 0x462   :  { %5902 = vmatprep.subr.bf16.mxu0 %v20910_v55  ;;  %v6030_v55 = vld [vmem:[#allocation6 + $0x7a8] sm:$0xff] }
 0x463   :  { %v18626_v2 = vcombine.low %v6030_v55, %v6034_v51  ;;  %v6082_v11 = vld [vmem:[#allocation6 + $0xc88] sm:$0xff] }
 0x464   :  { %8427 = vmatpush1.bf16.msra.mxu1 %v18554_v61  ;;  %v20932_v61 = vld [vmem:[#allocation9 + $0xb50] ss:$24 sps:$4 sm:$0xff]  }
 0x465   :  { %5903 = vmatpush1.bf16.msra.mxu0 %v20908_v26  ;;  %8428 = vmatprep.subr.bf16.mxu1 %v18563_v63  ;;  %v18627_v26 = vcombine.high %v6030_v55, %v6034_v51  ;;  %v20937_v63 = vld [vmem:[#allocation9 + $0xb84] ss:$24 sps:$4 sm:$0xff]   ;;  %v6086_v55 = vld [vmem:[#allocation6 + $0xce8] sm:$0xff] }
 0x466   :  { %5904 = vmatprep.subr.bf16.mxu0 %v20913_v22  ;;  %v6038_v22 = vld [vmem:[#allocation6 + $0x868] sm:$0xff] }
 0x467   :  { %v18634_v60 = vcombine.low %v6038_v22, %v6042_v1  ;;  %v6090_v51 = vld [vmem:[#allocation6 + $0xd48] sm:$0xff] }
 0x468   :  { %8429 = vmatpush1.bf16.msra.mxu1 %v18562_v4  ;;  %v20935_v4 = vld [vmem:[#allocation9 + $0xb80] ss:$24 sps:$4 sm:$0xff]  }
 0x469   :  { %5905 = vmatpush1.bf16.msra.mxu0 %v20911_v5  ;;  %8430 = vmatprep.subr.bf16.mxu1 %v18571_v56  ;;  %v18635_v5 = vcombine.high %v6038_v22, %v6042_v1  ;;  %v20940_v56 = vld [vmem:[#allocation9 + $0xbb4] ss:$24 sps:$4 sm:$0xff]   ;;  %v18683_v22 = vcombine.high %v6086_v55, %v6090_v51 }
 0x46a   :  { %5906 = vmatprep.subr.bf16.mxu0 %v20916_v14  ;;  %v6046_v14 = vld [vmem:[#allocation6 + $0x928] sm:$0xff] }
 0x46c   :  { %8431 = vmatpush1.bf16.msra.mxu1 %v18570_v19  ;;  %v20938_v19 = vld [vmem:[#allocation9 + $0xbb0] ss:$24 sps:$4 sm:$0xff]  }
 0x46d   :  { %5907 = vmatpush1.bf16.msra.mxu0 %v20914_v54  ;;  %8432 = vmatprep.subr.bf16.mxu1 %v18579_v0  ;;  %v18643_v54 = vcombine.high %v6046_v14, %v6050_v52  ;;  %v20943_v0 = vld [vmem:[#allocation9 + $0xbe4] ss:$24 sps:$4 sm:$0xff]  }
 0x46e   :  { %5908 = vmatprep.subr.bf16.mxu0 %v20919_v21  ;;  %v6054_v21 = vld [vmem:[#allocation6 + $0x9e8] sm:$0xff] }
 0x470   :  { %8433 = vmatpush1.bf16.msra.mxu1 %v18578_v29  ;;  %v5955_v29 = vld [vmem:[#allocation6 + $0x90] sm:$0xff] }
 0x471   :  { %5909 = vmatpush1.bf16.msra.mxu0 %v20917_v30  ;;  %8434 = vmatprep.subr.bf16.mxu1 %v18587_v6  ;;  %v18642_v30 = vcombine.low %v6046_v14, %v6050_v52  ;;  %v20941_v6 = vld [vmem:[#allocation9 + $0xbe0] ss:$24 sps:$4 sm:$0xff]   ;;  %v18549_v8 = vcombine.high %v5951_v27, %v5955_v29  ;;  %v18548_v18 = vcombine.low %v5951_v27, %v5955_v29 }
 0x472   :  { %5910 = vmatprep.subr.bf16.mxu0 %v20922_v13  ;;  %v18651_v13 = vcombine.high %v6054_v21, %v6058_v23  ;;  %v18682_v14 = vcombine.low %v6086_v55, %v6090_v51  ;;  %v6031_v55 = vld [vmem:[#allocation6 + $0x7b0] sm:$0xff] }
 0x473   :  { %v6035_v51 = vld [vmem:[#allocation6 + $0x810] sm:$0xff] }
 0x474   :  { %8435 = vmatpush1.bf16.msra.mxu1 %v18586_v17  ;;  %v6066_v17 = vld [vmem:[#allocation6 + $0xb08] sm:$0xff] }
 0x475   :  { %5911 = vmatpush1.bf16.msra.mxu0 %v20920_v12  ;;  %8436 = vmatprep.subr.bf16.mxu1 %v18595_v32  ;;  %v5959_v12 = vld [vmem:[#allocation6 + $0xf0] sm:$0xff]  ;;  %v18659_v37 = vcombine.high %v6062_v7, %v6066_v17  ;;  %v18658_v45 = vcombine.low %v6062_v7, %v6066_v17 }
 0x476   :  { %5912 = vmatprep.subr.bf16.mxu0 %v20925_v25  ;;  %v5963_v32 = vld [vmem:[#allocation6 + $0x150] sm:$0xff]  ;;  %v18650_v25 = vcombine.low %v6054_v21, %v6058_v23 }
 0x477   :  { %v5999_v21 = vld [vmem:[#allocation6 + $0x4b0] sm:$0xff] }
 0x478   :  { %8437 = vmatpush1.bf16.msra.mxu1 %v18594_v38  ;;  %v18557_v38 = vcombine.high %v5959_v12, %v5963_v32  ;;  %v6003_v23 = vld [vmem:[#allocation6 + $0x510] sm:$0xff] }
 0x479   :  { %5913 = vmatpush1.bf16.msra.mxu0 %v20923_v39  ;;  %8438 = vmatprep.subr.bf16.mxu1 %v18603_v31  ;;  %v6070_v39 = vld [vmem:[#allocation6 + $0xb68] sm:$0xff]  ;;  %v6007_v7 = vld [vmem:[#allocation6 + $0x570] sm:$0xff] }
 0x47a   :  { %5914 = vmatprep.subr.bf16.mxu0 %v20928_v42  ;;  %v6074_v31 = vld [vmem:[#allocation6 + $0xbc8] sm:$0xff]  ;;  %v5967_v42 = vld [vmem:[#allocation6 + $0x1b0] sm:$0xff] }
 0x47b   :  { %v6011_v17 = vld [vmem:[#allocation6 + $0x5d0] sm:$0xff] }
 0x47c   :  { %8439 = vmatpush1.bf16.msra.mxu1 %v18602_v35  ;;  %v18556_v35 = vcombine.low %v5959_v12, %v5963_v32  ;;  %v18596_v32 = vcombine.low %v5999_v21, %v6003_v23 }
 0x47d   :  { %5915 = vmatpush1.bf16.msra.mxu0 %v20926_v46  ;;  %8440 = vmatprep.subr.bf16.mxu1 %v18611_v34  ;;  %v18667_v46 = vcombine.high %v6070_v39, %v6074_v31  ;;  %v18565_v34 = vcombine.high %v5967_v42, %v5971_v44 }
 0x47e   :  { %5916 = vmatprep.subr.bf16.mxu0 %v20931_v47  ;;  %v6078_v47 = vld [vmem:[#allocation6 + $0xc28] sm:$0xff] }
 0x480   :  { %8441 = vmatpush1.bf16.msra.mxu1 %v18610_v49  ;;  %v5979_v49 = vld [vmem:[#allocation6 + $0x2d0] sm:$0xff] }
 0x481   :  { %5917 = vmatpush1.bf16.msra.mxu0 %v20929_v9  ;;  %8442 = vmatprep.subr.bf16.mxu1 %v18619_v16  ;;  %v18666_v9 = vcombine.low %v6070_v39, %v6074_v31  ;;  %v18564_v16 = vcombine.low %v5967_v42, %v5971_v44  ;;  %v6015_v39 = vld [vmem:[#allocation6 + $0x630] sm:$0xff]  ;;  %v18604_v44 = vcombine.low %v6007_v7, %v6011_v17 }
 0x482   :  { %5918 = vmatprep.subr.bf16.mxu0 %v20934_v53  ;;  %v18573_v53 = vcombine.high %v5975_v48, %v5979_v49  ;;  %v6019_v31 = vld [vmem:[#allocation6 + $0x690] sm:$0xff] }
 0x484   :  { %8443 = vmatpush1.bf16.msra.mxu1 %v18618_v58  ;;  %v5983_v58 = vld [vmem:[#allocation6 + $0x330] sm:$0xff] }
 0x485   :  { %5919 = vmatpush1.bf16.msra.mxu0 %v20932_v61  ;;  %8444 = vmatprep.subr.bf16.mxu1 %v18627_v26  ;;  %v5987_v61 = vld [vmem:[#allocation6 + $0x390] sm:$0xff]  ;;  %v18674_v26 = vcombine.low %v6078_v47, %v6082_v11 }
 0x486   :  { %5920 = vmatprep.subr.bf16.mxu0 %v20937_v63  ;;  %v18572_v63 = vcombine.low %v5975_v48, %v5979_v49  ;;  %v18581_v1 = vcombine.high %v5983_v58, %v5987_v61  ;;  %v18580_v52 = vcombine.low %v5983_v58, %v5987_v61  ;;  %v18612_v49 = vcombine.low %v6015_v39, %v6019_v31 }
 0x488   :  { %8445 = vmatpush1.bf16.msra.mxu1 %v18626_v2  ;;  %v6094_v2 = vld [vmem:[#allocation6 + $0xda8] sm:$0xff] }
 0x489   :  { %5921 = vmatpush1.bf16.msra.mxu0 %v20935_v4  ;;  %8446 = vmatprep.subr.bf16.mxu1 %v18635_v5  ;;  %v6098_v4 = vld [vmem:[#allocation6 + $0xe08] sm:$0xff]  ;;  %v5991_v5 = vld [vmem:[#allocation6 + $0x3f0] sm:$0xff] }
 0x48a   :  { %5922 = vmatprep.subr.bf16.mxu0 %v20940_v56  ;;  %v5995_v56 = vld [vmem:[#allocation6 + $0x450] sm:$0xff]  ;;  %v18690_v27 = vcombine.low %v6094_v2, %v6098_v4 }
 0x48b   :  { %v18588_v29 = vcombine.low %v5991_v5, %v5995_v56 }
 0x48c   :  { %8447 = vmatpush1.bf16.msra.mxu1 %v18634_v60  ;;  %v18691_v60 = vcombine.high %v6094_v2, %v6098_v4  ;;  %v6039_v2 = vld [vmem:[#allocation6 + $0x870] sm:$0xff] }
 0x48d   :  { %5923 = vmatpush1.bf16.msra.mxu0 %v20938_v19  ;;  %8448 = vmatprep.subr.bf16.mxu1 %v18643_v54  ;;  %v18589_v19 = vcombine.high %v5991_v5, %v5995_v56  ;;  %v6102_v54 = vld [vmem:[#allocation6 + $0xe68] sm:$0xff]  ;;  %v6043_v4 = vld [vmem:[#allocation6 + $0x8d0] sm:$0xff]  ;;  %v18628_v56 = vcombine.low %v6031_v55, %v6035_v51 }
 0x48e   :  { %5924 = vmatprep.subr.bf16.mxu0 %v20943_v0  ;;  %v6106_v0 = vld [vmem:[#allocation6 + $0xec8] sm:$0xff] }
 0x48f   :  { %v18698_v12 = vcombine.low %v6102_v54, %v6106_v0 }
 0x490   :  { %8449 = vmatpush1.bf16.msra.mxu1 %v18642_v30  ;;  %v18699_v30 = vcombine.high %v6102_v54, %v6106_v0  ;;  %v6047_v54 = vld [vmem:[#allocation6 + $0x930] sm:$0xff] }
 0x491   :  { %5925 = vmatpush1.bf16.msra.mxu0 %v20941_v6  ;;  %8450 = vmatprep.subr.bf16.mxu1 %v18651_v13  ;;  %v18597_v6 = vcombine.high %v5999_v21, %v6003_v23  ;;  %v6110_v13 = vld [vmem:[#allocation6 + $0xf28] sm:$0xff]  ;;  %v6051_v0 = vld [vmem:[#allocation6 + $0x990] sm:$0xff]  ;;  %v18636_v23 = vcombine.low %v6039_v2, %v6043_v4 }
 0x492   :  { %8553 = vmatprep.subr.bf16.mxu0 %v18549_v8  ;;  %v6114_v8 = vld [vmem:[#allocation6 + $0xf88] sm:$0xff] }
 0x493   :  { %v18706_v42 = vcombine.low %v6110_v13, %v6114_v8 }
 0x494   :  { %5927 = vmatmul.mubr.bf16.vlgmr.msra.gmra.mrb[8].mxu0 %v22616_v15  ;;  %8451 = vmatpush1.bf16.msra.mxu1 %v18650_v25  ;;  %v18675_v15 = vcombine.high %v6078_v47, %v6082_v11  ;;  %v18707_v25 = vcombine.high %v6110_v13, %v6114_v8  ;;  %v6023_v47 = vld [vmem:[#allocation6 + $0x6f0] sm:$0xff] }
 0x495   :  { %8554 = vmatpush1.bf16.msra.mxu0 %v18548_v18  ;;  %8452 = vmatprep.subr.bf16.mxu1 %v18659_v37  ;;  %v18605_v18 = vcombine.high %v6007_v7, %v6011_v17  ;;  %v6118_v37 = vld [vmem:[#allocation6 + $0xfe8] sm:$0xff]  ;;  %v6027_v11 = vld [vmem:[#allocation6 + $0x750] sm:$0xff]  ;;  %v18644_v17 = vcombine.low %v6047_v54, %v6051_v0 }
 0x496   :  { %8555 = vmatprep.subr.bf16.mxu0 %v18557_v38  ;;  %8585 = vmatprep.mubr.bf16.mxu0 %v22440_v20  ;;  %v6122_v38 = vld [vmem:[#allocation6 + $0x1048] sm:$0xff]  ;;  %v18620_v61 = vcombine.low %v6023_v47, %v6027_v11  ;;  %v6055_v13 = vld [vmem:[#allocation6 + $0x9f0] sm:$0xff] }
 0x497   :  { %v18714_v48 = vcombine.low %v6118_v37, %v6122_v38  ;;  %v6059_v8 = vld [vmem:[#allocation6 + $0xa50] sm:$0xff] }
 0x498   :  { %8453 = vmatpush1.bf16.msra.mxu1 %v18658_v45  ;;  %v18715_v45 = vcombine.high %v6118_v37, %v6122_v38  ;;  %v6063_v37 = vld [vmem:[#allocation6 + $0xab0] sm:$0xff] }
 0x499   :  { %8556 = vmatpush1.bf16.msra.mxu0 %v18556_v35  ;;  %8454 = vmatprep.subr.bf16.mxu1 %v18667_v46  ;;  %v18613_v35 = vcombine.high %v6015_v39, %v6019_v31  ;;  %v6126_v46 = vld [vmem:[#allocation6 + $0x10a8] sm:$0xff]  ;;  %v6067_v38 = vld [vmem:[#allocation6 + $0xb10] sm:$0xff]  ;;  %v18652_v31 = vcombine.low %v6055_v13, %v6059_v8 }
 0x49a   :  { %8557 = vmatprep.subr.bf16.mxu0 %v18565_v34  ;;  %v6130_v34 = vld [vmem:[#allocation6 + $0x1108] sm:$0xff] }
 0x49b   :  { %v18722_v58 = vcombine.low %v6126_v46, %v6130_v34 }
 0x49c   :  { %8455 = vmatpush1.bf16.msra.mxu1 %v18666_v9  ;;  %v18723_v9 = vcombine.high %v6126_v46, %v6130_v34  ;;  %v6071_v46 = vld [vmem:[#allocation6 + $0xb70] sm:$0xff] }
 0x49d   :  { %8558 = vmatpush1.bf16.msra.mxu0 %v18564_v16  ;;  %8467 = vmatprep.subr.bf16.mxu1 %v18675_v15  ;;  %v18621_v16 = vcombine.high %v6023_v47, %v6027_v11  ;;  %v6134_v15 = vld [vmem:[#allocation6 + $0x1168] sm:$0xff]  ;;  %v6075_v34 = vld [vmem:[#allocation6 + $0xbd0] sm:$0xff]  ;;  %v18660_v11 = vcombine.low %v6063_v37, %v6067_v38 }
 0x49e   :  { %8559 = vmatprep.subr.bf16.mxu0 %v18573_v53  ;;  %v6138_v53 = vld [vmem:[#allocation6 + $0x11c8] sm:$0xff] }
 0x49f   :  { %8457 = vmatmul.mubr.bf16.vlgmr.msra.gmra.mrb[20].mxu1 %v22444_v24  ;;  %v18730_v5 = vcombine.low %v6134_v15, %v6138_v53 }
 0x4a0   :  { %8468 = vmatpush1.bf16.msra.mxu1 %v18674_v26  ;;  %8499 = vmatprep.mubr.bf16.mxu1 %v22446_v28  ;;  %v18731_v26 = vcombine.high %v6134_v15, %v6138_v53  ;;  %v6079_v15 = vld [vmem:[#allocation6 + $0xc30] sm:$0xff] }
 0x4a1   :  { %8560 = vmatpush1.bf16.msra.mxu0 %v18572_v63  ;;  %8469 = vmatprep.subr.bf16.mxu1 %v18683_v22  ;;  %v18629_v63 = vcombine.high %v6031_v55, %v6035_v51  ;;  %v6142_v22 = vld [vmem:[#allocation6 + $0x1228] sm:$0xff]  ;;  %v6083_v53 = vld [vmem:[#allocation6 + $0xc90] sm:$0xff]  ;;  %v18668_v51 = vcombine.low %v6071_v46, %v6075_v34 }
 0x4a2   :  { %8561 = vmatprep.subr.bf16.mxu0 %v18581_v1  ;;  %v6146_v1 = vld [vmem:[#allocation6 + $0x1288] sm:$0xff] }
 0x4a3   :  { %v18738_v21 = vcombine.low %v6142_v22, %v6146_v1 }
 0x4a4   :  { %8470 = vmatpush1.bf16.msra.mxu1 %v18682_v14  ;;  %v18739_v14 = vcombine.high %v6142_v22, %v6146_v1  ;;  %v6087_v22 = vld [vmem:[#allocation6 + $0xcf0] sm:$0xff] }
 0x4a5   :  { %8562 = vmatpush1.bf16.msra.mxu0 %v18580_v52  ;;  %8471 = vmatprep.subr.bf16.mxu1 %v18691_v60  ;;  %v18637_v52 = vcombine.high %v6039_v2, %v6043_v4  ;;  %v6150_v60 = vld [vmem:[#allocation6 + $0x12e8] sm:$0xff]  ;;  %v6091_v1 = vld [vmem:[#allocation6 + $0xd50] sm:$0xff]  ;;  %v18676_v4 = vcombine.low %v6079_v15, %v6083_v53 }
 0x4a6   :  { %8563 = vmatprep.subr.bf16.mxu0 %v18589_v19  ;;  %v6154_v19 = vld [vmem:[#allocation6 + $0x1348] sm:$0xff] }
 0x4a7   :  { %v18746_v7 = vcombine.low %v6150_v60, %v6154_v19 }
 0x4a8   :  { %8472 = vmatpush1.bf16.msra.mxu1 %v18690_v27  ;;  %v18747_v27 = vcombine.high %v6150_v60, %v6154_v19  ;;  %v6095_v60 = vld [vmem:[#allocation6 + $0xdb0] sm:$0xff] }
 0x4a9   :  { %8564 = vmatpush1.bf16.msra.mxu0 %v18588_v29  ;;  %8473 = vmatprep.subr.bf16.mxu1 %v18699_v30  ;;  %v18645_v29 = vcombine.high %v6047_v54, %v6051_v0  ;;  %v6158_v30 = vld [vmem:[#allocation6 + $0x13a8] sm:$0xff]  ;;  %v6099_v19 = vld [vmem:[#allocation6 + $0xe10] sm:$0xff]  ;;  %v18684_v0 = vcombine.low %v6087_v22, %v6091_v1 }
 0x4aa   :  { %8565 = vmatprep.subr.bf16.mxu0 %v18597_v6  ;;  %v6162_v6 = vld [vmem:[#allocation6 + $0x1408] sm:$0xff] }
 0x4ab   :  { %v18754_v39 = vcombine.low %v6158_v30, %v6162_v6 }
 0x4ac   :  { %8474 = vmatpush1.bf16.msra.mxu1 %v18698_v12  ;;  %v18755_v12 = vcombine.high %v6158_v30, %v6162_v6  ;;  %v6103_v30 = vld [vmem:[#allocation6 + $0xe70] sm:$0xff] }
 0x4ad   :  { %8566 = vmatpush1.bf16.msra.mxu0 %v18596_v32  ;;  %8475 = vmatprep.subr.bf16.mxu1 %v18707_v25  ;;  %v18653_v32 = vcombine.high %v6055_v13, %v6059_v8  ;;  %v6166_v25 = vld [vmem:[#allocation6 + $0x1468] sm:$0xff]  ;;  %v6107_v6 = vld [vmem:[#allocation6 + $0xed0] sm:$0xff]  ;;  %v18692_v8 = vcombine.low %v6095_v60, %v6099_v19 }
 0x4ae   :  { %8567 = vmatprep.subr.bf16.mxu0 %v18605_v18  ;;  %v6170_v18 = vld [vmem:[#allocation6 + $0x14c8] sm:$0xff] }
 0x4af   :  { %v18762_v47 = vcombine.low %v6166_v25, %v6170_v18 }
 0x4b0   :  { %8476 = vmatpush1.bf16.msra.mxu1 %v18706_v42  ;;  %v18763_v42 = vcombine.high %v6166_v25, %v6170_v18  ;;  %v6111_v25 = vld [vmem:[#allocation6 + $0xf30] sm:$0xff] }
 0x4b1   :  { %8568 = vmatpush1.bf16.msra.mxu0 %v18604_v44  ;;  %8477 = vmatprep.subr.bf16.mxu1 %v18715_v45  ;;  %v18661_v44 = vcombine.high %v6063_v37, %v6067_v38  ;;  %v6174_v45 = vld [vmem:[#allocation6 + $0x1528] sm:$0xff]  ;;  %v6115_v18 = vld [vmem:[#allocation6 + $0xf90] sm:$0xff]  ;;  %v18700_v38 = vcombine.low %v6103_v30, %v6107_v6 }
 0x4b2   :  { %8569 = vmatprep.subr.bf16.mxu0 %v18613_v35  ;;  %v6178_v35 = vld [vmem:[#allocation6 + $0x1588] sm:$0xff] }
 0x4b3   :  { %v18770_v55 = vcombine.low %v6174_v45, %v6178_v35 }
 0x4b4   :  { %8478 = vmatpush1.bf16.msra.mxu1 %v18714_v48  ;;  %v18771_v48 = vcombine.high %v6174_v45, %v6178_v35  ;;  %v6119_v45 = vld [vmem:[#allocation6 + $0xff0] sm:$0xff] }
 0x4b5   :  { %8570 = vmatpush1.bf16.msra.mxu0 %v18612_v49  ;;  %8479 = vmatprep.subr.bf16.mxu1 %v18723_v9  ;;  %v18669_v49 = vcombine.high %v6071_v46, %v6075_v34  ;;  %v6182_v9 = vld [vmem:[#allocation6 + $0x15e8] sm:$0xff]  ;;  %v6123_v35 = vld [vmem:[#allocation6 + $0x1050] sm:$0xff]  ;;  %v18708_v34 = vcombine.low %v6111_v25, %v6115_v18 }
 0x4b6   :  { %8571 = vmatprep.subr.bf16.mxu0 %v18621_v16  ;;  %v6186_v16 = vld [vmem:[#allocation6 + $0x1648] sm:$0xff] }
 0x4b7   :  { %v18778_v2 = vcombine.low %v6182_v9, %v6186_v16 }
 0x4b8   :  { %8480 = vmatpush1.bf16.msra.mxu1 %v18722_v58  ;;  %v18779_v58 = vcombine.high %v6182_v9, %v6186_v16  ;;  %v6127_v9 = vld [vmem:[#allocation6 + $0x10b0] sm:$0xff] }
 0x4b9   :  { %8572 = vmatpush1.bf16.msra.mxu0 %v18620_v61  ;;  %8481 = vmatprep.subr.bf16.mxu1 %v18731_v26  ;;  %v18677_v61 = vcombine.high %v6079_v15, %v6083_v53  ;;  %v6190_v26 = vld [vmem:[#allocation6 + $0x16a8] sm:$0xff]  ;;  %v6131_v16 = vld [vmem:[#allocation6 + $0x1110] sm:$0xff]  ;;  %v18716_v53 = vcombine.low %v6119_v45, %v6123_v35 }
 0x4ba   :  { %8573 = vmatprep.subr.bf16.mxu0 %v18629_v63  ;;  %v6194_v63 = vld [vmem:[#allocation6 + $0x1708] sm:$0xff] }
 0x4bb   :  { %v18786_v54 = vcombine.low %v6190_v26, %v6194_v63 }
 0x4bc   :  { %8482 = vmatpush1.bf16.msra.mxu1 %v18730_v5  ;;  %v18787_v5 = vcombine.high %v6190_v26, %v6194_v63  ;;  %v6135_v26 = vld [vmem:[#allocation6 + $0x1170] sm:$0xff] }
 0x4bd   :  { %8574 = vmatpush1.bf16.msra.mxu0 %v18628_v56  ;;  %8483 = vmatprep.subr.bf16.mxu1 %v18739_v14  ;;  %v18685_v56 = vcombine.high %v6087_v22, %v6091_v1  ;;  %v6198_v14 = vld [vmem:[#allocation6 + $0x1768] sm:$0xff]  ;;  %v6139_v63 = vld [vmem:[#allocation6 + $0x11d0] sm:$0xff]  ;;  %v18724_v1 = vcombine.low %v6127_v9, %v6131_v16 }
 0x4be   :  { %8575 = vmatprep.subr.bf16.mxu0 %v18637_v52  ;;  %v6202_v52 = vld [vmem:[#allocation6 + $0x17c8] sm:$0xff] }
 0x4bf   :  { %v18794_v13 = vcombine.low %v6198_v14, %v6202_v52 }
 0x4c0   :  { %8484 = vmatpush1.bf16.msra.mxu1 %v18738_v21  ;;  %v18795_v21 = vcombine.high %v6198_v14, %v6202_v52  ;;  %v6143_v14 = vld [vmem:[#allocation6 + $0x1230] sm:$0xff] }
 0x4c1   :  { %8576 = vmatpush1.bf16.msra.mxu0 %v18636_v23  ;;  %8485 = vmatprep.subr.bf16.mxu1 %v18747_v27  ;;  %v18693_v23 = vcombine.high %v6095_v60, %v6099_v19  ;;  %v6206_v27 = vld [vmem:[#allocation6 + $0x1828] sm:$0xff]  ;;  %v6147_v52 = vld [vmem:[#allocation6 + $0x1290] sm:$0xff]  ;;  %v18732_v19 = vcombine.low %v6135_v26, %v6139_v63 }
 0x4c2   :  { %8577 = vmatprep.subr.bf16.mxu0 %v18645_v29  ;;  %v6210_v29 = vld [vmem:[#allocation6 + $0x1888] sm:$0xff] }
 0x4c3   :  { %v18802_v37 = vcombine.low %v6206_v27, %v6210_v29 }
 0x4c4   :  { %8486 = vmatpush1.bf16.msra.mxu1 %v18746_v7  ;;  %v18803_v7 = vcombine.high %v6206_v27, %v6210_v29  ;;  %v6151_v27 = vld [vmem:[#allocation6 + $0x12f0] sm:$0xff] }
 0x4c5   :  { %8578 = vmatpush1.bf16.msra.mxu0 %v18644_v17  ;;  %8487 = vmatprep.subr.bf16.mxu1 %v18755_v12  ;;  %v18701_v17 = vcombine.high %v6103_v30, %v6107_v6  ;;  %v6214_v12 = vld [vmem:[#allocation6 + $0x18e8] sm:$0xff]  ;;  %v6155_v29 = vld [vmem:[#allocation6 + $0x1350] sm:$0xff]  ;;  %v18740_v6 = vcombine.low %v6143_v14, %v6147_v52 }
 0x4c6   :  { %8579 = vmatprep.subr.bf16.mxu0 %v18653_v32  ;;  %v6218_v32 = vld [vmem:[#allocation6 + $0x1948] sm:$0xff] }
 0x4c7   :  { %v18810_v46 = vcombine.low %v6214_v12, %v6218_v32 }
 0x4c8   :  { %8488 = vmatpush1.bf16.msra.mxu1 %v18754_v39  ;;  %v18811_v39 = vcombine.high %v6214_v12, %v6218_v32  ;;  %v6159_v12 = vld [vmem:[#allocation6 + $0x13b0] sm:$0xff] }
 0x4c9   :  { %8580 = vmatpush1.bf16.msra.mxu0 %v18652_v31  ;;  %8489 = vmatprep.subr.bf16.mxu1 %v18763_v42  ;;  %v18709_v31 = vcombine.high %v6111_v25, %v6115_v18  ;;  %v6222_v42 = vld [vmem:[#allocation6 + $0x19a8] sm:$0xff]  ;;  %v6163_v32 = vld [vmem:[#allocation6 + $0x1410] sm:$0xff]  ;;  %v18748_v18 = vcombine.low %v6151_v27, %v6155_v29 }
 0x4ca   :  { %8581 = vmatprep.subr.bf16.mxu0 %v18661_v44  ;;  %v6226_v44 = vld [vmem:[#allocation6 + $0x1a08] sm:$0xff] }
 0x4cb   :  { %v18818_v15 = vcombine.low %v6222_v42, %v6226_v44 }
 0x4cc   :  { %8490 = vmatpush1.bf16.msra.mxu1 %v18762_v47  ;;  %v18819_v47 = vcombine.high %v6222_v42, %v6226_v44  ;;  %v6167_v42 = vld [vmem:[#allocation6 + $0x1470] sm:$0xff] }
 0x4cd   :  { %8582 = vmatpush1.bf16.msra.mxu0 %v18660_v11  ;;  %8491 = vmatprep.subr.bf16.mxu1 %v18771_v48  ;;  %v18717_v11 = vcombine.high %v6119_v45, %v6123_v35  ;;  %v6230_v48 = vld [vmem:[#allocation6 + $0x1a68] sm:$0xff]  ;;  %v6171_v44 = vld [vmem:[#allocation6 + $0x14d0] sm:$0xff]  ;;  %v18756_v35 = vcombine.low %v6159_v12, %v6163_v32 }
 0x4ce   :  { %8583 = vmatprep.subr.bf16.mxu0 %v18669_v49  ;;  %v6234_v49 = vld [vmem:[#allocation6 + $0x1ac8] sm:$0xff] }
 0x4cf   :  { %v18826_v22 = vcombine.low %v6230_v48, %v6234_v49 }
 0x4d0   :  { %8492 = vmatpush1.bf16.msra.mxu1 %v18770_v55  ;;  %v18827_v55 = vcombine.high %v6230_v48, %v6234_v49  ;;  %v6175_v48 = vld [vmem:[#allocation6 + $0x1530] sm:$0xff] }
 0x4d1   :  { %8584 = vmatpush1.bf16.msra.mxu0 %v18668_v51  ;;  %8493 = vmatprep.subr.bf16.mxu1 %v18779_v58  ;;  %v18725_v51 = vcombine.high %v6127_v9, %v6131_v16  ;;  %v6238_v58 = vld [vmem:[#allocation6 + $0x1b28] sm:$0xff]  ;;  %v6179_v49 = vld [vmem:[#allocation6 + $0x1590] sm:$0xff]  ;;  %v18764_v16 = vcombine.low %v6167_v42, %v6171_v44 }
 0x4d2   :  { %8596 = vmatprep.subr.bf16.mxu0 %v18677_v61  ;;  %v6242_v61 = vld [vmem:[#allocation6 + $0x1b88] sm:$0xff] }
 0x4d3   :  { %v18834_v60 = vcombine.low %v6238_v58, %v6242_v61 }
 0x4d4   :  { %8494 = vmatpush1.bf16.msra.mxu1 %v18778_v2  ;;  %8586 = vmatmul.mubr.bf16.vlgmr.msra.gmra.mrb[12].mxu0 %v22444_v24  ;;  %v18835_v2 = vcombine.high %v6238_v58, %v6242_v61  ;;  %v6183_v58 = vld [vmem:[#allocation6 + $0x15f0] sm:$0xff] }
 0x4d5   :  { %8597 = vmatpush1.bf16.msra.mxu0 %v18676_v4  ;;  %8495 = vmatprep.subr.bf16.mxu1 %v18787_v5  ;;  %v18733_v4 = vcombine.high %v6135_v26, %v6139_v63  ;;  %v6246_v5 = vld [vmem:[#allocation6 + $0x1be8] sm:$0xff]  ;;  %v6187_v61 = vld [vmem:[#allocation6 + $0x1650] sm:$0xff]  ;;  %v18772_v63 = vcombine.low %v6175_v48, %v6179_v49 }
 0x4d6   :  { %8598 = vmatprep.subr.bf16.mxu0 %v18685_v56  ;;  %8628 = vmatprep.mubr.bf16.mxu0 %v22446_v28  ;;  %v6250_v56 = vld [vmem:[#allocation6 + $0x1c48] sm:$0xff] }
 0x4d7   :  { %v18842_v30 = vcombine.low %v6246_v5, %v6250_v56 }
 0x4d8   :  { %8496 = vmatpush1.bf16.msra.mxu1 %v18786_v54  ;;  %v18843_v54 = vcombine.high %v6246_v5, %v6250_v56  ;;  %v6191_v5 = vld [vmem:[#allocation6 + $0x16b0] sm:$0xff] }
 0x4d9   :  { %8599 = vmatpush1.bf16.msra.mxu0 %v18684_v0  ;;  %8497 = vmatprep.subr.bf16.mxu1 %v18795_v21  ;;  %v18741_v0 = vcombine.high %v6143_v14, %v6147_v52  ;;  %v6254_v21 = vld [vmem:[#allocation6 + $0x1ca8] sm:$0xff]  ;;  %v6195_v56 = vld [vmem:[#allocation6 + $0x1710] sm:$0xff]  ;;  %v18780_v52 = vcombine.low %v6183_v58, %v6187_v61 }
 0x4da   :  { %8600 = vmatprep.subr.bf16.mxu0 %v18693_v23  ;;  %v6258_v23 = vld [vmem:[#allocation6 + $0x1d08] sm:$0xff] }
 0x4db   :  { %v18850_v25 = vcombine.low %v6254_v21, %v6258_v23 }
 0x4dc   :  { %8498 = vmatpush1.bf16.msra.mxu1 %v18794_v13  ;;  %v18851_v13 = vcombine.high %v6254_v21, %v6258_v23  ;;  %v6199_v21 = vld [vmem:[#allocation6 + $0x1770] sm:$0xff] }
 0x4dd   :  { %8601 = vmatpush1.bf16.msra.mxu0 %v18692_v8  ;;  %8510 = vmatprep.subr.bf16.mxu1 %v18803_v7  ;;  %v18749_v8 = vcombine.high %v6151_v27, %v6155_v29  ;;  %v6262_v7 = vld [vmem:[#allocation6 + $0x1d68] sm:$0xff]  ;;  %v6203_v23 = vld [vmem:[#allocation6 + $0x17d0] sm:$0xff]  ;;  %v18788_v29 = vcombine.low %v6191_v5, %v6195_v56 }
 0x4de   :  { %8602 = vmatprep.subr.bf16.mxu0 %v18701_v17  ;;  %v6266_v17 = vld [vmem:[#allocation6 + $0x1dc8] sm:$0xff] }
 0x4df   :  { %8500 = vmatmul.mubr.bf16.vlgmr.msra.gmra.mrb[20].mxu1 %v22452_v36  ;;  %v18858_v45 = vcombine.low %v6262_v7, %v6266_v17 }
 0x4e0   :  { %8511 = vmatpush1.bf16.msra.mxu1 %v18802_v37  ;;  %8542 = vmatprep.mubr.bf16.mxu1 %v22454_v41  ;;  %v18859_v37 = vcombine.high %v6262_v7, %v6266_v17  ;;  %v6207_v7 = vld [vmem:[#allocation6 + $0x1830] sm:$0xff] }
 0x4e1   :  { %8603 = vmatpush1.bf16.msra.mxu0 %v18700_v38  ;;  %8512 = vmatprep.subr.bf16.mxu1 %v18811_v39  ;;  %v18757_v38 = vcombine.high %v6159_v12, %v6163_v32  ;;  %v6270_v39 = vld [vmem:[#allocation6 + $0x1e28] sm:$0xff]  ;;  %v6211_v17 = vld [vmem:[#allocation6 + $0x1890] sm:$0xff]  ;;  %v18796_v32 = vcombine.low %v6199_v21, %v6203_v23 }
 0x4e2   :  { %8604 = vmatprep.subr.bf16.mxu0 %v18709_v31  ;;  %v6274_v31 = vld [vmem:[#allocation6 + $0x1e88] sm:$0xff] }
 0x4e3   :  { %v18866_v9 = vcombine.low %v6270_v39, %v6274_v31 }
 0x4e4   :  { %8513 = vmatpush1.bf16.msra.mxu1 %v18810_v46  ;;  %v18867_v46 = vcombine.high %v6270_v39, %v6274_v31  ;;  %v6215_v39 = vld [vmem:[#allocation6 + $0x18f0] sm:$0xff] }
 0x4e5   :  { %8605 = vmatpush1.bf16.msra.mxu0 %v18708_v34  ;;  %8514 = vmatprep.subr.bf16.mxu1 %v18819_v47  ;;  %v18765_v34 = vcombine.high %v6167_v42, %v6171_v44  ;;  %v6278_v47 = vld [vmem:[#allocation6 + $0x1ee8] sm:$0xff]  ;;  %v6219_v31 = vld [vmem:[#allocation6 + $0x1950] sm:$0xff]  ;;  %v18804_v44 = vcombine.low %v6207_v7, %v6211_v17 }
 0x4e6   :  { %8606 = vmatprep.subr.bf16.mxu0 %v18717_v11  ;;  %v6282_v11 = vld [vmem:[#allocation6 + $0x1f48] sm:$0xff] }
 0x4e7   :  { %v18874_v26 = vcombine.low %v6278_v47, %v6282_v11 }
 0x4e8   :  { %8515 = vmatpush1.bf16.msra.mxu1 %v18818_v15  ;;  %v18875_v15 = vcombine.high %v6278_v47, %v6282_v11  ;;  %v6223_v47 = vld [vmem:[#allocation6 + $0x19b0] sm:$0xff] }
 0x4e9   :  { %8607 = vmatpush1.bf16.msra.mxu0 %v18716_v53  ;;  %8516 = vmatprep.subr.bf16.mxu1 %v18827_v55  ;;  %v18773_v53 = vcombine.high %v6175_v48, %v6179_v49  ;;  %v6286_v55 = vld [vmem:[#allocation6 + $0x1fa8] sm:$0xff]  ;;  %v6227_v11 = vld [vmem:[#allocation6 + $0x1a10] sm:$0xff]  ;;  %v18812_v49 = vcombine.low %v6215_v39, %v6219_v31 }
 0x4ea   :  { %8608 = vmatprep.subr.bf16.mxu0 %v18725_v51  ;;  %v6290_v51 = vld [vmem:[#allocation6 + $0x2008] sm:$0xff] }
 0x4eb   :  { %v18882_v14 = vcombine.low %v6286_v55, %v6290_v51 }
 0x4ec   :  { %8517 = vmatpush1.bf16.msra.mxu1 %v18826_v22  ;;  %v18883_v22 = vcombine.high %v6286_v55, %v6290_v51  ;;  %v6231_v55 = vld [vmem:[#allocation6 + $0x1a70] sm:$0xff] }
 0x4ed   :  { %8609 = vmatpush1.bf16.msra.mxu0 %v18724_v1  ;;  %8518 = vmatprep.subr.bf16.mxu1 %v18835_v2  ;;  %v18781_v1 = vcombine.high %v6183_v58, %v6187_v61  ;;  %v6294_v2 = vld [vmem:[#allocation6 + $0x2068] sm:$0xff]  ;;  %v6235_v51 = vld [vmem:[#allocation6 + $0x1ad0] sm:$0xff]  ;;  %v18820_v61 = vcombine.low %v6223_v47, %v6227_v11 }
 0x4ee   :  { %8610 = vmatprep.subr.bf16.mxu0 %v18733_v4  ;;  %v6298_v4 = vld [vmem:[#allocation6 + $0x20c8] sm:$0xff] }
 0x4ef   :  { %v18890_v27 = vcombine.low %v6294_v2, %v6298_v4 }
 0x4f0   :  { %8519 = vmatpush1.bf16.msra.mxu1 %v18834_v60  ;;  %v18891_v60 = vcombine.high %v6294_v2, %v6298_v4  ;;  %v6239_v2 = vld [vmem:[#allocation6 + $0x1b30] sm:$0xff] }
 0x4f1   :  { %8611 = vmatpush1.bf16.msra.mxu0 %v18732_v19  ;;  %8520 = vmatprep.subr.bf16.mxu1 %v18843_v54  ;;  %v18789_v19 = vcombine.high %v6191_v5, %v6195_v56  ;;  %v6302_v54 = vld [vmem:[#allocation6 + $0x2128] sm:$0xff]  ;;  %v6243_v4 = vld [vmem:[#allocation6 + $0x1b90] sm:$0xff]  ;;  %v18828_v56 = vcombine.low %v6231_v55, %v6235_v51 }
 0x4f2   :  { %8612 = vmatprep.subr.bf16.mxu0 %v18741_v0  ;;  %v6306_v0 = vld [vmem:[#allocation6 + $0x2188] sm:$0xff] }
 0x4f3   :  { %v18898_v12 = vcombine.low %v6302_v54, %v6306_v0 }
 0x4f4   :  { %8521 = vmatpush1.bf16.msra.mxu1 %v18842_v30  ;;  %v18899_v30 = vcombine.high %v6302_v54, %v6306_v0  ;;  %v6247_v54 = vld [vmem:[#allocation6 + $0x1bf0] sm:$0xff] }
 0x4f5   :  { %8613 = vmatpush1.bf16.msra.mxu0 %v18740_v6  ;;  %8522 = vmatprep.subr.bf16.mxu1 %v18851_v13  ;;  %v18797_v6 = vcombine.high %v6199_v21, %v6203_v23  ;;  %v6310_v13 = vld [vmem:[#allocation6 + $0x21e8] sm:$0xff]  ;;  %v6251_v0 = vld [vmem:[#allocation6 + $0x1c50] sm:$0xff]  ;;  %v18836_v23 = vcombine.low %v6239_v2, %v6243_v4 }
 0x4f6   :  { %8614 = vmatprep.subr.bf16.mxu0 %v18749_v8  ;;  %v6314_v8 = vld [vmem:[#allocation6 + $0x2248] sm:$0xff] }
 0x4f7   :  { %v18906_v42 = vcombine.low %v6310_v13, %v6314_v8 }
 0x4f8   :  { %8523 = vmatpush1.bf16.msra.mxu1 %v18850_v25  ;;  %v18907_v25 = vcombine.high %v6310_v13, %v6314_v8  ;;  %v6255_v13 = vld [vmem:[#allocation6 + $0x1cb0] sm:$0xff] }
 0x4f9   :  { %8615 = vmatpush1.bf16.msra.mxu0 %v18748_v18  ;;  %8524 = vmatprep.subr.bf16.mxu1 %v18859_v37  ;;  %v18805_v18 = vcombine.high %v6207_v7, %v6211_v17  ;;  %v6318_v37 = vld [vmem:[#allocation6 + $0x22a8] sm:$0xff]  ;;  %v6259_v8 = vld [vmem:[#allocation6 + $0x1d10] sm:$0xff]  ;;  %v18844_v17 = vcombine.low %v6247_v54, %v6251_v0 }
 0x4fa   :  { %8616 = vmatprep.subr.bf16.mxu0 %v18757_v38  ;;  %v6322_v38 = vld [vmem:[#allocation6 + $0x2308] sm:$0xff] }
 0x4fb   :  { %v18914_v48 = vcombine.low %v6318_v37, %v6322_v38 }
 0x4fc   :  { %8525 = vmatpush1.bf16.msra.mxu1 %v18858_v45  ;;  %v18915_v45 = vcombine.high %v6318_v37, %v6322_v38  ;;  %v6263_v37 = vld [vmem:[#allocation6 + $0x1d70] sm:$0xff] }
 0x4fd   :  { %8617 = vmatpush1.bf16.msra.mxu0 %v18756_v35  ;;  %8526 = vmatprep.subr.bf16.mxu1 %v18867_v46  ;;  %v18813_v35 = vcombine.high %v6215_v39, %v6219_v31  ;;  %v6326_v46 = vld [vmem:[#allocation6 + $0x2368] sm:$0xff]  ;;  %v6267_v38 = vld [vmem:[#allocation6 + $0x1dd0] sm:$0xff]  ;;  %v18852_v31 = vcombine.low %v6255_v13, %v6259_v8 }
 0x4fe   :  { %8618 = vmatprep.subr.bf16.mxu0 %v18765_v34  ;;  %v6330_v34 = vld [vmem:[#allocation6 + $0x23c8] sm:$0xff] }
 0x4ff   :  { %v18922_v58 = vcombine.low %v6326_v46, %v6330_v34 }
 0x500   :  { %8527 = vmatpush1.bf16.msra.mxu1 %v18866_v9  ;;  %v18923_v9 = vcombine.high %v6326_v46, %v6330_v34  ;;  %v6271_v46 = vld [vmem:[#allocation6 + $0x1e30] sm:$0xff] }
 0x501   :  { %8619 = vmatpush1.bf16.msra.mxu0 %v18764_v16  ;;  %8528 = vmatprep.subr.bf16.mxu1 %v18875_v15  ;;  %v18821_v16 = vcombine.high %v6223_v47, %v6227_v11  ;;  %v5952_v15 = vld [vmem:[#allocation6 + $0x38] sm:$0xff]  ;;  %v6275_v34 = vld [vmem:[#allocation6 + $0x1e90] sm:$0xff]  ;;  %v6333_v11 = vld [vmem:[#allocation8 + $0x8] sm:$0xff] }
 0x502   :  { %8620 = vmatprep.subr.bf16.mxu0 %v18773_v53  ;;  %v5956_v53 = vld [vmem:[#allocation6 + $0x98] sm:$0xff] }
 0x503   :  { %v18550_v5 = vcombine.low %v5952_v15, %v5956_v53 }
 0x504   :  { %8529 = vmatpush1.bf16.msra.mxu1 %v18874_v26  ;;  %v18551_v26 = vcombine.high %v5952_v15, %v5956_v53  ;;  %v6004_v15 = vld [vmem:[#allocation6 + $0x518] sm:$0xff]  ;;  %v6338_v53 = vrot.slane %v6333_v11, %v22476_v57 }
 0x505   :  { %8621 = vmatpush1.bf16.msra.mxu0 %v18772_v63  ;;  %8530 = vmatprep.subr.bf16.mxu1 %v18883_v22  ;;  %v18829_v63 = vcombine.high %v6231_v55, %v6235_v51  ;;  %v5960_v22 = vld [vmem:[#allocation6 + $0xf8] sm:$0xff]  ;;  %v6279_v55 = vld [vmem:[#allocation6 + $0x1ef0] sm:$0xff] }
 0x506   :  { %8622 = vmatprep.subr.bf16.mxu0 %v18781_v1  ;;  %v5964_v1 = vld [vmem:[#allocation6 + $0x158] sm:$0xff]  ;;  %v6283_v51 = vld [vmem:[#allocation6 + $0x1f50] sm:$0xff] }
 0x507   :  { %v18558_v21 = vcombine.low %v5960_v22, %v5964_v1 }
 0x508   :  { %8531 = vmatpush1.bf16.msra.mxu1 %v18882_v14  ;;  %v18559_v14 = vcombine.high %v5960_v22, %v5964_v1  ;;  %v18877_v1 = vcombine.high %v6279_v55, %v6283_v51 }
 0x509   :  { %8623 = vmatpush1.bf16.msra.mxu0 %v18780_v52  ;;  %8532 = vmatprep.subr.bf16.mxu1 %v18891_v60  ;;  %v18837_v52 = vcombine.high %v6239_v2, %v6243_v4  ;;  %v5968_v60 = vld [vmem:[#allocation6 + $0x1b8] sm:$0xff] }
 0x50a   :  { %8624 = vmatprep.subr.bf16.mxu0 %v18789_v19  ;;  %v5972_v19 = vld [vmem:[#allocation6 + $0x218] sm:$0xff] }
 0x50b   :  { %v18566_v7 = vcombine.low %v5968_v60, %v5972_v19  ;;  %v6008_v2 = vld [vmem:[#allocation6 + $0x578] sm:$0xff] }
 0x50c   :  { %8533 = vmatpush1.bf16.msra.mxu1 %v18890_v27  ;;  %v18567_v27 = vcombine.high %v5968_v60, %v5972_v19  ;;  %v6012_v4 = vld [vmem:[#allocation6 + $0x5d8] sm:$0xff] }
 0x50d   :  { %8625 = vmatpush1.bf16.msra.mxu0 %v18788_v29  ;;  %8534 = vmatprep.subr.bf16.mxu1 %v18899_v30  ;;  %v18845_v29 = vcombine.high %v6247_v54, %v6251_v0  ;;  %v5976_v30 = vld [vmem:[#allocation6 + $0x278] sm:$0xff] }
 0x50e   :  { %8626 = vmatprep.subr.bf16.mxu0 %v18797_v6  ;;  %v5980_v6 = vld [vmem:[#allocation6 + $0x2d8] sm:$0xff] }
 0x50f   :  { %v18574_v39 = vcombine.low %v5976_v30, %v5980_v6 }
 0x510   :  { %8535 = vmatpush1.bf16.msra.mxu1 %v18898_v12  ;;  %v18575_v12 = vcombine.high %v5976_v30, %v5980_v6 }
 0x511   :  { %8627 = vmatpush1.bf16.msra.mxu0 %v18796_v32  ;;  %8536 = vmatprep.subr.bf16.mxu1 %v18907_v25  ;;  %v18853_v32 = vcombine.high %v6255_v13, %v6259_v8  ;;  %v5984_v25 = vld [vmem:[#allocation6 + $0x338] sm:$0xff] }
 0x512   :  { %8639 = vmatprep.subr.bf16.mxu0 %v18805_v18  ;;  %v5988_v18 = vld [vmem:[#allocation6 + $0x398] sm:$0xff] }
 0x513   :  { %v18582_v47 = vcombine.low %v5984_v25, %v5988_v18  ;;  %v6016_v8 = vld [vmem:[#allocation6 + $0x638] sm:$0xff] }
 0x514   :  { %8537 = vmatpush1.bf16.msra.mxu1 %v18906_v42  ;;  %8629 = vmatmul.mubr.bf16.vlgmr.msra.gmra.mrb[12].mxu0 %v22452_v36  ;;  %v18583_v42 = vcombine.high %v5984_v25, %v5988_v18  ;;  %v6299_v25 = vld [vmem:[#allocation6 + $0x20d0] sm:$0xff] }
 0x515   :  { %8640 = vmatpush1.bf16.msra.mxu0 %v18804_v44  ;;  %8538 = vmatprep.subr.bf16.mxu1 %v18915_v45  ;;  %v18861_v44 = vcombine.high %v6263_v37, %v6267_v38  ;;  %v5992_v45 = vld [vmem:[#allocation6 + $0x3f8] sm:$0xff] }
 0x516   :  { %8641 = vmatprep.subr.bf16.mxu0 %v18813_v35  ;;  %8671 = vmatprep.mubr.bf16.mxu0 %v22454_v41  ;;  %v5996_v35 = vld [vmem:[#allocation6 + $0x458] sm:$0xff] }
 0x518   :  { %8539 = vmatpush1.bf16.msra.mxu1 %v18914_v48  ;;  %v18860_v48 = vcombine.low %v6263_v37, %v6267_v38 }
 0x519   :  { %8642 = vmatpush1.bf16.msra.mxu0 %v18812_v49  ;;  %8540 = vmatprep.subr.bf16.mxu1 %v18923_v9  ;;  %v18591_v49 = vcombine.high %v5992_v45, %v5996_v35  ;;  %v18869_v9 = vcombine.high %v6271_v46, %v6275_v34 }
 0x51a   :  { %8643 = vmatprep.subr.bf16.mxu0 %v18821_v16  ;;  %v6000_v16 = vld [vmem:[#allocation6 + $0x4b8] sm:$0xff] }
 0x51b   :  { %v18598_v54 = vcombine.low %v6000_v16, %v6004_v15 }
 0x51c   :  { %8541 = vmatpush1.bf16.msra.mxu1 %v18922_v58  ;;  %v6342_v58 = vrot.slane %v6333_v11, %v22479_v59 }
 0x51d   :  { %8644 = vmatpush1.bf16.msra.mxu0 %v18820_v61  ;;  %8682 = vmatprep.subr.bf16.mxu1 %v18551_v26  ;;  %v18590_v61 = vcombine.low %v5992_v45, %v5996_v35  ;;  %v18868_v26 = vcombine.low %v6271_v46, %v6275_v34  ;;  %v6024_v34 = vld [vmem:[#allocation6 + $0x6f8] sm:$0xff] }
 0x51e   :  { %8645 = vmatprep.subr.bf16.mxu0 %v18829_v63  ;;  %v18599_v63 = vcombine.high %v6000_v16, %v6004_v15 }
 0x51f   :  { %8543 = vmatmul.mubr.bf16.vlgmr.msra.gmra.mrb[20].mxu1 %v22460_v50 }
 0x520   :  { %8683 = vmatpush1.bf16.msra.mxu1 %v18550_v5  ;;  %8714 = vmatprep.mubr.bf16.mxu1 %v22440_v20 }
 0x521   :  { %8646 = vmatpush1.bf16.msra.mxu0 %v18828_v56  ;;  %8684 = vmatprep.subr.bf16.mxu1 %v18559_v14  ;;  %v6287_v14 = vld [vmem:[#allocation6 + $0x1fb0] sm:$0xff] }
 0x522   :  { %8647 = vmatprep.subr.bf16.mxu0 %v18837_v52  ;;  %v6291_v52 = vld [vmem:[#allocation6 + $0x2010] sm:$0xff] }
 0x523   :  { %v18885_v13 = vcombine.high %v6287_v14, %v6291_v52  ;;  %v18884_v38 = vcombine.low %v6287_v14, %v6291_v52  ;;  %v6315_v14 = vld [vmem:[#allocation6 + $0x2250] sm:$0xff] }
 0x524   :  { %8685 = vmatpush1.bf16.msra.mxu1 %v18558_v21 }
 0x525   :  { %8648 = vmatpush1.bf16.msra.mxu0 %v18836_v23  ;;  %8686 = vmatprep.subr.bf16.mxu1 %v18567_v27  ;;  %v18876_v27 = vcombine.low %v6279_v55, %v6283_v51 }
 0x526   :  { %8649 = vmatprep.subr.bf16.mxu0 %v18845_v29  ;;  %v18607_v29 = vcombine.high %v6008_v2, %v6012_v4 }
 0x528   :  { %8687 = vmatpush1.bf16.msra.mxu1 %v18566_v7  ;;  %v6020_v7 = vld [vmem:[#allocation6 + $0x698] sm:$0xff] }
 0x529   :  { %8650 = vmatpush1.bf16.msra.mxu0 %v18844_v17  ;;  %8688 = vmatprep.subr.bf16.mxu1 %v18575_v12  ;;  %v18614_v15 = vcombine.low %v6016_v8, %v6020_v7 }
 0x52a   :  { %8651 = vmatprep.subr.bf16.mxu0 %v18853_v32  ;;  %v6295_v32 = vld [vmem:[#allocation6 + $0x2070] sm:$0xff] }
 0x52b   :  { %v18893_v46 = vcombine.high %v6295_v32, %v6299_v25 }
 0x52c   :  { %8689 = vmatpush1.bf16.msra.mxu1 %v18574_v39  ;;  %v18606_v39 = vcombine.low %v6008_v2, %v6012_v4 }
 0x52d   :  { %8652 = vmatpush1.bf16.msra.mxu0 %v18852_v31  ;;  %8690 = vmatprep.subr.bf16.mxu1 %v18583_v42 }
 0x52e   :  { %8653 = vmatprep.subr.bf16.mxu0 %v18861_v44  ;;  %v18615_v44 = vcombine.high %v6016_v8, %v6020_v7 }
 0x530   :  { %8691 = vmatpush1.bf16.msra.mxu1 %v18582_v47  ;;  %v6028_v47 = vld [vmem:[#allocation6 + $0x758] sm:$0xff] }
 0x531   :  { %8654 = vmatpush1.bf16.msra.mxu0 %v18860_v48  ;;  %8692 = vmatprep.subr.bf16.mxu1 %v18591_v49  ;;  %v6303_v49 = vld [vmem:[#allocation6 + $0x2130] sm:$0xff]  ;;  %v18622_v52 = vcombine.low %v6024_v34, %v6028_v47 }
 0x532   :  { %v8415_v22 = vpop.f32.mrb[16].mxu1  ;;  %8655 = vmatprep.subr.bf16.mxu0 %v18869_v9  ;;  %v6307_v9 = vld [vmem:[#allocation6 + $0x2190] sm:$0xff] }
 0x533   :  { %v22652_v5 = vadd.f32 %v8415_v22, %v6338_v53  ;;  %v8417_v56 = vpop.f32.mrb[17].mxu1  ;;  %v6036_v22 = vld [vmem:[#allocation6 + $0x818] sm:$0xff] }
 0x534   :  { %v22654_v60 = vadd.f32 %v8417_v56, %v6342_v58  ;;  %v8419_v19 = vpop.f32.mrb[18].mxu1  ;;  %8693 = vmatpush1.bf16.msra.mxu1 %v18590_v61  ;;  %v18623_v61 = vcombine.high %v6024_v34, %v6028_v47  ;;  %v6311_v56 = vld [vmem:[#allocation6 + $0x21f0] sm:$0xff] }
 0x535   :  { %v8827_v0 = vmul.f32 0.044715, %v22652_v5  ;;  %v22657_v21 = vadd.f32 %v8419_v19, %v6338_v53  ;;  %8656 = vmatpush1.bf16.msra.mxu0 %v18868_v26  ;;  %v8421_v23 = vpop.f32.mrb[19].mxu1  ;;  %8694 = vmatprep.subr.bf16.mxu1 %v18599_v63  ;;  %v18901_v26 = vcombine.high %v6303_v49, %v6307_v9  ;;  %v6032_v63 = vld [vmem:[#allocation6 + $0x7b8] sm:$0xff]  ;;  %v18908_v7 = vcombine.low %v6311_v56, %v6315_v14 }
 0x536   :  { %v8828_v30 = vmul.f32 0.044715, %v22654_v60  ;;  %v22660_v6 = vadd.f32 %v8421_v23, %v6342_v58  ;;  %8657 = vmatprep.subr.bf16.mxu0 %v18877_v1  ;;  %v18892_v58 = vcombine.low %v6295_v32, %v6299_v25  ;;  %v18909_v23 = vcombine.high %v6311_v56, %v6315_v14  ;;  %v6048_v32 = vld [vmem:[#allocation6 + $0x938] sm:$0xff] }
 0x537   :  { %v8843_v17 = vmul.f32 %v22652_v5, %v8827_v0  ;;  %v8835_v12 = vmul.f32 0.044715, %v22657_v21  ;;  %v18631_v0 = vcombine.high %v6032_v63, %v6036_v22  ;;  %v18630_v8 = vcombine.low %v6032_v63, %v6036_v22  ;;  %v6052_v25 = vld [vmem:[#allocation6 + $0x998] sm:$0xff] }
 0x538   :  { %v8844_v18 = vmul.f32 %v22654_v60, %v8828_v30  ;;  %v8836_v37 = vmul.f32 0.044715, %v22660_v6  ;;  %8695 = vmatpush1.bf16.msra.mxu1 %v18598_v54  ;;  %v18900_v54 = vcombine.low %v6303_v49, %v6307_v9  ;;  %v6319_v30 = vld [vmem:[#allocation6 + $0x22b0] sm:$0xff]  ;;  %v18646_v9 = vcombine.low %v6048_v32, %v6052_v25  ;;  %v6068_v56 = vld [vmem:[#allocation6 + $0xb18] sm:$0xff] }
 0x539   :  { %v8859_v31 = vmul.f32 %v22652_v5, %v8843_v17  ;;  %v8851_v42 = vmul.f32 %v22657_v21, %v8835_v12  ;;  %8658 = vmatpush1.bf16.msra.mxu0 %v18876_v27  ;;  %8696 = vmatprep.subr.bf16.mxu1 %v18607_v29  ;;  %v6040_v27 = vld [vmem:[#allocation6 + $0x878] sm:$0xff] }
 0x53a   :  { %v8860_v45 = vmul.f32 %v22654_v60, %v8844_v18  ;;  %v8852_v35 = vmul.f32 %v22660_v6, %v8836_v37  ;;  %8659 = vmatprep.subr.bf16.mxu0 %v18885_v13  ;;  %v6044_v29 = vld [vmem:[#allocation6 + $0x8d8] sm:$0xff]  ;;  %v6323_v13 = vld [vmem:[#allocation6 + $0x2310] sm:$0xff] }
 0x53b   :  { %v8875_v11 = vadd.f32 %v22652_v5, %v8859_v31  ;;  %v8867_v48 = vmul.f32 %v22657_v21, %v8851_v42  ;;  %v18639_v17 = vcombine.high %v6040_v27, %v6044_v29  ;;  %v18917_v12 = vcombine.high %v6319_v30, %v6323_v13  ;;  %v6327_v18 = vld [vmem:[#allocation6 + $0x2370] sm:$0xff] }
 0x53c   :  { %v8868_v16 = vmul.f32 %v22660_v6, %v8852_v35  ;;  %8697 = vmatpush1.bf16.msra.mxu1 %v18606_v39  ;;  %v8876_v53 = vadd.f32 %v22654_v60, %v8860_v45  ;;  %v6331_v37 = vld [vmem:[#allocation6 + $0x23d0] sm:$0xff]  ;;  %v18916_v31 = vcombine.low %v6319_v30, %v6323_v13  ;;  %v18647_v42 = vcombine.high %v6048_v32, %v6052_v25  ;;  %v6056_v35 = vld [vmem:[#allocation6 + $0x9f8] sm:$0xff] }
 0x53d   :  { %v8891_v55 = vmul.f32 0.7978846, %v8875_v11  ;;  %v8883_v51 = vadd.f32 %v22657_v21, %v8867_v48  ;;  %8660 = vmatpush1.bf16.msra.mxu0 %v18884_v38  ;;  %8698 = vmatprep.subr.bf16.mxu1 %v18615_v44  ;;  %v18638_v38 = vcombine.low %v6040_v27, %v6044_v29  ;;  %v18925_v45 = vcombine.high %v6327_v18, %v6331_v37  ;;  %v20944_v14 = vld [vmem:[#allocation9 + $0xc00] ss:$24 sps:$4 sm:$0xff]   ;;  %v20952_v29 = vld [vmem:[#allocation9 + $0xc64] ss:$24 sps:$4 sm:$0xff]  }
 0x53e   :  { %8661 = vmatprep.subr.bf16.mxu0 %v18893_v46  ;;  %v8884_v1 = vadd.f32 %v22660_v6, %v8868_v16  ;;  %v8892_v2 = vmul.f32 0.7978846, %v8876_v53  ;;  %v6060_v46 = vld [vmem:[#allocation6 + $0xa58] sm:$0xff]  ;;  %v18924_v11 = vcombine.low %v6327_v18, %v6331_v37  ;;  %v8811_v16 = vmul.f32 0.5, %v22652_v5  ;;  %v20953_v37 = vld [vmem:[#allocation9 + $0xc90] ss:$24 sps:$4 sm:$0xff]  }
 0x53f   :  { %22128 = vtanh.f32 %v8891_v55  ;;  %v8899_v4 = vmul.f32 0.7978846, %v8883_v51  ;;  %v18655_v55 = vcombine.high %v6056_v35, %v6060_v46  ;;  %v8812_v51 = vmul.f32 0.5, %v22654_v60  ;;  %v6080_v30 = vld [vmem:[#allocation6 + $0xc38] sm:$0xff] }
 0x540   :  { %8699 = vmatpush1.bf16.msra.mxu1 %v18614_v15  ;;  %v8900_v19 = vmul.f32 0.7978846, %v8884_v1  ;;  %22130 = vtanh.f32 %v8892_v2  ;;  %v8819_v15 = vmul.f32 0.5, %v22657_v21  ;;  %v18654_v5 = vcombine.low %v6056_v35, %v6060_v46  ;;  %v6084_v13 = vld [vmem:[#allocation6 + $0xc98] sm:$0xff]  ;;  %v20961_v46 = vld [vmem:[#allocation9 + $0xcf4] ss:$24 sps:$4 sm:$0xff]  }
 0x541   :  { %22132 = vtanh.f32 %v8899_v4  ;;  %8662 = vmatpush1.bf16.msra.mxu0 %v18892_v58  ;;  %8700 = vmatprep.subr.bf16.mxu1 %v18623_v61  ;;  %v8820_v58 = vmul.f32 0.5, %v22660_v6  ;;  %v6064_v4 = vld [vmem:[#allocation6 + $0xab8] sm:$0xff]  ;;  %v20949_v6 = vld [vmem:[#allocation9 + $0xc34] ss:$24 sps:$4 sm:$0xff]   ;;  %v18678_v18 = vcombine.low %v6080_v30, %v6084_v13 }
 0x542   :  { %8663 = vmatprep.subr.bf16.mxu0 %v18901_v26  ;;  %22134 = vtanh.f32 %v8900_v19  ;;  %v20946_v26 = vld [vmem:[#allocation9 + $0xc04] ss:$24 sps:$4 sm:$0xff]   ;;  %v18663_v60 = vcombine.high %v6064_v4, %v6068_v56 }
 0x543   :  { %v6072_v19 = vld [vmem:[#allocation6 + $0xb78] sm:$0xff] }
 0x544   :  { %8701 = vmatpush1.bf16.msra.mxu1 %v18622_v52  ;;  %v6088_v32 = vld [vmem:[#allocation6 + $0xcf8] sm:$0xff] }
 0x545   :  { %8664 = vmatpush1.bf16.msra.mxu0 %v18900_v54  ;;  %8702 = vmatprep.subr.bf16.mxu1 %v18631_v0  ;;  %v6076_v54 = vld [vmem:[#allocation6 + $0xbd8] sm:$0xff]  ;;  %v18662_v0 = vcombine.low %v6064_v4, %v6068_v56 }
 0x546   :  { %8665 = vmatprep.subr.bf16.mxu0 %v18909_v23  ;;  %v20947_v23 = vld [vmem:[#allocation9 + $0xc30] ss:$24 sps:$4 sm:$0xff]   ;;  %v18671_v27 = vcombine.high %v6072_v19, %v6076_v54  ;;  %v6092_v25 = vld [vmem:[#allocation6 + $0xd58] sm:$0xff] }
 0x547   :  { %v6128_v4 = vld [vmem:[#allocation6 + $0x10b8] sm:$0xff] }
 0x548   :  { %8703 = vmatpush1.bf16.msra.mxu1 %v18630_v8  ;;  %v18670_v8 = vcombine.low %v6072_v19, %v6076_v54  ;;  %v6132_v56 = vld [vmem:[#allocation6 + $0x1118] sm:$0xff] }
 0x549   :  { %v22129_v39 = vpop.eup %22128  ;;  %8666 = vmatpush1.bf16.msra.mxu0 %v18908_v7  ;;  %8704 = vmatprep.subr.bf16.mxu1 %v18639_v17  ;;  %v20950_v7 = vld [vmem:[#allocation9 + $0xc60] ss:$24 sps:$4 sm:$0xff]   ;;  %v18679_v17 = vcombine.high %v6080_v30, %v6084_v13 }
 0x54a   :  { %v22131_v44 = vpop.eup %22130  ;;  %8667 = vmatprep.subr.bf16.mxu0 %v18917_v12  ;;  %v8923_v34 = vadd.f32 1.0, %v22129_v39  ;;  %v20955_v12 = vld [vmem:[#allocation9 + $0xc94] ss:$24 sps:$4 sm:$0xff]   ;;  %v20958_v39 = vld [vmem:[#allocation9 + $0xcc4] ss:$24 sps:$4 sm:$0xff]  }
 0x54b   :  { %v22133_v47 = vpop.eup %22132  ;;  %v8924_v48 = vadd.f32 1.0, %v22131_v44  ;;  %v18686_v44 = vcombine.low %v6088_v32, %v6092_v25  ;;  %v6136_v19 = vld [vmem:[#allocation6 + $0x1178] sm:$0xff] }
 0x54c   :  { %v22135_v49 = vpop.eup %22134  ;;  %8705 = vmatpush1.bf16.msra.mxu1 %v18638_v38  ;;  %v8931_v53 = vadd.f32 1.0, %v22133_v47  ;;  %v8939_v63 = vmul.f32 %v8923_v34, %v8811_v16  ;;  %v18687_v38 = vcombine.high %v6088_v32, %v6092_v25  ;;  %v6104_v34 = vld [vmem:[#allocation6 + $0xe78] sm:$0xff] }
 0x54d   :  { %8668 = vmatpush1.bf16.msra.mxu0 %v18916_v31  ;;  %8706 = vmatprep.subr.bf16.mxu1 %v18647_v42  ;;  %v8932_v61 = vadd.f32 1.0, %v22135_v49  ;;  %v8940_v1 = vmul.f32 %v8924_v48, %v8812_v51  ;;  %v6096_v31 = vld [vmem:[#allocation6 + $0xdb8] sm:$0xff]  ;;  %v20959_v48 = vld [vmem:[#allocation9 + $0xcf0] ss:$24 sps:$4 sm:$0xff]  }
 0x54e   :  { %8669 = vmatprep.subr.bf16.mxu0 %v18925_v45  ;;  %v8947_v22 = vmul.f32 %v8931_v53, %v8819_v15  ;;  %v6100_v42 = vld [vmem:[#allocation6 + $0xe18] sm:$0xff] }
 0x54f   :  { %v8948_v2 = vmul.f32 %v8932_v61, %v8820_v58  ;;  %v20956_v45 = vld [vmem:[#allocation9 + $0xcc0] ss:$24 sps:$4 sm:$0xff]   ;;  %v18695_v35 = vcombine.high %v6096_v31, %v6100_v42  ;;  %v20967_v58 = vld [vmem:[#allocation9 + $0xd54] ss:$24 sps:$4 sm:$0xff]  }
 0x550   :  { %8707 = vmatpush1.bf16.msra.mxu1 %v18646_v9  ;;  %v22680_v21 = vpack.c.bf16 %v8947_v22, %v8939_v63  ;;  %v6108_v47 = vld [vmem:[#allocation6 + $0xed8] sm:$0xff]  ;;  %v20965_v22 = vld [vmem:[#allocation9 + $0xd50] ss:$24 sps:$4 sm:$0xff]  }
 0x551   :  { %8670 = vmatpush1.bf16.msra.mxu0 %v18924_v11  ;;  %8708 = vmatprep.subr.bf16.mxu1 %v18655_v55  ;;  %v22682_v52 = vpack.c.bf16 %v8948_v2, %v8940_v1  ;;  %v18694_v11 = vcombine.low %v6096_v31, %v6100_v42  ;;  %v18703_v49 = vcombine.high %v6104_v34, %v6108_v47  ;;  %v20964_v9 = vld [vmem:[#allocation9 + $0xd24] ss:$24 sps:$4 sm:$0xff]   ;;  %v20962_v55 = vld [vmem:[#allocation9 + $0xd20] ss:$24 sps:$4 sm:$0xff]  }
 0x552   :  { %11267 = vmatprep.subr.bf16.mxu0 %v20946_v26  ;;  %v6112_v16 = vld [vmem:[#allocation6 + $0xf38] sm:$0xff]  ;;  %v18702_v53 = vcombine.low %v6104_v34, %v6108_v47 }
 0x553   :  { %v6116_v15 = vld [vmem:[#allocation6 + $0xf98] sm:$0xff] }
 0x554   :  { %8672 = vmatmul.mubr.bf16.vlgmr.msra.gmra.mrb[12].mxu0 %v22460_v50  ;;  %8709 = vmatpush1.bf16.msra.mxu1 %v18654_v5  ;;  %v18711_v51 = vcombine.high %v6112_v16, %v6116_v15  ;;  %v6120_v61 = vld [vmem:[#allocation6 + $0xff8] sm:$0xff]  ;;  %v18710_v63 = vcombine.low %v6112_v16, %v6116_v15 }
 0x555   :  { %11268 = vmatpush1.bf16.msra.mxu0 %v20944_v14  ;;  %11299 = vmatprep.mubr.bf16.mxu0 %v22682_v52  ;;  %v6124_v26 = vld [vmem:[#allocation6 + $0x1058] sm:$0xff] }
 0x556   :  { %8710 = vmatprep.subr.bf16.mxu1 %v18663_v60  ;;  %11269 = vmatprep.subr.bf16.mxu0 %v20949_v6  ;;  %v18719_v1 = vcombine.high %v6120_v61, %v6124_v26  ;;  %v20970_v2 = vld [vmem:[#allocation9 + $0xd84] ss:$24 sps:$4 sm:$0xff]   ;;  %v18718_v5 = vcombine.low %v6120_v61, %v6124_v26  ;;  %v20968_v14 = vld [vmem:[#allocation9 + $0xd80] ss:$24 sps:$4 sm:$0xff]   ;;  %v18727_v60 = vcombine.high %v6128_v4, %v6132_v56  ;;  %v20973_v6 = vld [vmem:[#allocation9 + $0xdb4] ss:$24 sps:$4 sm:$0xff]  }
 0x557   :  { %v6140_v54 = vld [vmem:[#allocation6 + $0x11d8] sm:$0xff] }
 0x558   :  { %8711 = vmatpush1.bf16.msra.mxu1 %v18662_v0  ;;  %v18726_v0 = vcombine.low %v6128_v4, %v6132_v56  ;;  %v6144_v30 = vld [vmem:[#allocation6 + $0x1238] sm:$0xff] }
 0x559   :  { %11270 = vmatpush1.bf16.msra.mxu0 %v20947_v23  ;;  %8712 = vmatprep.subr.bf16.mxu1 %v18671_v27  ;;  %v20971_v23 = vld [vmem:[#allocation9 + $0xdb0] ss:$24 sps:$4 sm:$0xff]   ;;  %v18735_v27 = vcombine.high %v6136_v19, %v6140_v54  ;;  %v6148_v13 = vld [vmem:[#allocation6 + $0x1298] sm:$0xff] }
 0x55a   :  { %11271 = vmatprep.subr.bf16.mxu0 %v20952_v29  ;;  %v20976_v29 = vld [vmem:[#allocation9 + $0xde4] ss:$24 sps:$4 sm:$0xff]  }
 0x55b   :  { %v6152_v32 = vld [vmem:[#allocation6 + $0x12f8] sm:$0xff] }
 0x55c   :  { %8713 = vmatpush1.bf16.msra.mxu1 %v18670_v8  ;;  %v18734_v8 = vcombine.low %v6136_v19, %v6140_v54  ;;  %v6156_v25 = vld [vmem:[#allocation6 + $0x1358] sm:$0xff]  ;;  %v20997_v54 = vld [vmem:[#allocation9 + $0xf34] ss:$24 sps:$4 sm:$0xff]  }
 0x55d   :  { %11272 = vmatpush1.bf16.msra.mxu0 %v20950_v7  ;;  %8725 = vmatprep.subr.bf16.mxu1 %v18679_v17  ;;  %v20974_v7 = vld [vmem:[#allocation9 + $0xde0] ss:$24 sps:$4 sm:$0xff]   ;;  %v18743_v17 = vcombine.high %v6144_v30, %v6148_v13  ;;  %v20994_v56 = vld [vmem:[#allocation9 + $0xf04] ss:$24 sps:$4 sm:$0xff]  }
 0x55e   :  { %11273 = vmatprep.subr.bf16.mxu0 %v20955_v12  ;;  %v20979_v12 = vld [vmem:[#allocation9 + $0xe14] ss:$24 sps:$4 sm:$0xff]   ;;  %v6160_v31 = vld [vmem:[#allocation6 + $0x13b8] sm:$0xff] }
 0x55f   :  { %8715 = vmatmul.mubr.bf16.vlgmr.msra.gmra.mrb[24].mxu1 %v22444_v24  ;;  %v6164_v42 = vld [vmem:[#allocation6 + $0x1418] sm:$0xff] }
 0x560   :  { %8726 = vmatpush1.bf16.msra.mxu1 %v18678_v18  ;;  %8757 = vmatprep.mubr.bf16.mxu1 %v22446_v28  ;;  %v18742_v18 = vcombine.low %v6144_v30, %v6148_v13  ;;  %v6168_v34 = vld [vmem:[#allocation6 + $0x1478] sm:$0xff] }
 0x561   :  { %11274 = vmatpush1.bf16.msra.mxu0 %v20953_v37  ;;  %8727 = vmatprep.subr.bf16.mxu1 %v18687_v38  ;;  %v20977_v37 = vld [vmem:[#allocation9 + $0xe10] ss:$24 sps:$4 sm:$0xff]   ;;  %v18751_v38 = vcombine.high %v6152_v32, %v6156_v25  ;;  %v6172_v47 = vld [vmem:[#allocation6 + $0x14d8] sm:$0xff] }
 0x562   :  { %11275 = vmatprep.subr.bf16.mxu0 %v20958_v39  ;;  %v20982_v39 = vld [vmem:[#allocation9 + $0xe44] ss:$24 sps:$4 sm:$0xff]  }
 0x563   :  { %v6176_v16 = vld [vmem:[#allocation6 + $0x1538] sm:$0xff] }
 0x564   :  { %8728 = vmatpush1.bf16.msra.mxu1 %v18686_v44  ;;  %v18750_v44 = vcombine.low %v6152_v32, %v6156_v25  ;;  %v6180_v15 = vld [vmem:[#allocation6 + $0x1598] sm:$0xff]  ;;  %v21003_v25 = vld [vmem:[#allocation9 + $0xf94] ss:$24 sps:$4 sm:$0xff]  }
 0x565   :  { %11276 = vmatpush1.bf16.msra.mxu0 %v20956_v45  ;;  %8729 = vmatprep.subr.bf16.mxu1 %v18695_v35  ;;  %v20980_v45 = vld [vmem:[#allocation9 + $0xe40] ss:$24 sps:$4 sm:$0xff]   ;;  %v18759_v35 = vcombine.high %v6160_v31, %v6164_v42  ;;  %v21000_v13 = vld [vmem:[#allocation9 + $0xf64] ss:$24 sps:$4 sm:$0xff]  }
 0x566   :  { %11277 = vmatprep.subr.bf16.mxu0 %v20961_v46  ;;  %v20985_v46 = vld [vmem:[#allocation9 + $0xe74] ss:$24 sps:$4 sm:$0xff]   ;;  %v6184_v61 = vld [vmem:[#allocation6 + $0x15f8] sm:$0xff] }
 0x567   :  { %v6188_v26 = vld [vmem:[#allocation6 + $0x1658] sm:$0xff] }
 0x568   :  { %8730 = vmatpush1.bf16.msra.mxu1 %v18694_v11  ;;  %v18758_v11 = vcombine.low %v6160_v31, %v6164_v42  ;;  %v6196_v4 = vld [vmem:[#allocation6 + $0x1718] sm:$0xff] }
 0x569   :  { %11278 = vmatpush1.bf16.msra.mxu0 %v20959_v48  ;;  %8731 = vmatprep.subr.bf16.mxu1 %v18703_v49  ;;  %v20983_v48 = vld [vmem:[#allocation9 + $0xe70] ss:$24 sps:$4 sm:$0xff]   ;;  %v18767_v49 = vcombine.high %v6168_v34, %v6172_v47  ;;  %v6204_v19 = vld [vmem:[#allocation6 + $0x17d8] sm:$0xff] }
 0x56a   :  { %11279 = vmatprep.subr.bf16.mxu0 %v20964_v9  ;;  %v20988_v9 = vld [vmem:[#allocation9 + $0xea4] ss:$24 sps:$4 sm:$0xff]  }
 0x56b   :  { %v6212_v30 = vld [vmem:[#allocation6 + $0x1898] sm:$0xff] }
 0x56c   :  { %8732 = vmatpush1.bf16.msra.mxu1 %v18702_v53  ;;  %v18766_v53 = vcombine.low %v6168_v34, %v6172_v47  ;;  %v6220_v32 = vld [vmem:[#allocation6 + $0x1958] sm:$0xff]  ;;  %v21015_v47 = vld [vmem:[#allocation9 + $0xff4] ss:$24 sps:$4 sm:$0xff]  }
 0x56d   :  { %11280 = vmatpush1.bf16.msra.mxu0 %v20962_v55  ;;  %8733 = vmatprep.subr.bf16.mxu1 %v18711_v51  ;;  %v20986_v55 = vld [vmem:[#allocation9 + $0xea0] ss:$24 sps:$4 sm:$0xff]   ;;  %v18775_v51 = vcombine.high %v6176_v16, %v6180_v15  ;;  %v21009_v42 = vld [vmem:[#allocation9 + $0xfc4] ss:$24 sps:$4 sm:$0xff]  }
 0x56e   :  { %11281 = vmatprep.subr.bf16.mxu0 %v20967_v58  ;;  %v20991_v58 = vld [vmem:[#allocation9 + $0xed4] ss:$24 sps:$4 sm:$0xff]   ;;  %v6228_v31 = vld [vmem:[#allocation6 + $0x1a18] sm:$0xff] }
 0x56f   :  { %v6236_v34 = vld [vmem:[#allocation6 + $0x1ad8] sm:$0xff] }
 0x570   :  { %8734 = vmatpush1.bf16.msra.mxu1 %v18710_v63  ;;  %v18774_v63 = vcombine.low %v6176_v16, %v6180_v15  ;;  %v6244_v16 = vld [vmem:[#allocation6 + $0x1b98] sm:$0xff] }
 0x571   :  { %11282 = vmatpush1.bf16.msra.mxu0 %v20965_v22  ;;  %8735 = vmatprep.subr.bf16.mxu1 %v18719_v1  ;;  %v20989_v22 = vld [vmem:[#allocation9 + $0xed0] ss:$24 sps:$4 sm:$0xff]   ;;  %v18783_v1 = vcombine.high %v6184_v61, %v6188_v26  ;;  %v21021_v15 = vld [vmem:[#allocation9 + $0x1024] ss:$24 sps:$4 sm:$0xff]  }
 0x572   :  { %11283 = vmatprep.subr.bf16.mxu0 %v20970_v2  ;;  %v6192_v2 = vld [vmem:[#allocation6 + $0x16b8] sm:$0xff] }
 0x574   :  { %8736 = vmatpush1.bf16.msra.mxu1 %v18718_v5  ;;  %v18782_v5 = vcombine.low %v6184_v61, %v6188_v26  ;;  %v6252_v61 = vld [vmem:[#allocation6 + $0x1c58] sm:$0xff]  ;;  %v21027_v26 = vld [vmem:[#allocation9 + $0x1054] ss:$24 sps:$4 sm:$0xff]  }
 0x575   :  { %11284 = vmatpush1.bf16.msra.mxu0 %v20968_v14  ;;  %8737 = vmatprep.subr.bf16.mxu1 %v18727_v60  ;;  %v18791_v14 = vcombine.high %v6192_v2, %v6196_v4  ;;  %v20992_v60 = vld [vmem:[#allocation9 + $0xf00] ss:$24 sps:$4 sm:$0xff]  }
 0x576   :  { %11285 = vmatprep.subr.bf16.mxu0 %v20973_v6  ;;  %v6200_v6 = vld [vmem:[#allocation6 + $0x1778] sm:$0xff] }
 0x578   :  { %8738 = vmatpush1.bf16.msra.mxu1 %v18726_v0  ;;  %v18790_v0 = vcombine.low %v6192_v2, %v6196_v4  ;;  %v6256_v2 = vld [vmem:[#allocation6 + $0x1cb8] sm:$0xff] }
 0x579   :  { %11286 = vmatpush1.bf16.msra.mxu0 %v20971_v23  ;;  %8739 = vmatprep.subr.bf16.mxu1 %v18735_v27  ;;  %v18799_v23 = vcombine.high %v6200_v6, %v6204_v19  ;;  %v20995_v27 = vld [vmem:[#allocation9 + $0xf30] ss:$24 sps:$4 sm:$0xff]   ;;  %v6260_v4 = vld [vmem:[#allocation6 + $0x1d18] sm:$0xff] }
 0x57a   :  { %11287 = vmatprep.subr.bf16.mxu0 %v20976_v29  ;;  %v6208_v29 = vld [vmem:[#allocation6 + $0x1838] sm:$0xff] }
 0x57c   :  { %8740 = vmatpush1.bf16.msra.mxu1 %v18734_v8  ;;  %v18798_v8 = vcombine.low %v6200_v6, %v6204_v19  ;;  %v6264_v6 = vld [vmem:[#allocation6 + $0x1d78] sm:$0xff] }
 0x57d   :  { %11288 = vmatpush1.bf16.msra.mxu0 %v20974_v7  ;;  %8741 = vmatprep.subr.bf16.mxu1 %v18743_v17  ;;  %v18807_v7 = vcombine.high %v6208_v29, %v6212_v30  ;;  %v20998_v17 = vld [vmem:[#allocation9 + $0xf60] ss:$24 sps:$4 sm:$0xff]  }
 0x57e   :  { %11289 = vmatprep.subr.bf16.mxu0 %v20979_v12  ;;  %v6216_v12 = vld [vmem:[#allocation6 + $0x18f8] sm:$0xff] }
 0x57f   :  { %v6268_v19 = vld [vmem:[#allocation6 + $0x1dd8] sm:$0xff] }
 0x580   :  { %8742 = vmatpush1.bf16.msra.mxu1 %v18742_v18  ;;  %v18806_v18 = vcombine.low %v6208_v29, %v6212_v30  ;;  %v6272_v29 = vld [vmem:[#allocation6 + $0x1e38] sm:$0xff] }
 0x581   :  { %11290 = vmatpush1.bf16.msra.mxu0 %v20977_v37  ;;  %8743 = vmatprep.subr.bf16.mxu1 %v18751_v38  ;;  %v18815_v37 = vcombine.high %v6216_v12, %v6220_v32  ;;  %v21001_v38 = vld [vmem:[#allocation9 + $0xf90] ss:$24 sps:$4 sm:$0xff]   ;;  %v6276_v30 = vld [vmem:[#allocation6 + $0x1e98] sm:$0xff] }
 0x582   :  { %11291 = vmatprep.subr.bf16.mxu0 %v20982_v39  ;;  %v6224_v39 = vld [vmem:[#allocation6 + $0x19b8] sm:$0xff] }
 0x584   :  { %8744 = vmatpush1.bf16.msra.mxu1 %v18750_v44  ;;  %v18814_v44 = vcombine.low %v6216_v12, %v6220_v32  ;;  %v6280_v12 = vld [vmem:[#allocation6 + $0x1ef8] sm:$0xff] }
 0x585   :  { %11292 = vmatpush1.bf16.msra.mxu0 %v20980_v45  ;;  %8745 = vmatprep.subr.bf16.mxu1 %v18759_v35  ;;  %v18823_v45 = vcombine.high %v6224_v39, %v6228_v31  ;;  %v21007_v35 = vld [vmem:[#allocation9 + $0xfc0] ss:$24 sps:$4 sm:$0xff]  }
 0x586   :  { %11293 = vmatprep.subr.bf16.mxu0 %v20985_v46  ;;  %v6232_v46 = vld [vmem:[#allocation6 + $0x1a78] sm:$0xff] }
 0x587   :  { %v6284_v32 = vld [vmem:[#allocation6 + $0x1f58] sm:$0xff] }
 0x588   :  { %8746 = vmatpush1.bf16.msra.mxu1 %v18758_v11  ;;  %v18822_v11 = vcombine.low %v6224_v39, %v6228_v31  ;;  %v6288_v39 = vld [vmem:[#allocation6 + $0x1fb8] sm:$0xff] }
 0x589   :  { %11294 = vmatpush1.bf16.msra.mxu0 %v20983_v48  ;;  %8747 = vmatprep.subr.bf16.mxu1 %v18767_v49  ;;  %v18831_v48 = vcombine.high %v6232_v46, %v6236_v34  ;;  %v21013_v49 = vld [vmem:[#allocation9 + $0xff0] ss:$24 sps:$4 sm:$0xff]   ;;  %v6292_v31 = vld [vmem:[#allocation6 + $0x2018] sm:$0xff] }
 0x58a   :  { %11295 = vmatprep.subr.bf16.mxu0 %v20988_v9  ;;  %v6240_v9 = vld [vmem:[#allocation6 + $0x1b38] sm:$0xff] }
 0x58c   :  { %8748 = vmatpush1.bf16.msra.mxu1 %v18766_v53  ;;  %v18830_v53 = vcombine.low %v6232_v46, %v6236_v34  ;;  %v6296_v46 = vld [vmem:[#allocation6 + $0x2078] sm:$0xff] }
 0x58d   :  { %11296 = vmatpush1.bf16.msra.mxu0 %v20986_v55  ;;  %8749 = vmatprep.subr.bf16.mxu1 %v18775_v51  ;;  %v18839_v55 = vcombine.high %v6240_v9, %v6244_v16  ;;  %v21019_v51 = vld [vmem:[#allocation9 + $0x1020] ss:$24 sps:$4 sm:$0xff]  }
 0x58e   :  { %11297 = vmatprep.subr.bf16.mxu0 %v20991_v58  ;;  %v6248_v58 = vld [vmem:[#allocation6 + $0x1bf8] sm:$0xff] }
 0x58f   :  { %v6300_v34 = vld [vmem:[#allocation6 + $0x20d8] sm:$0xff] }
 0x590   :  { %8750 = vmatpush1.bf16.msra.mxu1 %v18774_v63  ;;  %v18838_v63 = vcombine.low %v6240_v9, %v6244_v16  ;;  %v6304_v9 = vld [vmem:[#allocation6 + $0x2138] sm:$0xff] }
 0x591   :  { %11298 = vmatpush1.bf16.msra.mxu0 %v20989_v22  ;;  %8751 = vmatprep.subr.bf16.mxu1 %v18783_v1  ;;  %v18847_v22 = vcombine.high %v6248_v58, %v6252_v61  ;;  %v21025_v1 = vld [vmem:[#allocation9 + $0x1050] ss:$24 sps:$4 sm:$0xff]   ;;  %v6308_v16 = vld [vmem:[#allocation6 + $0x2198] sm:$0xff] }
 0x592   :  { %11310 = vmatprep.subr.bf16.mxu0 %v20994_v56  ;;  %v21033_v56 = vld [vmem:[#allocation9 + $0x1084] ss:$24 sps:$4 sm:$0xff]  }
 0x594   :  { %11300 = vmatmul.mubr.bf16.vlgmr.msra.gmra.mrb[4].mxu0 %v22680_v21  ;;  %8752 = vmatpush1.bf16.msra.mxu1 %v18782_v5  ;;  %v18846_v5 = vcombine.low %v6248_v58, %v6252_v61  ;;  %v6312_v58 = vld [vmem:[#allocation6 + $0x21f8] sm:$0xff] }
 0x595   :  { %8753 = vmatprep.subr.bf16.mxu1 %v18791_v14  ;;  %11311 = vmatpush1.bf16.msra.mxu0 %v20992_v60  ;;  %v18855_v14 = vcombine.high %v6256_v2, %v6260_v4  ;;  %v21031_v60 = vld [vmem:[#allocation9 + $0x1080] ss:$24 sps:$4 sm:$0xff]  }
 0x596   :  { %11312 = vmatprep.subr.bf16.mxu0 %v20997_v54  ;;  %v21039_v54 = vld [vmem:[#allocation9 + $0x10b4] ss:$24 sps:$4 sm:$0xff]   ;;  %v6316_v61 = vld [vmem:[#allocation6 + $0x2258] sm:$0xff] }
 0x598   :  { %8754 = vmatpush1.bf16.msra.mxu1 %v18790_v0  ;;  %v18854_v0 = vcombine.low %v6256_v2, %v6260_v4  ;;  %v6320_v2 = vld [vmem:[#allocation6 + $0x22b8] sm:$0xff] }
 0x599   :  { %8755 = vmatprep.subr.bf16.mxu1 %v18799_v23  ;;  %11313 = vmatpush1.bf16.msra.mxu0 %v20995_v27  ;;  %v18863_v23 = vcombine.high %v6264_v6, %v6268_v19  ;;  %v21037_v27 = vld [vmem:[#allocation9 + $0x10b0] ss:$24 sps:$4 sm:$0xff]   ;;  %v6324_v4 = vld [vmem:[#allocation6 + $0x2318] sm:$0xff] }
 0x59a   :  { %11314 = vmatprep.subr.bf16.mxu0 %v21000_v13  ;;  %v21045_v13 = vld [vmem:[#allocation9 + $0x10e4] ss:$24 sps:$4 sm:$0xff]  }
 0x59c   :  { %8756 = vmatpush1.bf16.msra.mxu1 %v18798_v8  ;;  %v18862_v8 = vcombine.low %v6264_v6, %v6268_v19  ;;  %v6332_v6 = vld [vmem:[#allocation6 + $0x23d8] sm:$0xff]  ;;  %v18918_v19 = vcombine.low %v6320_v2, %v6324_v4 }
 0x59d   :  { %8768 = vmatprep.subr.bf16.mxu1 %v18807_v7  ;;  %11315 = vmatpush1.bf16.msra.mxu0 %v20998_v17  ;;  %v18871_v7 = vcombine.high %v6272_v29, %v6276_v30  ;;  %v21043_v17 = vld [vmem:[#allocation9 + $0x10e0] ss:$24 sps:$4 sm:$0xff]  }
 0x59e   :  { %11316 = vmatprep.subr.bf16.mxu0 %v21003_v25  ;;  %v21051_v25 = vld [vmem:[#allocation9 + $0x1114] ss:$24 sps:$4 sm:$0xff]  }
 0x59f   :  { %8758 = vmatmul.mubr.bf16.vlgmr.msra.gmra.mrb[24].mxu1 %v22452_v36 }
 0x5a0   :  { %8769 = vmatpush1.bf16.msra.mxu1 %v18806_v18  ;;  %8800 = vmatprep.mubr.bf16.mxu1 %v22454_v41  ;;  %v18870_v18 = vcombine.low %v6272_v29, %v6276_v30  ;;  %v21012_v29 = vld [vmem:[#allocation9 + $0xc3c] ss:$24 sps:$4 sm:$0xff]   ;;  %v21010_v30 = vld [vmem:[#allocation9 + $0xc38] ss:$24 sps:$4 sm:$0xff]  }
 0x5a1   :  { %8770 = vmatprep.subr.bf16.mxu1 %v18815_v37  ;;  %11317 = vmatpush1.bf16.msra.mxu0 %v21001_v38  ;;  %v18879_v37 = vcombine.high %v6280_v12, %v6284_v32  ;;  %v21049_v38 = vld [vmem:[#allocation9 + $0x1110] ss:$24 sps:$4 sm:$0xff]  }
 0x5a2   :  { %11318 = vmatprep.subr.bf16.mxu0 %v21009_v42  ;;  %v21057_v42 = vld [vmem:[#allocation9 + $0x1144] ss:$24 sps:$4 sm:$0xff]  }
 0x5a4   :  { %8771 = vmatpush1.bf16.msra.mxu1 %v18814_v44  ;;  %v18878_v44 = vcombine.low %v6280_v12, %v6284_v32  ;;  %v21030_v12 = vld [vmem:[#allocation9 + $0xccc] ss:$24 sps:$4 sm:$0xff]   ;;  %v21028_v32 = vld [vmem:[#allocation9 + $0xcc8] ss:$24 sps:$4 sm:$0xff]  }
 0x5a5   :  { %8772 = vmatprep.subr.bf16.mxu1 %v18823_v45  ;;  %11319 = vmatpush1.bf16.msra.mxu0 %v21007_v35  ;;  %v18887_v45 = vcombine.high %v6288_v39, %v6292_v31  ;;  %v21055_v35 = vld [vmem:[#allocation9 + $0x1140] ss:$24 sps:$4 sm:$0xff]  }
 0x5a6   :  { %11320 = vmatprep.subr.bf16.mxu0 %v21015_v47  ;;  %v21063_v47 = vld [vmem:[#allocation9 + $0x1174] ss:$24 sps:$4 sm:$0xff]  }
 0x5a8   :  { %8773 = vmatpush1.bf16.msra.mxu1 %v18822_v11  ;;  %v18886_v11 = vcombine.low %v6288_v39, %v6292_v31  ;;  %v21034_v39 = vld [vmem:[#allocation9 + $0xcf8] ss:$24 sps:$4 sm:$0xff]   ;;  %v21042_v31 = vld [vmem:[#allocation9 + $0xd2c] ss:$24 sps:$4 sm:$0xff]  }
 0x5a9   :  { %8774 = vmatprep.subr.bf16.mxu1 %v18831_v48  ;;  %11321 = vmatpush1.bf16.msra.mxu0 %v21013_v49  ;;  %v18895_v48 = vcombine.high %v6296_v46, %v6300_v34  ;;  %v21061_v49 = vld [vmem:[#allocation9 + $0x1170] ss:$24 sps:$4 sm:$0xff]  }
 0x5aa   :  { %11322 = vmatprep.subr.bf16.mxu0 %v21021_v15  ;;  %v21069_v15 = vld [vmem:[#allocation9 + $0x11a4] ss:$24 sps:$4 sm:$0xff]  }
 0x5ac   :  { %8775 = vmatpush1.bf16.msra.mxu1 %v18830_v53  ;;  %v18894_v53 = vcombine.low %v6296_v46, %v6300_v34  ;;  %v21040_v34 = vld [vmem:[#allocation9 + $0xd28] ss:$24 sps:$4 sm:$0xff]  }
 0x5ad   :  { %8776 = vmatprep.subr.bf16.mxu1 %v18839_v55  ;;  %11323 = vmatpush1.bf16.msra.mxu0 %v21019_v51  ;;  %v18903_v55 = vcombine.high %v6304_v9, %v6308_v16  ;;  %v21067_v51 = vld [vmem:[#allocation9 + $0x11a0] ss:$24 sps:$4 sm:$0xff]  }
 0x5ae   :  { %11324 = vmatprep.subr.bf16.mxu0 %v21027_v26  ;;  %v21075_v26 = vld [vmem:[#allocation9 + $0x11d4] ss:$24 sps:$4 sm:$0xff]  }
 0x5b0   :  { %8777 = vmatpush1.bf16.msra.mxu1 %v18838_v63  ;;  %v18902_v63 = vcombine.low %v6304_v9, %v6308_v16 }
 0x5b1   :  { %8778 = vmatprep.subr.bf16.mxu1 %v18847_v22  ;;  %11325 = vmatpush1.bf16.msra.mxu0 %v21025_v1  ;;  %v18911_v22 = vcombine.high %v6312_v58, %v6316_v61  ;;  %v21073_v1 = vld [vmem:[#allocation9 + $0x11d0] ss:$24 sps:$4 sm:$0xff]  }
 0x5b2   :  { %11326 = vmatprep.subr.bf16.mxu0 %v21033_v56  ;;  %v21081_v56 = vld [vmem:[#allocation9 + $0x1204] ss:$24 sps:$4 sm:$0xff]  }
 0x5b4   :  { %8779 = vmatpush1.bf16.msra.mxu1 %v18846_v5  ;;  %v18910_v5 = vcombine.low %v6312_v58, %v6316_v61  ;;  %v21046_v58 = vld [vmem:[#allocation9 + $0xd58] ss:$24 sps:$4 sm:$0xff]  }
 0x5b5   :  { %8780 = vmatprep.subr.bf16.mxu1 %v18855_v14  ;;  %11327 = vmatpush1.bf16.msra.mxu0 %v21031_v60  ;;  %v18919_v14 = vcombine.high %v6320_v2, %v6324_v4  ;;  %v6328_v60 = vld [vmem:[#allocation6 + $0x2378] sm:$0xff] }
 0x5b6   :  { %11328 = vmatprep.subr.bf16.mxu0 %v21039_v54  ;;  %v18927_v54 = vcombine.high %v6328_v60, %v6332_v6 }
 0x5b8   :  { %8781 = vmatpush1.bf16.msra.mxu1 %v18854_v0  ;;  %v18926_v0 = vcombine.low %v6328_v60, %v6332_v6 }
 0x5b9   :  { %8782 = vmatprep.subr.bf16.mxu1 %v18863_v23  ;;  %11329 = vmatpush1.bf16.msra.mxu0 %v21037_v27  ;;  %v21006_v23 = vld [vmem:[#allocation9 + $0xc0c] ss:$24 sps:$4 sm:$0xff]   ;;  %v21004_v27 = vld [vmem:[#allocation9 + $0xc08] ss:$24 sps:$4 sm:$0xff]  }
 0x5ba   :  { %11330 = vmatprep.subr.bf16.mxu0 %v21045_v13  ;;  %v21018_v13 = vld [vmem:[#allocation9 + $0xc6c] ss:$24 sps:$4 sm:$0xff]  }
 0x5bc   :  { %8783 = vmatpush1.bf16.msra.mxu1 %v18862_v8  ;;  %v21016_v8 = vld [vmem:[#allocation9 + $0xc68] ss:$24 sps:$4 sm:$0xff]  }
 0x5bd   :  { %8784 = vmatprep.subr.bf16.mxu1 %v18871_v7  ;;  %11331 = vmatpush1.bf16.msra.mxu0 %v21043_v17  ;;  %v21024_v7 = vld [vmem:[#allocation9 + $0xc9c] ss:$24 sps:$4 sm:$0xff]   ;;  %v21022_v17 = vld [vmem:[#allocation9 + $0xc98] ss:$24 sps:$4 sm:$0xff]  }
 0x5be   :  { %11332 = vmatprep.subr.bf16.mxu0 %v21051_v25  ;;  %v21036_v25 = vld [vmem:[#allocation9 + $0xcfc] ss:$24 sps:$4 sm:$0xff]  }
 0x5c0   :  { %8785 = vmatpush1.bf16.msra.mxu1 %v18870_v18  ;;  %v22693_v18 = vld [vmem:[#allocation8 + $0x8] sm:$0xff] }
 0x5c1   :  { %8786 = vmatprep.subr.bf16.mxu1 %v18879_v37  ;;  %11333 = vmatpush1.bf16.msra.mxu0 %v21049_v38  ;;  %v6346_v37 = vrot.slane %v22693_v18, %v22568_v62  ;;  %v6350_v38 = vrot.slane %v22693_v18, %v22571_v33 }
 0x5c2   :  { %11334 = vmatprep.subr.bf16.mxu0 %v21057_v42 }
 0x5c4   :  { %8787 = vmatpush1.bf16.msra.mxu1 %v18878_v44 }
 0x5c5   :  { %8788 = vmatprep.subr.bf16.mxu1 %v18887_v45  ;;  %11335 = vmatpush1.bf16.msra.mxu0 %v21055_v35 }
 0x5c6   :  { %11336 = vmatprep.subr.bf16.mxu0 %v21063_v47 }
 0x5c8   :  { %8789 = vmatpush1.bf16.msra.mxu1 %v18886_v11 }
 0x5c9   :  { %8790 = vmatprep.subr.bf16.mxu1 %v18895_v48  ;;  %11337 = vmatpush1.bf16.msra.mxu0 %v21061_v49  ;;  %v21048_v49 = vld [vmem:[#allocation9 + $0xd5c] ss:$24 sps:$4 sm:$0xff]  }
 0x5ca   :  { %11338 = vmatprep.subr.bf16.mxu0 %v21069_v15 }
 0x5cc   :  { %8791 = vmatpush1.bf16.msra.mxu1 %v18894_v53 }
 0x5cd   :  { %8792 = vmatprep.subr.bf16.mxu1 %v18903_v55  ;;  %11339 = vmatpush1.bf16.msra.mxu0 %v21067_v51 }
 0x5ce   :  { %11340 = vmatprep.subr.bf16.mxu0 %v21075_v26 }
 0x5d0   :  { %8793 = vmatpush1.bf16.msra.mxu1 %v18902_v63  ;;  %v21054_v63 = vld [vmem:[#allocation9 + $0xd8c] ss:$24 sps:$4 sm:$0xff]  }
 0x5d1   :  { %8794 = vmatprep.subr.bf16.mxu1 %v18911_v22  ;;  %11341 = vmatpush1.bf16.msra.mxu0 %v21073_v1 }
 0x5d2   :  { %11353 = vmatprep.subr.bf16.mxu0 %v21081_v56 }
 0x5d4   :  { %8795 = vmatpush1.bf16.msra.mxu1 %v18910_v5  ;;  %v21052_v5 = vld [vmem:[#allocation9 + $0xd88] ss:$24 sps:$4 sm:$0xff]  }
 0x5d5   :  { %8796 = vmatprep.subr.bf16.mxu1 %v18919_v14 }
 0x5d8   :  { %8797 = vmatpush1.bf16.msra.mxu1 %v18918_v19  ;;  %v21060_v19 = vld [vmem:[#allocation9 + $0xdbc] ss:$24 sps:$4 sm:$0xff]  }
 0x5d9   :  { %8798 = vmatprep.subr.bf16.mxu1 %v18927_v54 }
 0x5dc   :  { %8799 = vmatpush1.bf16.msra.mxu1 %v18926_v0 }
 0x5dd   :  { %11439 = vmatprep.subr.bf16.mxu1 %v21006_v23 }
 0x5df   :  { %8801 = vmatmul.mubr.bf16.vlgmr.msra.gmra.mrb[24].mxu1 %v22460_v50 }
 0x5e0   :  { %11440 = vmatpush1.bf16.msra.mxu1 %v21004_v27  ;;  %11471 = vmatprep.mubr.bf16.mxu1 %v22682_v52  ;;  %v21058_v27 = vld [vmem:[#allocation9 + $0xdb8] ss:$24 sps:$4 sm:$0xff]  }
 0x5e1   :  { %11441 = vmatprep.subr.bf16.mxu1 %v21012_v29 }
 0x5e4   :  { %11442 = vmatpush1.bf16.msra.mxu1 %v21010_v30  ;;  %v21066_v30 = vld [vmem:[#allocation9 + $0xdec] ss:$24 sps:$4 sm:$0xff]  }
 0x5e5   :  { %11443 = vmatprep.subr.bf16.mxu1 %v21018_v13  ;;  %v21064_v13 = vld [vmem:[#allocation9 + $0xde8] ss:$24 sps:$4 sm:$0xff]  }
 0x5e8   :  { %11444 = vmatpush1.bf16.msra.mxu1 %v21016_v8  ;;  %v21072_v8 = vld [vmem:[#allocation9 + $0xe1c] ss:$24 sps:$4 sm:$0xff]  }
 0x5e9   :  { %11445 = vmatprep.subr.bf16.mxu1 %v21024_v7  ;;  %v21070_v7 = vld [vmem:[#allocation9 + $0xe18] ss:$24 sps:$4 sm:$0xff]  }
 0x5ec   :  { %11446 = vmatpush1.bf16.msra.mxu1 %v21022_v17 }
 0x5ed   :  { %11447 = vmatprep.subr.bf16.mxu1 %v21030_v12  ;;  %v21078_v12 = vld [vmem:[#allocation9 + $0xe4c] ss:$24 sps:$4 sm:$0xff]  }
 0x5f0   :  { %11448 = vmatpush1.bf16.msra.mxu1 %v21028_v32 }
 0x5f1   :  { %11449 = vmatprep.subr.bf16.mxu1 %v21036_v25 }
 0x5f2   :  { %v8544_v42 = vpop.f32.mrb[20].mxu1 }
 0x5f3   :  { %v20100_v44 = vadd.f32 %v8544_v42, %v6346_v37  ;;  %v8546_v45 = vpop.f32.mrb[21].mxu1 }
 0x5f4   :  { %v22699_v35 = vadd.f32 %v8546_v45, %v6350_v38  ;;  %v8548_v46 = vpop.f32.mrb[22].mxu1  ;;  %11450 = vmatpush1.bf16.msra.mxu1 %v21034_v39 }
 0x5f5   :  { %v8829_v47 = vmul.f32 0.044715, %v20100_v44  ;;  %v20102_v11 = vadd.f32 %v8548_v46, %v6346_v37  ;;  %v8550_v48 = vpop.f32.mrb[23].mxu1  ;;  %11451 = vmatprep.subr.bf16.mxu1 %v21042_v31  ;;  %v21076_v31 = vld [vmem:[#allocation9 + $0xe48] ss:$24 sps:$4 sm:$0xff]   ;;  %v8813_v42 = vmul.f32 0.5, %v20100_v44 }
 0x5f6   :  { %v8830_v9 = vmul.f32 0.044715, %v22699_v35  ;;  %v20103_v16 = vadd.f32 %v8550_v48, %v6350_v38 }
 0x5f7   :  { %v8845_v15 = vmul.f32 %v20100_v44, %v8829_v47  ;;  %v8837_v53 = vmul.f32 0.044715, %v20102_v11  ;;  %v8821_v45 = vmul.f32 0.5, %v20102_v11 }
 0x5f8   :  { %v8846_v55 = vmul.f32 %v22699_v35, %v8830_v9  ;;  %v8838_v51 = vmul.f32 0.044715, %v20103_v16  ;;  %11452 = vmatpush1.bf16.msra.mxu1 %v21040_v34  ;;  %v8814_v34 = vmul.f32 0.5, %v22699_v35  ;;  %v8822_v47 = vmul.f32 0.5, %v20103_v16 }
 0x5f9   :  { %v8861_v61 = vmul.f32 %v20100_v44, %v8845_v15  ;;  %v8853_v26 = vmul.f32 %v20102_v11, %v8837_v53  ;;  %11453 = vmatprep.subr.bf16.mxu1 %v21048_v49  ;;  %v21084_v49 = vld [vmem:[#allocation9 + $0xe7c] ss:$24 sps:$4 sm:$0xff]  }
 0x5fa   :  { %v8862_v22 = vmul.f32 %v22699_v35, %v8846_v55  ;;  %v8854_v1 = vmul.f32 %v20103_v16, %v8838_v51  ;;  %v21082_v51 = vld [vmem:[#allocation9 + $0xe78] ss:$24 sps:$4 sm:$0xff]  }
 0x5fb   :  { %v8877_v2 = vadd.f32 %v20100_v44, %v8861_v61  ;;  %v8869_v4 = vmul.f32 %v20102_v11, %v8853_v26  ;;  %v21079_v26 = vld [vmem:[#allocation9 + $0x1200] ss:$24 sps:$4 sm:$0xff]   ;;  %v21090_v44 = vld [vmem:[#allocation9 + $0xeac] ss:$24 sps:$4 sm:$0xff]  }
 0x5fc   :  { %v8870_v56 = vmul.f32 %v20103_v16, %v8854_v1  ;;  %11454 = vmatpush1.bf16.msra.mxu1 %v21046_v58  ;;  %v8878_v14 = vadd.f32 %v22699_v35, %v8862_v22  ;;  %v21088_v35 = vld [vmem:[#allocation9 + $0xea8] ss:$24 sps:$4 sm:$0xff]   ;;  %v21093_v22 = vld [vmem:[#allocation9 + $0x1264] ss:$24 sps:$4 sm:$0xff]   ;;  %v21094_v1 = vld [vmem:[#allocation9 + $0xed8] ss:$24 sps:$4 sm:$0xff]  }
 0x5fd   :  { %v8893_v60 = vmul.f32 0.7978846, %v8877_v2  ;;  %v8885_v6 = vadd.f32 %v20102_v11, %v8869_v4  ;;  %11455 = vmatprep.subr.bf16.mxu1 %v21054_v63  ;;  %v21087_v11 = vld [vmem:[#allocation9 + $0x1234] ss:$24 sps:$4 sm:$0xff]   ;;  %v21091_v2 = vld [vmem:[#allocation9 + $0x1260] ss:$24 sps:$4 sm:$0xff]  }
 0x5fe   :  { %v8886_v54 = vadd.f32 %v20103_v16, %v8870_v56  ;;  %v8894_v0 = vmul.f32 0.7978846, %v8878_v14  ;;  %v21085_v16 = vld [vmem:[#allocation9 + $0x1230] ss:$24 sps:$4 sm:$0xff]   ;;  %v21096_v63 = vld [vmem:[#allocation9 + $0xedc] ss:$24 sps:$4 sm:$0xff]  }
 0x5ff   :  { %22136 = vtanh.f32 %v8893_v60  ;;  %v8901_v23 = vmul.f32 0.7978846, %v8885_v6  ;;  %v21102_v4 = vld [vmem:[#allocation9 + $0xf0c] ss:$24 sps:$4 sm:$0xff]   ;;  %v21097_v14 = vld [vmem:[#allocation9 + $0x1290] ss:$24 sps:$4 sm:$0xff]  }
 0x600   :  { %11456 = vmatpush1.bf16.msra.mxu1 %v21052_v5  ;;  %v8902_v29 = vmul.f32 0.7978846, %v8886_v54  ;;  %22138 = vtanh.f32 %v8894_v0  ;;  %v21099_v56 = vld [vmem:[#allocation9 + $0x1294] ss:$24 sps:$4 sm:$0xff]   ;;  %v21100_v5 = vld [vmem:[#allocation9 + $0xf08] ss:$24 sps:$4 sm:$0xff]  }
 0x601   :  { %22140 = vtanh.f32 %v8901_v23  ;;  %11457 = vmatprep.subr.bf16.mxu1 %v21060_v19  ;;  %v21108_v60 = vld [vmem:[#allocation9 + $0xf3c] ss:$24 sps:$4 sm:$0xff]   ;;  %v21106_v19 = vld [vmem:[#allocation9 + $0xf38] ss:$24 sps:$4 sm:$0xff]   ;;  %v21114_v0 = vld [vmem:[#allocation9 + $0xf6c] ss:$24 sps:$4 sm:$0xff]  }
 0x602   :  { %22142 = vtanh.f32 %v8902_v29  ;;  %v21105_v6 = vld [vmem:[#allocation9 + $0x12c4] ss:$24 sps:$4 sm:$0xff]   ;;  %v21103_v54 = vld [vmem:[#allocation9 + $0x12c0] ss:$24 sps:$4 sm:$0xff]   ;;  %v21111_v23 = vld [vmem:[#allocation9 + $0x12f4] ss:$24 sps:$4 sm:$0xff]  }
 0x603   :  { %v21112_v29 = vld [vmem:[#allocation9 + $0xf68] ss:$24 sps:$4 sm:$0xff]  }
 0x604   :  { %11458 = vmatpush1.bf16.msra.mxu1 %v21058_v27  ;;  %v6354_v27 = vrot.slane %v22693_v18, %v22522_v3 }
 0x605   :  { %11459 = vmatprep.subr.bf16.mxu1 %v21066_v30  ;;  %v6358_v30 = vrot.slane %v22693_v18, %v22525_v10 }
 0x608   :  { %11460 = vmatpush1.bf16.msra.mxu1 %v21064_v13  ;;  %v21109_v13 = vld [vmem:[#allocation9 + $0x12f0] ss:$24 sps:$4 sm:$0xff]  }
 0x609   :  { %v22137_v17 = vpop.eup %22136  ;;  %11461 = vmatprep.subr.bf16.mxu1 %v21072_v8  ;;  %v21120_v8 = vld [vmem:[#allocation9 + $0xf9c] ss:$24 sps:$4 sm:$0xff]  }
 0x60a   :  { %v22139_v32 = vpop.eup %22138  ;;  %v8925_v25 = vadd.f32 1.0, %v22137_v17 }
 0x60b   :  { %v22141_v37 = vpop.eup %22140  ;;  %v8926_v38 = vadd.f32 1.0, %v22139_v32 }
 0x60c   :  { %v22143_v39 = vpop.eup %22142  ;;  %11462 = vmatpush1.bf16.msra.mxu1 %v21070_v7  ;;  %v8933_v46 = vadd.f32 1.0, %v22141_v37  ;;  %v8941_v9 = vmul.f32 %v8925_v25, %v8813_v42  ;;  %v21117_v7 = vld [vmem:[#allocation9 + $0x1324] ss:$24 sps:$4 sm:$0xff]   ;;  %v21118_v25 = vld [vmem:[#allocation9 + $0xf98] ss:$24 sps:$4 sm:$0xff]  }
 0x60d   :  { %11463 = vmatprep.subr.bf16.mxu1 %v21078_v12  ;;  %v8934_v48 = vadd.f32 1.0, %v22143_v39  ;;  %v8942_v53 = vmul.f32 %v8926_v38, %v8814_v34  ;;  %v21115_v39 = vld [vmem:[#allocation9 + $0x1320] ss:$24 sps:$4 sm:$0xff]   ;;  %v21123_v34 = vld [vmem:[#allocation9 + $0x1354] ss:$24 sps:$4 sm:$0xff]  }
 0x60e   :  { %v8949_v15 = vmul.f32 %v8933_v46, %v8821_v45 }
 0x60f   :  { %v8950_v55 = vmul.f32 %v8934_v48, %v8822_v47 }
 0x610   :  { %11464 = vmatpush1.bf16.msra.mxu1 %v21076_v31  ;;  %v22706_v58 = vpack.c.bf16 %v8949_v15, %v8941_v9  ;;  %v21126_v31 = vld [vmem:[#allocation9 + $0xfcc] ss:$24 sps:$4 sm:$0xff]   ;;  %v21124_v15 = vld [vmem:[#allocation9 + $0xfc8] ss:$24 sps:$4 sm:$0xff]  }
 0x611   :  { %v22708_v61 = vpack.c.bf16 %v8950_v55, %v8942_v53  ;;  %11465 = vmatprep.subr.bf16.mxu1 %v21084_v49 }
 0x613   :  { %11342 = vmatprep.mubr.bf16.mxu0 %v22708_v61 }
 0x614   :  { %11343 = vmatmul.mubr.bf16.vlgmr.msra.gmra.mrb[4].mxu0 %v22706_v58  ;;  %11466 = vmatpush1.bf16.msra.mxu1 %v21082_v51  ;;  %v21121_v51 = vld [vmem:[#allocation9 + $0x1350] ss:$24 sps:$4 sm:$0xff]  }
 0x615   :  { %11354 = vmatpush1.bf16.msra.mxu0 %v21079_v26  ;;  %11467 = vmatprep.subr.bf16.mxu1 %v21090_v44  ;;  %v21132_v26 = vld [vmem:[#allocation9 + $0xffc] ss:$24 sps:$4 sm:$0xff]  }
 0x616   :  { %11355 = vmatprep.subr.bf16.mxu0 %v21087_v11 }
 0x618   :  { %11468 = vmatpush1.bf16.msra.mxu1 %v21088_v35  ;;  %v21129_v35 = vld [vmem:[#allocation9 + $0x1384] ss:$24 sps:$4 sm:$0xff]  }
 0x619   :  { %11356 = vmatpush1.bf16.msra.mxu0 %v21085_v16  ;;  %11469 = vmatprep.subr.bf16.mxu1 %v21096_v63 }
 0x61a   :  { %11357 = vmatprep.subr.bf16.mxu0 %v21093_v22 }
 0x61c   :  { %11470 = vmatpush1.bf16.msra.mxu1 %v21094_v1 }
 0x61d   :  { %11358 = vmatpush1.bf16.msra.mxu0 %v21091_v2  ;;  %11482 = vmatprep.subr.bf16.mxu1 %v21102_v4  ;;  %v21130_v2 = vld [vmem:[#allocation9 + $0xff8] ss:$24 sps:$4 sm:$0xff]  }
 0x61e   :  { %11359 = vmatprep.subr.bf16.mxu0 %v21099_v56  ;;  %v21127_v56 = vld [vmem:[#allocation9 + $0x1380] ss:$24 sps:$4 sm:$0xff]  }
 0x61f   :  { %11472 = vmatmul.mubr.bf16.vlgmr.msra.gmra.mrb[12].mxu1 %v22680_v21 }
 0x620   :  { %11483 = vmatpush1.bf16.msra.mxu1 %v21100_v5  ;;  %11514 = vmatprep.mubr.bf16.mxu1 %v22708_v61  ;;  %v21138_v5 = vld [vmem:[#allocation9 + $0x102c] ss:$24 sps:$4 sm:$0xff]  }
 0x621   :  { %11360 = vmatpush1.bf16.msra.mxu0 %v21097_v14  ;;  %11484 = vmatprep.subr.bf16.mxu1 %v21108_v60 }
 0x622   :  { %11361 = vmatprep.subr.bf16.mxu0 %v21105_v6 }
 0x624   :  { %11485 = vmatpush1.bf16.msra.mxu1 %v21106_v19  ;;  %v21135_v19 = vld [vmem:[#allocation9 + $0x13b4] ss:$24 sps:$4 sm:$0xff]  }
 0x625   :  { %11362 = vmatpush1.bf16.msra.mxu0 %v21103_v54  ;;  %11486 = vmatprep.subr.bf16.mxu1 %v21114_v0 }
 0x626   :  { %11363 = vmatprep.subr.bf16.mxu0 %v21111_v23 }
 0x627   :  { %v8673_v17 = vpop.f32.mrb[12].mxu0 }
 0x628   :  { %v22718_v12 = vadd.f32 %v8673_v17, %v6354_v27  ;;  %v8675_v32 = vpop.f32.mrb[13].mxu0  ;;  %11487 = vmatpush1.bf16.msra.mxu1 %v21112_v29  ;;  %v21133_v29 = vld [vmem:[#allocation9 + $0x13b0] ss:$24 sps:$4 sm:$0xff]   ;;  %v21139_v17 = vld [vmem:[#allocation9 + $0x13e0] ss:$24 sps:$4 sm:$0xff]  }
 0x629   :  { %v22720_v37 = vadd.f32 %v8675_v32, %v6358_v30  ;;  %v8677_v38 = vpop.f32.mrb[14].mxu0  ;;  %11364 = vmatpush1.bf16.msra.mxu0 %v21109_v13  ;;  %11488 = vmatprep.subr.bf16.mxu1 %v21120_v8  ;;  %v21141_v8 = vld [vmem:[#allocation9 + $0x13e4] ss:$24 sps:$4 sm:$0xff]  }
 0x62a   :  { %v8831_v42 = vmul.f32 0.044715, %v22718_v12  ;;  %v22723_v45 = vadd.f32 %v8677_v38, %v6354_v27  ;;  %v8679_v46 = vpop.f32.mrb[15].mxu0  ;;  %11365 = vmatprep.subr.bf16.mxu0 %v21117_v7  ;;  %v21136_v27 = vld [vmem:[#allocation9 + $0x1028] ss:$24 sps:$4 sm:$0xff]  }
 0x62b   :  { %v8832_v47 = vmul.f32 0.044715, %v22720_v37  ;;  %v22726_v48 = vadd.f32 %v8679_v46, %v6358_v30  ;;  %v21144_v30 = vld [vmem:[#allocation9 + $0x105c] ss:$24 sps:$4 sm:$0xff]   ;;  %v21142_v7 = vld [vmem:[#allocation9 + $0x1058] ss:$24 sps:$4 sm:$0xff]  }
 0x62c   :  { %v8847_v49 = vmul.f32 %v22718_v12, %v8831_v42  ;;  %v8839_v9 = vmul.f32 0.044715, %v22723_v45  ;;  %11489 = vmatpush1.bf16.msra.mxu1 %v21118_v25  ;;  %v21150_v32 = vld [vmem:[#allocation9 + $0x108c] ss:$24 sps:$4 sm:$0xff]   ;;  %v21148_v38 = vld [vmem:[#allocation9 + $0x1088] ss:$24 sps:$4 sm:$0xff]  }
 0x62d   :  { %v8848_v53 = vmul.f32 %v22720_v37, %v8832_v47  ;;  %v8840_v55 = vmul.f32 0.044715, %v22726_v48  ;;  %11366 = vmatpush1.bf16.msra.mxu0 %v21115_v39  ;;  %11490 = vmatprep.subr.bf16.mxu1 %v21126_v31  ;;  %v21147_v25 = vld [vmem:[#allocation9 + $0x1414] ss:$24 sps:$4 sm:$0xff]   ;;  %v21145_v39 = vld [vmem:[#allocation9 + $0x1410] ss:$24 sps:$4 sm:$0xff]  }
 0x62e   :  { %v8863_v44 = vmul.f32 %v22718_v12, %v8847_v49  ;;  %v8855_v11 = vmul.f32 %v22723_v45, %v8839_v9  ;;  %11367 = vmatprep.subr.bf16.mxu0 %v21123_v34  ;;  %v21156_v31 = vld [vmem:[#allocation9 + $0x10bc] ss:$24 sps:$4 sm:$0xff]   ;;  %v21151_v9 = vld [vmem:[#allocation9 + $0x1440] ss:$24 sps:$4 sm:$0xff]  }
 0x62f   :  { %v8864_v16 = vmul.f32 %v22720_v37, %v8848_v53  ;;  %v8856_v63 = vmul.f32 %v22726_v48, %v8840_v55  ;;  %v21153_v46 = vld [vmem:[#allocation9 + $0x1444] ss:$24 sps:$4 sm:$0xff]  }
 0x630   :  { %v8879_v22 = vadd.f32 %v22718_v12, %v8863_v44  ;;  %v8871_v1 = vmul.f32 %v22723_v45, %v8855_v11  ;;  %11491 = vmatpush1.bf16.msra.mxu1 %v21124_v15  ;;  %v21154_v15 = vld [vmem:[#allocation9 + $0x10b8] ss:$24 sps:$4 sm:$0xff]   ;;  %v8823_v44 = vmul.f32 0.5, %v22723_v45 }
 0x631   :  { %v8872_v4 = vmul.f32 %v22726_v48, %v8856_v63  ;;  %11368 = vmatpush1.bf16.msra.mxu0 %v21121_v51  ;;  %11492 = vmatprep.subr.bf16.mxu1 %v21132_v26  ;;  %v8880_v14 = vadd.f32 %v22720_v37, %v8864_v16  ;;  %v21162_v51 = vld [vmem:[#allocation9 + $0x10ec] ss:$24 sps:$4 sm:$0xff]   ;;  %v8815_v26 = vmul.f32 0.5, %v22718_v12  ;;  %v8816_v16 = vmul.f32 0.5, %v22720_v37  ;;  %v21168_v12 = vld [vmem:[#allocation9 + $0x111c] ss:$24 sps:$4 sm:$0xff]  }
 0x632   :  { %v8895_v60 = vmul.f32 0.7978846, %v8879_v22  ;;  %v8887_v6 = vadd.f32 %v22723_v45, %v8871_v1  ;;  %11369 = vmatprep.subr.bf16.mxu0 %v21129_v35  ;;  %v21159_v35 = vld [vmem:[#allocation9 + $0x1474] ss:$24 sps:$4 sm:$0xff]   ;;  %v8824_v63 = vmul.f32 0.5, %v22726_v48 }
 0x633   :  { %v8888_v54 = vadd.f32 %v22726_v48, %v8872_v4  ;;  %v8896_v0 = vmul.f32 0.7978846, %v8880_v14  ;;  %v21157_v14 = vld [vmem:[#allocation9 + $0x1470] ss:$24 sps:$4 sm:$0xff]   ;;  %v21163_v48 = vld [vmem:[#allocation9 + $0x14a0] ss:$24 sps:$4 sm:$0xff]  }
 0x634   :  { %22144 = vtanh.f32 %v8895_v60  ;;  %v8903_v23 = vmul.f32 0.7978846, %v8887_v6  ;;  %11493 = vmatpush1.bf16.msra.mxu1 %v21130_v2  ;;  %v21165_v6 = vld [vmem:[#allocation9 + $0x14a4] ss:$24 sps:$4 sm:$0xff]   ;;  %v21166_v37 = vld [vmem:[#allocation9 + $0x1118] ss:$24 sps:$4 sm:$0xff]  }
 0x635   :  { %11370 = vmatpush1.bf16.msra.mxu0 %v21127_v56  ;;  %11494 = vmatprep.subr.bf16.mxu1 %v21138_v5  ;;  %v8904_v13 = vmul.f32 0.7978846, %v8888_v54  ;;  %22146 = vtanh.f32 %v8896_v0  ;;  %v21160_v5 = vld [vmem:[#allocation9 + $0x10e8] ss:$24 sps:$4 sm:$0xff]   ;;  %v21171_v54 = vld [vmem:[#allocation9 + $0x14d4] ss:$24 sps:$4 sm:$0xff]  }
 0x636   :  { %22148 = vtanh.f32 %v8903_v23  ;;  %11371 = vmatprep.subr.bf16.mxu0 %v21135_v19  ;;  %v21174_v19 = vld [vmem:[#allocation9 + $0x114c] ss:$24 sps:$4 sm:$0xff]   ;;  %v21172_v0 = vld [vmem:[#allocation9 + $0x1148] ss:$24 sps:$4 sm:$0xff]  }
 0x637   :  { %22150 = vtanh.f32 %v8904_v13  ;;  %v21169_v23 = vld [vmem:[#allocation9 + $0x14d0] ss:$24 sps:$4 sm:$0xff]   ;;  %v21180_v13 = vld [vmem:[#allocation9 + $0x11ac] ss:$24 sps:$4 sm:$0xff]  }
 0x638   :  { %11495 = vmatpush1.bf16.msra.mxu1 %v21136_v27  ;;  %v21177_v27 = vld [vmem:[#allocation9 + $0x117c] ss:$24 sps:$4 sm:$0xff]  }
 0x639   :  { %11372 = vmatpush1.bf16.msra.mxu0 %v21133_v29  ;;  %11496 = vmatprep.subr.bf16.mxu1 %v21144_v30  ;;  %v21225_v29 = vld [vmem:[#allocation9 + $0x1504] ss:$24 sps:$4 sm:$0xff]   ;;  %v21175_v30 = vld [vmem:[#allocation9 + $0x1178] ss:$24 sps:$4 sm:$0xff]  }
 0x63a   :  { %11373 = vmatprep.subr.bf16.mxu0 %v21141_v8  ;;  %v21223_v8 = vld [vmem:[#allocation9 + $0x1500] ss:$24 sps:$4 sm:$0xff]  }
 0x63c   :  { %11497 = vmatpush1.bf16.msra.mxu1 %v21142_v7  ;;  %v21231_v7 = vld [vmem:[#allocation9 + $0x1534] ss:$24 sps:$4 sm:$0xff]  }
 0x63d   :  { %11374 = vmatpush1.bf16.msra.mxu0 %v21139_v17  ;;  %11498 = vmatprep.subr.bf16.mxu1 %v21150_v32  ;;  %v21178_v17 = vld [vmem:[#allocation9 + $0x11a8] ss:$24 sps:$4 sm:$0xff]   ;;  %v21183_v32 = vld [vmem:[#allocation9 + $0x11dc] ss:$24 sps:$4 sm:$0xff]  }
 0x63e   :  { %v22145_v42 = vpop.eup %22144  ;;  %11375 = vmatprep.subr.bf16.mxu0 %v21147_v25  ;;  %v21229_v25 = vld [vmem:[#allocation9 + $0x1530] ss:$24 sps:$4 sm:$0xff]  }
 0x63f   :  { %v22147_v34 = vpop.eup %22146  ;;  %v8927_v47 = vadd.f32 1.0, %v22145_v42  ;;  %v21235_v42 = vld [vmem:[#allocation9 + $0x1560] ss:$24 sps:$4 sm:$0xff]  }
 0x640   :  { %v22149_v49 = vpop.eup %22148  ;;  %11499 = vmatpush1.bf16.msra.mxu1 %v21148_v38  ;;  %v8928_v53 = vadd.f32 1.0, %v22147_v34  ;;  %v21237_v38 = vld [vmem:[#allocation9 + $0x1564] ss:$24 sps:$4 sm:$0xff]   ;;  %v21184_v34 = vld [vmem:[#allocation9 + $0x1208] ss:$24 sps:$4 sm:$0xff]  }
 0x641   :  { %v22151_v55 = vpop.eup %22150  ;;  %11376 = vmatpush1.bf16.msra.mxu0 %v21145_v39  ;;  %11500 = vmatprep.subr.bf16.mxu1 %v21156_v31  ;;  %v8935_v11 = vadd.f32 1.0, %v22149_v49  ;;  %v8943_v1 = vmul.f32 %v8927_v47, %v8815_v26  ;;  %v21181_v39 = vld [vmem:[#allocation9 + $0x11d8] ss:$24 sps:$4 sm:$0xff]   ;;  %v21186_v31 = vld [vmem:[#allocation9 + $0x120c] ss:$24 sps:$4 sm:$0xff]  }
 0x642   :  { %11377 = vmatprep.subr.bf16.mxu0 %v21153_v46  ;;  %v8936_v22 = vadd.f32 1.0, %v22151_v55  ;;  %v8944_v4 = vmul.f32 %v8928_v53, %v8816_v16  ;;  %v21243_v46 = vld [vmem:[#allocation9 + $0x1594] ss:$24 sps:$4 sm:$0xff]   ;;  %v21241_v49 = vld [vmem:[#allocation9 + $0x1590] ss:$24 sps:$4 sm:$0xff]  }
 0x643   :  { %v8951_v2 = vmul.f32 %v8935_v11, %v8823_v44  ;;  %v21189_v47 = vld [vmem:[#allocation9 + $0x123c] ss:$24 sps:$4 sm:$0xff]   ;;  %v21192_v53 = vld [vmem:[#allocation9 + $0x126c] ss:$24 sps:$4 sm:$0xff]   ;;  %v21247_v55 = vld [vmem:[#allocation9 + $0x15c0] ss:$24 sps:$4 sm:$0xff]  }
 0x644   :  { %11501 = vmatpush1.bf16.msra.mxu1 %v21154_v15  ;;  %v8952_v56 = vmul.f32 %v8936_v22, %v8824_v63  ;;  %v21187_v15 = vld [vmem:[#allocation9 + $0x1238] ss:$24 sps:$4 sm:$0xff]   ;;  %v21190_v26 = vld [vmem:[#allocation9 + $0x1268] ss:$24 sps:$4 sm:$0xff]   ;;  %v21195_v44 = vld [vmem:[#allocation9 + $0x129c] ss:$24 sps:$4 sm:$0xff]  }
 0x645   :  { %11378 = vmatpush1.bf16.msra.mxu0 %v21151_v9  ;;  %11502 = vmatprep.subr.bf16.mxu1 %v21162_v51  ;;  %v22746_v60 = vpack.c.bf16 %v8951_v2, %v8943_v1  ;;  %v21249_v9 = vld [vmem:[#allocation9 + $0x15c4] ss:$24 sps:$4 sm:$0xff]   ;;  %v21255_v51 = vld [vmem:[#allocation9 + $0x15f4] ss:$24 sps:$4 sm:$0xff]   ;;  %v21253_v11 = vld [vmem:[#allocation9 + $0x15f0] ss:$24 sps:$4 sm:$0xff]  }
 0x646   :  { %11379 = vmatprep.subr.bf16.mxu0 %v21159_v35  ;;  %v22748_v45 = vpack.c.bf16 %v8952_v56, %v8944_v4  ;;  %v21261_v35 = vld [vmem:[#allocation9 + $0x1624] ss:$24 sps:$4 sm:$0xff]   ;;  %v21193_v16 = vld [vmem:[#allocation9 + $0x1298] ss:$24 sps:$4 sm:$0xff]   ;;  %v21267_v1 = vld [vmem:[#allocation9 + $0x1654] ss:$24 sps:$4 sm:$0xff]  }
 0x647   :  { %v21198_v63 = vld [vmem:[#allocation9 + $0x12cc] ss:$24 sps:$4 sm:$0xff]   ;;  %v21259_v22 = vld [vmem:[#allocation9 + $0x1620] ss:$24 sps:$4 sm:$0xff]   ;;  %v21201_v4 = vld [vmem:[#allocation9 + $0x12fc] ss:$24 sps:$4 sm:$0xff]  }
 0x648   :  { %11385 = vmatprep.mubr.bf16.mxu0 %v22748_v45  ;;  %11503 = vmatpush1.bf16.msra.mxu1 %v21160_v5  ;;  %v21196_v2 = vld [vmem:[#allocation9 + $0x12c8] ss:$24 sps:$4 sm:$0xff]   ;;  %v21273_v5 = vld [vmem:[#allocation9 + $0x1684] ss:$24 sps:$4 sm:$0xff]  }
 0x649   :  { %11380 = vmatpush1.bf16.msra.mxu0 %v21157_v14  ;;  %11504 = vmatprep.subr.bf16.mxu1 %v21168_v12  ;;  %v21265_v56 = vld [vmem:[#allocation9 + $0x1650] ss:$24 sps:$4 sm:$0xff]   ;;  %v21204_v12 = vld [vmem:[#allocation9 + $0x132c] ss:$24 sps:$4 sm:$0xff]  }
 0x64a   :  { %11381 = vmatprep.subr.bf16.mxu0 %v21165_v6  ;;  %v21199_v14 = vld [vmem:[#allocation9 + $0x12f8] ss:$24 sps:$4 sm:$0xff]  }
 0x64b   :  { %v21271_v6 = vld [vmem:[#allocation9 + $0x1680] ss:$24 sps:$4 sm:$0xff]  }
 0x64c   :  { %11505 = vmatpush1.bf16.msra.mxu1 %v21166_v37  ;;  %v21279_v37 = vld [vmem:[#allocation9 + $0x16b4] ss:$24 sps:$4 sm:$0xff]  }
 0x64d   :  { %11382 = vmatpush1.bf16.msra.mxu0 %v21163_v48  ;;  %11506 = vmatprep.subr.bf16.mxu1 %v21174_v19  ;;  %v21202_v48 = vld [vmem:[#allocation9 + $0x1328] ss:$24 sps:$4 sm:$0xff]   ;;  %v21207_v19 = vld [vmem:[#allocation9 + $0x135c] ss:$24 sps:$4 sm:$0xff]  }
 0x64e   :  { %11383 = vmatprep.subr.bf16.mxu0 %v21171_v54  ;;  %v21277_v54 = vld [vmem:[#allocation9 + $0x16b0] ss:$24 sps:$4 sm:$0xff]  }
 0x650   :  { %11507 = vmatpush1.bf16.msra.mxu1 %v21172_v0  ;;  %v21285_v0 = vld [vmem:[#allocation9 + $0x16e4] ss:$24 sps:$4 sm:$0xff]  }
 0x651   :  { %11384 = vmatpush1.bf16.msra.mxu0 %v21169_v23  ;;  %11508 = vmatprep.subr.bf16.mxu1 %v21177_v27  ;;  %v21205_v23 = vld [vmem:[#allocation9 + $0x1358] ss:$24 sps:$4 sm:$0xff]   ;;  %v21210_v27 = vld [vmem:[#allocation9 + $0x138c] ss:$24 sps:$4 sm:$0xff]  }
 0x652   :  { %11396 = vmatprep.subr.bf16.mxu0 %v21225_v29  ;;  %v21283_v29 = vld [vmem:[#allocation9 + $0x16e0] ss:$24 sps:$4 sm:$0xff]  }
 0x654   :  { %11386 = vmatmul.mubr.bf16.vlgmr.msra.gmra.mrb[4].mxu0 %v22746_v60  ;;  %11509 = vmatpush1.bf16.msra.mxu1 %v21175_v30  ;;  %v21291_v30 = vld [vmem:[#allocation9 + $0x1714] ss:$24 sps:$4 sm:$0xff]  }
 0x655   :  { %11510 = vmatprep.subr.bf16.mxu1 %v21180_v13  ;;  %11397 = vmatpush1.bf16.msra.mxu0 %v21223_v8  ;;  %v21208_v13 = vld [vmem:[#allocation9 + $0x1388] ss:$24 sps:$4 sm:$0xff]   ;;  %v21213_v8 = vld [vmem:[#allocation9 + $0x13bc] ss:$24 sps:$4 sm:$0xff]  }
 0x656   :  { %11398 = vmatprep.subr.bf16.mxu0 %v21231_v7  ;;  %v21289_v7 = vld [vmem:[#allocation9 + $0x1710] ss:$24 sps:$4 sm:$0xff]  }
 0x658   :  { %11511 = vmatpush1.bf16.msra.mxu1 %v21178_v17  ;;  %v21297_v17 = vld [vmem:[#allocation9 + $0x1744] ss:$24 sps:$4 sm:$0xff]  }
 0x659   :  { %11512 = vmatprep.subr.bf16.mxu1 %v21183_v32  ;;  %11399 = vmatpush1.bf16.msra.mxu0 %v21229_v25  ;;  %v21211_v32 = vld [vmem:[#allocation9 + $0x13b8] ss:$24 sps:$4 sm:$0xff]   ;;  %v21216_v25 = vld [vmem:[#allocation9 + $0x13ec] ss:$24 sps:$4 sm:$0xff]  }
 0x65a   :  { %11400 = vmatprep.subr.bf16.mxu0 %v21237_v38  ;;  %v21295_v38 = vld [vmem:[#allocation9 + $0x1740] ss:$24 sps:$4 sm:$0xff]  }
 0x65c   :  { %11513 = vmatpush1.bf16.msra.mxu1 %v21181_v39  ;;  %v21303_v39 = vld [vmem:[#allocation9 + $0x1774] ss:$24 sps:$4 sm:$0xff]  }
 0x65d   :  { %11525 = vmatprep.subr.bf16.mxu1 %v21186_v31  ;;  %11401 = vmatpush1.bf16.msra.mxu0 %v21235_v42  ;;  %v21214_v31 = vld [vmem:[#allocation9 + $0x13e8] ss:$24 sps:$4 sm:$0xff]   ;;  %v21219_v42 = vld [vmem:[#allocation9 + $0x141c] ss:$24 sps:$4 sm:$0xff]  }
 0x65e   :  { %11402 = vmatprep.subr.bf16.mxu0 %v21243_v46  ;;  %v21301_v46 = vld [vmem:[#allocation9 + $0x1770] ss:$24 sps:$4 sm:$0xff]  }
 0x65f   :  { %11515 = vmatmul.mubr.bf16.vlgmr.msra.gmra.mrb[12].mxu1 %v22706_v58 }
 0x660   :  { %11526 = vmatpush1.bf16.msra.mxu1 %v21184_v34  ;;  %11557 = vmatprep.mubr.bf16.mxu1 %v22748_v45  ;;  %v21309_v34 = vld [vmem:[#allocation9 + $0x17a4] ss:$24 sps:$4 sm:$0xff]  }
 0x661   :  { %11527 = vmatprep.subr.bf16.mxu1 %v21189_v47  ;;  %11403 = vmatpush1.bf16.msra.mxu0 %v21241_v49  ;;  %v21217_v47 = vld [vmem:[#allocation9 + $0x1418] ss:$24 sps:$4 sm:$0xff]   ;;  %v21222_v49 = vld [vmem:[#allocation9 + $0x144c] ss:$24 sps:$4 sm:$0xff]  }
 0x662   :  { %11404 = vmatprep.subr.bf16.mxu0 %v21249_v9  ;;  %v21307_v9 = vld [vmem:[#allocation9 + $0x17a0] ss:$24 sps:$4 sm:$0xff]  }
 0x664   :  { %11528 = vmatpush1.bf16.msra.mxu1 %v21187_v15  ;;  %v21315_v15 = vld [vmem:[#allocation9 + $0x17d4] ss:$24 sps:$4 sm:$0xff]  }
 0x665   :  { %11529 = vmatprep.subr.bf16.mxu1 %v21192_v53  ;;  %11405 = vmatpush1.bf16.msra.mxu0 %v21247_v55  ;;  %v21220_v53 = vld [vmem:[#allocation9 + $0x1448] ss:$24 sps:$4 sm:$0xff]   ;;  %v21228_v55 = vld [vmem:[#allocation9 + $0x147c] ss:$24 sps:$4 sm:$0xff]  }
 0x666   :  { %11406 = vmatprep.subr.bf16.mxu0 %v21255_v51  ;;  %v21313_v51 = vld [vmem:[#allocation9 + $0x17d0] ss:$24 sps:$4 sm:$0xff]  }
 0x668   :  { %11530 = vmatpush1.bf16.msra.mxu1 %v21190_v26  ;;  %v21324_v26 = vld [vmem:[#allocation9 + $0xc14] ss:$24 sps:$4 sm:$0xff]  }
 0x669   :  { %11531 = vmatprep.subr.bf16.mxu1 %v21195_v44  ;;  %11407 = vmatpush1.bf16.msra.mxu0 %v21253_v11  ;;  %v21226_v44 = vld [vmem:[#allocation9 + $0x1478] ss:$24 sps:$4 sm:$0xff]   ;;  %v21234_v11 = vld [vmem:[#allocation9 + $0x14ac] ss:$24 sps:$4 sm:$0xff]  }
 0x66a   :  { %11408 = vmatprep.subr.bf16.mxu0 %v21261_v35  ;;  %v21232_v35 = vld [vmem:[#allocation9 + $0x14a8] ss:$24 sps:$4 sm:$0xff]  }
 0x66c   :  { %11532 = vmatpush1.bf16.msra.mxu1 %v21193_v16  ;;  %v21240_v16 = vld [vmem:[#allocation9 + $0x14dc] ss:$24 sps:$4 sm:$0xff]  }
 0x66d   :  { %11533 = vmatprep.subr.bf16.mxu1 %v21198_v63  ;;  %11409 = vmatpush1.bf16.msra.mxu0 %v21259_v22  ;;  %v21238_v63 = vld [vmem:[#allocation9 + $0x14d8] ss:$24 sps:$4 sm:$0xff]   ;;  %v21246_v22 = vld [vmem:[#allocation9 + $0x150c] ss:$24 sps:$4 sm:$0xff]  }
 0x66e   :  { %11410 = vmatprep.subr.bf16.mxu0 %v21267_v1  ;;  %v21244_v1 = vld [vmem:[#allocation9 + $0x1508] ss:$24 sps:$4 sm:$0xff]  }
 0x670   :  { %11534 = vmatpush1.bf16.msra.mxu1 %v21196_v2  ;;  %v21252_v2 = vld [vmem:[#allocation9 + $0x153c] ss:$24 sps:$4 sm:$0xff]  }
 0x671   :  { %11535 = vmatprep.subr.bf16.mxu1 %v21201_v4  ;;  %11411 = vmatpush1.bf16.msra.mxu0 %v21265_v56  ;;  %v21250_v4 = vld [vmem:[#allocation9 + $0x1538] ss:$24 sps:$4 sm:$0xff]   ;;  %v21258_v56 = vld [vmem:[#allocation9 + $0x156c] ss:$24 sps:$4 sm:$0xff]  }
 0x672   :  { %11412 = vmatprep.subr.bf16.mxu0 %v21273_v5  ;;  %v21256_v5 = vld [vmem:[#allocation9 + $0x1568] ss:$24 sps:$4 sm:$0xff]  }
 0x674   :  { %11536 = vmatpush1.bf16.msra.mxu1 %v21199_v14  ;;  %v21264_v14 = vld [vmem:[#allocation9 + $0x159c] ss:$24 sps:$4 sm:$0xff]  }
 0x675   :  { %11537 = vmatprep.subr.bf16.mxu1 %v21204_v12  ;;  %11413 = vmatpush1.bf16.msra.mxu0 %v21271_v6  ;;  %v21262_v12 = vld [vmem:[#allocation9 + $0x1598] ss:$24 sps:$4 sm:$0xff]   ;;  %v21270_v6 = vld [vmem:[#allocation9 + $0x15cc] ss:$24 sps:$4 sm:$0xff]  }
 0x676   :  { %11414 = vmatprep.subr.bf16.mxu0 %v21279_v37  ;;  %v21268_v37 = vld [vmem:[#allocation9 + $0x15c8] ss:$24 sps:$4 sm:$0xff]  }
 0x678   :  { %11538 = vmatpush1.bf16.msra.mxu1 %v21202_v48  ;;  %v21276_v48 = vld [vmem:[#allocation9 + $0x15fc] ss:$24 sps:$4 sm:$0xff]  }
 0x679   :  { %11539 = vmatprep.subr.bf16.mxu1 %v21207_v19  ;;  %11415 = vmatpush1.bf16.msra.mxu0 %v21277_v54  ;;  %v6362_v19 = vrot.slane %v22693_v18, %v22600_v40  ;;  %v6366_v54 = vrot.slane %v22693_v18, %v22603_v43 }
 0x67a   :  { %11416 = vmatprep.subr.bf16.mxu0 %v21285_v0  ;;  %v21274_v0 = vld [vmem:[#allocation9 + $0x15f8] ss:$24 sps:$4 sm:$0xff]  }
 0x67c   :  { %11540 = vmatpush1.bf16.msra.mxu1 %v21205_v23  ;;  %v21282_v23 = vld [vmem:[#allocation9 + $0x162c] ss:$24 sps:$4 sm:$0xff]  }
 0x67d   :  { %11541 = vmatprep.subr.bf16.mxu1 %v21210_v27  ;;  %11417 = vmatpush1.bf16.msra.mxu0 %v21283_v29 }
 0x67e   :  { %11418 = vmatprep.subr.bf16.mxu0 %v21291_v30 }
 0x680   :  { %11542 = vmatpush1.bf16.msra.mxu1 %v21208_v13 }
 0x681   :  { %11543 = vmatprep.subr.bf16.mxu1 %v21213_v8  ;;  %11419 = vmatpush1.bf16.msra.mxu0 %v21289_v7  ;;  %v21280_v7 = vld [vmem:[#allocation9 + $0x1628] ss:$24 sps:$4 sm:$0xff]  }
 0x682   :  { %11420 = vmatprep.subr.bf16.mxu0 %v21297_v17 }
 0x684   :  { %11544 = vmatpush1.bf16.msra.mxu1 %v21211_v32 }
 0x685   :  { %11545 = vmatprep.subr.bf16.mxu1 %v21216_v25  ;;  %11421 = vmatpush1.bf16.msra.mxu0 %v21295_v38  ;;  %v21288_v38 = vld [vmem:[#allocation9 + $0x165c] ss:$24 sps:$4 sm:$0xff]  }
 0x686   :  { %11422 = vmatprep.subr.bf16.mxu0 %v21303_v39 }
 0x688   :  { %11546 = vmatpush1.bf16.msra.mxu1 %v21214_v31 }
 0x689   :  { %11547 = vmatprep.subr.bf16.mxu1 %v21219_v42  ;;  %11423 = vmatpush1.bf16.msra.mxu0 %v21301_v46 }
 0x68a   :  { %11424 = vmatprep.subr.bf16.mxu0 %v21309_v34 }
 0x68c   :  { %11548 = vmatpush1.bf16.msra.mxu1 %v21217_v47  ;;  %v21286_v47 = vld [vmem:[#allocation9 + $0x1658] ss:$24 sps:$4 sm:$0xff]  }
 0x68d   :  { %11549 = vmatprep.subr.bf16.mxu1 %v21222_v49  ;;  %11425 = vmatpush1.bf16.msra.mxu0 %v21307_v9 }
 0x68e   :  { %11426 = vmatprep.subr.bf16.mxu0 %v21315_v15  ;;  %v21294_v15 = vld [vmem:[#allocation9 + $0x168c] ss:$24 sps:$4 sm:$0xff]  }
 0x690   :  { %11550 = vmatpush1.bf16.msra.mxu1 %v21220_v53 }
 0x691   :  { %11551 = vmatprep.subr.bf16.mxu1 %v21228_v55  ;;  %11427 = vmatpush1.bf16.msra.mxu0 %v21313_v51 }
 0x692   :  { %11611 = vmatprep.subr.bf16.mxu0 %v21324_v26 }
 0x694   :  { %11552 = vmatpush1.bf16.msra.mxu1 %v21226_v44 }
 0x695   :  { %11553 = vmatprep.subr.bf16.mxu1 %v21234_v11  ;;  %v21292_v11 = vld [vmem:[#allocation9 + $0x1688] ss:$24 sps:$4 sm:$0xff]  }
 0x698   :  { %11554 = vmatpush1.bf16.msra.mxu1 %v21232_v35 }
 0x699   :  { %11555 = vmatprep.subr.bf16.mxu1 %v21240_v16 }
 0x69c   :  { %11556 = vmatpush1.bf16.msra.mxu1 %v21238_v63 }
 0x69d   :  { %11568 = vmatprep.subr.bf16.mxu1 %v21246_v22  ;;  %v21300_v22 = vld [vmem:[#allocation9 + $0x16bc] ss:$24 sps:$4 sm:$0xff]  }
 0x69f   :  { %11558 = vmatmul.mubr.bf16.vlgmr.msra.gmra.mrb[12].mxu1 %v22746_v60 }
 0x6a0   :  { %11569 = vmatpush1.bf16.msra.mxu1 %v21244_v1 }
 0x6a1   :  { %11570 = vmatprep.subr.bf16.mxu1 %v21252_v2 }
 0x6a4   :  { %11571 = vmatpush1.bf16.msra.mxu1 %v21250_v4 }
 0x6a5   :  { %11572 = vmatprep.subr.bf16.mxu1 %v21258_v56  ;;  %v21298_v56 = vld [vmem:[#allocation9 + $0x16b8] ss:$24 sps:$4 sm:$0xff]  }
 0x6a8   :  { %11573 = vmatpush1.bf16.msra.mxu1 %v21256_v5 }
 0x6a9   :  { %11574 = vmatprep.subr.bf16.mxu1 %v21264_v14  ;;  %v21306_v14 = vld [vmem:[#allocation9 + $0x16ec] ss:$24 sps:$4 sm:$0xff]  }
 0x6ac   :  { %11575 = vmatpush1.bf16.msra.mxu1 %v21262_v12  ;;  %v21304_v12 = vld [vmem:[#allocation9 + $0x16e8] ss:$24 sps:$4 sm:$0xff]  }
 0x6ad   :  { %11576 = vmatprep.subr.bf16.mxu1 %v21270_v6  ;;  %v21312_v6 = vld [vmem:[#allocation9 + $0x171c] ss:$24 sps:$4 sm:$0xff]  }
 0x6b0   :  { %11577 = vmatpush1.bf16.msra.mxu1 %v21268_v37  ;;  %v21310_v37 = vld [vmem:[#allocation9 + $0x1718] ss:$24 sps:$4 sm:$0xff]  }
 0x6b1   :  { %11578 = vmatprep.subr.bf16.mxu1 %v21276_v48 }
 0x6b2   :  { %v8802_v27 = vpop.f32.mrb[24].mxu1 }
 0x6b3   :  { %v20108_v29 = vadd.f32 %v8802_v27, %v6362_v19  ;;  %v8804_v30 = vpop.f32.mrb[25].mxu1 }
 0x6b4   :  { %v22759_v13 = vadd.f32 %v8804_v30, %v6366_v54  ;;  %v8806_v8 = vpop.f32.mrb[26].mxu1  ;;  %11579 = vmatpush1.bf16.msra.mxu1 %v21274_v0 }
 0x6b5   :  { %v8833_v17 = vmul.f32 0.044715, %v20108_v29  ;;  %v20110_v32 = vadd.f32 %v8806_v8, %v6362_v19  ;;  %v8808_v25 = vpop.f32.mrb[27].mxu1  ;;  %11580 = vmatprep.subr.bf16.mxu1 %v21282_v23  ;;  %v21318_v19 = vld [vmem:[#allocation9 + $0x174c] ss:$24 sps:$4 sm:$0xff]  }
 0x6b6   :  { %v8834_v39 = vmul.f32 0.044715, %v22759_v13  ;;  %v20111_v31 = vadd.f32 %v8808_v25, %v6366_v54  ;;  %v21316_v8 = vld [vmem:[#allocation9 + $0x1748] ss:$24 sps:$4 sm:$0xff]  }
 0x6b7   :  { %v8849_v18 = vmul.f32 %v20108_v29, %v8833_v17  ;;  %v8841_v42 = vmul.f32 0.044715, %v20110_v32  ;;  %v8825_v17 = vmul.f32 0.5, %v20110_v32 }
 0x6b8   :  { %v8850_v46 = vmul.f32 %v22759_v13, %v8834_v39  ;;  %v8842_v34 = vmul.f32 0.044715, %v20111_v31  ;;  %11581 = vmatpush1.bf16.msra.mxu1 %v21280_v7  ;;  %v8817_v7 = vmul.f32 0.5, %v20108_v29  ;;  %v8826_v39 = vmul.f32 0.5, %v20111_v31 }
 0x6b9   :  { %v8865_v49 = vmul.f32 %v20108_v29, %v8849_v18  ;;  %v8857_v9 = vmul.f32 %v20110_v32, %v8841_v42  ;;  %11582 = vmatprep.subr.bf16.mxu1 %v21288_v38  ;;  %v8818_v38 = vmul.f32 0.5, %v22759_v13  ;;  %v21321_v42 = vld [vmem:[#allocation9 + $0x177c] ss:$24 sps:$4 sm:$0xff]  }
 0x6ba   :  { %v8866_v53 = vmul.f32 %v22759_v13, %v8850_v46  ;;  %v8858_v55 = vmul.f32 %v20111_v31, %v8842_v34 }
 0x6bb   :  { %v8881_v51 = vadd.f32 %v20108_v29, %v8865_v49  ;;  %v8873_v26 = vmul.f32 %v20110_v32, %v8857_v9  ;;  %v21319_v9 = vld [vmem:[#allocation9 + $0x1778] ss:$24 sps:$4 sm:$0xff]  }
 0x6bc   :  { %v8874_v44 = vmul.f32 %v20111_v31, %v8858_v55  ;;  %11583 = vmatpush1.bf16.msra.mxu1 %v21286_v47  ;;  %v8882_v35 = vadd.f32 %v22759_v13, %v8866_v53  ;;  %v21322_v29 = vld [vmem:[#allocation9 + $0xc10] ss:$24 sps:$4 sm:$0xff]   ;;  %v21330_v55 = vld [vmem:[#allocation9 + $0xc44] ss:$24 sps:$4 sm:$0xff]  }
 0x6bd   :  { %v8897_v16 = vmul.f32 0.7978846, %v8881_v51  ;;  %v8889_v63 = vadd.f32 %v20110_v32, %v8873_v26  ;;  %11584 = vmatprep.subr.bf16.mxu1 %v21294_v15  ;;  %v21327_v32 = vld [vmem:[#allocation9 + $0x17ac] ss:$24 sps:$4 sm:$0xff]   ;;  %v21325_v13 = vld [vmem:[#allocation9 + $0x17a8] ss:$24 sps:$4 sm:$0xff]  }
 0x6be   :  { %v8890_v1 = vadd.f32 %v20111_v31, %v8874_v44  ;;  %v8898_v2 = vmul.f32 0.7978846, %v8882_v35  ;;  %v21328_v31 = vld [vmem:[#allocation9 + $0xc40] ss:$24 sps:$4 sm:$0xff]   ;;  %v21333_v51 = vld [vmem:[#allocation9 + $0x17dc] ss:$24 sps:$4 sm:$0xff]  }
 0x6bf   :  { %22152 = vtanh.f32 %v8897_v16  ;;  %v8905_v4 = vmul.f32 0.7978846, %v8889_v63  ;;  %v21336_v26 = vld [vmem:[#allocation9 + $0xc74] ss:$24 sps:$4 sm:$0xff]   ;;  %v21331_v35 = vld [vmem:[#allocation9 + $0x17d8] ss:$24 sps:$4 sm:$0xff]  }
 0x6c0   :  { %11585 = vmatpush1.bf16.msra.mxu1 %v21292_v11  ;;  %v8906_v5 = vmul.f32 0.7978846, %v8890_v1  ;;  %22154 = vtanh.f32 %v8898_v2  ;;  %v11819_v44 = vld [vmem:[#allocation6 + $0x40] sm:$0xff] }
 0x6c1   :  { %22156 = vtanh.f32 %v8905_v4  ;;  %11586 = vmatprep.subr.bf16.mxu1 %v21300_v22  ;;  %v11823_v11 = vld [vmem:[#allocation6 + $0xa0] sm:$0xff]  ;;  %v21339_v22 = vld [vmem:[#allocation9 + $0xca4] ss:$24 sps:$4 sm:$0xff]  }
 0x6c2   :  { %22158 = vtanh.f32 %v8906_v5  ;;  %v21334_v16 = vld [vmem:[#allocation9 + $0xc70] ss:$24 sps:$4 sm:$0xff]   ;;  %v19313_v63 = vcombine.high %v11819_v44, %v11823_v11  ;;  %v19312_v4 = vcombine.low %v11819_v44, %v11823_v11  ;;  %v21342_v5 = vld [vmem:[#allocation9 + $0xcd4] ss:$24 sps:$4 sm:$0xff]  }
 0x6c3   :  { %v11827_v1 = vld [vmem:[#allocation6 + $0x100] sm:$0xff] }
 0x6c4   :  { %11587 = vmatpush1.bf16.msra.mxu1 %v21298_v56  ;;  %v11831_v2 = vld [vmem:[#allocation6 + $0x160] sm:$0xff] }
 0x6c5   :  { %11588 = vmatprep.subr.bf16.mxu1 %v21306_v14  ;;  %v19321_v56 = vcombine.high %v11827_v1, %v11831_v2  ;;  %v11835_v14 = vld [vmem:[#allocation6 + $0x1c0] sm:$0xff] }
 0x6c6   :  { %v11879_v44 = vld [vmem:[#allocation6 + $0x5e0] sm:$0xff] }
 0x6c8   :  { %11589 = vmatpush1.bf16.msra.mxu1 %v21304_v12  ;;  %v11839_v12 = vld [vmem:[#allocation6 + $0x220] sm:$0xff] }
 0x6c9   :  { %v22153_v48 = vpop.eup %22152  ;;  %11590 = vmatprep.subr.bf16.mxu1 %v21312_v6  ;;  %v19320_v6 = vcombine.low %v11827_v1, %v11831_v2  ;;  %v11887_v1 = vld [vmem:[#allocation6 + $0x6a0] sm:$0xff] }
 0x6ca   :  { %v22155_v54 = vpop.eup %22154  ;;  %v8929_v0 = vadd.f32 1.0, %v22153_v48  ;;  %v19329_v48 = vcombine.high %v11835_v14, %v11839_v12 }
 0x6cb   :  { %v22157_v23 = vpop.eup %22156  ;;  %v8930_v27 = vadd.f32 1.0, %v22155_v54  ;;  %v11843_v54 = vld [vmem:[#allocation6 + $0x280] sm:$0xff] }
 0x6cc   :  { %v22159_v30 = vpop.eup %22158  ;;  %11591 = vmatpush1.bf16.msra.mxu1 %v21310_v37  ;;  %v8937_v25 = vadd.f32 1.0, %v22157_v23  ;;  %v8945_v46 = vmul.f32 %v8929_v0, %v8817_v7  ;;  %v21340_v37 = vld [vmem:[#allocation9 + $0xcd0] ss:$24 sps:$4 sm:$0xff]   ;;  %v19328_v23 = vcombine.low %v11835_v14, %v11839_v12 }
 0x6cd   :  { %11592 = vmatprep.subr.bf16.mxu1 %v21318_v19  ;;  %v8938_v18 = vadd.f32 1.0, %v22159_v30  ;;  %v8946_v47 = vmul.f32 %v8930_v27, %v8818_v38  ;;  %v21345_v19 = vld [vmem:[#allocation9 + $0xd04] ss:$24 sps:$4 sm:$0xff]   ;;  %v11847_v0 = vld [vmem:[#allocation6 + $0x2e0] sm:$0xff]  ;;  %v21343_v27 = vld [vmem:[#allocation9 + $0xd00] ss:$24 sps:$4 sm:$0xff]  }
 0x6ce   :  { %v8953_v34 = vmul.f32 %v8937_v25, %v8825_v17  ;;  %v19337_v30 = vcombine.high %v11843_v54, %v11847_v0  ;;  %v11851_v7 = vld [vmem:[#allocation6 + $0x340] sm:$0xff]  ;;  %v19336_v25 = vcombine.low %v11843_v54, %v11847_v0 }
 0x6cf   :  { %v8954_v49 = vmul.f32 %v8938_v18, %v8826_v39  ;;  %v11855_v17 = vld [vmem:[#allocation6 + $0x3a0] sm:$0xff]  ;;  %v21351_v18 = vld [vmem:[#allocation9 + $0xd64] ss:$24 sps:$4 sm:$0xff]  }
 0x6d0   :  { %11593 = vmatpush1.bf16.msra.mxu1 %v21316_v8  ;;  %v22766_v15 = vpack.c.bf16 %v8953_v34, %v8945_v46  ;;  %v21348_v8 = vld [vmem:[#allocation9 + $0xd34] ss:$24 sps:$4 sm:$0xff]   ;;  %v21346_v38 = vld [vmem:[#allocation9 + $0xd30] ss:$24 sps:$4 sm:$0xff]   ;;  %v19345_v39 = vcombine.high %v11851_v7, %v11855_v17  ;;  %v19344_v34 = vcombine.low %v11851_v7, %v11855_v17 }
 0x6d1   :  { %v22768_v53 = vpack.c.bf16 %v8954_v49, %v8946_v47  ;;  %11594 = vmatprep.subr.bf16.mxu1 %v21321_v42  ;;  %v11859_v42 = vld [vmem:[#allocation6 + $0x400] sm:$0xff]  ;;  %v21349_v47 = vld [vmem:[#allocation9 + $0xd60] ss:$24 sps:$4 sm:$0xff]  }
 0x6d2   :  { %v11863_v46 = vld [vmem:[#allocation6 + $0x460] sm:$0xff] }
 0x6d3   :  { %11428 = vmatprep.mubr.bf16.mxu0 %v22768_v53  ;;  %11600 = vmatprep.mubr.bf16.mxu1 %v22768_v53  ;;  %v19353_v49 = vcombine.high %v11859_v42, %v11863_v46  ;;  %v11895_v14 = vld [vmem:[#allocation6 + $0x760] sm:$0xff] }
 0x6d4   :  { %11429 = vmatmul.mubr.bf16.vlgmr.msra.gmra.mrb[4].mxu0 %v22766_v15  ;;  %11595 = vmatpush1.bf16.msra.mxu1 %v21319_v9  ;;  %v21354_v9 = vld [vmem:[#allocation9 + $0xd94] ss:$24 sps:$4 sm:$0xff]  }
 0x6d5   :  { %11612 = vmatpush1.bf16.msra.mxu0 %v21322_v29  ;;  %11643 = vmatprep.mubr.bf16.mxu0 %v22682_v52  ;;  %v21337_v52 = vld [vmem:[#allocation9 + $0xca0] ss:$24 sps:$4 sm:$0xff]   ;;  %v11867_v29 = vld [vmem:[#allocation6 + $0x4c0] sm:$0xff] }
 0x6d6   :  { %11596 = vmatprep.subr.bf16.mxu1 %v21327_v32  ;;  %11613 = vmatprep.subr.bf16.mxu0 %v21330_v55  ;;  %v11871_v32 = vld [vmem:[#allocation6 + $0x520] sm:$0xff]  ;;  %v19352_v55 = vcombine.low %v11859_v42, %v11863_v46 }
 0x6d7   :  { %v19360_v11 = vcombine.low %v11867_v29, %v11871_v32  ;;  %v11903_v54 = vld [vmem:[#allocation6 + $0x820] sm:$0xff] }
 0x6d8   :  { %11597 = vmatpush1.bf16.msra.mxu1 %v21325_v13  ;;  %v21352_v13 = vld [vmem:[#allocation9 + $0xd90] ss:$24 sps:$4 sm:$0xff]  }
 0x6d9   :  { %11614 = vmatpush1.bf16.msra.mxu0 %v21328_v31  ;;  %11598 = vmatprep.subr.bf16.mxu1 %v21333_v51  ;;  %v19361_v31 = vcombine.high %v11867_v29, %v11871_v32  ;;  %v21357_v51 = vld [vmem:[#allocation9 + $0xdc4] ss:$24 sps:$4 sm:$0xff]   ;;  %v11911_v7 = vld [vmem:[#allocation6 + $0x8e0] sm:$0xff] }
 0x6da   :  { %11615 = vmatprep.subr.bf16.mxu0 %v21336_v26  ;;  %v11875_v26 = vld [vmem:[#allocation6 + $0x580] sm:$0xff] }
 0x6db   :  { %v19368_v2 = vcombine.low %v11875_v26, %v11879_v44  ;;  %v11919_v42 = vld [vmem:[#allocation6 + $0x9a0] sm:$0xff] }
 0x6dc   :  { %11599 = vmatpush1.bf16.msra.mxu1 %v21331_v35  ;;  %v21355_v35 = vld [vmem:[#allocation9 + $0xdc0] ss:$24 sps:$4 sm:$0xff]   ;;  %v11927_v29 = vld [vmem:[#allocation6 + $0xa60] sm:$0xff] }
 0x6dd   :  { %11616 = vmatpush1.bf16.msra.mxu0 %v21334_v16  ;;  %14165 = vmatprep.subr.bf16.mxu1 %v19313_v63  ;;  %v19369_v16 = vcombine.high %v11875_v26, %v11879_v44  ;;  %v21360_v63 = vld [vmem:[#allocation9 + $0xdf4] ss:$24 sps:$4 sm:$0xff]  }
 0x6de   :  { %11617 = vmatprep.subr.bf16.mxu0 %v21339_v22  ;;  %v11883_v22 = vld [vmem:[#allocation6 + $0x640] sm:$0xff] }
 0x6df   :  { %11601 = vmatmul.mubr.bf16.vlgmr.msra.gmra.mrb[12].mxu1 %v22766_v15  ;;  %v19376_v12 = vcombine.low %v11883_v22, %v11887_v1  ;;  %v11935_v26 = vld [vmem:[#allocation6 + $0xb20] sm:$0xff] }
 0x6e0   :  { %14166 = vmatpush1.bf16.msra.mxu1 %v19312_v4  ;;  %14197 = vmatprep.mubr.bf16.mxu1 %v22440_v20  ;;  %v21358_v4 = vld [vmem:[#allocation9 + $0xdf0] ss:$24 sps:$4 sm:$0xff]  }
 0x6e1   :  { %11618 = vmatpush1.bf16.msra.mxu0 %v21337_v52  ;;  %14167 = vmatprep.subr.bf16.mxu1 %v19321_v56  ;;  %v19377_v52 = vcombine.high %v11883_v22, %v11887_v1  ;;  %v21363_v56 = vld [vmem:[#allocation9 + $0xe24] ss:$24 sps:$4 sm:$0xff]   ;;  %v11943_v22 = vld [vmem:[#allocation6 + $0xbe0] sm:$0xff] }
 0x6e2   :  { %11619 = vmatprep.subr.bf16.mxu0 %v21342_v5  ;;  %v11891_v5 = vld [vmem:[#allocation6 + $0x700] sm:$0xff] }
 0x6e3   :  { %v19384_v0 = vcombine.low %v11891_v5, %v11895_v14 }
 0x6e4   :  { %14168 = vmatpush1.bf16.msra.mxu1 %v19320_v6  ;;  %v21361_v6 = vld [vmem:[#allocation9 + $0xe20] ss:$24 sps:$4 sm:$0xff]  }
 0x6e5   :  { %11620 = vmatpush1.bf16.msra.mxu0 %v21340_v37  ;;  %14169 = vmatprep.subr.bf16.mxu1 %v19329_v48  ;;  %v19385_v37 = vcombine.high %v11891_v5, %v11895_v14  ;;  %v21366_v48 = vld [vmem:[#allocation9 + $0xe54] ss:$24 sps:$4 sm:$0xff]  }
 0x6e6   :  { %11621 = vmatprep.subr.bf16.mxu0 %v21345_v19  ;;  %v11899_v19 = vld [vmem:[#allocation6 + $0x7c0] sm:$0xff] }
 0x6e7   :  { %v19392_v17 = vcombine.low %v11899_v19, %v11903_v54  ;;  %v11951_v5 = vld [vmem:[#allocation6 + $0xca0] sm:$0xff] }
 0x6e8   :  { %14170 = vmatpush1.bf16.msra.mxu1 %v19328_v23  ;;  %v21364_v23 = vld [vmem:[#allocation9 + $0xe50] ss:$24 sps:$4 sm:$0xff]  }
 0x6e9   :  { %11622 = vmatpush1.bf16.msra.mxu0 %v21343_v27  ;;  %14171 = vmatprep.subr.bf16.mxu1 %v19337_v30  ;;  %v19393_v27 = vcombine.high %v11899_v19, %v11903_v54  ;;  %v21369_v30 = vld [vmem:[#allocation9 + $0xe84] ss:$24 sps:$4 sm:$0xff]  }
 0x6ea   :  { %11623 = vmatprep.subr.bf16.mxu0 %v21348_v8  ;;  %v11907_v8 = vld [vmem:[#allocation6 + $0x880] sm:$0xff] }
 0x6eb   :  { %v19400_v46 = vcombine.low %v11907_v8, %v11911_v7 }
 0x6ec   :  { %14172 = vmatpush1.bf16.msra.mxu1 %v19336_v25  ;;  %v21367_v25 = vld [vmem:[#allocation9 + $0xe80] ss:$24 sps:$4 sm:$0xff]  }
 0x6ed   :  { %11624 = vmatpush1.bf16.msra.mxu0 %v21346_v38  ;;  %14173 = vmatprep.subr.bf16.mxu1 %v19345_v39  ;;  %v19401_v38 = vcombine.high %v11907_v8, %v11911_v7  ;;  %v21372_v39 = vld [vmem:[#allocation9 + $0xeb4] ss:$24 sps:$4 sm:$0xff]   ;;  %v21388_v8 = vld [vmem:[#allocation9 + $0xfd0] ss:$24 sps:$4 sm:$0xff]  }
 0x6ee   :  { %11625 = vmatprep.subr.bf16.mxu0 %v21351_v18  ;;  %v11915_v18 = vld [vmem:[#allocation6 + $0x940] sm:$0xff] }
 0x6ef   :  { %v19408_v32 = vcombine.low %v11915_v18, %v11919_v42 }
 0x6f0   :  { %14174 = vmatpush1.bf16.msra.mxu1 %v19344_v34  ;;  %v21370_v34 = vld [vmem:[#allocation9 + $0xeb0] ss:$24 sps:$4 sm:$0xff]  }
 0x6f1   :  { %11626 = vmatpush1.bf16.msra.mxu0 %v21349_v47  ;;  %14175 = vmatprep.subr.bf16.mxu1 %v19353_v49  ;;  %v19409_v47 = vcombine.high %v11915_v18, %v11919_v42  ;;  %v21375_v49 = vld [vmem:[#allocation9 + $0xee4] ss:$24 sps:$4 sm:$0xff]   ;;  %v21391_v18 = vld [vmem:[#allocation9 + $0x1000] ss:$24 sps:$4 sm:$0xff]  }
 0x6f2   :  { %11627 = vmatprep.subr.bf16.mxu0 %v21354_v9  ;;  %v11923_v9 = vld [vmem:[#allocation6 + $0xa00] sm:$0xff] }
 0x6f3   :  { %v19416_v44 = vcombine.low %v11923_v9, %v11927_v29 }
 0x6f4   :  { %14176 = vmatpush1.bf16.msra.mxu1 %v19352_v55  ;;  %v21373_v55 = vld [vmem:[#allocation9 + $0xee0] ss:$24 sps:$4 sm:$0xff]  }
 0x6f5   :  { %11628 = vmatpush1.bf16.msra.mxu0 %v21352_v13  ;;  %14177 = vmatprep.subr.bf16.mxu1 %v19361_v31  ;;  %v19417_v13 = vcombine.high %v11923_v9, %v11927_v29  ;;  %v21378_v31 = vld [vmem:[#allocation9 + $0xf14] ss:$24 sps:$4 sm:$0xff]   ;;  %v21394_v9 = vld [vmem:[#allocation9 + $0x1030] ss:$24 sps:$4 sm:$0xff]  }
 0x6f6   :  { %11629 = vmatprep.subr.bf16.mxu0 %v21357_v51  ;;  %v11931_v51 = vld [vmem:[#allocation6 + $0xac0] sm:$0xff] }
 0x6f7   :  { %v19424_v1 = vcombine.low %v11931_v51, %v11935_v26 }
 0x6f8   :  { %14178 = vmatpush1.bf16.msra.mxu1 %v19360_v11  ;;  %v21376_v11 = vld [vmem:[#allocation9 + $0xf10] ss:$24 sps:$4 sm:$0xff]  }
 0x6f9   :  { %11630 = vmatpush1.bf16.msra.mxu0 %v21355_v35  ;;  %14179 = vmatprep.subr.bf16.mxu1 %v19369_v16  ;;  %v21381_v35 = vld [vmem:[#allocation9 + $0xf44] ss:$24 sps:$4 sm:$0xff]   ;;  %v19425_v16 = vcombine.high %v11931_v51, %v11935_v26  ;;  %v21397_v51 = vld [vmem:[#allocation9 + $0x1060] ss:$24 sps:$4 sm:$0xff]  }
 0x6fa   :  { %11631 = vmatprep.subr.bf16.mxu0 %v21360_v63  ;;  %v11939_v63 = vld [vmem:[#allocation6 + $0xb80] sm:$0xff] }
 0x6fb   :  { %v19432_v14 = vcombine.low %v11939_v63, %v11943_v22 }
 0x6fc   :  { %14180 = vmatpush1.bf16.msra.mxu1 %v19368_v2  ;;  %v21379_v2 = vld [vmem:[#allocation9 + $0xf40] ss:$24 sps:$4 sm:$0xff]  }
 0x6fd   :  { %11632 = vmatpush1.bf16.msra.mxu0 %v21358_v4  ;;  %14181 = vmatprep.subr.bf16.mxu1 %v19377_v52  ;;  %v19433_v4 = vcombine.high %v11939_v63, %v11943_v22  ;;  %v21384_v52 = vld [vmem:[#allocation9 + $0xf74] ss:$24 sps:$4 sm:$0xff]   ;;  %v21400_v63 = vld [vmem:[#allocation9 + $0x1090] ss:$24 sps:$4 sm:$0xff]  }
 0x6fe   :  { %11633 = vmatprep.subr.bf16.mxu0 %v21363_v56  ;;  %v11947_v56 = vld [vmem:[#allocation6 + $0xc40] sm:$0xff] }
 0x6ff   :  { %v19440_v19 = vcombine.low %v11947_v56, %v11951_v5 }
 0x700   :  { %14182 = vmatpush1.bf16.msra.mxu1 %v19376_v12  ;;  %v21382_v12 = vld [vmem:[#allocation9 + $0xf70] ss:$24 sps:$4 sm:$0xff]  }
 0x701   :  { %11634 = vmatpush1.bf16.msra.mxu0 %v21361_v6  ;;  %14183 = vmatprep.subr.bf16.mxu1 %v19385_v37  ;;  %v19441_v6 = vcombine.high %v11947_v56, %v11951_v5  ;;  %v11955_v37 = vld [vmem:[#allocation6 + $0xd00] sm:$0xff]  ;;  %v21403_v56 = vld [vmem:[#allocation9 + $0x10c0] ss:$24 sps:$4 sm:$0xff]  }
 0x702   :  { %11635 = vmatprep.subr.bf16.mxu0 %v21366_v48  ;;  %v11959_v48 = vld [vmem:[#allocation6 + $0xd60] sm:$0xff] }
 0x703   :  { %v19449_v54 = vcombine.high %v11955_v37, %v11959_v48 }
 0x704   :  { %14184 = vmatpush1.bf16.msra.mxu1 %v19384_v0  ;;  %v21390_v0 = vld [vmem:[#allocation9 + $0xfd4] ss:$24 sps:$4 sm:$0xff]  }
 0x705   :  { %11636 = vmatpush1.bf16.msra.mxu0 %v21364_v23  ;;  %14185 = vmatprep.subr.bf16.mxu1 %v19393_v27  ;;  %v11963_v23 = vld [vmem:[#allocation6 + $0xdc0] sm:$0xff] }
 0x706   :  { %11637 = vmatprep.subr.bf16.mxu0 %v21369_v30  ;;  %v11967_v27 = vld [vmem:[#allocation6 + $0xe20] sm:$0xff]  ;;  %v19448_v30 = vcombine.low %v11955_v37, %v11959_v48 }
 0x707   :  { %v19457_v7 = vcombine.high %v11963_v23, %v11967_v27  ;;  %v21406_v37 = vld [vmem:[#allocation9 + $0x10f0] ss:$24 sps:$4 sm:$0xff]  }
 0x708   :  { %14186 = vmatpush1.bf16.msra.mxu1 %v19392_v17  ;;  %v21393_v17 = vld [vmem:[#allocation9 + $0x1004] ss:$24 sps:$4 sm:$0xff]  }
 0x709   :  { %11638 = vmatpush1.bf16.msra.mxu0 %v21367_v25  ;;  %14187 = vmatprep.subr.bf16.mxu1 %v19401_v38  ;;  %v11971_v25 = vld [vmem:[#allocation6 + $0xe80] sm:$0xff] }
 0x70a   :  { %11639 = vmatprep.subr.bf16.mxu0 %v21372_v39  ;;  %v11975_v38 = vld [vmem:[#allocation6 + $0xee0] sm:$0xff]  ;;  %v19456_v39 = vcombine.low %v11963_v23, %v11967_v27  ;;  %v21409_v23 = vld [vmem:[#allocation9 + $0x1120] ss:$24 sps:$4 sm:$0xff]  }
 0x70b   :  { %v19465_v42 = vcombine.high %v11971_v25, %v11975_v38 }
 0x70c   :  { %14188 = vmatpush1.bf16.msra.mxu1 %v19400_v46  ;;  %v21396_v46 = vld [vmem:[#allocation9 + $0x1034] ss:$24 sps:$4 sm:$0xff]  }
 0x70d   :  { %11640 = vmatpush1.bf16.msra.mxu0 %v21370_v34  ;;  %14189 = vmatprep.subr.bf16.mxu1 %v19409_v47  ;;  %v11979_v34 = vld [vmem:[#allocation6 + $0xf40] sm:$0xff] }
 0x70e   :  { %11641 = vmatprep.subr.bf16.mxu0 %v21375_v49  ;;  %v11983_v47 = vld [vmem:[#allocation6 + $0xfa0] sm:$0xff]  ;;  %v19464_v49 = vcombine.low %v11971_v25, %v11975_v38 }
 0x70f   :  { %v19473_v29 = vcombine.high %v11979_v34, %v11983_v47  ;;  %v21412_v25 = vld [vmem:[#allocation9 + $0x1150] ss:$24 sps:$4 sm:$0xff]  }
 0x710   :  { %14190 = vmatpush1.bf16.msra.mxu1 %v19408_v32  ;;  %v21399_v32 = vld [vmem:[#allocation9 + $0x1064] ss:$24 sps:$4 sm:$0xff]  }
 0x711   :  { %11642 = vmatpush1.bf16.msra.mxu0 %v21373_v55  ;;  %14191 = vmatprep.subr.bf16.mxu1 %v19417_v13  ;;  %v11987_v55 = vld [vmem:[#allocation6 + $0x1000] sm:$0xff] }
 0x712   :  { %11654 = vmatprep.subr.bf16.mxu0 %v21378_v31  ;;  %v11991_v13 = vld [vmem:[#allocation6 + $0x1060] sm:$0xff]  ;;  %v19472_v31 = vcombine.low %v11979_v34, %v11983_v47  ;;  %v21415_v34 = vld [vmem:[#allocation9 + $0x1180] ss:$24 sps:$4 sm:$0xff]  }
 0x713   :  { %v19481_v26 = vcombine.high %v11987_v55, %v11991_v13 }
 0x714   :  { %11644 = vmatmul.mubr.bf16.vlgmr.msra.gmra.mrb[8].mxu0 %v22680_v21  ;;  %14192 = vmatpush1.bf16.msra.mxu1 %v19416_v44  ;;  %v21387_v21 = vld [vmem:[#allocation9 + $0xfa4] ss:$24 sps:$4 sm:$0xff]   ;;  %v21402_v44 = vld [vmem:[#allocation9 + $0x1094] ss:$24 sps:$4 sm:$0xff]  }
 0x715   :  { %11655 = vmatpush1.bf16.msra.mxu0 %v21376_v11  ;;  %11686 = vmatprep.mubr.bf16.mxu0 %v22708_v61  ;;  %v21385_v61 = vld [vmem:[#allocation9 + $0xfa0] ss:$24 sps:$4 sm:$0xff]   ;;  %v11995_v11 = vld [vmem:[#allocation6 + $0x10c0] sm:$0xff] }
 0x716   :  { %11656 = vmatprep.subr.bf16.mxu0 %v21381_v35  ;;  %14193 = vmatprep.subr.bf16.mxu1 %v19425_v16  ;;  %v11999_v35 = vld [vmem:[#allocation6 + $0x1120] sm:$0xff]  ;;  %v19480_v16 = vcombine.low %v11987_v55, %v11991_v13 }
 0x717   :  { %v19489_v22 = vcombine.high %v11995_v11, %v11999_v35  ;;  %v21418_v55 = vld [vmem:[#allocation9 + $0x11b0] ss:$24 sps:$4 sm:$0xff]  }
 0x718   :  { %14194 = vmatpush1.bf16.msra.mxu1 %v19424_v1  ;;  %v21405_v1 = vld [vmem:[#allocation9 + $0x10c4] ss:$24 sps:$4 sm:$0xff]  }
 0x719   :  { %11657 = vmatpush1.bf16.msra.mxu0 %v21379_v2  ;;  %14195 = vmatprep.subr.bf16.mxu1 %v19433_v4  ;;  %v12003_v2 = vld [vmem:[#allocation6 + $0x1180] sm:$0xff] }
 0x71a   :  { %11658 = vmatprep.subr.bf16.mxu0 %v21384_v52  ;;  %v12007_v4 = vld [vmem:[#allocation6 + $0x11e0] sm:$0xff]  ;;  %v19488_v52 = vcombine.low %v11995_v11, %v11999_v35  ;;  %v21421_v11 = vld [vmem:[#allocation9 + $0x11e0] ss:$24 sps:$4 sm:$0xff]  }
 0x71b   :  { %v19497_v5 = vcombine.high %v12003_v2, %v12007_v4 }
 0x71c   :  { %14196 = vmatpush1.bf16.msra.mxu1 %v19432_v14  ;;  %v21408_v14 = vld [vmem:[#allocation9 + $0x10f4] ss:$24 sps:$4 sm:$0xff]  }
 0x71d   :  { %11659 = vmatpush1.bf16.msra.mxu0 %v21382_v12  ;;  %14208 = vmatprep.subr.bf16.mxu1 %v19441_v6  ;;  %v12011_v12 = vld [vmem:[#allocation6 + $0x1240] sm:$0xff] }
 0x71e   :  { %11660 = vmatprep.subr.bf16.mxu0 %v21387_v21  ;;  %v12015_v6 = vld [vmem:[#allocation6 + $0x12a0] sm:$0xff]  ;;  %v19496_v21 = vcombine.low %v12003_v2, %v12007_v4  ;;  %v21429_v4 = vld [vmem:[#allocation9 + $0x1244] ss:$24 sps:$4 sm:$0xff]  }
 0x71f   :  { %14198 = vmatmul.mubr.bf16.vlgmr.msra.gmra.mrb[28].mxu1 %v22444_v24  ;;  %v19505_v48 = vcombine.high %v12011_v12, %v12015_v6  ;;  %v21424_v2 = vld [vmem:[#allocation9 + $0x1210] ss:$24 sps:$4 sm:$0xff]  }
 0x720   :  { %14209 = vmatpush1.bf16.msra.mxu1 %v19440_v19  ;;  %14240 = vmatprep.mubr.bf16.mxu1 %v22446_v28  ;;  %v21411_v19 = vld [vmem:[#allocation9 + $0x1124] ss:$24 sps:$4 sm:$0xff]  }
 0x721   :  { %11661 = vmatpush1.bf16.msra.mxu0 %v21385_v61  ;;  %14210 = vmatprep.subr.bf16.mxu1 %v19449_v54  ;;  %v12019_v61 = vld [vmem:[#allocation6 + $0x1300] sm:$0xff] }
 0x722   :  { %11662 = vmatprep.subr.bf16.mxu0 %v21390_v0  ;;  %v12023_v54 = vld [vmem:[#allocation6 + $0x1360] sm:$0xff]  ;;  %v19504_v0 = vcombine.low %v12011_v12, %v12015_v6  ;;  %v21427_v12 = vld [vmem:[#allocation9 + $0x1240] ss:$24 sps:$4 sm:$0xff]  }
 0x723   :  { %v19513_v27 = vcombine.high %v12019_v61, %v12023_v54 }
 0x724   :  { %14211 = vmatpush1.bf16.msra.mxu1 %v19448_v30  ;;  %v21414_v30 = vld [vmem:[#allocation9 + $0x1154] ss:$24 sps:$4 sm:$0xff]  }
 0x725   :  { %11663 = vmatpush1.bf16.msra.mxu0 %v21388_v8  ;;  %14212 = vmatprep.subr.bf16.mxu1 %v19457_v7  ;;  %v12027_v8 = vld [vmem:[#allocation6 + $0x13c0] sm:$0xff] }
 0x726   :  { %11664 = vmatprep.subr.bf16.mxu0 %v21393_v17  ;;  %v12031_v7 = vld [vmem:[#allocation6 + $0x1420] sm:$0xff]  ;;  %v19512_v17 = vcombine.low %v12019_v61, %v12023_v54 }
 0x727   :  { %v19521_v38 = vcombine.high %v12027_v8, %v12031_v7  ;;  %v21430_v61 = vld [vmem:[#allocation9 + $0x1270] ss:$24 sps:$4 sm:$0xff]  }
 0x728   :  { %14213 = vmatpush1.bf16.msra.mxu1 %v19456_v39  ;;  %v21417_v39 = vld [vmem:[#allocation9 + $0x1184] ss:$24 sps:$4 sm:$0xff]  }
 0x729   :  { %11665 = vmatpush1.bf16.msra.mxu0 %v21391_v18  ;;  %14214 = vmatprep.subr.bf16.mxu1 %v19465_v42  ;;  %v12035_v18 = vld [vmem:[#allocation6 + $0x1480] sm:$0xff] }
 0x72a   :  { %11666 = vmatprep.subr.bf16.mxu0 %v21396_v46  ;;  %v12039_v42 = vld [vmem:[#allocation6 + $0x14e0] sm:$0xff]  ;;  %v19520_v46 = vcombine.low %v12027_v8, %v12031_v7 }
 0x72b   :  { %v19529_v47 = vcombine.high %v12035_v18, %v12039_v42  ;;  %v21438_v8 = vld [vmem:[#allocation9 + $0x12d4] ss:$24 sps:$4 sm:$0xff]  }
 0x72c   :  { %14215 = vmatpush1.bf16.msra.mxu1 %v19464_v49  ;;  %v21420_v49 = vld [vmem:[#allocation9 + $0x11b4] ss:$24 sps:$4 sm:$0xff]  }
 0x72d   :  { %11667 = vmatpush1.bf16.msra.mxu0 %v21394_v9  ;;  %14216 = vmatprep.subr.bf16.mxu1 %v19473_v29  ;;  %v12043_v9 = vld [vmem:[#allocation6 + $0x1540] sm:$0xff] }
 0x72e   :  { %11668 = vmatprep.subr.bf16.mxu0 %v21399_v32  ;;  %v12047_v29 = vld [vmem:[#allocation6 + $0x15a0] sm:$0xff]  ;;  %v19528_v32 = vcombine.low %v12035_v18, %v12039_v42  ;;  %v21441_v18 = vld [vmem:[#allocation9 + $0x1304] ss:$24 sps:$4 sm:$0xff]  }
 0x72f   :  { %v19537_v13 = vcombine.high %v12043_v9, %v12047_v29  ;;  %v12091_v7 = vld [vmem:[#allocation6 + $0x19c0] sm:$0xff] }
 0x730   :  { %14217 = vmatpush1.bf16.msra.mxu1 %v19472_v31  ;;  %v21423_v31 = vld [vmem:[#allocation9 + $0x11e4] ss:$24 sps:$4 sm:$0xff]   ;;  %v12099_v42 = vld [vmem:[#allocation6 + $0x1a80] sm:$0xff] }
 0x731   :  { %11669 = vmatpush1.bf16.msra.mxu0 %v21397_v51  ;;  %14218 = vmatprep.subr.bf16.mxu1 %v19481_v26  ;;  %v12051_v51 = vld [vmem:[#allocation6 + $0x1600] sm:$0xff] }
 0x732   :  { %11670 = vmatprep.subr.bf16.mxu0 %v21402_v44  ;;  %v12055_v26 = vld [vmem:[#allocation6 + $0x1660] sm:$0xff]  ;;  %v19536_v44 = vcombine.low %v12043_v9, %v12047_v29 }
 0x733   :  { %v19545_v35 = vcombine.high %v12051_v51, %v12055_v26  ;;  %v21444_v9 = vld [vmem:[#allocation9 + $0x1334] ss:$24 sps:$4 sm:$0xff]  }
 0x734   :  { %14219 = vmatpush1.bf16.msra.mxu1 %v19480_v16  ;;  %v21426_v16 = vld [vmem:[#allocation9 + $0x1214] ss:$24 sps:$4 sm:$0xff]  }
 0x735   :  { %11671 = vmatpush1.bf16.msra.mxu0 %v21400_v63  ;;  %14220 = vmatprep.subr.bf16.mxu1 %v19489_v22  ;;  %v12059_v63 = vld [vmem:[#allocation6 + $0x16c0] sm:$0xff] }
 0x736   :  { %11672 = vmatprep.subr.bf16.mxu0 %v21405_v1  ;;  %v12063_v22 = vld [vmem:[#allocation6 + $0x1720] sm:$0xff]  ;;  %v19544_v1 = vcombine.low %v12051_v51, %v12055_v26  ;;  %v21447_v51 = vld [vmem:[#allocation9 + $0x1364] ss:$24 sps:$4 sm:$0xff]  }
 0x737   :  { %v12107_v29 = vld [vmem:[#allocation6 + $0x1b40] sm:$0xff] }
 0x738   :  { %14221 = vmatpush1.bf16.msra.mxu1 %v19488_v52  ;;  %v19553_v52 = vcombine.high %v12059_v63, %v12063_v22  ;;  %v12115_v26 = vld [vmem:[#allocation6 + $0x1c00] sm:$0xff] }
 0x739   :  { %11673 = vmatpush1.bf16.msra.mxu0 %v21403_v56  ;;  %14222 = vmatprep.subr.bf16.mxu1 %v19497_v5  ;;  %v12067_v56 = vld [vmem:[#allocation6 + $0x1780] sm:$0xff] }
 0x73a   :  { %11674 = vmatprep.subr.bf16.mxu0 %v21408_v14  ;;  %v12071_v5 = vld [vmem:[#allocation6 + $0x17e0] sm:$0xff]  ;;  %v19552_v14 = vcombine.low %v12059_v63, %v12063_v22 }
 0x73b   :  { %v19561_v6 = vcombine.high %v12067_v56, %v12071_v5  ;;  %v21450_v63 = vld [vmem:[#allocation9 + $0x1394] ss:$24 sps:$4 sm:$0xff]  }
 0x73c   :  { %14223 = vmatpush1.bf16.msra.mxu1 %v19496_v21  ;;  %v21432_v21 = vld [vmem:[#allocation9 + $0x1274] ss:$24 sps:$4 sm:$0xff]  }
 0x73d   :  { %11675 = vmatpush1.bf16.msra.mxu0 %v21406_v37  ;;  %14224 = vmatprep.subr.bf16.mxu1 %v19505_v48  ;;  %v12075_v37 = vld [vmem:[#allocation6 + $0x1840] sm:$0xff] }
 0x73e   :  { %11676 = vmatprep.subr.bf16.mxu0 %v21411_v19  ;;  %v12079_v48 = vld [vmem:[#allocation6 + $0x18a0] sm:$0xff]  ;;  %v19560_v19 = vcombine.low %v12067_v56, %v12071_v5  ;;  %v21453_v56 = vld [vmem:[#allocation9 + $0x13c4] ss:$24 sps:$4 sm:$0xff]  }
 0x73f   :  { %v19569_v54 = vcombine.high %v12075_v37, %v12079_v48  ;;  %v12123_v22 = vld [vmem:[#allocation6 + $0x1cc0] sm:$0xff] }
 0x740   :  { %14225 = vmatpush1.bf16.msra.mxu1 %v19504_v0  ;;  %v12083_v0 = vld [vmem:[#allocation6 + $0x1900] sm:$0xff] }
 0x741   :  { %11677 = vmatpush1.bf16.msra.mxu0 %v21409_v23  ;;  %14226 = vmatprep.subr.bf16.mxu1 %v19513_v27  ;;  %v12087_v23 = vld [vmem:[#allocation6 + $0x1960] sm:$0xff]  ;;  %v19568_v27 = vcombine.low %v12075_v37, %v12079_v48 }
 0x742   :  { %11678 = vmatprep.subr.bf16.mxu0 %v21414_v30  ;;  %v19577_v30 = vcombine.high %v12083_v0, %v12087_v23  ;;  %v12131_v5 = vld [vmem:[#allocation6 + $0x1d80] sm:$0xff] }
 0x743   :  { %v21456_v37 = vld [vmem:[#allocation9 + $0x13f4] ss:$24 sps:$4 sm:$0xff]  }
 0x744   :  { %14227 = vmatpush1.bf16.msra.mxu1 %v19512_v17  ;;  %v12095_v17 = vld [vmem:[#allocation6 + $0x1a20] sm:$0xff] }
 0x745   :  { %11679 = vmatpush1.bf16.msra.mxu0 %v21412_v25  ;;  %14228 = vmatprep.subr.bf16.mxu1 %v19521_v38  ;;  %v19576_v25 = vcombine.low %v12083_v0, %v12087_v23  ;;  %v21436_v38 = vld [vmem:[#allocation9 + $0x12d0] ss:$24 sps:$4 sm:$0xff]   ;;  %v21459_v0 = vld [vmem:[#allocation9 + $0x1424] ss:$24 sps:$4 sm:$0xff]  }
 0x746   :  { %11680 = vmatprep.subr.bf16.mxu0 %v21417_v39  ;;  %v19585_v39 = vcombine.high %v12091_v7, %v12095_v17  ;;  %v12139_v48 = vld [vmem:[#allocation6 + $0x1e40] sm:$0xff] }
 0x747   :  { %v12147_v23 = vld [vmem:[#allocation6 + $0x1f00] sm:$0xff] }
 0x748   :  { %14229 = vmatpush1.bf16.msra.mxu1 %v19520_v46  ;;  %v12103_v46 = vld [vmem:[#allocation6 + $0x1ae0] sm:$0xff] }
 0x749   :  { %11681 = vmatpush1.bf16.msra.mxu0 %v21415_v34  ;;  %14230 = vmatprep.subr.bf16.mxu1 %v19529_v47  ;;  %v19584_v34 = vcombine.low %v12091_v7, %v12095_v17  ;;  %v21439_v47 = vld [vmem:[#allocation9 + $0x1300] ss:$24 sps:$4 sm:$0xff]   ;;  %v21462_v7 = vld [vmem:[#allocation9 + $0x1454] ss:$24 sps:$4 sm:$0xff]  }
 0x74a   :  { %11682 = vmatprep.subr.bf16.mxu0 %v21420_v49  ;;  %v19593_v49 = vcombine.high %v12099_v42, %v12103_v46  ;;  %v12155_v17 = vld [vmem:[#allocation6 + $0x1fc0] sm:$0xff] }
 0x74c   :  { %14231 = vmatpush1.bf16.msra.mxu1 %v19528_v32  ;;  %v12111_v32 = vld [vmem:[#allocation6 + $0x1ba0] sm:$0xff] }
 0x74d   :  { %11683 = vmatpush1.bf16.msra.mxu0 %v21418_v55  ;;  %14232 = vmatprep.subr.bf16.mxu1 %v19537_v13  ;;  %v19592_v55 = vcombine.low %v12099_v42, %v12103_v46  ;;  %v21442_v13 = vld [vmem:[#allocation9 + $0x1330] ss:$24 sps:$4 sm:$0xff]   ;;  %v21465_v42 = vld [vmem:[#allocation9 + $0x1484] ss:$24 sps:$4 sm:$0xff]  }
 0x74e   :  { %11684 = vmatprep.subr.bf16.mxu0 %v21423_v31  ;;  %v19601_v31 = vcombine.high %v12107_v29, %v12111_v32  ;;  %v12163_v46 = vld [vmem:[#allocation6 + $0x2080] sm:$0xff] }
 0x750   :  { %14233 = vmatpush1.bf16.msra.mxu1 %v19536_v44  ;;  %v12119_v44 = vld [vmem:[#allocation6 + $0x1c60] sm:$0xff] }
 0x751   :  { %11685 = vmatpush1.bf16.msra.mxu0 %v21421_v11  ;;  %14234 = vmatprep.subr.bf16.mxu1 %v19545_v35  ;;  %v19600_v11 = vcombine.low %v12107_v29, %v12111_v32  ;;  %v21445_v35 = vld [vmem:[#allocation9 + $0x1360] ss:$24 sps:$4 sm:$0xff]   ;;  %v21468_v29 = vld [vmem:[#allocation9 + $0x14b4] ss:$24 sps:$4 sm:$0xff]  }
 0x752   :  { %11697 = vmatprep.subr.bf16.mxu0 %v21426_v16  ;;  %v19609_v16 = vcombine.high %v12115_v26, %v12119_v44  ;;  %v12171_v32 = vld [vmem:[#allocation6 + $0x2140] sm:$0xff] }
 0x754   :  { %11687 = vmatmul.mubr.bf16.vlgmr.msra.gmra.mrb[8].mxu0 %v22706_v58  ;;  %14235 = vmatpush1.bf16.msra.mxu1 %v19544_v1  ;;  %v21435_v58 = vld [vmem:[#allocation9 + $0x12a4] ss:$24 sps:$4 sm:$0xff]   ;;  %v12127_v1 = vld [vmem:[#allocation6 + $0x1d20] sm:$0xff] }
 0x755   :  { %11698 = vmatpush1.bf16.msra.mxu0 %v21424_v2  ;;  %11729 = vmatprep.mubr.bf16.mxu0 %v22748_v45  ;;  %v21433_v45 = vld [vmem:[#allocation9 + $0x12a0] ss:$24 sps:$4 sm:$0xff]   ;;  %v19608_v2 = vcombine.low %v12115_v26, %v12119_v44  ;;  %v21471_v26 = vld [vmem:[#allocation9 + $0x14e4] ss:$24 sps:$4 sm:$0xff]   ;;  %v12179_v44 = vld [vmem:[#allocation6 + $0x2200] sm:$0xff] }
 0x756   :  { %11699 = vmatprep.subr.bf16.mxu0 %v21429_v4  ;;  %14236 = vmatprep.subr.bf16.mxu1 %v19553_v52  ;;  %v21448_v4 = vld [vmem:[#allocation9 + $0x1390] ss:$24 sps:$4 sm:$0xff]   ;;  %v19617_v52 = vcombine.high %v12123_v22, %v12127_v1 }
 0x758   :  { %14237 = vmatpush1.bf16.msra.mxu1 %v19552_v14  ;;  %v12135_v14 = vld [vmem:[#allocation6 + $0x1de0] sm:$0xff] }
 0x759   :  { %11700 = vmatpush1.bf16.msra.mxu0 %v21427_v12  ;;  %14238 = vmatprep.subr.bf16.mxu1 %v19561_v6  ;;  %v19616_v12 = vcombine.low %v12123_v22, %v12127_v1  ;;  %v21451_v6 = vld [vmem:[#allocation9 + $0x13c0] ss:$24 sps:$4 sm:$0xff]   ;;  %v21474_v22 = vld [vmem:[#allocation9 + $0x1514] ss:$24 sps:$4 sm:$0xff]  }
 0x75a   :  { %11701 = vmatprep.subr.bf16.mxu0 %v21432_v21  ;;  %v19625_v21 = vcombine.high %v12131_v5, %v12135_v14  ;;  %v12187_v1 = vld [vmem:[#allocation6 + $0x22c0] sm:$0xff] }
 0x75c   :  { %14239 = vmatpush1.bf16.msra.mxu1 %v19560_v19  ;;  %v12143_v19 = vld [vmem:[#allocation6 + $0x1ea0] sm:$0xff] }
 0x75d   :  { %11702 = vmatpush1.bf16.msra.mxu0 %v21430_v61  ;;  %14251 = vmatprep.subr.bf16.mxu1 %v19569_v54  ;;  %v19624_v61 = vcombine.low %v12131_v5, %v12135_v14  ;;  %v21454_v54 = vld [vmem:[#allocation9 + $0x13f0] ss:$24 sps:$4 sm:$0xff]  }
 0x75e   :  { %11703 = vmatprep.subr.bf16.mxu0 %v21435_v58  ;;  %v19633_v58 = vcombine.high %v12139_v48, %v12143_v19  ;;  %v12195_v14 = vld [vmem:[#allocation6 + $0x2380] sm:$0xff] }
 0x75f   :  { %14241 = vmatmul.mubr.bf16.vlgmr.msra.gmra.mrb[28].mxu1 %v22452_v36 }
 0x760   :  { %14252 = vmatpush1.bf16.msra.mxu1 %v19568_v27  ;;  %14283 = vmatprep.mubr.bf16.mxu1 %v22454_v41  ;;  %v12151_v27 = vld [vmem:[#allocation6 + $0x1f60] sm:$0xff] }
 0x761   :  { %11704 = vmatpush1.bf16.msra.mxu0 %v21433_v45  ;;  %14253 = vmatprep.subr.bf16.mxu1 %v19577_v30  ;;  %v19632_v45 = vcombine.low %v12139_v48, %v12143_v19  ;;  %v21457_v30 = vld [vmem:[#allocation9 + $0x1420] ss:$24 sps:$4 sm:$0xff]   ;;  %v21480_v48 = vld [vmem:[#allocation9 + $0x1574] ss:$24 sps:$4 sm:$0xff]  }
 0x762   :  { %11705 = vmatprep.subr.bf16.mxu0 %v21438_v8  ;;  %v19641_v8 = vcombine.high %v12147_v23, %v12151_v27  ;;  %v11821_v19 = vld [vmem:[#allocation6 + $0x50] sm:$0xff] }
 0x764   :  { %14254 = vmatpush1.bf16.msra.mxu1 %v19576_v25  ;;  %v12159_v25 = vld [vmem:[#allocation6 + $0x2020] sm:$0xff] }
 0x765   :  { %11706 = vmatpush1.bf16.msra.mxu0 %v21436_v38  ;;  %14255 = vmatprep.subr.bf16.mxu1 %v19585_v39  ;;  %v19640_v38 = vcombine.low %v12147_v23, %v12151_v27  ;;  %v21460_v39 = vld [vmem:[#allocation9 + $0x1450] ss:$24 sps:$4 sm:$0xff]   ;;  %v11829_v23 = vld [vmem:[#allocation6 + $0x110] sm:$0xff] }
 0x766   :  { %11707 = vmatprep.subr.bf16.mxu0 %v21441_v18  ;;  %v19649_v18 = vcombine.high %v12155_v17, %v12159_v25  ;;  %v11833_v27 = vld [vmem:[#allocation6 + $0x170] sm:$0xff] }
 0x768   :  { %14256 = vmatpush1.bf16.msra.mxu1 %v19584_v34  ;;  %v12167_v34 = vld [vmem:[#allocation6 + $0x20e0] sm:$0xff] }
 0x769   :  { %11708 = vmatpush1.bf16.msra.mxu0 %v21439_v47  ;;  %14257 = vmatprep.subr.bf16.mxu1 %v19593_v49  ;;  %v19648_v47 = vcombine.low %v12155_v17, %v12159_v25  ;;  %v21463_v49 = vld [vmem:[#allocation9 + $0x1480] ss:$24 sps:$4 sm:$0xff]   ;;  %v19324_v25 = vcombine.low %v11829_v23, %v11833_v27 }
 0x76a   :  { %11709 = vmatprep.subr.bf16.mxu0 %v21444_v9  ;;  %v19657_v9 = vcombine.high %v12163_v46, %v12167_v34  ;;  %v11841_v17 = vld [vmem:[#allocation6 + $0x230] sm:$0xff] }
 0x76c   :  { %14258 = vmatpush1.bf16.msra.mxu1 %v19592_v55  ;;  %v12175_v55 = vld [vmem:[#allocation6 + $0x21a0] sm:$0xff] }
 0x76d   :  { %11710 = vmatpush1.bf16.msra.mxu0 %v21442_v13  ;;  %14259 = vmatprep.subr.bf16.mxu1 %v19601_v31  ;;  %v19656_v13 = vcombine.low %v12163_v46, %v12167_v34  ;;  %v21466_v31 = vld [vmem:[#allocation9 + $0x14b0] ss:$24 sps:$4 sm:$0xff]   ;;  %v11849_v46 = vld [vmem:[#allocation6 + $0x2f0] sm:$0xff] }
 0x76e   :  { %11711 = vmatprep.subr.bf16.mxu0 %v21447_v51  ;;  %v19665_v51 = vcombine.high %v12171_v32, %v12175_v55 }
 0x770   :  { %14260 = vmatpush1.bf16.msra.mxu1 %v19600_v11  ;;  %v12183_v11 = vld [vmem:[#allocation6 + $0x2260] sm:$0xff] }
 0x771   :  { %11712 = vmatpush1.bf16.msra.mxu0 %v21445_v35  ;;  %14261 = vmatprep.subr.bf16.mxu1 %v19609_v16  ;;  %v19664_v35 = vcombine.low %v12171_v32, %v12175_v55  ;;  %v21469_v16 = vld [vmem:[#allocation9 + $0x14e0] ss:$24 sps:$4 sm:$0xff]  }
 0x772   :  { %11713 = vmatprep.subr.bf16.mxu0 %v21450_v63  ;;  %v19673_v63 = vcombine.high %v12179_v44, %v12183_v11  ;;  %v11857_v32 = vld [vmem:[#allocation6 + $0x3b0] sm:$0xff] }
 0x774   :  { %14262 = vmatpush1.bf16.msra.mxu1 %v19608_v2  ;;  %v12191_v2 = vld [vmem:[#allocation6 + $0x2320] sm:$0xff] }
 0x775   :  { %11714 = vmatpush1.bf16.msra.mxu0 %v21448_v4  ;;  %14263 = vmatprep.subr.bf16.mxu1 %v19617_v52  ;;  %v19672_v4 = vcombine.low %v12179_v44, %v12183_v11  ;;  %v21472_v52 = vld [vmem:[#allocation9 + $0x1510] ss:$24 sps:$4 sm:$0xff]   ;;  %v19681_v5 = vcombine.high %v12187_v1, %v12191_v2  ;;  %v11865_v44 = vld [vmem:[#allocation6 + $0x470] sm:$0xff] }
 0x776   :  { %11715 = vmatprep.subr.bf16.mxu0 %v21453_v56  ;;  %v21477_v56 = vld [vmem:[#allocation9 + $0x1544] ss:$24 sps:$4 sm:$0xff]  }
 0x778   :  { %14264 = vmatpush1.bf16.msra.mxu1 %v19616_v12  ;;  %v12199_v12 = vld [vmem:[#allocation6 + $0x23e0] sm:$0xff] }
 0x779   :  { %11716 = vmatpush1.bf16.msra.mxu0 %v21451_v6  ;;  %14265 = vmatprep.subr.bf16.mxu1 %v19625_v21  ;;  %v19680_v6 = vcombine.low %v12187_v1, %v12191_v2  ;;  %v21475_v21 = vld [vmem:[#allocation9 + $0x1540] ss:$24 sps:$4 sm:$0xff]  }
 0x77a   :  { %11717 = vmatprep.subr.bf16.mxu0 %v21456_v37  ;;  %v19689_v37 = vcombine.high %v12195_v14, %v12199_v12  ;;  %v11873_v1 = vld [vmem:[#allocation6 + $0x530] sm:$0xff] }
 0x77c   :  { %14266 = vmatpush1.bf16.msra.mxu1 %v19624_v61  ;;  %v11825_v61 = vld [vmem:[#allocation6 + $0xb0] sm:$0xff] }
 0x77d   :  { %11718 = vmatpush1.bf16.msra.mxu0 %v21454_v54  ;;  %14267 = vmatprep.subr.bf16.mxu1 %v19633_v58  ;;  %v19688_v54 = vcombine.low %v12195_v14, %v12199_v12  ;;  %v21478_v58 = vld [vmem:[#allocation9 + $0x1570] ss:$24 sps:$4 sm:$0xff]   ;;  %v11881_v14 = vld [vmem:[#allocation6 + $0x5f0] sm:$0xff] }
 0x77e   :  { %11719 = vmatprep.subr.bf16.mxu0 %v21459_v0  ;;  %v19317_v0 = vcombine.high %v11821_v19, %v11825_v61 }
 0x780   :  { %14268 = vmatpush1.bf16.msra.mxu1 %v19632_v45  ;;  %v19316_v45 = vcombine.low %v11821_v19, %v11825_v61  ;;  %v11889_v19 = vld [vmem:[#allocation6 + $0x6b0] sm:$0xff] }
 0x781   :  { %11720 = vmatpush1.bf16.msra.mxu0 %v21457_v30  ;;  %14269 = vmatprep.subr.bf16.mxu1 %v19641_v8  ;;  %v19325_v30 = vcombine.high %v11829_v23, %v11833_v27  ;;  %v21486_v8 = vld [vmem:[#allocation9 + $0x15d4] ss:$24 sps:$4 sm:$0xff]   ;;  %v11897_v23 = vld [vmem:[#allocation6 + $0x770] sm:$0xff] }
 0x782   :  { %11721 = vmatprep.subr.bf16.mxu0 %v21462_v7  ;;  %v11837_v7 = vld [vmem:[#allocation6 + $0x1d0] sm:$0xff] }
 0x783   :  { %v19332_v34 = vcombine.low %v11837_v7, %v11841_v17 }
 0x784   :  { %14270 = vmatpush1.bf16.msra.mxu1 %v19640_v38  ;;  %v21484_v38 = vld [vmem:[#allocation9 + $0x15d0] ss:$24 sps:$4 sm:$0xff]  }
 0x785   :  { %11722 = vmatpush1.bf16.msra.mxu0 %v21460_v39  ;;  %14271 = vmatprep.subr.bf16.mxu1 %v19649_v18  ;;  %v19333_v39 = vcombine.high %v11837_v7, %v11841_v17  ;;  %v21489_v18 = vld [vmem:[#allocation9 + $0x1604] ss:$24 sps:$4 sm:$0xff]  }
 0x786   :  { %11723 = vmatprep.subr.bf16.mxu0 %v21465_v42  ;;  %v11845_v42 = vld [vmem:[#allocation6 + $0x290] sm:$0xff] }
 0x787   :  { %v19340_v55 = vcombine.low %v11845_v42, %v11849_v46  ;;  %v11905_v7 = vld [vmem:[#allocation6 + $0x830] sm:$0xff] }
 0x788   :  { %14272 = vmatpush1.bf16.msra.mxu1 %v19648_v47  ;;  %v21487_v47 = vld [vmem:[#allocation9 + $0x1600] ss:$24 sps:$4 sm:$0xff]  }
 0x789   :  { %11724 = vmatpush1.bf16.msra.mxu0 %v21463_v49  ;;  %14273 = vmatprep.subr.bf16.mxu1 %v19657_v9  ;;  %v19341_v49 = vcombine.high %v11845_v42, %v11849_v46  ;;  %v21492_v9 = vld [vmem:[#allocation9 + $0x1634] ss:$24 sps:$4 sm:$0xff]   ;;  %v11913_v42 = vld [vmem:[#allocation6 + $0x8f0] sm:$0xff] }
 0x78a   :  { %11725 = vmatprep.subr.bf16.mxu0 %v21468_v29  ;;  %v11853_v29 = vld [vmem:[#allocation6 + $0x350] sm:$0xff] }
 0x78b   :  { %v19348_v11 = vcombine.low %v11853_v29, %v11857_v32 }
 0x78c   :  { %14274 = vmatpush1.bf16.msra.mxu1 %v19656_v13  ;;  %v21490_v13 = vld [vmem:[#allocation9 + $0x1630] ss:$24 sps:$4 sm:$0xff]  }
 0x78d   :  { %11726 = vmatpush1.bf16.msra.mxu0 %v21466_v31  ;;  %14275 = vmatprep.subr.bf16.mxu1 %v19665_v51  ;;  %v19349_v31 = vcombine.high %v11853_v29, %v11857_v32  ;;  %v21495_v51 = vld [vmem:[#allocation9 + $0x1664] ss:$24 sps:$4 sm:$0xff]  }
 0x78e   :  { %11727 = vmatprep.subr.bf16.mxu0 %v21471_v26  ;;  %v11861_v26 = vld [vmem:[#allocation6 + $0x410] sm:$0xff] }
 0x78f   :  { %v19356_v2 = vcombine.low %v11861_v26, %v11865_v44  ;;  %v11921_v29 = vld [vmem:[#allocation6 + $0x9b0] sm:$0xff] }
 0x790   :  { %14276 = vmatpush1.bf16.msra.mxu1 %v19664_v35  ;;  %v21493_v35 = vld [vmem:[#allocation9 + $0x1660] ss:$24 sps:$4 sm:$0xff]  }
 0x791   :  { %11728 = vmatpush1.bf16.msra.mxu0 %v21469_v16  ;;  %14277 = vmatprep.subr.bf16.mxu1 %v19673_v63  ;;  %v19357_v16 = vcombine.high %v11861_v26, %v11865_v44  ;;  %v21498_v63 = vld [vmem:[#allocation9 + $0x1694] ss:$24 sps:$4 sm:$0xff]   ;;  %v11929_v26 = vld [vmem:[#allocation6 + $0xa70] sm:$0xff] }
 0x792   :  { %11740 = vmatprep.subr.bf16.mxu0 %v21474_v22  ;;  %v11869_v22 = vld [vmem:[#allocation6 + $0x4d0] sm:$0xff]  ;;  %v11820_v44 = vld [vmem:[#allocation6 + $0x48] sm:$0xff] }
 0x793   :  { %v19364_v12 = vcombine.low %v11869_v22, %v11873_v1 }
 0x794   :  { %11730 = vmatmul.mubr.bf16.vlgmr.msra.gmra.mrb[8].mxu0 %v22746_v60  ;;  %14278 = vmatpush1.bf16.msra.mxu1 %v19672_v4  ;;  %v21483_v60 = vld [vmem:[#allocation9 + $0x15a4] ss:$24 sps:$4 sm:$0xff]   ;;  %v21496_v4 = vld [vmem:[#allocation9 + $0x1690] ss:$24 sps:$4 sm:$0xff]  }
 0x795   :  { %11741 = vmatpush1.bf16.msra.mxu0 %v21472_v52  ;;  %11772 = vmatprep.mubr.bf16.mxu0 %v22768_v53  ;;  %v21481_v53 = vld [vmem:[#allocation9 + $0x15a0] ss:$24 sps:$4 sm:$0xff]   ;;  %v19365_v52 = vcombine.high %v11869_v22, %v11873_v1 }
 0x796   :  { %11742 = vmatprep.subr.bf16.mxu0 %v21477_v56  ;;  %14279 = vmatprep.subr.bf16.mxu1 %v19681_v5  ;;  %v21501_v56 = vld [vmem:[#allocation9 + $0x16c4] ss:$24 sps:$4 sm:$0xff]  }
 0x797   :  { %v11877_v5 = vld [vmem:[#allocation6 + $0x590] sm:$0xff] }
 0x798   :  { %14280 = vmatpush1.bf16.msra.mxu1 %v19680_v6  ;;  %v21499_v6 = vld [vmem:[#allocation9 + $0x16c0] ss:$24 sps:$4 sm:$0xff]   ;;  %v19372_v61 = vcombine.low %v11877_v5, %v11881_v14 }
 0x799   :  { %11743 = vmatpush1.bf16.msra.mxu0 %v21475_v21  ;;  %14281 = vmatprep.subr.bf16.mxu1 %v19689_v37  ;;  %v19373_v21 = vcombine.high %v11877_v5, %v11881_v14  ;;  %v21504_v37 = vld [vmem:[#allocation9 + $0x16f4] ss:$24 sps:$4 sm:$0xff]   ;;  %v11933_v1 = vld [vmem:[#allocation6 + $0xad0] sm:$0xff] }
 0x79a   :  { %11744 = vmatprep.subr.bf16.mxu0 %v21480_v48  ;;  %v11885_v48 = vld [vmem:[#allocation6 + $0x650] sm:$0xff] }
 0x79b   :  { %v19380_v27 = vcombine.low %v11885_v48, %v11889_v19 }
 0x79c   :  { %14282 = vmatpush1.bf16.msra.mxu1 %v19688_v54  ;;  %v21502_v54 = vld [vmem:[#allocation9 + $0x16f0] ss:$24 sps:$4 sm:$0xff]  }
 0x79d   :  { %11745 = vmatpush1.bf16.msra.mxu0 %v21478_v58  ;;  %14423 = vmatprep.subr.bf16.mxu1 %v19317_v0  ;;  %v19381_v58 = vcombine.high %v11885_v48, %v11889_v19  ;;  %v21507_v0 = vld [vmem:[#allocation9 + $0x1724] ss:$24 sps:$4 sm:$0xff]   ;;  %v11840_v48 = vld [vmem:[#allocation6 + $0x228] sm:$0xff] }
 0x79e   :  { %11746 = vmatprep.subr.bf16.mxu0 %v21483_v60  ;;  %v11893_v60 = vld [vmem:[#allocation6 + $0x710] sm:$0xff] }
 0x79f   :  { %14284 = vmatmul.mubr.bf16.vlgmr.msra.gmra.mrb[28].mxu1 %v22460_v50  ;;  %v19388_v17 = vcombine.low %v11893_v60, %v11897_v23 }
 0x7a0   :  { %14424 = vmatpush1.bf16.msra.mxu1 %v19316_v45  ;;  %14455 = vmatprep.mubr.bf16.mxu1 %v22440_v20  ;;  %v21505_v45 = vld [vmem:[#allocation9 + $0x1720] ss:$24 sps:$4 sm:$0xff]  }
 0x7a1   :  { %11747 = vmatpush1.bf16.msra.mxu0 %v21481_v53  ;;  %14425 = vmatprep.subr.bf16.mxu1 %v19325_v30  ;;  %v19389_v53 = vcombine.high %v11893_v60, %v11897_v23  ;;  %v21510_v30 = vld [vmem:[#allocation9 + $0x1754] ss:$24 sps:$4 sm:$0xff]   ;;  %v11953_v60 = vld [vmem:[#allocation6 + $0xcb0] sm:$0xff] }
 0x7a2   :  { %11748 = vmatprep.subr.bf16.mxu0 %v21486_v8  ;;  %v11901_v8 = vld [vmem:[#allocation6 + $0x7d0] sm:$0xff]  ;;  %v11844_v23 = vld [vmem:[#allocation6 + $0x288] sm:$0xff] }
 0x7a3   :  { %v19396_v46 = vcombine.low %v11901_v8, %v11905_v7 }
 0x7a4   :  { %14426 = vmatpush1.bf16.msra.mxu1 %v19324_v25  ;;  %v21508_v25 = vld [vmem:[#allocation9 + $0x1750] ss:$24 sps:$4 sm:$0xff]  }
 0x7a5   :  { %11749 = vmatpush1.bf16.msra.mxu0 %v21484_v38  ;;  %14427 = vmatprep.subr.bf16.mxu1 %v19333_v39  ;;  %v19397_v38 = vcombine.high %v11901_v8, %v11905_v7  ;;  %v21513_v39 = vld [vmem:[#allocation9 + $0x1784] ss:$24 sps:$4 sm:$0xff]  }
 0x7a6   :  { %11750 = vmatprep.subr.bf16.mxu0 %v21489_v18  ;;  %v11909_v18 = vld [vmem:[#allocation6 + $0x890] sm:$0xff] }
 0x7a7   :  { %v19404_v32 = vcombine.low %v11909_v18, %v11913_v42  ;;  %v11957_v8 = vld [vmem:[#allocation6 + $0xd10] sm:$0xff] }
 0x7a8   :  { %14428 = vmatpush1.bf16.msra.mxu1 %v19332_v34  ;;  %v21511_v34 = vld [vmem:[#allocation9 + $0x1780] ss:$24 sps:$4 sm:$0xff]  }
 0x7a9   :  { %11751 = vmatpush1.bf16.msra.mxu0 %v21487_v47  ;;  %14429 = vmatprep.subr.bf16.mxu1 %v19341_v49  ;;  %v19405_v47 = vcombine.high %v11909_v18, %v11913_v42  ;;  %v21516_v49 = vld [vmem:[#allocation9 + $0x17b4] ss:$24 sps:$4 sm:$0xff]   ;;  %v11961_v7 = vld [vmem:[#allocation6 + $0xd70] sm:$0xff] }
 0x7aa   :  { %11752 = vmatprep.subr.bf16.mxu0 %v21492_v9  ;;  %v11917_v9 = vld [vmem:[#allocation6 + $0x950] sm:$0xff]  ;;  %v19453_v18 = vcombine.high %v11957_v8, %v11961_v7 }
 0x7ac   :  { %14430 = vmatpush1.bf16.msra.mxu1 %v19340_v55  ;;  %v21514_v55 = vld [vmem:[#allocation9 + $0x17b0] ss:$24 sps:$4 sm:$0xff]  }
 0x7ad   :  { %11753 = vmatpush1.bf16.msra.mxu0 %v21490_v13  ;;  %14431 = vmatprep.subr.bf16.mxu1 %v19349_v31  ;;  %v19413_v13 = vcombine.high %v11917_v9, %v11921_v29  ;;  %v21519_v31 = vld [vmem:[#allocation9 + $0x17e4] ss:$24 sps:$4 sm:$0xff]  }
 0x7ae   :  { %11754 = vmatprep.subr.bf16.mxu0 %v21495_v51  ;;  %v11925_v51 = vld [vmem:[#allocation6 + $0xa10] sm:$0xff] }
 0x7b0   :  { %14432 = vmatpush1.bf16.msra.mxu1 %v19348_v11  ;;  %v11824_v11 = vld [vmem:[#allocation6 + $0xa8] sm:$0xff] }
 0x7b1   :  { %11755 = vmatpush1.bf16.msra.mxu0 %v21493_v35  ;;  %14433 = vmatprep.subr.bf16.mxu1 %v19357_v16  ;;  %v19412_v35 = vcombine.low %v11917_v9, %v11921_v29  ;;  %v21517_v16 = vld [vmem:[#allocation9 + $0x17e0] ss:$24 sps:$4 sm:$0xff]   ;;  %v19315_v22 = vcombine.high %v11820_v44, %v11824_v11  ;;  %v19314_v5 = vcombine.low %v11820_v44, %v11824_v11 }
 0x7b2   :  { %11756 = vmatprep.subr.bf16.mxu0 %v21498_v63  ;;  %v19421_v63 = vcombine.high %v11925_v51, %v11929_v26  ;;  %v19452_v9 = vcombine.low %v11957_v8, %v11961_v7  ;;  %v11900_v8 = vld [vmem:[#allocation6 + $0x7c8] sm:$0xff] }
 0x7b3   :  { %v11904_v7 = vld [vmem:[#allocation6 + $0x828] sm:$0xff] }
 0x7b4   :  { %14434 = vmatpush1.bf16.msra.mxu1 %v19356_v2  ;;  %v11937_v2 = vld [vmem:[#allocation6 + $0xb30] sm:$0xff] }
 0x7b5   :  { %11757 = vmatpush1.bf16.msra.mxu0 %v21496_v4  ;;  %14435 = vmatprep.subr.bf16.mxu1 %v19365_v52  ;;  %v11828_v4 = vld [vmem:[#allocation6 + $0x108] sm:$0xff]  ;;  %v19429_v14 = vcombine.high %v11933_v1, %v11937_v2  ;;  %v19428_v19 = vcombine.low %v11933_v1, %v11937_v2 }
 0x7b6   :  { %11758 = vmatprep.subr.bf16.mxu0 %v21501_v56  ;;  %v11832_v52 = vld [vmem:[#allocation6 + $0x168] sm:$0xff]  ;;  %v19420_v56 = vcombine.low %v11925_v51, %v11929_v26 }
 0x7b7   :  { %v11868_v51 = vld [vmem:[#allocation6 + $0x4c8] sm:$0xff] }
 0x7b8   :  { %14436 = vmatpush1.bf16.msra.mxu1 %v19364_v12  ;;  %v19323_v12 = vcombine.high %v11828_v4, %v11832_v52  ;;  %v11872_v26 = vld [vmem:[#allocation6 + $0x528] sm:$0xff] }
 0x7b9   :  { %11759 = vmatpush1.bf16.msra.mxu0 %v21499_v6  ;;  %14437 = vmatprep.subr.bf16.mxu1 %v19373_v21  ;;  %v11941_v6 = vld [vmem:[#allocation6 + $0xb90] sm:$0xff]  ;;  %v11876_v1 = vld [vmem:[#allocation6 + $0x588] sm:$0xff] }
 0x7ba   :  { %11760 = vmatprep.subr.bf16.mxu0 %v21504_v37  ;;  %v11945_v21 = vld [vmem:[#allocation6 + $0xbf0] sm:$0xff]  ;;  %v11836_v37 = vld [vmem:[#allocation6 + $0x1c8] sm:$0xff] }
 0x7bb   :  { %v11880_v2 = vld [vmem:[#allocation6 + $0x5e8] sm:$0xff] }
 0x7bc   :  { %14438 = vmatpush1.bf16.msra.mxu1 %v19372_v61  ;;  %v19322_v61 = vcombine.low %v11828_v4, %v11832_v52  ;;  %v19362_v52 = vcombine.low %v11868_v51, %v11872_v26 }
 0x7bd   :  { %11761 = vmatpush1.bf16.msra.mxu0 %v21502_v54  ;;  %14439 = vmatprep.subr.bf16.mxu1 %v19381_v58  ;;  %v19437_v54 = vcombine.high %v11941_v6, %v11945_v21  ;;  %v19331_v58 = vcombine.high %v11836_v37, %v11840_v48 }
 0x7be   :  { %11762 = vmatprep.subr.bf16.mxu0 %v21507_v0  ;;  %v11949_v0 = vld [vmem:[#allocation6 + $0xc50] sm:$0xff] }
 0x7c0   :  { %14440 = vmatpush1.bf16.msra.mxu1 %v19380_v27  ;;  %v11848_v27 = vld [vmem:[#allocation6 + $0x2e8] sm:$0xff] }
 0x7c1   :  { %11763 = vmatpush1.bf16.msra.mxu0 %v21505_v45  ;;  %14441 = vmatprep.subr.bf16.mxu1 %v19389_v53  ;;  %v19436_v45 = vcombine.low %v11941_v6, %v11945_v21  ;;  %v19330_v53 = vcombine.low %v11836_v37, %v11840_v48  ;;  %v11884_v6 = vld [vmem:[#allocation6 + $0x648] sm:$0xff]  ;;  %v19370_v48 = vcombine.low %v11876_v1, %v11880_v2 }
 0x7c2   :  { %11764 = vmatprep.subr.bf16.mxu0 %v21510_v30  ;;  %v19339_v30 = vcombine.high %v11844_v23, %v11848_v27  ;;  %v11888_v21 = vld [vmem:[#allocation6 + $0x6a8] sm:$0xff] }
 0x7c4   :  { %14442 = vmatpush1.bf16.msra.mxu1 %v19388_v17  ;;  %v11852_v17 = vld [vmem:[#allocation6 + $0x348] sm:$0xff] }
 0x7c5   :  { %11765 = vmatpush1.bf16.msra.mxu0 %v21508_v25  ;;  %14443 = vmatprep.subr.bf16.mxu1 %v19397_v38  ;;  %v11856_v25 = vld [vmem:[#allocation6 + $0x3a8] sm:$0xff]  ;;  %v19444_v38 = vcombine.low %v11949_v0, %v11953_v60 }
 0x7c6   :  { %11766 = vmatprep.subr.bf16.mxu0 %v21513_v39  ;;  %v19338_v39 = vcombine.low %v11844_v23, %v11848_v27  ;;  %v19347_v42 = vcombine.high %v11852_v17, %v11856_v25  ;;  %v19346_v29 = vcombine.low %v11852_v17, %v11856_v25  ;;  %v19378_v27 = vcombine.low %v11884_v6, %v11888_v21 }
 0x7c8   :  { %14444 = vmatpush1.bf16.msra.mxu1 %v19396_v46  ;;  %v11965_v46 = vld [vmem:[#allocation6 + $0xdd0] sm:$0xff] }
 0x7c9   :  { %11767 = vmatpush1.bf16.msra.mxu0 %v21511_v34  ;;  %14445 = vmatprep.subr.bf16.mxu1 %v19405_v47  ;;  %v11969_v34 = vld [vmem:[#allocation6 + $0xe30] sm:$0xff]  ;;  %v11860_v47 = vld [vmem:[#allocation6 + $0x408] sm:$0xff] }
 0x7ca   :  { %11768 = vmatprep.subr.bf16.mxu0 %v21516_v49  ;;  %v11864_v49 = vld [vmem:[#allocation6 + $0x468] sm:$0xff]  ;;  %v19460_v44 = vcombine.low %v11965_v46, %v11969_v34 }
 0x7cb   :  { %v19354_v11 = vcombine.low %v11860_v47, %v11864_v49 }
 0x7cc   :  { %14446 = vmatpush1.bf16.msra.mxu1 %v19404_v32  ;;  %v19461_v32 = vcombine.high %v11965_v46, %v11969_v34  ;;  %v11908_v46 = vld [vmem:[#allocation6 + $0x888] sm:$0xff] }
 0x7cd   :  { %11769 = vmatpush1.bf16.msra.mxu0 %v21514_v55  ;;  %14447 = vmatprep.subr.bf16.mxu1 %v19413_v13  ;;  %v19355_v55 = vcombine.high %v11860_v47, %v11864_v49  ;;  %v11973_v13 = vld [vmem:[#allocation6 + $0xe90] sm:$0xff]  ;;  %v11912_v34 = vld [vmem:[#allocation6 + $0x8e8] sm:$0xff]  ;;  %v19394_v49 = vcombine.low %v11900_v8, %v11904_v7 }
 0x7ce   :  { %11770 = vmatprep.subr.bf16.mxu0 %v21519_v31  ;;  %v11977_v31 = vld [vmem:[#allocation6 + $0xef0] sm:$0xff] }
 0x7cf   :  { %v19468_v4 = vcombine.low %v11973_v13, %v11977_v31 }
 0x7d0   :  { %14448 = vmatpush1.bf16.msra.mxu1 %v19412_v35  ;;  %v19469_v35 = vcombine.high %v11973_v13, %v11977_v31  ;;  %v11916_v13 = vld [vmem:[#allocation6 + $0x948] sm:$0xff] }
 0x7d1   :  { %11771 = vmatpush1.bf16.msra.mxu0 %v21517_v16  ;;  %14449 = vmatprep.subr.bf16.mxu1 %v19421_v63  ;;  %v19363_v16 = vcombine.high %v11868_v51, %v11872_v26  ;;  %v11981_v63 = vld [vmem:[#allocation6 + $0xf50] sm:$0xff]  ;;  %v11920_v31 = vld [vmem:[#allocation6 + $0x9a8] sm:$0xff]  ;;  %v19402_v26 = vcombine.low %v11908_v46, %v11912_v34 }
 0x7d2   :  { %14294 = vmatprep.subr.bf16.mxu0 %v19315_v22  ;;  %v11985_v22 = vld [vmem:[#allocation6 + $0xfb0] sm:$0xff] }
 0x7d3   :  { %v19476_v37 = vcombine.low %v11981_v63, %v11985_v22 }
 0x7d4   :  { %11773 = vmatmul.mubr.bf16.vlgmr.msra.gmra.mrb[8].mxu0 %v22766_v15  ;;  %14450 = vmatpush1.bf16.msra.mxu1 %v19420_v56  ;;  %v19445_v15 = vcombine.high %v11949_v0, %v11953_v60  ;;  %v19477_v56 = vcombine.high %v11981_v63, %v11985_v22  ;;  %v11892_v0 = vld [vmem:[#allocation6 + $0x708] sm:$0xff] }
 0x7d5   :  { %14295 = vmatpush1.bf16.msra.mxu0 %v19314_v5  ;;  %14451 = vmatprep.subr.bf16.mxu1 %v19429_v14  ;;  %v19371_v5 = vcombine.high %v11876_v1, %v11880_v2  ;;  %v11989_v14 = vld [vmem:[#allocation6 + $0x1010] sm:$0xff]  ;;  %v11896_v60 = vld [vmem:[#allocation6 + $0x768] sm:$0xff]  ;;  %v19410_v2 = vcombine.low %v11916_v13, %v11920_v31 }
 0x7d6   :  { %14296 = vmatprep.subr.bf16.mxu0 %v19323_v12  ;;  %14326 = vmatprep.mubr.bf16.mxu0 %v22440_v20  ;;  %v11993_v12 = vld [vmem:[#allocation6 + $0x1070] sm:$0xff]  ;;  %v19386_v25 = vcombine.low %v11892_v0, %v11896_v60  ;;  %v11924_v63 = vld [vmem:[#allocation6 + $0xa08] sm:$0xff] }
 0x7d7   :  { %v19484_v23 = vcombine.low %v11989_v14, %v11993_v12  ;;  %v11928_v22 = vld [vmem:[#allocation6 + $0xa68] sm:$0xff] }
 0x7d8   :  { %14452 = vmatpush1.bf16.msra.mxu1 %v19428_v19  ;;  %v19485_v19 = vcombine.high %v11989_v14, %v11993_v12  ;;  %v11932_v14 = vld [vmem:[#allocation6 + $0xac8] sm:$0xff] }
 0x7d9   :  { %14297 = vmatpush1.bf16.msra.mxu0 %v19322_v61  ;;  %14453 = vmatprep.subr.bf16.mxu1 %v19437_v54  ;;  %v19379_v61 = vcombine.high %v11884_v6, %v11888_v21  ;;  %v11997_v54 = vld [vmem:[#allocation6 + $0x10d0] sm:$0xff]  ;;  %v11936_v12 = vld [vmem:[#allocation6 + $0xb28] sm:$0xff]  ;;  %v19418_v21 = vcombine.low %v11924_v63, %v11928_v22 }
 0x7da   :  { %14298 = vmatprep.subr.bf16.mxu0 %v19331_v58  ;;  %v12001_v58 = vld [vmem:[#allocation6 + $0x1130] sm:$0xff] }
 0x7db   :  { %v19492_v17 = vcombine.low %v11997_v54, %v12001_v58 }
 0x7dc   :  { %14454 = vmatpush1.bf16.msra.mxu1 %v19436_v45  ;;  %v19493_v45 = vcombine.high %v11997_v54, %v12001_v58  ;;  %v11940_v54 = vld [vmem:[#allocation6 + $0xb88] sm:$0xff] }
 0x7dd   :  { %14299 = vmatpush1.bf16.msra.mxu0 %v19330_v53  ;;  %14466 = vmatprep.subr.bf16.mxu1 %v19445_v15  ;;  %v19387_v53 = vcombine.high %v11892_v0, %v11896_v60  ;;  %v12005_v15 = vld [vmem:[#allocation6 + $0x1190] sm:$0xff]  ;;  %v11944_v58 = vld [vmem:[#allocation6 + $0xbe8] sm:$0xff]  ;;  %v19426_v60 = vcombine.low %v11932_v14, %v11936_v12 }
 0x7de   :  { %14300 = vmatprep.subr.bf16.mxu0 %v19339_v30  ;;  %v12009_v30 = vld [vmem:[#allocation6 + $0x11f0] sm:$0xff] }
 0x7df   :  { %14456 = vmatmul.mubr.bf16.vlgmr.msra.gmra.mrb[32].mxu1 %v22444_v24  ;;  %v19500_v47 = vcombine.low %v12005_v15, %v12009_v30 }
 0x7e0   :  { %14467 = vmatpush1.bf16.msra.mxu1 %v19444_v38  ;;  %14498 = vmatprep.mubr.bf16.mxu1 %v22446_v28  ;;  %v19501_v38 = vcombine.high %v12005_v15, %v12009_v30  ;;  %v11948_v15 = vld [vmem:[#allocation6 + $0xc48] sm:$0xff] }
 0x7e1   :  { %14301 = vmatpush1.bf16.msra.mxu0 %v19338_v39  ;;  %14468 = vmatprep.subr.bf16.mxu1 %v19453_v18  ;;  %v19395_v39 = vcombine.high %v11900_v8, %v11904_v7  ;;  %v12013_v18 = vld [vmem:[#allocation6 + $0x1250] sm:$0xff]  ;;  %v11952_v30 = vld [vmem:[#allocation6 + $0xca8] sm:$0xff]  ;;  %v19434_v7 = vcombine.low %v11940_v54, %v11944_v58 }
 0x7e2   :  { %14302 = vmatprep.subr.bf16.mxu0 %v19347_v42  ;;  %v12017_v42 = vld [vmem:[#allocation6 + $0x12b0] sm:$0xff] }
 0x7e3   :  { %v19508_v51 = vcombine.low %v12013_v18, %v12017_v42 }
 0x7e4   :  { %14469 = vmatpush1.bf16.msra.mxu1 %v19452_v9  ;;  %v19509_v9 = vcombine.high %v12013_v18, %v12017_v42  ;;  %v11956_v18 = vld [vmem:[#allocation6 + $0xd08] sm:$0xff] }
 0x7e5   :  { %14303 = vmatpush1.bf16.msra.mxu0 %v19346_v29  ;;  %14470 = vmatprep.subr.bf16.mxu1 %v19461_v32  ;;  %v19403_v29 = vcombine.high %v11908_v46, %v11912_v34  ;;  %v12021_v32 = vld [vmem:[#allocation6 + $0x1310] sm:$0xff]  ;;  %v11960_v42 = vld [vmem:[#allocation6 + $0xd68] sm:$0xff]  ;;  %v19442_v34 = vcombine.low %v11948_v15, %v11952_v30 }
 0x7e6   :  { %14304 = vmatprep.subr.bf16.mxu0 %v19355_v55  ;;  %v12025_v55 = vld [vmem:[#allocation6 + $0x1370] sm:$0xff] }
 0x7e7   :  { %v19516_v1 = vcombine.low %v12021_v32, %v12025_v55 }
 0x7e8   :  { %14471 = vmatpush1.bf16.msra.mxu1 %v19460_v44  ;;  %v19517_v44 = vcombine.high %v12021_v32, %v12025_v55  ;;  %v11964_v32 = vld [vmem:[#allocation6 + $0xdc8] sm:$0xff] }
 0x7e9   :  { %14305 = vmatpush1.bf16.msra.mxu0 %v19354_v11  ;;  %14472 = vmatprep.subr.bf16.mxu1 %v19469_v35  ;;  %v19411_v11 = vcombine.high %v11916_v13, %v11920_v31  ;;  %v12029_v35 = vld [vmem:[#allocation6 + $0x13d0] sm:$0xff]  ;;  %v11968_v55 = vld [vmem:[#allocation6 + $0xe28] sm:$0xff]  ;;  %v19450_v31 = vcombine.low %v11956_v18, %v11960_v42 }
 0x7ea   :  { %14306 = vmatprep.subr.bf16.mxu0 %v19363_v16  ;;  %v12033_v16 = vld [vmem:[#allocation6 + $0x1430] sm:$0xff] }
 0x7eb   :  { %v19524_v6 = vcombine.low %v12029_v35, %v12033_v16 }
 0x7ec   :  { %14473 = vmatpush1.bf16.msra.mxu1 %v19468_v4  ;;  %v19525_v4 = vcombine.high %v12029_v35, %v12033_v16  ;;  %v11972_v35 = vld [vmem:[#allocation6 + $0xe88] sm:$0xff] }
 0x7ed   :  { %14307 = vmatpush1.bf16.msra.mxu0 %v19362_v52  ;;  %14474 = vmatprep.subr.bf16.mxu1 %v19477_v56  ;;  %v19419_v52 = vcombine.high %v11924_v63, %v11928_v22  ;;  %v12037_v56 = vld [vmem:[#allocation6 + $0x1490] sm:$0xff]  ;;  %v11976_v16 = vld [vmem:[#allocation6 + $0xee8] sm:$0xff]  ;;  %v19458_v22 = vcombine.low %v11964_v32, %v11968_v55 }
 0x7ee   :  { %14308 = vmatprep.subr.bf16.mxu0 %v19371_v5  ;;  %v12041_v5 = vld [vmem:[#allocation6 + $0x14f0] sm:$0xff] }
 0x7ef   :  { %v19532_v0 = vcombine.low %v12037_v56, %v12041_v5 }
 0x7f0   :  { %14475 = vmatpush1.bf16.msra.mxu1 %v19476_v37  ;;  %v19533_v37 = vcombine.high %v12037_v56, %v12041_v5  ;;  %v11980_v56 = vld [vmem:[#allocation6 + $0xf48] sm:$0xff] }
 0x7f1   :  { %14309 = vmatpush1.bf16.msra.mxu0 %v19370_v48  ;;  %14476 = vmatprep.subr.bf16.mxu1 %v19485_v19  ;;  %v19427_v48 = vcombine.high %v11932_v14, %v11936_v12  ;;  %v12045_v19 = vld [vmem:[#allocation6 + $0x1550] sm:$0xff]  ;;  %v11984_v5 = vld [vmem:[#allocation6 + $0xfa8] sm:$0xff]  ;;  %v19466_v12 = vcombine.low %v11972_v35, %v11976_v16 }
 0x7f2   :  { %14310 = vmatprep.subr.bf16.mxu0 %v19379_v61  ;;  %v12049_v61 = vld [vmem:[#allocation6 + $0x15b0] sm:$0xff] }
 0x7f3   :  { %v19540_v8 = vcombine.low %v12045_v19, %v12049_v61 }
 0x7f4   :  { %14477 = vmatpush1.bf16.msra.mxu1 %v19484_v23  ;;  %v19541_v23 = vcombine.high %v12045_v19, %v12049_v61  ;;  %v11988_v19 = vld [vmem:[#allocation6 + $0x1008] sm:$0xff] }
 0x7f5   :  { %14311 = vmatpush1.bf16.msra.mxu0 %v19378_v27  ;;  %14478 = vmatprep.subr.bf16.mxu1 %v19493_v45  ;;  %v19435_v27 = vcombine.high %v11940_v54, %v11944_v58  ;;  %v12053_v45 = vld [vmem:[#allocation6 + $0x1610] sm:$0xff]  ;;  %v11992_v61 = vld [vmem:[#allocation6 + $0x1068] sm:$0xff]  ;;  %v19474_v58 = vcombine.low %v11980_v56, %v11984_v5 }
 0x7f6   :  { %14312 = vmatprep.subr.bf16.mxu0 %v19387_v53  ;;  %v12057_v53 = vld [vmem:[#allocation6 + $0x1670] sm:$0xff] }
 0x7f7   :  { %v19548_v46 = vcombine.low %v12053_v45, %v12057_v53 }
 0x7f8   :  { %14479 = vmatpush1.bf16.msra.mxu1 %v19492_v17  ;;  %v19549_v17 = vcombine.high %v12053_v45, %v12057_v53  ;;  %v11996_v45 = vld [vmem:[#allocation6 + $0x10c8] sm:$0xff] }
 0x7f9   :  { %14313 = vmatpush1.bf16.msra.mxu0 %v19386_v25  ;;  %14480 = vmatprep.subr.bf16.mxu1 %v19501_v38  ;;  %v19443_v25 = vcombine.high %v11948_v15, %v11952_v30  ;;  %v12061_v38 = vld [vmem:[#allocation6 + $0x16d0] sm:$0xff]  ;;  %v12000_v53 = vld [vmem:[#allocation6 + $0x1128] sm:$0xff]  ;;  %v19482_v30 = vcombine.low %v11988_v19, %v11992_v61 }
 0x7fa   :  { %14314 = vmatprep.subr.bf16.mxu0 %v19395_v39  ;;  %v12065_v39 = vld [vmem:[#allocation6 + $0x1730] sm:$0xff] }
 0x7fb   :  { %v19556_v13 = vcombine.low %v12061_v38, %v12065_v39 }
 0x7fc   :  { %14481 = vmatpush1.bf16.msra.mxu1 %v19500_v47  ;;  %v19557_v47 = vcombine.high %v12061_v38, %v12065_v39  ;;  %v12004_v38 = vld [vmem:[#allocation6 + $0x1188] sm:$0xff] }
 0x7fd   :  { %14315 = vmatpush1.bf16.msra.mxu0 %v19394_v49  ;;  %14482 = vmatprep.subr.bf16.mxu1 %v19509_v9  ;;  %v19451_v49 = vcombine.high %v11956_v18, %v11960_v42  ;;  %v12069_v9 = vld [vmem:[#allocation6 + $0x1790] sm:$0xff]  ;;  %v12008_v39 = vld [vmem:[#allocation6 + $0x11e8] sm:$0xff]  ;;  %v19490_v42 = vcombine.low %v11996_v45, %v12000_v53 }
 0x7fe   :  { %14316 = vmatprep.subr.bf16.mxu0 %v19403_v29  ;;  %v12073_v29 = vld [vmem:[#allocation6 + $0x17f0] sm:$0xff] }
 0x7ff   :  { %v19564_v63 = vcombine.low %v12069_v9, %v12073_v29 }
 0x800   :  { %14483 = vmatpush1.bf16.msra.mxu1 %v19508_v51  ;;  %v19565_v51 = vcombine.high %v12069_v9, %v12073_v29  ;;  %v12012_v9 = vld [vmem:[#allocation6 + $0x1248] sm:$0xff] }
 0x801   :  { %14317 = vmatpush1.bf16.msra.mxu0 %v19402_v26  ;;  %14484 = vmatprep.subr.bf16.mxu1 %v19517_v44  ;;  %v19459_v26 = vcombine.high %v11964_v32, %v11968_v55  ;;  %v12077_v44 = vld [vmem:[#allocation6 + $0x1850] sm:$0xff]  ;;  %v12016_v29 = vld [vmem:[#allocation6 + $0x12a8] sm:$0xff]  ;;  %v19498_v55 = vcombine.low %v12004_v38, %v12008_v39 }
 0x802   :  { %14318 = vmatprep.subr.bf16.mxu0 %v19411_v11  ;;  %v12081_v11 = vld [vmem:[#allocation6 + $0x18b0] sm:$0xff] }
 0x803   :  { %v19572_v14 = vcombine.low %v12077_v44, %v12081_v11 }
 0x804   :  { %14485 = vmatpush1.bf16.msra.mxu1 %v19516_v1  ;;  %v19573_v1 = vcombine.high %v12077_v44, %v12081_v11  ;;  %v12020_v44 = vld [vmem:[#allocation6 + $0x1308] sm:$0xff] }
 0x805   :  { %14319 = vmatpush1.bf16.msra.mxu0 %v19410_v2  ;;  %14486 = vmatprep.subr.bf16.mxu1 %v19525_v4  ;;  %v19467_v2 = vcombine.high %v11972_v35, %v11976_v16  ;;  %v12085_v4 = vld [vmem:[#allocation6 + $0x1910] sm:$0xff]  ;;  %v12024_v11 = vld [vmem:[#allocation6 + $0x1368] sm:$0xff]  ;;  %v19506_v16 = vcombine.low %v12012_v9, %v12016_v29 }
 0x806   :  { %14320 = vmatprep.subr.bf16.mxu0 %v19419_v52  ;;  %v12089_v52 = vld [vmem:[#allocation6 + $0x1970] sm:$0xff] }
 0x807   :  { %v19580_v54 = vcombine.low %v12085_v4, %v12089_v52 }
 0x808   :  { %14487 = vmatpush1.bf16.msra.mxu1 %v19524_v6  ;;  %v19581_v6 = vcombine.high %v12085_v4, %v12089_v52  ;;  %v12028_v4 = vld [vmem:[#allocation6 + $0x13c8] sm:$0xff] }
 0x809   :  { %14321 = vmatpush1.bf16.msra.mxu0 %v19418_v21  ;;  %14488 = vmatprep.subr.bf16.mxu1 %v19533_v37  ;;  %v19475_v21 = vcombine.high %v11980_v56, %v11984_v5  ;;  %v12093_v37 = vld [vmem:[#allocation6 + $0x19d0] sm:$0xff]  ;;  %v12032_v52 = vld [vmem:[#allocation6 + $0x1428] sm:$0xff]  ;;  %v19514_v5 = vcombine.low %v12020_v44, %v12024_v11 }
 0x80a   :  { %14322 = vmatprep.subr.bf16.mxu0 %v19427_v48  ;;  %v12097_v48 = vld [vmem:[#allocation6 + $0x1a30] sm:$0xff] }
 0x80b   :  { %v19588_v15 = vcombine.low %v12093_v37, %v12097_v48 }
 0x80c   :  { %14489 = vmatpush1.bf16.msra.mxu1 %v19532_v0  ;;  %v19589_v0 = vcombine.high %v12093_v37, %v12097_v48  ;;  %v12036_v37 = vld [vmem:[#allocation6 + $0x1488] sm:$0xff] }
 0x80d   :  { %14323 = vmatpush1.bf16.msra.mxu0 %v19426_v60  ;;  %14490 = vmatprep.subr.bf16.mxu1 %v19541_v23  ;;  %v19483_v60 = vcombine.high %v11988_v19, %v11992_v61  ;;  %v12101_v23 = vld [vmem:[#allocation6 + $0x1a90] sm:$0xff]  ;;  %v12040_v48 = vld [vmem:[#allocation6 + $0x14e8] sm:$0xff]  ;;  %v19522_v61 = vcombine.low %v12028_v4, %v12032_v52 }
 0x80e   :  { %14324 = vmatprep.subr.bf16.mxu0 %v19435_v27  ;;  %v12105_v27 = vld [vmem:[#allocation6 + $0x1af0] sm:$0xff] }
 0x80f   :  { %v19596_v18 = vcombine.low %v12101_v23, %v12105_v27 }
 0x810   :  { %14491 = vmatpush1.bf16.msra.mxu1 %v19540_v8  ;;  %v19597_v8 = vcombine.high %v12101_v23, %v12105_v27  ;;  %v12044_v23 = vld [vmem:[#allocation6 + $0x1548] sm:$0xff] }
 0x811   :  { %14325 = vmatpush1.bf16.msra.mxu0 %v19434_v7  ;;  %14492 = vmatprep.subr.bf16.mxu1 %v19549_v17  ;;  %v19491_v7 = vcombine.high %v11996_v45, %v12000_v53  ;;  %v12109_v17 = vld [vmem:[#allocation6 + $0x1b50] sm:$0xff]  ;;  %v12048_v27 = vld [vmem:[#allocation6 + $0x15a8] sm:$0xff]  ;;  %v19530_v53 = vcombine.low %v12036_v37, %v12040_v48 }
 0x812   :  { %14337 = vmatprep.subr.bf16.mxu0 %v19443_v25  ;;  %v12113_v25 = vld [vmem:[#allocation6 + $0x1bb0] sm:$0xff] }
 0x813   :  { %v19604_v32 = vcombine.low %v12109_v17, %v12113_v25 }
 0x814   :  { %14327 = vmatmul.mubr.bf16.vlgmr.msra.gmra.mrb[16].mxu0 %v22444_v24  ;;  %14493 = vmatpush1.bf16.msra.mxu1 %v19548_v46  ;;  %v19605_v46 = vcombine.high %v12109_v17, %v12113_v25  ;;  %v12052_v17 = vld [vmem:[#allocation6 + $0x1608] sm:$0xff] }
 0x815   :  { %14338 = vmatpush1.bf16.msra.mxu0 %v19442_v34  ;;  %14494 = vmatprep.subr.bf16.mxu1 %v19557_v47  ;;  %v19499_v34 = vcombine.high %v12004_v38, %v12008_v39  ;;  %v12117_v47 = vld [vmem:[#allocation6 + $0x1c10] sm:$0xff]  ;;  %v12056_v25 = vld [vmem:[#allocation6 + $0x1668] sm:$0xff]  ;;  %v19538_v39 = vcombine.low %v12044_v23, %v12048_v27 }
 0x816   :  { %14339 = vmatprep.subr.bf16.mxu0 %v19451_v49  ;;  %14369 = vmatprep.mubr.bf16.mxu0 %v22446_v28  ;;  %v12121_v49 = vld [vmem:[#allocation6 + $0x1c70] sm:$0xff] }
 0x817   :  { %v19612_v35 = vcombine.low %v12117_v47, %v12121_v49 }
 0x818   :  { %14495 = vmatpush1.bf16.msra.mxu1 %v19556_v13  ;;  %v19613_v13 = vcombine.high %v12117_v47, %v12121_v49  ;;  %v12060_v47 = vld [vmem:[#allocation6 + $0x16c8] sm:$0xff] }
 0x819   :  { %14340 = vmatpush1.bf16.msra.mxu0 %v19450_v31  ;;  %14496 = vmatprep.subr.bf16.mxu1 %v19565_v51  ;;  %v19507_v31 = vcombine.high %v12012_v9, %v12016_v29  ;;  %v12125_v51 = vld [vmem:[#allocation6 + $0x1cd0] sm:$0xff]  ;;  %v12064_v49 = vld [vmem:[#allocation6 + $0x1728] sm:$0xff]  ;;  %v19546_v29 = vcombine.low %v12052_v17, %v12056_v25 }
 0x81a   :  { %14341 = vmatprep.subr.bf16.mxu0 %v19459_v26  ;;  %v12129_v26 = vld [vmem:[#allocation6 + $0x1d30] sm:$0xff] }
 0x81b   :  { %v19620_v56 = vcombine.low %v12125_v51, %v12129_v26 }
 0x81c   :  { %14497 = vmatpush1.bf16.msra.mxu1 %v19564_v63  ;;  %v19621_v63 = vcombine.high %v12125_v51, %v12129_v26  ;;  %v12068_v51 = vld [vmem:[#allocation6 + $0x1788] sm:$0xff] }
 0x81d   :  { %14342 = vmatpush1.bf16.msra.mxu0 %v19458_v22  ;;  %14509 = vmatprep.subr.bf16.mxu1 %v19573_v1  ;;  %v19515_v22 = vcombine.high %v12020_v44, %v12024_v11  ;;  %v12133_v1 = vld [vmem:[#allocation6 + $0x1d90] sm:$0xff]  ;;  %v12072_v26 = vld [vmem:[#allocation6 + $0x17e8] sm:$0xff]  ;;  %v19554_v11 = vcombine.low %v12060_v47, %v12064_v49 }
 0x81e   :  { %14343 = vmatprep.subr.bf16.mxu0 %v19467_v2  ;;  %v12137_v2 = vld [vmem:[#allocation6 + $0x1df0] sm:$0xff] }
 0x81f   :  { %14499 = vmatmul.mubr.bf16.vlgmr.msra.gmra.mrb[32].mxu1 %v22452_v36  ;;  %v19628_v19 = vcombine.low %v12133_v1, %v12137_v2 }
 0x820   :  { %14510 = vmatpush1.bf16.msra.mxu1 %v19572_v14  ;;  %14541 = vmatprep.mubr.bf16.mxu1 %v22454_v41  ;;  %v19629_v14 = vcombine.high %v12133_v1, %v12137_v2  ;;  %v12076_v1 = vld [vmem:[#allocation6 + $0x1848] sm:$0xff] }
 0x821   :  { %14344 = vmatpush1.bf16.msra.mxu0 %v19466_v12  ;;  %14511 = vmatprep.subr.bf16.mxu1 %v19581_v6  ;;  %v19523_v12 = vcombine.high %v12028_v4, %v12032_v52  ;;  %v12141_v6 = vld [vmem:[#allocation6 + $0x1e50] sm:$0xff]  ;;  %v12080_v2 = vld [vmem:[#allocation6 + $0x18a8] sm:$0xff]  ;;  %v19562_v52 = vcombine.low %v12068_v51, %v12072_v26 }
 0x822   :  { %14345 = vmatprep.subr.bf16.mxu0 %v19475_v21  ;;  %v12145_v21 = vld [vmem:[#allocation6 + $0x1eb0] sm:$0xff] }
 0x823   :  { %v19636_v45 = vcombine.low %v12141_v6, %v12145_v21 }
 0x824   :  { %14512 = vmatpush1.bf16.msra.mxu1 %v19580_v54  ;;  %v19637_v54 = vcombine.high %v12141_v6, %v12145_v21  ;;  %v12084_v6 = vld [vmem:[#allocation6 + $0x1908] sm:$0xff] }
 0x825   :  { %14346 = vmatpush1.bf16.msra.mxu0 %v19474_v58  ;;  %14513 = vmatprep.subr.bf16.mxu1 %v19589_v0  ;;  %v19531_v58 = vcombine.high %v12036_v37, %v12040_v48  ;;  %v12149_v0 = vld [vmem:[#allocation6 + $0x1f10] sm:$0xff]  ;;  %v12088_v21 = vld [vmem:[#allocation6 + $0x1968] sm:$0xff]  ;;  %v19570_v48 = vcombine.low %v12076_v1, %v12080_v2 }
 0x826   :  { %14347 = vmatprep.subr.bf16.mxu0 %v19483_v60  ;;  %v12153_v60 = vld [vmem:[#allocation6 + $0x1f70] sm:$0xff] }
 0x827   :  { %v19644_v38 = vcombine.low %v12149_v0, %v12153_v60 }
 0x828   :  { %14514 = vmatpush1.bf16.msra.mxu1 %v19588_v15  ;;  %v19645_v15 = vcombine.high %v12149_v0, %v12153_v60  ;;  %v12092_v0 = vld [vmem:[#allocation6 + $0x19c8] sm:$0xff] }
 0x829   :  { %14348 = vmatpush1.bf16.msra.mxu0 %v19482_v30  ;;  %14515 = vmatprep.subr.bf16.mxu1 %v19597_v8  ;;  %v19539_v30 = vcombine.high %v12044_v23, %v12048_v27  ;;  %v12157_v8 = vld [vmem:[#allocation6 + $0x1fd0] sm:$0xff]  ;;  %v12096_v60 = vld [vmem:[#allocation6 + $0x1a28] sm:$0xff]  ;;  %v19578_v27 = vcombine.low %v12084_v6, %v12088_v21 }
 0x82a   :  { %14349 = vmatprep.subr.bf16.mxu0 %v19491_v7  ;;  %v12161_v7 = vld [vmem:[#allocation6 + $0x2030] sm:$0xff] }
 0x82b   :  { %v19652_v9 = vcombine.low %v12157_v8, %v12161_v7 }
 0x82c   :  { %14516 = vmatpush1.bf16.msra.mxu1 %v19596_v18  ;;  %v19653_v18 = vcombine.high %v12157_v8, %v12161_v7  ;;  %v19586_v7 = vcombine.low %v12092_v0, %v12096_v60 }
 0x82d   :  { %14350 = vmatpush1.bf16.msra.mxu0 %v19490_v42  ;;  %14517 = vmatprep.subr.bf16.mxu1 %v19605_v46  ;;  %v19547_v42 = vcombine.high %v12052_v17, %v12056_v25  ;;  %v12165_v46 = vld [vmem:[#allocation6 + $0x2090] sm:$0xff]  ;;  %v21522_v17 = vld [vmem:[#allocation9 + $0x180c] ss:$24 sps:$4 sm:$0xff]  }
 0x82e   :  { %14351 = vmatprep.subr.bf16.mxu0 %v19499_v34  ;;  %v12169_v34 = vld [vmem:[#allocation6 + $0x20f0] sm:$0xff] }
 0x82f   :  { %v19660_v44 = vcombine.low %v12165_v46, %v12169_v34 }
 0x830   :  { %14518 = vmatpush1.bf16.msra.mxu1 %v19604_v32  ;;  %v19661_v32 = vcombine.high %v12165_v46, %v12169_v34  ;;  %v21525_v46 = vld [vmem:[#allocation9 + $0x183c] ss:$24 sps:$4 sm:$0xff]  }
 0x831   :  { %14352 = vmatpush1.bf16.msra.mxu0 %v19498_v55  ;;  %14519 = vmatprep.subr.bf16.mxu1 %v19613_v13  ;;  %v19555_v55 = vcombine.high %v12060_v47, %v12064_v49  ;;  %v12173_v13 = vld [vmem:[#allocation6 + $0x2150] sm:$0xff]  ;;  %v12116_v47 = vld [vmem:[#allocation6 + $0x1c08] sm:$0xff] }
 0x832   :  { %14353 = vmatprep.subr.bf16.mxu0 %v19507_v31  ;;  %v12177_v31 = vld [vmem:[#allocation6 + $0x21b0] sm:$0xff]  ;;  %v12120_v49 = vld [vmem:[#allocation6 + $0x1c68] sm:$0xff] }
 0x833   :  { %v19668_v4 = vcombine.low %v12173_v13, %v12177_v31 }
 0x834   :  { %14520 = vmatpush1.bf16.msra.mxu1 %v19612_v35  ;;  %v19669_v35 = vcombine.high %v12173_v13, %v12177_v31  ;;  %v12124_v13 = vld [vmem:[#allocation6 + $0x1cc8] sm:$0xff] }
 0x835   :  { %14354 = vmatpush1.bf16.msra.mxu0 %v19506_v16  ;;  %14521 = vmatprep.subr.bf16.mxu1 %v19621_v63  ;;  %v19563_v16 = vcombine.high %v12068_v51, %v12072_v26  ;;  %v12181_v63 = vld [vmem:[#allocation6 + $0x2210] sm:$0xff]  ;;  %v12128_v31 = vld [vmem:[#allocation6 + $0x1d28] sm:$0xff]  ;;  %v21526_v51 = vld [vmem:[#allocation9 + $0x1868] ss:$24 sps:$4 sm:$0xff]   ;;  %v19610_v26 = vcombine.low %v12116_v47, %v12120_v49 }
 0x836   :  { %14355 = vmatprep.subr.bf16.mxu0 %v19515_v22  ;;  %v12185_v22 = vld [vmem:[#allocation6 + $0x2270] sm:$0xff] }
 0x837   :  { %v19676_v37 = vcombine.low %v12181_v63, %v12185_v22 }
 0x838   :  { %14522 = vmatpush1.bf16.msra.mxu1 %v19620_v56  ;;  %v19677_v56 = vcombine.high %v12181_v63, %v12185_v22  ;;  %v21529_v63 = vld [vmem:[#allocation9 + $0x1898] ss:$24 sps:$4 sm:$0xff]   ;;  %v19618_v22 = vcombine.low %v12124_v13, %v12128_v31 }
 0x839   :  { %14356 = vmatpush1.bf16.msra.mxu0 %v19514_v5  ;;  %14523 = vmatprep.subr.bf16.mxu1 %v19629_v14  ;;  %v19571_v5 = vcombine.high %v12076_v1, %v12080_v2  ;;  %v12189_v14 = vld [vmem:[#allocation6 + $0x22d0] sm:$0xff]  ;;  %v21534_v1 = vld [vmem:[#allocation9 + $0x18cc] ss:$24 sps:$4 sm:$0xff]  }
 0x83a   :  { %14357 = vmatprep.subr.bf16.mxu0 %v19523_v12  ;;  %v12193_v12 = vld [vmem:[#allocation6 + $0x2330] sm:$0xff] }
 0x83b   :  { %v19684_v23 = vcombine.low %v12189_v14, %v12193_v12 }
 0x83c   :  { %14524 = vmatpush1.bf16.msra.mxu1 %v19628_v19  ;;  %v19685_v19 = vcombine.high %v12189_v14, %v12193_v12  ;;  %v21537_v12 = vld [vmem:[#allocation9 + $0x18fc] ss:$24 sps:$4 sm:$0xff]  }
 0x83d   :  { %14358 = vmatpush1.bf16.msra.mxu0 %v19522_v61  ;;  %14525 = vmatprep.subr.bf16.mxu1 %v19637_v54  ;;  %v19579_v61 = vcombine.high %v12084_v6, %v12088_v21  ;;  %v12197_v54 = vld [vmem:[#allocation6 + $0x2390] sm:$0xff]  ;;  %v12148_v21 = vld [vmem:[#allocation6 + $0x1f08] sm:$0xff] }
 0x83e   :  { %14359 = vmatprep.subr.bf16.mxu0 %v19531_v58  ;;  %v12201_v58 = vld [vmem:[#allocation6 + $0x23f0] sm:$0xff] }
 0x83f   :  { %v19692_v8 = vcombine.low %v12197_v54, %v12201_v58 }
 0x840   :  { %14526 = vmatpush1.bf16.msra.mxu1 %v19636_v45  ;;  %v19693_v45 = vcombine.high %v12197_v54, %v12201_v58  ;;  %v21540_v58 = vld [vmem:[#allocation9 + $0x192c] ss:$24 sps:$4 sm:$0xff]  }
 0x841   :  { %14360 = vmatpush1.bf16.msra.mxu0 %v19530_v53  ;;  %14527 = vmatprep.subr.bf16.mxu1 %v19645_v15  ;;  %v19587_v53 = vcombine.high %v12092_v0, %v12096_v60  ;;  %v12100_v15 = vld [vmem:[#allocation6 + $0x1a88] sm:$0xff] }
 0x842   :  { %14361 = vmatprep.subr.bf16.mxu0 %v19539_v30  ;;  %v12104_v30 = vld [vmem:[#allocation6 + $0x1ae8] sm:$0xff] }
 0x843   :  { %v19595_v25 = vcombine.high %v12100_v15, %v12104_v30 }
 0x844   :  { %14528 = vmatpush1.bf16.msra.mxu1 %v19644_v38  ;;  %v12108_v38 = vld [vmem:[#allocation6 + $0x1b48] sm:$0xff] }
 0x845   :  { %14362 = vmatpush1.bf16.msra.mxu0 %v19538_v39  ;;  %14529 = vmatprep.subr.bf16.mxu1 %v19653_v18  ;;  %v12112_v39 = vld [vmem:[#allocation6 + $0x1ba8] sm:$0xff]  ;;  %v21520_v18 = vld [vmem:[#allocation9 + $0x1808] ss:$24 sps:$4 sm:$0xff]  }
 0x846   :  { %14363 = vmatprep.subr.bf16.mxu0 %v19547_v42  ;;  %v19594_v42 = vcombine.low %v12100_v15, %v12104_v30  ;;  %v19603_v34 = vcombine.high %v12108_v38, %v12112_v39  ;;  %v21538_v15 = vld [vmem:[#allocation9 + $0x1928] ss:$24 sps:$4 sm:$0xff]  }
 0x848   :  { %14530 = vmatpush1.bf16.msra.mxu1 %v19652_v9  ;;  %v21523_v9 = vld [vmem:[#allocation9 + $0x1838] ss:$24 sps:$4 sm:$0xff]  }
 0x849   :  { %14364 = vmatpush1.bf16.msra.mxu0 %v19546_v29  ;;  %14531 = vmatprep.subr.bf16.mxu1 %v19661_v32  ;;  %v19602_v29 = vcombine.low %v12108_v38, %v12112_v39  ;;  %v21528_v32 = vld [vmem:[#allocation9 + $0x186c] ss:$24 sps:$4 sm:$0xff]  }
 0x84a   :  { %14365 = vmatprep.subr.bf16.mxu0 %v19555_v55  ;;  %v19611_v55 = vcombine.high %v12116_v47, %v12120_v49  ;;  %v12168_v47 = vld [vmem:[#allocation6 + $0x20e8] sm:$0xff] }
 0x84c   :  { %14532 = vmatpush1.bf16.msra.mxu1 %v19660_v44  ;;  %v21531_v44 = vld [vmem:[#allocation9 + $0x189c] ss:$24 sps:$4 sm:$0xff]  }
 0x84d   :  { %14366 = vmatpush1.bf16.msra.mxu0 %v19554_v11  ;;  %14533 = vmatprep.subr.bf16.mxu1 %v19669_v35  ;;  %v19619_v11 = vcombine.high %v12124_v13, %v12128_v31  ;;  %v12132_v35 = vld [vmem:[#allocation6 + $0x1d88] sm:$0xff] }
 0x84e   :  { %14367 = vmatprep.subr.bf16.mxu0 %v19563_v16  ;;  %v12136_v16 = vld [vmem:[#allocation6 + $0x1de8] sm:$0xff] }
 0x84f   :  { %v19627_v2 = vcombine.high %v12132_v35, %v12136_v16  ;;  %v19626_v14 = vcombine.low %v12132_v35, %v12136_v16  ;;  %v12172_v16 = vld [vmem:[#allocation6 + $0x2148] sm:$0xff] }
 0x850   :  { %14534 = vmatpush1.bf16.msra.mxu1 %v19668_v4  ;;  %v12140_v4 = vld [vmem:[#allocation6 + $0x1e48] sm:$0xff] }
 0x851   :  { %14368 = vmatpush1.bf16.msra.mxu0 %v19562_v52  ;;  %14535 = vmatprep.subr.bf16.mxu1 %v19677_v56  ;;  %v12144_v52 = vld [vmem:[#allocation6 + $0x1ea8] sm:$0xff]  ;;  %v21532_v56 = vld [vmem:[#allocation9 + $0x18c8] ss:$24 sps:$4 sm:$0xff]  }
 0x852   :  { %14380 = vmatprep.subr.bf16.mxu0 %v19571_v5  ;;  %v22799_v5 = vld [vmem:[#allocation8 + $0x10] sm:$0xff]  ;;  %v19635_v6 = vcombine.high %v12140_v4, %v12144_v52  ;;  %v19634_v54 = vcombine.low %v12140_v4, %v12144_v52 }
 0x854   :  { %14370 = vmatmul.mubr.bf16.vlgmr.msra.gmra.mrb[16].mxu0 %v22452_v36  ;;  %14536 = vmatpush1.bf16.msra.mxu1 %v19676_v37  ;;  %v12152_v37 = vld [vmem:[#allocation6 + $0x1f68] sm:$0xff] }
 0x855   :  { %14381 = vmatpush1.bf16.msra.mxu0 %v19570_v48  ;;  %14537 = vmatprep.subr.bf16.mxu1 %v19685_v19  ;;  %v12208_v48 = vrot.slane %v22799_v5, %v22476_v57  ;;  %v21535_v19 = vld [vmem:[#allocation9 + $0x18f8] ss:$24 sps:$4 sm:$0xff]   ;;  %v19643_v0 = vcombine.high %v12148_v21, %v12152_v37 }
 0x856   :  { %14382 = vmatprep.subr.bf16.mxu0 %v19579_v61  ;;  %14412 = vmatprep.mubr.bf16.mxu0 %v22454_v41  ;;  %v12212_v61 = vrot.slane %v22799_v5, %v22479_v59 }
 0x858   :  { %14538 = vmatpush1.bf16.msra.mxu1 %v19684_v23  ;;  %v12156_v23 = vld [vmem:[#allocation6 + $0x1fc8] sm:$0xff] }
 0x859   :  { %14383 = vmatpush1.bf16.msra.mxu0 %v19578_v27  ;;  %14539 = vmatprep.subr.bf16.mxu1 %v19693_v45  ;;  %v12160_v27 = vld [vmem:[#allocation6 + $0x2028] sm:$0xff] }
 0x85a   :  { %14384 = vmatprep.subr.bf16.mxu0 %v19587_v53  ;;  %v19650_v13 = vcombine.low %v12156_v23, %v12160_v27 }
 0x85c   :  { %14540 = vmatpush1.bf16.msra.mxu1 %v19692_v8 }
 0x85d   :  { %14385 = vmatpush1.bf16.msra.mxu0 %v19586_v7  ;;  %17309 = vmatprep.subr.bf16.mxu1 %v21522_v17  ;;  %v19642_v7 = vcombine.low %v12148_v21, %v12152_v37  ;;  %v21543_v17 = vld [vmem:[#allocation9 + $0x195c] ss:$24 sps:$4 sm:$0xff]  }
 0x85e   :  { %14386 = vmatprep.subr.bf16.mxu0 %v19595_v25 }
 0x85f   :  { %14542 = vmatmul.mubr.bf16.vlgmr.msra.gmra.mrb[32].mxu1 %v22460_v50 }
 0x860   :  { %17310 = vmatpush1.bf16.msra.mxu1 %v21520_v18  ;;  %v19651_v18 = vcombine.high %v12156_v23, %v12160_v27  ;;  %v21552_v23 = vld [vmem:[#allocation9 + $0x19ec] ss:$24 sps:$4 sm:$0xff]  }
 0x861   :  { %14387 = vmatpush1.bf16.msra.mxu0 %v19594_v42  ;;  %17311 = vmatprep.subr.bf16.mxu1 %v21525_v46 }
 0x862   :  { %14388 = vmatprep.subr.bf16.mxu0 %v19603_v34  ;;  %v12164_v34 = vld [vmem:[#allocation6 + $0x2088] sm:$0xff] }
 0x864   :  { %17312 = vmatpush1.bf16.msra.mxu1 %v21523_v9 }
 0x865   :  { %14389 = vmatpush1.bf16.msra.mxu0 %v19602_v29  ;;  %17313 = vmatprep.subr.bf16.mxu1 %v21528_v32  ;;  %v21541_v29 = vld [vmem:[#allocation9 + $0x1958] ss:$24 sps:$4 sm:$0xff]  }
 0x866   :  { %14390 = vmatprep.subr.bf16.mxu0 %v19611_v55 }
 0x868   :  { %17314 = vmatpush1.bf16.msra.mxu1 %v21526_v51 }
 0x869   :  { %14391 = vmatpush1.bf16.msra.mxu0 %v19610_v26  ;;  %17315 = vmatprep.subr.bf16.mxu1 %v21531_v44  ;;  %v21546_v26 = vld [vmem:[#allocation9 + $0x198c] ss:$24 sps:$4 sm:$0xff]   ;;  %v19659_v44 = vcombine.high %v12164_v34, %v12168_v47 }
 0x86a   :  { %14392 = vmatprep.subr.bf16.mxu0 %v19619_v11 }
 0x86c   :  { %17316 = vmatpush1.bf16.msra.mxu1 %v21529_v63  ;;  %v12176_v63 = vld [vmem:[#allocation6 + $0x21a8] sm:$0xff] }
 0x86d   :  { %14393 = vmatpush1.bf16.msra.mxu0 %v19618_v22  ;;  %17317 = vmatprep.subr.bf16.mxu1 %v21534_v1  ;;  %v19667_v21 = vcombine.high %v12172_v16, %v12176_v63 }
 0x86e   :  { %14394 = vmatprep.subr.bf16.mxu0 %v19627_v2  ;;  %v21544_v2 = vld [vmem:[#allocation9 + $0x1988] ss:$24 sps:$4 sm:$0xff]  }
 0x870   :  { %17318 = vmatpush1.bf16.msra.mxu1 %v21532_v56  ;;  %v19658_v56 = vcombine.low %v12164_v34, %v12168_v47 }
 0x871   :  { %14395 = vmatpush1.bf16.msra.mxu0 %v19626_v14  ;;  %17319 = vmatprep.subr.bf16.mxu1 %v21537_v12 }
 0x872   :  { %14396 = vmatprep.subr.bf16.mxu0 %v19635_v6  ;;  %v14285_v60 = vpop.f32.mrb[28].mxu1  ;;  %v21549_v6 = vld [vmem:[#allocation9 + $0x19bc] ss:$24 sps:$4 sm:$0xff]  }
 0x873   :  { %v22805_v45 = vadd.f32 %v14285_v60, %v12208_v48  ;;  %v14287_v53 = vpop.f32.mrb[29].mxu1  ;;  %v19666_v60 = vcombine.low %v12172_v16, %v12176_v63  ;;  %v21556_v16 = vld [vmem:[#allocation9 + $0x1a48] ss:$24 sps:$4 sm:$0xff]  }
 0x874   :  { %17320 = vmatpush1.bf16.msra.mxu1 %v21535_v19  ;;  %v22807_v30 = vadd.f32 %v14287_v53, %v12212_v61  ;;  %v14289_v8 = vpop.f32.mrb[30].mxu1  ;;  %v12180_v19 = vld [vmem:[#allocation6 + $0x2208] sm:$0xff] }
 0x875   :  { %14397 = vmatpush1.bf16.msra.mxu0 %v19634_v54  ;;  %17321 = vmatprep.subr.bf16.mxu1 %v21540_v58  ;;  %v14697_v25 = vmul.f32 0.044715, %v22805_v45  ;;  %v22810_v38 = vadd.f32 %v14289_v8, %v12208_v48  ;;  %v14291_v39 = vpop.f32.mrb[31].mxu1  ;;  %v21547_v58 = vld [vmem:[#allocation9 + $0x19b8] ss:$24 sps:$4 sm:$0xff]   ;;  %v14681_v34 = vmul.f32 0.5, %v22805_v45 }
 0x876   :  { %14398 = vmatprep.subr.bf16.mxu0 %v19643_v0  ;;  %v14698_v42 = vmul.f32 0.044715, %v22807_v30  ;;  %v22813_v46 = vadd.f32 %v14291_v39, %v12212_v61  ;;  %v12184_v61 = vld [vmem:[#allocation6 + $0x2268] sm:$0xff]  ;;  %v21550_v8 = vld [vmem:[#allocation9 + $0x19e8] ss:$24 sps:$4 sm:$0xff]  }
 0x877   :  { %v14713_v49 = vmul.f32 %v22805_v45, %v14697_v25  ;;  %v14705_v9 = vmul.f32 0.044715, %v22810_v38  ;;  %v19675_v27 = vcombine.high %v12180_v19, %v12184_v61  ;;  %v12188_v53 = vld [vmem:[#allocation6 + $0x22c8] sm:$0xff] }
 0x878   :  { %17322 = vmatpush1.bf16.msra.mxu1 %v21538_v15  ;;  %v14714_v32 = vmul.f32 %v22807_v30, %v14698_v42  ;;  %v14706_v55 = vmul.f32 0.044715, %v22813_v46  ;;  %v12192_v15 = vld [vmem:[#allocation6 + $0x2328] sm:$0xff] }
 0x879   :  { %14399 = vmatpush1.bf16.msra.mxu0 %v19642_v7  ;;  %17323 = vmatprep.subr.bf16.mxu1 %v21543_v17  ;;  %v14729_v31 = vmul.f32 %v22805_v45, %v14713_v49  ;;  %v14721_v51 = vmul.f32 %v22810_v38, %v14705_v9  ;;  %v19674_v7 = vcombine.low %v12180_v19, %v12184_v61  ;;  %v21555_v17 = vld [vmem:[#allocation9 + $0x1a1c] ss:$24 sps:$4 sm:$0xff]   ;;  %v21553_v42 = vld [vmem:[#allocation9 + $0x1a18] ss:$24 sps:$4 sm:$0xff]   ;;  %v21558_v9 = vld [vmem:[#allocation9 + $0x1a4c] ss:$24 sps:$4 sm:$0xff]  }
 0x87a   :  { %14400 = vmatprep.subr.bf16.mxu0 %v19651_v18  ;;  %v14730_v11 = vmul.f32 %v22807_v30, %v14714_v32  ;;  %v14722_v35 = vmul.f32 %v22813_v46, %v14706_v55  ;;  %v19683_v25 = vcombine.high %v12188_v53, %v12192_v15  ;;  %v12196_v39 = vld [vmem:[#allocation6 + $0x2388] sm:$0xff]  ;;  %v19682_v49 = vcombine.low %v12188_v53, %v12192_v15  ;;  %v11838_v61 = vld [vmem:[#allocation6 + $0x1d8] sm:$0xff] }
 0x87b   :  { %v14745_v22 = vadd.f32 %v22805_v45, %v14729_v31  ;;  %v14737_v1 = vmul.f32 %v22810_v38, %v14721_v51  ;;  %v12200_v18 = vld [vmem:[#allocation6 + $0x23e8] sm:$0xff]  ;;  %v11850_v53 = vld [vmem:[#allocation6 + $0x2f8] sm:$0xff] }
 0x87c   :  { %17324 = vmatpush1.bf16.msra.mxu1 %v21541_v29  ;;  %v14738_v4 = vmul.f32 %v22813_v46, %v14722_v35  ;;  %v14746_v52 = vadd.f32 %v22807_v30, %v14730_v11  ;;  %v14682_v29 = vmul.f32 0.5, %v22807_v30  ;;  %v19691_v55 = vcombine.high %v12196_v39, %v12200_v18  ;;  %v21561_v30 = vld [vmem:[#allocation9 + $0x1a7c] ss:$24 sps:$4 sm:$0xff]   ;;  %v21565_v15 = vld [vmem:[#allocation9 + $0x1ad8] ss:$24 sps:$4 sm:$0xff]  }
 0x87d   :  { %14401 = vmatpush1.bf16.msra.mxu0 %v19650_v13  ;;  %v14761_v14 = vmul.f32 0.7978846, %v14745_v22  ;;  %v14753_v12 = vadd.f32 %v22810_v38, %v14737_v1  ;;  %17325 = vmatprep.subr.bf16.mxu1 %v21546_v26  ;;  %v14689_v13 = vmul.f32 0.5, %v22810_v38  ;;  %v11822_v26 = vld [vmem:[#allocation6 + $0x58] sm:$0xff]  ;;  %v14690_v11 = vmul.f32 0.5, %v22813_v46 }
 0x87e   :  { %14402 = vmatprep.subr.bf16.mxu0 %v19659_v44  ;;  %v14754_v37 = vadd.f32 %v22813_v46, %v14738_v4  ;;  %v14762_v48 = vmul.f32 0.7978846, %v14746_v52  ;;  %v11826_v44 = vld [vmem:[#allocation6 + $0xb8] sm:$0xff]  ;;  %v19690_v1 = vcombine.low %v12196_v39, %v12200_v18  ;;  %v21559_v46 = vld [vmem:[#allocation9 + $0x1a78] ss:$24 sps:$4 sm:$0xff]  }
 0x87f   :  { %22160 = vtanh.f32 %v14761_v14  ;;  %v14769_v54 = vmul.f32 0.7978846, %v14753_v12  ;;  %v19319_v38 = vcombine.high %v11822_v26, %v11826_v44  ;;  %v11834_v14 = vld [vmem:[#allocation6 + $0x178] sm:$0xff] }
 0x880   :  { %17326 = vmatpush1.bf16.msra.mxu1 %v21544_v2  ;;  %v14770_v0 = vmul.f32 0.7978846, %v14754_v37  ;;  %22162 = vtanh.f32 %v14762_v48  ;;  %v21564_v37 = vld [vmem:[#allocation9 + $0x1aac] ss:$24 sps:$4 sm:$0xff]  }
 0x881   :  { %14403 = vmatpush1.bf16.msra.mxu0 %v19658_v56  ;;  %22164 = vtanh.f32 %v14769_v54  ;;  %17327 = vmatprep.subr.bf16.mxu1 %v21549_v6  ;;  %v11830_v56 = vld [vmem:[#allocation6 + $0x118] sm:$0xff] }
 0x882   :  { %14404 = vmatprep.subr.bf16.mxu0 %v19667_v21  ;;  %22166 = vtanh.f32 %v14770_v0  ;;  %v19318_v21 = vcombine.low %v11822_v26, %v11826_v44  ;;  %v19327_v19 = vcombine.high %v11830_v56, %v11834_v14  ;;  %v11842_v54 = vld [vmem:[#allocation6 + $0x238] sm:$0xff]  ;;  %v19326_v0 = vcombine.low %v11830_v56, %v11834_v14 }
 0x883   :  { %v11886_v26 = vld [vmem:[#allocation6 + $0x658] sm:$0xff] }
 0x884   :  { %17328 = vmatpush1.bf16.msra.mxu1 %v21547_v58  ;;  %v21562_v58 = vld [vmem:[#allocation9 + $0x1aa8] ss:$24 sps:$4 sm:$0xff]  }
 0x885   :  { %14405 = vmatpush1.bf16.msra.mxu0 %v19666_v60  ;;  %17329 = vmatprep.subr.bf16.mxu1 %v21552_v23  ;;  %v21567_v60 = vld [vmem:[#allocation9 + $0x1adc] ss:$24 sps:$4 sm:$0xff]   ;;  %v19335_v23 = vcombine.high %v11838_v61, %v11842_v54  ;;  %v11890_v44 = vld [vmem:[#allocation6 + $0x6b8] sm:$0xff] }
 0x886   :  { %14406 = vmatprep.subr.bf16.mxu0 %v19675_v27  ;;  %v11846_v27 = vld [vmem:[#allocation6 + $0x298] sm:$0xff] }
 0x887   :  { %v19342_v39 = vcombine.low %v11846_v27, %v11850_v53 }
 0x888   :  { %17330 = vmatpush1.bf16.msra.mxu1 %v21550_v8  ;;  %v19334_v8 = vcombine.low %v11838_v61, %v11842_v54  ;;  %v11930_v61 = vld [vmem:[#allocation6 + $0xa78] sm:$0xff] }
 0x889   :  { %v22161_v47 = vpop.eup %22160  ;;  %14407 = vmatpush1.bf16.msra.mxu0 %v19674_v7  ;;  %17331 = vmatprep.subr.bf16.mxu1 %v21555_v17  ;;  %v19343_v7 = vcombine.high %v11846_v27, %v11850_v53  ;;  %v11854_v17 = vld [vmem:[#allocation6 + $0x358] sm:$0xff] }
 0x88a   :  { %v22163_v32 = vpop.eup %22162  ;;  %14408 = vmatprep.subr.bf16.mxu0 %v19683_v25  ;;  %v14793_v31 = vadd.f32 1.0, %v22161_v47  ;;  %v11858_v25 = vld [vmem:[#allocation6 + $0x3b8] sm:$0xff] }
 0x88b   :  { %v22165_v51 = vpop.eup %22164  ;;  %v14794_v35 = vadd.f32 1.0, %v22163_v32  ;;  %v19351_v18 = vcombine.high %v11854_v17, %v11858_v25  ;;  %v21568_v53 = vld [vmem:[#allocation9 + $0x1b08] ss:$24 sps:$4 sm:$0xff]  }
 0x88c   :  { %v22167_v45 = vpop.eup %22166  ;;  %17332 = vmatpush1.bf16.msra.mxu1 %v21553_v42  ;;  %v14801_v63 = vadd.f32 1.0, %v22165_v51  ;;  %v14809_v22 = vmul.f32 %v14793_v31, %v14681_v34  ;;  %v11862_v42 = vld [vmem:[#allocation6 + $0x418] sm:$0xff] }
 0x88d   :  { %14409 = vmatpush1.bf16.msra.mxu0 %v19682_v49  ;;  %17333 = vmatprep.subr.bf16.mxu1 %v21558_v9  ;;  %v14802_v2 = vadd.f32 1.0, %v22167_v45  ;;  %v14810_v4 = vmul.f32 %v14794_v35, %v14682_v29  ;;  %v11866_v34 = vld [vmem:[#allocation6 + $0x478] sm:$0xff]  ;;  %v19383_v35 = vcombine.high %v11886_v26, %v11890_v44 }
 0x88e   :  { %14410 = vmatprep.subr.bf16.mxu0 %v19691_v55  ;;  %v14817_v52 = vmul.f32 %v14801_v63, %v14689_v13  ;;  %v19359_v47 = vcombine.high %v11862_v42, %v11866_v34  ;;  %v11870_v49 = vld [vmem:[#allocation6 + $0x4d8] sm:$0xff]  ;;  %v19358_v29 = vcombine.low %v11862_v42, %v11866_v34  ;;  %v19382_v63 = vcombine.low %v11886_v26, %v11890_v44  ;;  %v21580_v44 = vld [vmem:[#allocation9 + $0x1b98] ss:$24 sps:$4 sm:$0xff]  }
 0x88f   :  { %v14818_v12 = vmul.f32 %v14802_v2, %v14690_v11  ;;  %v11874_v9 = vld [vmem:[#allocation6 + $0x538] sm:$0xff] }
 0x890   :  { %17334 = vmatpush1.bf16.msra.mxu1 %v21556_v16  ;;  %v22833_v6 = vpack.c.bf16 %v14817_v52, %v14809_v22  ;;  %v19367_v32 = vcombine.high %v11870_v49, %v11874_v9  ;;  %v11878_v55 = vld [vmem:[#allocation6 + $0x598] sm:$0xff]  ;;  %v19366_v31 = vcombine.low %v11870_v49, %v11874_v9 }
 0x891   :  { %14411 = vmatpush1.bf16.msra.mxu0 %v19690_v1  ;;  %17335 = vmatprep.subr.bf16.mxu1 %v21561_v30  ;;  %v22835_v48 = vpack.c.bf16 %v14818_v12, %v14810_v4  ;;  %v11882_v13 = vld [vmem:[#allocation6 + $0x5f8] sm:$0xff] }
 0x892   :  { %14552 = vmatprep.subr.bf16.mxu0 %v19319_v38  ;;  %v19375_v51 = vcombine.high %v11878_v55, %v11882_v13  ;;  %v19374_v11 = vcombine.low %v11878_v55, %v11882_v13  ;;  %v11894_v45 = vld [vmem:[#allocation6 + $0x718] sm:$0xff] }
 0x893   :  { %17341 = vmatprep.mubr.bf16.mxu1 %v22835_v48  ;;  %v11898_v16 = vld [vmem:[#allocation6 + $0x778] sm:$0xff] }
 0x894   :  { %14413 = vmatmul.mubr.bf16.vlgmr.msra.gmra.mrb[16].mxu0 %v22460_v50  ;;  %17336 = vmatpush1.bf16.msra.mxu1 %v21559_v46  ;;  %v19391_v22 = vcombine.high %v11894_v45, %v11898_v16  ;;  %v11902_v1 = vld [vmem:[#allocation6 + $0x7d8] sm:$0xff]  ;;  %v19390_v2 = vcombine.low %v11894_v45, %v11898_v16 }
 0x895   :  { %14553 = vmatpush1.bf16.msra.mxu0 %v19318_v21  ;;  %17337 = vmatprep.subr.bf16.mxu1 %v21564_v37  ;;  %v11906_v30 = vld [vmem:[#allocation6 + $0x838] sm:$0xff] }
 0x896   :  { %14554 = vmatprep.subr.bf16.mxu0 %v19327_v19  ;;  %14584 = vmatprep.mubr.bf16.mxu0 %v22440_v20  ;;  %v19350_v20 = vcombine.low %v11854_v17, %v11858_v25  ;;  %v19399_v4 = vcombine.high %v11902_v1, %v11906_v30  ;;  %v11910_v38 = vld [vmem:[#allocation6 + $0x898] sm:$0xff]  ;;  %v19398_v56 = vcombine.low %v11902_v1, %v11906_v30 }
 0x897   :  { %v11914_v52 = vld [vmem:[#allocation6 + $0x8f8] sm:$0xff] }
 0x898   :  { %17338 = vmatpush1.bf16.msra.mxu1 %v21562_v58  ;;  %v19407_v14 = vcombine.high %v11910_v38, %v11914_v52  ;;  %v11918_v12 = vld [vmem:[#allocation6 + $0x958] sm:$0xff]  ;;  %v19406_v21 = vcombine.low %v11910_v38, %v11914_v52 }
 0x899   :  { %14555 = vmatpush1.bf16.msra.mxu0 %v19326_v0  ;;  %17339 = vmatprep.subr.bf16.mxu1 %v21567_v60  ;;  %v11922_v46 = vld [vmem:[#allocation6 + $0x9b8] sm:$0xff] }
 0x89a   :  { %14556 = vmatprep.subr.bf16.mxu0 %v19335_v23  ;;  %v19415_v37 = vcombine.high %v11918_v12, %v11922_v46  ;;  %v11926_v19 = vld [vmem:[#allocation6 + $0xa18] sm:$0xff]  ;;  %v19414_v54 = vcombine.low %v11918_v12, %v11922_v46 }
 0x89b   :  { %v19423_v58 = vcombine.high %v11926_v19, %v11930_v61  ;;  %v11934_v0 = vld [vmem:[#allocation6 + $0xad8] sm:$0xff]  ;;  %v19422_v23 = vcombine.low %v11926_v19, %v11930_v61  ;;  %v21604_v19 = vld [vmem:[#allocation9 + $0x1c58] ss:$24 sps:$4 sm:$0xff]   ;;  %v21606_v61 = vld [vmem:[#allocation9 + $0x1c5c] ss:$24 sps:$4 sm:$0xff]  }
 0x89c   :  { %17340 = vmatpush1.bf16.msra.mxu1 %v21565_v15  ;;  %v11938_v60 = vld [vmem:[#allocation6 + $0xb38] sm:$0xff] }
 0x89d   :  { %14557 = vmatpush1.bf16.msra.mxu0 %v19334_v8  ;;  %v19431_v27 = vcombine.high %v11934_v0, %v11938_v60  ;;  %v21570_v15 = vld [vmem:[#allocation9 + $0x1b0c] ss:$24 sps:$4 sm:$0xff]   ;;  %v19430_v17 = vcombine.low %v11934_v0, %v11938_v60  ;;  %v21574_v49 = vld [vmem:[#allocation9 + $0x1b68] ss:$24 sps:$4 sm:$0xff]  }
 0x89e   :  { %14558 = vmatprep.subr.bf16.mxu0 %v19343_v7  ;;  %v11942_v8 = vld [vmem:[#allocation6 + $0xb98] sm:$0xff]  ;;  %17352 = vmatprep.subr.bf16.mxu1 %v21570_v15 }
 0x89f   :  { %17342 = vmatmul.mubr.bf16.vlgmr.msra.gmra.mrb[12].mxu1 %v22833_v6  ;;  %v11946_v7 = vld [vmem:[#allocation6 + $0xbf8] sm:$0xff] }
 0x8a0   :  { %17353 = vmatpush1.bf16.msra.mxu1 %v21568_v53  ;;  %v19439_v25 = vcombine.high %v11942_v8, %v11946_v7  ;;  %v11950_v42 = vld [vmem:[#allocation6 + $0xc58] sm:$0xff] }
 0x8a1   :  { %14559 = vmatpush1.bf16.msra.mxu0 %v19342_v39  ;;  %v21571_v39 = vld [vmem:[#allocation9 + $0x1b38] ss:$24 sps:$4 sm:$0xff]   ;;  %v11954_v34 = vld [vmem:[#allocation6 + $0xcb8] sm:$0xff] }
 0x8a2   :  { %14560 = vmatprep.subr.bf16.mxu0 %v19351_v18  ;;  %v21573_v18 = vld [vmem:[#allocation9 + $0x1b3c] ss:$24 sps:$4 sm:$0xff]   ;;  %v21576_v9 = vld [vmem:[#allocation9 + $0x1b6c] ss:$24 sps:$4 sm:$0xff]   ;;  %v19446_v55 = vcombine.low %v11950_v42, %v11954_v34  ;;  %v21586_v45 = vld [vmem:[#allocation9 + $0x1bc8] ss:$24 sps:$4 sm:$0xff]  }
 0x8a3   :  { %17354 = vmatprep.subr.bf16.mxu1 %v21573_v18  ;;  %v11970_v26 = vld [vmem:[#allocation6 + $0xe38] sm:$0xff]  ;;  %v21616_v18 = vld [vmem:[#allocation9 + $0x1cb8] ss:$24 sps:$4 sm:$0xff]  }
 0x8a4   :  { %17355 = vmatpush1.bf16.msra.mxu1 %v21571_v39  ;;  %v21588_v16 = vld [vmem:[#allocation9 + $0x1bcc] ss:$24 sps:$4 sm:$0xff]   ;;  %v21610_v15 = vld [vmem:[#allocation9 + $0x1c88] ss:$24 sps:$4 sm:$0xff]  }
 0x8a5   :  { %14561 = vmatpush1.bf16.msra.mxu0 %v19350_v20  ;;  %v19438_v20 = vcombine.low %v11942_v8, %v11946_v7  ;;  %17356 = vmatprep.subr.bf16.mxu1 %v21576_v9  ;;  %v11986_v38 = vld [vmem:[#allocation6 + $0xfb8] sm:$0xff] }
 0x8a6   :  { %14562 = vmatprep.subr.bf16.mxu0 %v19359_v47  ;;  %v19447_v47 = vcombine.high %v11950_v42, %v11954_v34  ;;  %v11990_v12 = vld [vmem:[#allocation6 + $0x1018] sm:$0xff] }
 0x8a7   :  { %v11994_v46 = vld [vmem:[#allocation6 + $0x1078] sm:$0xff] }
 0x8a8   :  { %17357 = vmatpush1.bf16.msra.mxu1 %v21574_v49  ;;  %v19486_v0 = vcombine.low %v11990_v12, %v11994_v46  ;;  %v12010_v53 = vld [vmem:[#allocation6 + $0x11f8] sm:$0xff] }
 0x8a9   :  { %14563 = vmatpush1.bf16.msra.mxu0 %v19358_v29  ;;  %v11958_v29 = vld [vmem:[#allocation6 + $0xd18] sm:$0xff] }
 0x8aa   :  { %14564 = vmatprep.subr.bf16.mxu0 %v19367_v32  ;;  %v11962_v32 = vld [vmem:[#allocation6 + $0xd78] sm:$0xff] }
 0x8ab   :  { %v19455_v13 = vcombine.high %v11958_v29, %v11962_v32  ;;  %v12018_v39 = vld [vmem:[#allocation6 + $0x12b8] sm:$0xff] }
 0x8ac   :  { %v12026_v49 = vld [vmem:[#allocation6 + $0x1378] sm:$0xff] }
 0x8ad   :  { %14565 = vmatpush1.bf16.msra.mxu0 %v19366_v31  ;;  %v21582_v31 = vld [vmem:[#allocation9 + $0x1b9c] ss:$24 sps:$4 sm:$0xff]   ;;  %v21622_v9 = vld [vmem:[#allocation9 + $0x1ce8] ss:$24 sps:$4 sm:$0xff]  }
 0x8ae   :  { %14566 = vmatprep.subr.bf16.mxu0 %v19375_v51  ;;  %v11966_v51 = vld [vmem:[#allocation6 + $0xdd8] sm:$0xff]  ;;  %17358 = vmatprep.subr.bf16.mxu1 %v21582_v31 }
 0x8af   :  { %17359 = vmatpush1.bf16.msra.mxu1 %v21580_v44  ;;  %v19462_v1 = vcombine.low %v11966_v51, %v11970_v26  ;;  %v12034_v31 = vld [vmem:[#allocation6 + $0x1438] sm:$0xff] }
 0x8b0   :  { %17360 = vmatprep.subr.bf16.mxu1 %v21588_v16  ;;  %v21636_v16 = vld [vmem:[#allocation9 + $0x1d4c] ss:$24 sps:$4 sm:$0xff]  }
 0x8b1   :  { %14567 = vmatpush1.bf16.msra.mxu0 %v19374_v11  ;;  %v19454_v11 = vcombine.low %v11958_v29, %v11962_v32 }
 0x8b2   :  { %14568 = vmatprep.subr.bf16.mxu0 %v19383_v35  ;;  %v19463_v35 = vcombine.high %v11966_v51, %v11970_v26  ;;  %v21628_v51 = vld [vmem:[#allocation9 + $0x1d18] ss:$24 sps:$4 sm:$0xff]  }
 0x8b3   :  { %17361 = vmatpush1.bf16.msra.mxu1 %v21586_v45  ;;  %v12042_v45 = vld [vmem:[#allocation6 + $0x14f8] sm:$0xff] }
 0x8b5   :  { %14569 = vmatpush1.bf16.msra.mxu0 %v19382_v63  ;;  %v11974_v63 = vld [vmem:[#allocation6 + $0xe98] sm:$0xff] }
 0x8b6   :  { %14570 = vmatprep.subr.bf16.mxu0 %v19391_v22  ;;  %v11978_v22 = vld [vmem:[#allocation6 + $0xef8] sm:$0xff] }
 0x8b7   :  { %v19471_v30 = vcombine.high %v11974_v63, %v11978_v22 }
 0x8b9   :  { %14571 = vmatpush1.bf16.msra.mxu0 %v19390_v2  ;;  %v21592_v2 = vld [vmem:[#allocation9 + $0x1bf8] ss:$24 sps:$4 sm:$0xff]  }
 0x8ba   :  { %14572 = vmatprep.subr.bf16.mxu0 %v19399_v4  ;;  %v11982_v4 = vld [vmem:[#allocation6 + $0xf58] sm:$0xff] }
 0x8bb   :  { %v19479_v52 = vcombine.high %v11982_v4, %v11986_v38 }
 0x8bd   :  { %14573 = vmatpush1.bf16.msra.mxu0 %v19398_v56  ;;  %v21598_v56 = vld [vmem:[#allocation9 + $0x1c28] ss:$24 sps:$4 sm:$0xff]  }
 0x8be   :  { %14574 = vmatprep.subr.bf16.mxu0 %v19407_v14  ;;  %v21600_v14 = vld [vmem:[#allocation9 + $0x1c2c] ss:$24 sps:$4 sm:$0xff]  }
 0x8c1   :  { %14575 = vmatpush1.bf16.msra.mxu0 %v19406_v21  ;;  %v19478_v21 = vcombine.low %v11982_v4, %v11986_v38 }
 0x8c2   :  { %14576 = vmatprep.subr.bf16.mxu0 %v19415_v37  ;;  %v19487_v37 = vcombine.high %v11990_v12, %v11994_v46 }
 0x8c5   :  { %14577 = vmatpush1.bf16.msra.mxu0 %v19414_v54  ;;  %v11998_v54 = vld [vmem:[#allocation6 + $0x10d8] sm:$0xff] }
 0x8c6   :  { %14578 = vmatprep.subr.bf16.mxu0 %v19423_v58  ;;  %v12002_v58 = vld [vmem:[#allocation6 + $0x1138] sm:$0xff] }
 0x8c7   :  { %v19495_v60 = vcombine.high %v11998_v54, %v12002_v58  ;;  %v19494_v8 = vcombine.low %v11998_v54, %v12002_v58 }
 0x8c9   :  { %14579 = vmatpush1.bf16.msra.mxu0 %v19422_v23  ;;  %v21612_v23 = vld [vmem:[#allocation9 + $0x1c8c] ss:$24 sps:$4 sm:$0xff]  }
 0x8ca   :  { %14580 = vmatprep.subr.bf16.mxu0 %v19431_v27  ;;  %v12006_v27 = vld [vmem:[#allocation6 + $0x1198] sm:$0xff] }
 0x8cb   :  { %v19503_v7 = vcombine.high %v12006_v27, %v12010_v53  ;;  %v19502_v42 = vcombine.low %v12006_v27, %v12010_v53 }
 0x8cd   :  { %14581 = vmatpush1.bf16.msra.mxu0 %v19430_v17  ;;  %v21618_v17 = vld [vmem:[#allocation9 + $0x1cbc] ss:$24 sps:$4 sm:$0xff]  }
 0x8ce   :  { %14582 = vmatprep.subr.bf16.mxu0 %v19439_v25  ;;  %v12014_v25 = vld [vmem:[#allocation6 + $0x1258] sm:$0xff] }
 0x8cf   :  { %v19511_v34 = vcombine.high %v12014_v25, %v12018_v39  ;;  %v19510_v29 = vcombine.low %v12014_v25, %v12018_v39  ;;  %v12086_v25 = vld [vmem:[#allocation6 + $0x1918] sm:$0xff] }
 0x8d0   :  { %v12090_v39 = vld [vmem:[#allocation6 + $0x1978] sm:$0xff] }
 0x8d1   :  { %14583 = vmatpush1.bf16.msra.mxu0 %v19438_v20  ;;  %v21624_v20 = vld [vmem:[#allocation9 + $0x1cec] ss:$24 sps:$4 sm:$0xff]  }
 0x8d2   :  { %14595 = vmatprep.subr.bf16.mxu0 %v19447_v47  ;;  %v12022_v47 = vld [vmem:[#allocation6 + $0x1318] sm:$0xff] }
 0x8d3   :  { %v19519_v32 = vcombine.high %v12022_v47, %v12026_v49  ;;  %v19518_v26 = vcombine.low %v12022_v47, %v12026_v49  ;;  %v19582_v47 = vcombine.low %v12086_v25, %v12090_v39 }
 0x8d4   :  { %14585 = vmatmul.mubr.bf16.vlgmr.msra.gmra.mrb[20].mxu0 %v22444_v24  ;;  %v21594_v24 = vld [vmem:[#allocation9 + $0x1bfc] ss:$24 sps:$4 sm:$0xff]  }
 0x8d5   :  { %14596 = vmatpush1.bf16.msra.mxu0 %v19446_v55  ;;  %14627 = vmatprep.mubr.bf16.mxu0 %v22446_v28  ;;  %v19470_v28 = vcombine.low %v11974_v63, %v11978_v22  ;;  %v21630_v55 = vld [vmem:[#allocation9 + $0x1d1c] ss:$24 sps:$4 sm:$0xff]  }
 0x8d6   :  { %14597 = vmatprep.subr.bf16.mxu0 %v19455_v13  ;;  %17362 = vmatprep.subr.bf16.mxu1 %v21594_v24  ;;  %v12030_v13 = vld [vmem:[#allocation6 + $0x13d8] sm:$0xff] }
 0x8d7   :  { %17363 = vmatpush1.bf16.msra.mxu1 %v21592_v2  ;;  %v19527_v44 = vcombine.high %v12030_v13, %v12034_v31  ;;  %v19526_v63 = vcombine.low %v12030_v13, %v12034_v31  ;;  %v12046_v2 = vld [vmem:[#allocation6 + $0x1558] sm:$0xff] }
 0x8d8   :  { %17364 = vmatprep.subr.bf16.mxu1 %v21600_v14  ;;  %v12050_v24 = vld [vmem:[#allocation6 + $0x15b8] sm:$0xff] }
 0x8d9   :  { %14598 = vmatpush1.bf16.msra.mxu0 %v19454_v11  ;;  %v21634_v11 = vld [vmem:[#allocation9 + $0x1d48] ss:$24 sps:$4 sm:$0xff]   ;;  %v19543_v38 = vcombine.high %v12046_v2, %v12050_v24  ;;  %v19542_v12 = vcombine.low %v12046_v2, %v12050_v24 }
 0x8da   :  { %14599 = vmatprep.subr.bf16.mxu0 %v19463_v35  ;;  %v12038_v35 = vld [vmem:[#allocation6 + $0x1498] sm:$0xff] }
 0x8db   :  { %17365 = vmatpush1.bf16.msra.mxu1 %v21598_v56  ;;  %v19535_v22 = vcombine.high %v12038_v35, %v12042_v45  ;;  %v19534_v4 = vcombine.low %v12038_v35, %v12042_v45  ;;  %v12054_v56 = vld [vmem:[#allocation6 + $0x1618] sm:$0xff] }
 0x8dc   :  { %17366 = vmatprep.subr.bf16.mxu1 %v21606_v61  ;;  %v12058_v14 = vld [vmem:[#allocation6 + $0x1678] sm:$0xff] }
 0x8dd   :  { %14600 = vmatpush1.bf16.msra.mxu0 %v19462_v1  ;;  %v21640_v1 = vld [vmem:[#allocation9 + $0x1d78] ss:$24 sps:$4 sm:$0xff]   ;;  %v19551_v46 = vcombine.high %v12054_v56, %v12058_v14  ;;  %v12066_v61 = vld [vmem:[#allocation6 + $0x1738] sm:$0xff]  ;;  %v19550_v54 = vcombine.low %v12054_v56, %v12058_v14  ;;  %v12224_v14 = vrot.slane %v22799_v5, %v22522_v3 }
 0x8de   :  { %14601 = vmatprep.subr.bf16.mxu0 %v19471_v30  ;;  %v21642_v30 = vld [vmem:[#allocation9 + $0x1d7c] ss:$24 sps:$4 sm:$0xff]   ;;  %v12110_v13 = vld [vmem:[#allocation6 + $0x1b58] sm:$0xff] }
 0x8df   :  { %17367 = vmatpush1.bf16.msra.mxu1 %v21604_v19  ;;  %v12062_v19 = vld [vmem:[#allocation6 + $0x16d8] sm:$0xff] }
 0x8e0   :  { %17368 = vmatprep.subr.bf16.mxu1 %v21612_v23  ;;  %v19559_v58 = vcombine.high %v12062_v19, %v12066_v61  ;;  %v12074_v23 = vld [vmem:[#allocation6 + $0x17f8] sm:$0xff]  ;;  %v19558_v27 = vcombine.low %v12062_v19, %v12066_v61 }
 0x8e1   :  { %14602 = vmatpush1.bf16.msra.mxu0 %v19470_v28  ;;  %v21646_v28 = vld [vmem:[#allocation9 + $0x1da8] ss:$24 sps:$4 sm:$0xff]  }
 0x8e2   :  { %14603 = vmatprep.subr.bf16.mxu0 %v19479_v52  ;;  %v21648_v52 = vld [vmem:[#allocation9 + $0x1dac] ss:$24 sps:$4 sm:$0xff]  }
 0x8e3   :  { %17369 = vmatpush1.bf16.msra.mxu1 %v21610_v15  ;;  %v12078_v15 = vld [vmem:[#allocation6 + $0x1858] sm:$0xff] }
 0x8e4   :  { %17370 = vmatprep.subr.bf16.mxu1 %v21618_v17  ;;  %v12114_v31 = vld [vmem:[#allocation6 + $0x1bb8] sm:$0xff] }
 0x8e5   :  { %14604 = vmatpush1.bf16.msra.mxu0 %v19478_v21  ;;  %v21652_v21 = vld [vmem:[#allocation9 + $0x1dd8] ss:$24 sps:$4 sm:$0xff]   ;;  %v12126_v35 = vld [vmem:[#allocation6 + $0x1cd8] sm:$0xff] }
 0x8e6   :  { %14605 = vmatprep.subr.bf16.mxu0 %v19487_v37  ;;  %v21654_v37 = vld [vmem:[#allocation9 + $0x1ddc] ss:$24 sps:$4 sm:$0xff]   ;;  %v12130_v45 = vld [vmem:[#allocation6 + $0x1d38] sm:$0xff] }
 0x8e7   :  { %17371 = vmatpush1.bf16.msra.mxu1 %v21616_v18  ;;  %v12142_v24 = vld [vmem:[#allocation6 + $0x1e58] sm:$0xff] }
 0x8e8   :  { %17372 = vmatprep.subr.bf16.mxu1 %v21624_v20  ;;  %v12098_v20 = vld [vmem:[#allocation6 + $0x1a38] sm:$0xff] }
 0x8e9   :  { %14606 = vmatpush1.bf16.msra.mxu0 %v19486_v0  ;;  %v21660_v0 = vld [vmem:[#allocation9 + $0x1e0c] ss:$24 sps:$4 sm:$0xff]  }
 0x8ea   :  { %14607 = vmatprep.subr.bf16.mxu0 %v19495_v60  ;;  %v12070_v60 = vld [vmem:[#allocation6 + $0x1798] sm:$0xff] }
 0x8eb   :  { %17373 = vmatpush1.bf16.msra.mxu1 %v21622_v9  ;;  %v19567_v53 = vcombine.high %v12070_v60, %v12074_v23  ;;  %v12102_v9 = vld [vmem:[#allocation6 + $0x1a98] sm:$0xff] }
 0x8ec   :  { %17374 = vmatprep.subr.bf16.mxu1 %v21630_v55  ;;  %v12154_v56 = vld [vmem:[#allocation6 + $0x1f78] sm:$0xff] }
 0x8ed   :  { %14608 = vmatpush1.bf16.msra.mxu0 %v19494_v8  ;;  %v12082_v8 = vld [vmem:[#allocation6 + $0x18b8] sm:$0xff] }
 0x8ee   :  { %14609 = vmatprep.subr.bf16.mxu0 %v19503_v7  ;;  %v19566_v7 = vcombine.low %v12070_v60, %v12074_v23  ;;  %v19575_v17 = vcombine.high %v12078_v15, %v12082_v8  ;;  %v19574_v18 = vcombine.low %v12078_v15, %v12082_v8  ;;  %v12158_v19 = vld [vmem:[#allocation6 + $0x1fd8] sm:$0xff] }
 0x8ef   :  { %17375 = vmatpush1.bf16.msra.mxu1 %v21628_v51  ;;  %v12162_v61 = vld [vmem:[#allocation6 + $0x2038] sm:$0xff] }
 0x8f0   :  { %17376 = vmatprep.subr.bf16.mxu1 %v21636_v16  ;;  %v19655_v8 = vcombine.high %v12158_v19, %v12162_v61 }
 0x8f1   :  { %14610 = vmatpush1.bf16.msra.mxu0 %v19502_v42  ;;  %v19583_v42 = vcombine.high %v12086_v25, %v12090_v39  ;;  %v12170_v25 = vld [vmem:[#allocation6 + $0x20f8] sm:$0xff] }
 0x8f2   :  { %14611 = vmatprep.subr.bf16.mxu0 %v19511_v34  ;;  %v12094_v34 = vld [vmem:[#allocation6 + $0x19d8] sm:$0xff] }
 0x8f3   :  { %17377 = vmatpush1.bf16.msra.mxu1 %v21634_v11  ;;  %v19591_v49 = vcombine.high %v12094_v34, %v12098_v20  ;;  %v19606_v11 = vcombine.low %v12110_v13, %v12114_v31 }
 0x8f4   :  { %17378 = vmatprep.subr.bf16.mxu1 %v21642_v30  ;;  %v19622_v30 = vcombine.low %v12126_v35, %v12130_v45 }
 0x8f5   :  { %14612 = vmatpush1.bf16.msra.mxu0 %v19510_v29  ;;  %v12106_v29 = vld [vmem:[#allocation6 + $0x1af8] sm:$0xff] }
 0x8f6   :  { %14613 = vmatprep.subr.bf16.mxu0 %v19519_v32  ;;  %v19590_v32 = vcombine.low %v12094_v34, %v12098_v20  ;;  %v19599_v55 = vcombine.high %v12102_v9, %v12106_v29  ;;  %v19598_v51 = vcombine.low %v12102_v9, %v12106_v29  ;;  %v19654_v20 = vcombine.low %v12158_v19, %v12162_v61 }
 0x8f7   :  { %17379 = vmatpush1.bf16.msra.mxu1 %v21640_v1  ;;  %v12138_v1 = vld [vmem:[#allocation6 + $0x1df8] sm:$0xff] }
 0x8f8   :  { %17380 = vmatprep.subr.bf16.mxu1 %v21648_v52  ;;  %v12150_v52 = vld [vmem:[#allocation6 + $0x1f18] sm:$0xff] }
 0x8f9   :  { %14614 = vmatpush1.bf16.msra.mxu0 %v19518_v26  ;;  %v19607_v26 = vcombine.high %v12110_v13, %v12114_v31  ;;  %v19646_v23 = vcombine.low %v12150_v52, %v12154_v56  ;;  %v12178_v13 = vld [vmem:[#allocation6 + $0x21b8] sm:$0xff] }
 0x8fa   :  { %14615 = vmatprep.subr.bf16.mxu0 %v19527_v44  ;;  %v12118_v44 = vld [vmem:[#allocation6 + $0x1c18] sm:$0xff] }
 0x8fb   :  { %17381 = vmatpush1.bf16.msra.mxu1 %v21646_v28 }
 0x8fc   :  { %17382 = vmatprep.subr.bf16.mxu1 %v21654_v37 }
 0x8fd   :  { %14616 = vmatpush1.bf16.msra.mxu0 %v19526_v63  ;;  %v19623_v63 = vcombine.high %v12126_v35, %v12130_v45 }
 0x8fe   :  { %14617 = vmatprep.subr.bf16.mxu0 %v19535_v22  ;;  %v12134_v22 = vld [vmem:[#allocation6 + $0x1d98] sm:$0xff] }
 0x8ff   :  { %17383 = vmatpush1.bf16.msra.mxu1 %v21652_v21  ;;  %v19631_v2 = vcombine.high %v12134_v22, %v12138_v1  ;;  %v19647_v21 = vcombine.high %v12150_v52, %v12154_v56  ;;  %v12198_v56 = vld [vmem:[#allocation6 + $0x2398] sm:$0xff] }
 0x900   :  { %17395 = vmatprep.subr.bf16.mxu1 %v21660_v0 }
 0x901   :  { %14618 = vmatpush1.bf16.msra.mxu0 %v19534_v4  ;;  %v12146_v4 = vld [vmem:[#allocation6 + $0x1eb8] sm:$0xff] }
 0x902   :  { %14619 = vmatprep.subr.bf16.mxu0 %v19543_v38  ;;  %v19630_v38 = vcombine.low %v12134_v22, %v12138_v1  ;;  %v19639_v28 = vcombine.high %v12142_v24, %v12146_v4  ;;  %v12186_v22 = vld [vmem:[#allocation6 + $0x2278] sm:$0xff] }
 0x905   :  { %14620 = vmatpush1.bf16.msra.mxu0 %v19542_v12  ;;  %v12228_v12 = vrot.slane %v22799_v5, %v22525_v10 }
 0x906   :  { %14621 = vmatprep.subr.bf16.mxu0 %v19551_v46  ;;  %v19638_v46 = vcombine.low %v12142_v24, %v12146_v4  ;;  %v12190_v4 = vld [vmem:[#allocation6 + $0x22d8] sm:$0xff] }
 0x909   :  { %14622 = vmatpush1.bf16.msra.mxu0 %v19550_v54 }
 0x90a   :  { %14623 = vmatprep.subr.bf16.mxu0 %v19559_v58 }
 0x90d   :  { %14624 = vmatpush1.bf16.msra.mxu0 %v19558_v27 }
 0x90e   :  { %14625 = vmatprep.subr.bf16.mxu0 %v19567_v53 }
 0x911   :  { %14626 = vmatpush1.bf16.msra.mxu0 %v19566_v7 }
 0x912   :  { %14638 = vmatprep.subr.bf16.mxu0 %v19575_v17  ;;  %v12166_v17 = vld [vmem:[#allocation6 + $0x2098] sm:$0xff] }
 0x913   :  { %v19663_v9 = vcombine.high %v12166_v17, %v12170_v25 }
 0x914   :  { %14628 = vmatmul.mubr.bf16.vlgmr.msra.gmra.mrb[20].mxu0 %v22452_v36  ;;  %v12122_v36 = vld [vmem:[#allocation6 + $0x1c78] sm:$0xff] }
 0x915   :  { %14639 = vmatpush1.bf16.msra.mxu0 %v19574_v18  ;;  %14670 = vmatprep.mubr.bf16.mxu0 %v22454_v41  ;;  %v19615_v41 = vcombine.high %v12118_v44, %v12122_v36  ;;  %v19614_v16 = vcombine.low %v12118_v44, %v12122_v36  ;;  %v19662_v36 = vcombine.low %v12166_v17, %v12170_v25 }
 0x916   :  { %14640 = vmatprep.subr.bf16.mxu0 %v19583_v42 }
 0x919   :  { %14641 = vmatpush1.bf16.msra.mxu0 %v19582_v47 }
 0x91a   :  { %14642 = vmatprep.subr.bf16.mxu0 %v19591_v49 }
 0x91d   :  { %14643 = vmatpush1.bf16.msra.mxu0 %v19590_v32 }
 0x91e   :  { %14644 = vmatprep.subr.bf16.mxu0 %v19599_v55  ;;  %v12174_v55 = vld [vmem:[#allocation6 + $0x2158] sm:$0xff] }
 0x91f   :  { %v19671_v35 = vcombine.high %v12174_v55, %v12178_v13 }
 0x921   :  { %14645 = vmatpush1.bf16.msra.mxu0 %v19598_v51 }
 0x922   :  { %14646 = vmatprep.subr.bf16.mxu0 %v19607_v26 }
 0x925   :  { %14647 = vmatpush1.bf16.msra.mxu0 %v19606_v11 }
 0x926   :  { %14648 = vmatprep.subr.bf16.mxu0 %v19615_v41 }
 0x929   :  { %14649 = vmatpush1.bf16.msra.mxu0 %v19614_v16 }
 0x92a   :  { %14650 = vmatprep.subr.bf16.mxu0 %v19623_v63  ;;  %v12182_v63 = vld [vmem:[#allocation6 + $0x2218] sm:$0xff] }
 0x92b   :  { %v19679_v24 = vcombine.high %v12182_v63, %v12186_v22 }
 0x92d   :  { %14651 = vmatpush1.bf16.msra.mxu0 %v19622_v30 }
 0x92e   :  { %14652 = vmatprep.subr.bf16.mxu0 %v19631_v2  ;;  %v19670_v2 = vcombine.low %v12174_v55, %v12178_v13  ;;  %v21603_v55 = vld [vmem:[#allocation9 + $0x18c4] ss:$24 sps:$4 sm:$0xff]   ;;  %v21601_v13 = vld [vmem:[#allocation9 + $0x18c0] ss:$24 sps:$4 sm:$0xff]  }
 0x931   :  { %14653 = vmatpush1.bf16.msra.mxu0 %v19630_v38  ;;  %v12194_v38 = vld [vmem:[#allocation6 + $0x2338] sm:$0xff] }
 0x932   :  { %14654 = vmatprep.subr.bf16.mxu0 %v19639_v28  ;;  %v14543_v37 = vpop.f32.mrb[32].mxu1  ;;  %v19678_v28 = vcombine.low %v12182_v63, %v12186_v22  ;;  %v19687_v52 = vcombine.high %v12190_v4, %v12194_v38  ;;  %v21613_v63 = vld [vmem:[#allocation9 + $0x1920] ss:$24 sps:$4 sm:$0xff]  }
 0x933   :  { %v20120_v54 = vadd.f32 %v14543_v37, %v12224_v14  ;;  %v14545_v58 = vpop.f32.mrb[33].mxu1 }
 0x934   :  { %v22849_v0 = vadd.f32 %v14545_v58, %v12228_v12  ;;  %v14547_v60 = vpop.f32.mrb[34].mxu1 }
 0x935   :  { %14655 = vmatpush1.bf16.msra.mxu0 %v19638_v46  ;;  %v14701_v27 = vmul.f32 0.044715, %v20120_v54  ;;  %v20122_v53 = vadd.f32 %v14547_v60, %v12224_v14  ;;  %v14549_v15 = vpop.f32.mrb[35].mxu1  ;;  %v12202_v14 = vld [vmem:[#allocation6 + $0x23f8] sm:$0xff] }
 0x936   :  { %14656 = vmatprep.subr.bf16.mxu0 %v19647_v21  ;;  %v14702_v5 = vmul.f32 0.044715, %v22849_v0  ;;  %v20123_v7 = vadd.f32 %v14549_v15, %v12228_v12  ;;  %v14685_v12 = vmul.f32 0.5, %v20120_v54  ;;  %v19686_v21 = vcombine.low %v12190_v4, %v12194_v38 }
 0x937   :  { %v14717_v39 = vmul.f32 %v20120_v54, %v14701_v27  ;;  %v14709_v18 = vmul.f32 0.044715, %v20122_v53  ;;  %v14686_v37 = vmul.f32 0.5, %v22849_v0  ;;  %v19695_v61 = vcombine.high %v12198_v56, %v12202_v14 }
 0x938   :  { %v14718_v42 = vmul.f32 %v22849_v0, %v14702_v5  ;;  %v14710_v34 = vmul.f32 0.044715, %v20123_v7  ;;  %v14693_v58 = vmul.f32 0.5, %v20122_v53  ;;  %v14694_v27 = vmul.f32 0.5, %v20123_v7 }
 0x939   :  { %14657 = vmatpush1.bf16.msra.mxu0 %v19646_v23  ;;  %v14733_v47 = vmul.f32 %v20120_v54, %v14717_v39  ;;  %v14725_v49 = vmul.f32 %v20122_v53, %v14709_v18  ;;  %v19694_v25 = vcombine.low %v12198_v56, %v12202_v14  ;;  %v21579_v18 = vld [vmem:[#allocation9 + $0x1804] ss:$24 sps:$4 sm:$0xff]   ;;  %v21619_v14 = vld [vmem:[#allocation9 + $0x1950] ss:$24 sps:$4 sm:$0xff]  }
 0x93a   :  { %14658 = vmatprep.subr.bf16.mxu0 %v19655_v8  ;;  %v14734_v29 = vmul.f32 %v22849_v0, %v14718_v42  ;;  %v14726_v32 = vmul.f32 %v20123_v7, %v14710_v34 }
 0x93b   :  { %v14749_v31 = vadd.f32 %v20120_v54, %v14733_v47  ;;  %v14741_v51 = vmul.f32 %v20122_v53, %v14725_v49  ;;  %v21583_v47 = vld [vmem:[#allocation9 + $0x1830] ss:$24 sps:$4 sm:$0xff]   ;;  %v21591_v49 = vld [vmem:[#allocation9 + $0x1864] ss:$24 sps:$4 sm:$0xff]  }
 0x93c   :  { %v14742_v26 = vmul.f32 %v20123_v7, %v14726_v32  ;;  %v14750_v44 = vadd.f32 %v22849_v0, %v14734_v29  ;;  %v21597_v29 = vld [vmem:[#allocation9 + $0x1894] ss:$24 sps:$4 sm:$0xff]   ;;  %v21595_v32 = vld [vmem:[#allocation9 + $0x1890] ss:$24 sps:$4 sm:$0xff]  }
 0x93d   :  { %14659 = vmatpush1.bf16.msra.mxu0 %v19654_v20  ;;  %v14765_v11 = vmul.f32 0.7978846, %v14749_v31  ;;  %v14757_v41 = vadd.f32 %v20122_v53, %v14741_v51  ;;  %v21577_v20 = vld [vmem:[#allocation9 + $0x1800] ss:$24 sps:$4 sm:$0xff]   ;;  %v21609_v31 = vld [vmem:[#allocation9 + $0x18f4] ss:$24 sps:$4 sm:$0xff]  }
 0x93e   :  { %14660 = vmatprep.subr.bf16.mxu0 %v19663_v9  ;;  %v14758_v45 = vadd.f32 %v20123_v7, %v14742_v26  ;;  %v14766_v16 = vmul.f32 0.7978846, %v14750_v44  ;;  %v21585_v7 = vld [vmem:[#allocation9 + $0x1834] ss:$24 sps:$4 sm:$0xff]   ;;  %v21589_v9 = vld [vmem:[#allocation9 + $0x1860] ss:$24 sps:$4 sm:$0xff]  }
 0x93f   :  { %22168 = vtanh.f32 %v14765_v11  ;;  %v14773_v1 = vmul.f32 0.7978846, %v14757_v41  ;;  %v22862_v51 = vld [vmem:[#allocation8 + $0x10] sm:$0xff]  ;;  %v21607_v44 = vld [vmem:[#allocation9 + $0x18f0] ss:$24 sps:$4 sm:$0xff]  }
 0x940   :  { %v14774_v30 = vmul.f32 0.7978846, %v14758_v45  ;;  %22170 = vtanh.f32 %v14766_v16  ;;  %v12220_v26 = vrot.slane %v22862_v51, %v22571_v33 }
 0x941   :  { %14661 = vmatpush1.bf16.msra.mxu0 %v19662_v36  ;;  %22172 = vtanh.f32 %v14773_v1  ;;  %v21615_v36 = vld [vmem:[#allocation9 + $0x1924] ss:$24 sps:$4 sm:$0xff]  }
 0x942   :  { %14662 = vmatprep.subr.bf16.mxu0 %v19671_v35  ;;  %22174 = vtanh.f32 %v14774_v30 }
 0x945   :  { %14663 = vmatpush1.bf16.msra.mxu0 %v19670_v2  ;;  %v21621_v2 = vld [vmem:[#allocation9 + $0x1954] ss:$24 sps:$4 sm:$0xff]  }
 0x946   :  { %14664 = vmatprep.subr.bf16.mxu0 %v19679_v24 }
 0x949   :  { %v22169_v46 = vpop.eup %22168  ;;  %14665 = vmatpush1.bf16.msra.mxu0 %v19678_v28 }
 0x94a   :  { %v22171_v19 = vpop.eup %22170  ;;  %14666 = vmatprep.subr.bf16.mxu0 %v19687_v52  ;;  %v14797_v60 = vadd.f32 1.0, %v22169_v46 }
 0x94b   :  { %v22173_v23 = vpop.eup %22172  ;;  %v14798_v15 = vadd.f32 1.0, %v22171_v19 }
 0x94c   :  { %v22175_v8 = vpop.eup %22174  ;;  %v14805_v5 = vadd.f32 1.0, %v22173_v23  ;;  %v14813_v17 = vmul.f32 %v14797_v60, %v14685_v12  ;;  %v21625_v23 = vld [vmem:[#allocation9 + $0x1980] ss:$24 sps:$4 sm:$0xff]  }
 0x94d   :  { %14667 = vmatpush1.bf16.msra.mxu0 %v19686_v21  ;;  %v14806_v39 = vadd.f32 1.0, %v22175_v8  ;;  %v14814_v54 = vmul.f32 %v14798_v15, %v14686_v37  ;;  %v21627_v21 = vld [vmem:[#allocation9 + $0x1984] ss:$24 sps:$4 sm:$0xff]  }
 0x94e   :  { %14668 = vmatprep.subr.bf16.mxu0 %v19695_v61  ;;  %v14821_v42 = vmul.f32 %v14805_v5, %v14693_v58  ;;  %v21633_v5 = vld [vmem:[#allocation9 + $0x19b4] ss:$24 sps:$4 sm:$0xff]  }
 0x94f   :  { %v14822_v34 = vmul.f32 %v14806_v39, %v14694_v27 }
 0x950   :  { %v22856_v0 = vpack.c.bf16 %v14821_v42, %v14813_v17  ;;  %v21639_v42 = vld [vmem:[#allocation9 + $0x19e4] ss:$24 sps:$4 sm:$0xff]  }
 0x951   :  { %14669 = vmatpush1.bf16.msra.mxu0 %v19694_v25  ;;  %v22858_v53 = vpack.c.bf16 %v14822_v34, %v14814_v54  ;;  %v21631_v54 = vld [vmem:[#allocation9 + $0x19b0] ss:$24 sps:$4 sm:$0xff]   ;;  %v21637_v34 = vld [vmem:[#allocation9 + $0x19e0] ss:$24 sps:$4 sm:$0xff]  }
 0x952   :  { %17137 = vmatprep.subr.bf16.mxu0 %v21579_v18 }
 0x954   :  { %14671 = vmatmul.mubr.bf16.vlgmr.msra.gmra.mrb[20].mxu0 %v22460_v50  ;;  %v12216_v50 = vrot.slane %v22862_v51, %v22568_v62 }
 0x955   :  { %17138 = vmatpush1.bf16.msra.mxu0 %v21577_v20  ;;  %17169 = vmatprep.mubr.bf16.mxu0 %v22835_v48  ;;  %v21645_v20 = vld [vmem:[#allocation9 + $0x1a14] ss:$24 sps:$4 sm:$0xff]  }
 0x956   :  { %17139 = vmatprep.subr.bf16.mxu0 %v21585_v7  ;;  %v21643_v7 = vld [vmem:[#allocation9 + $0x1a10] ss:$24 sps:$4 sm:$0xff]  }
 0x959   :  { %17140 = vmatpush1.bf16.msra.mxu0 %v21583_v47 }
 0x95a   :  { %17141 = vmatprep.subr.bf16.mxu0 %v21591_v49  ;;  %v21651_v49 = vld [vmem:[#allocation9 + $0x1a44] ss:$24 sps:$4 sm:$0xff]  }
 0x95d   :  { %17142 = vmatpush1.bf16.msra.mxu0 %v21589_v9 }
 0x95e   :  { %17143 = vmatprep.subr.bf16.mxu0 %v21597_v29 }
 0x961   :  { %17144 = vmatpush1.bf16.msra.mxu0 %v21595_v32 }
 0x962   :  { %17145 = vmatprep.subr.bf16.mxu0 %v21603_v55 }
 0x965   :  { %17146 = vmatpush1.bf16.msra.mxu0 %v21601_v13 }
 0x966   :  { %17147 = vmatprep.subr.bf16.mxu0 %v21609_v31  ;;  %v21649_v31 = vld [vmem:[#allocation9 + $0x1a40] ss:$24 sps:$4 sm:$0xff]  }
 0x967   :  { %v14414_v11 = vpop.f32.mrb[16].mxu0 }
 0x968   :  { %v20116_v41 = vadd.f32 %v14414_v11, %v12216_v50  ;;  %v14416_v35 = vpop.f32.mrb[17].mxu0 }
 0x969   :  { %v22868_v45 = vadd.f32 %v14416_v35, %v12220_v26  ;;  %v14418_v16 = vpop.f32.mrb[18].mxu0  ;;  %17148 = vmatpush1.bf16.msra.mxu0 %v21607_v44 }
 0x96a   :  { %v14699_v22 = vmul.f32 0.044715, %v20116_v41  ;;  %v20118_v1 = vadd.f32 %v14418_v16, %v12216_v50  ;;  %v14420_v30 = vpop.f32.mrb[19].mxu0  ;;  %17149 = vmatprep.subr.bf16.mxu0 %v21615_v36  ;;  %v14683_v50 = vmul.f32 0.5, %v20116_v41  ;;  %v21657_v36 = vld [vmem:[#allocation9 + $0x1a74] ss:$24 sps:$4 sm:$0xff]  }
 0x96b   :  { %v14700_v24 = vmul.f32 0.044715, %v22868_v45  ;;  %v20119_v4 = vadd.f32 %v14420_v30, %v12220_v26  ;;  %v14684_v11 = vmul.f32 0.5, %v22868_v45 }
 0x96c   :  { %v14715_v38 = vmul.f32 %v20116_v41, %v14699_v22  ;;  %v14707_v28 = vmul.f32 0.044715, %v20118_v1  ;;  %v14691_v26 = vmul.f32 0.5, %v20118_v1 }
 0x96d   :  { %v14716_v52 = vmul.f32 %v22868_v45, %v14700_v24  ;;  %v14708_v56 = vmul.f32 0.044715, %v20119_v4  ;;  %17150 = vmatpush1.bf16.msra.mxu0 %v21613_v63  ;;  %v14692_v35 = vmul.f32 0.5, %v20119_v4  ;;  %v21655_v24 = vld [vmem:[#allocation9 + $0x1a70] ss:$24 sps:$4 sm:$0xff]  }
 0x96e   :  { %v14731_v12 = vmul.f32 %v20116_v41, %v14715_v38  ;;  %v14723_v46 = vmul.f32 %v20118_v1, %v14707_v28  ;;  %17151 = vmatprep.subr.bf16.mxu0 %v21621_v2 }
 0x96f   :  { %v14732_v37 = vmul.f32 %v22868_v45, %v14716_v52  ;;  %v14724_v19 = vmul.f32 %v20119_v4, %v14708_v56  ;;  %v21666_v52 = vld [vmem:[#allocation9 + $0x1e3c] ss:$24 sps:$4 sm:$0xff]  }
 0x970   :  { %v14747_v61 = vadd.f32 %v20116_v41, %v14731_v12  ;;  %v14739_v58 = vmul.f32 %v20118_v1, %v14723_v46  ;;  %v21658_v41 = vld [vmem:[#allocation9 + $0x1e08] ss:$24 sps:$4 sm:$0xff]   ;;  %v21669_v56 = vld [vmem:[#allocation9 + $0x1ad4] ss:$24 sps:$4 sm:$0xff]  }
 0x971   :  { %v14740_v60 = vmul.f32 %v20119_v4, %v14724_v19  ;;  %17152 = vmatpush1.bf16.msra.mxu0 %v21619_v14  ;;  %v14748_v27 = vadd.f32 %v22868_v45, %v14732_v37  ;;  %v21661_v45 = vld [vmem:[#allocation9 + $0x1aa0] ss:$24 sps:$4 sm:$0xff]   ;;  %v21672_v14 = vld [vmem:[#allocation9 + $0x1e6c] ss:$24 sps:$4 sm:$0xff]   ;;  %v21667_v12 = vld [vmem:[#allocation9 + $0x1ad0] ss:$24 sps:$4 sm:$0xff]  }
 0x972   :  { %v14763_v15 = vmul.f32 0.7978846, %v14747_v61  ;;  %v14755_v8 = vadd.f32 %v20118_v1, %v14739_v58  ;;  %17153 = vmatprep.subr.bf16.mxu0 %v21627_v21  ;;  %v21663_v1 = vld [vmem:[#allocation9 + $0x1aa4] ss:$24 sps:$4 sm:$0xff]   ;;  %v21670_v46 = vld [vmem:[#allocation9 + $0x1e68] ss:$24 sps:$4 sm:$0xff]  }
 0x973   :  { %v14756_v17 = vadd.f32 %v20119_v4, %v14740_v60  ;;  %v14764_v25 = vmul.f32 0.7978846, %v14748_v27  ;;  %v21664_v4 = vld [vmem:[#allocation9 + $0x1e38] ss:$24 sps:$4 sm:$0xff]   ;;  %v21675_v21 = vld [vmem:[#allocation9 + $0x1b04] ss:$24 sps:$4 sm:$0xff]  }
 0x974   :  { %22176 = vtanh.f32 %v14763_v15  ;;  %v14771_v39 = vmul.f32 0.7978846, %v14755_v8  ;;  %v21678_v37 = vld [vmem:[#allocation9 + $0x1e9c] ss:$24 sps:$4 sm:$0xff]   ;;  %v21673_v19 = vld [vmem:[#allocation9 + $0x1b00] ss:$24 sps:$4 sm:$0xff]  }
 0x975   :  { %17154 = vmatpush1.bf16.msra.mxu0 %v21625_v23  ;;  %v14772_v18 = vmul.f32 0.7978846, %v14756_v17  ;;  %22178 = vtanh.f32 %v14764_v25  ;;  %v21676_v61 = vld [vmem:[#allocation9 + $0x1e98] ss:$24 sps:$4 sm:$0xff]   ;;  %v21681_v58 = vld [vmem:[#allocation9 + $0x1b34] ss:$24 sps:$4 sm:$0xff]  }
 0x976   :  { %22180 = vtanh.f32 %v14771_v39  ;;  %17155 = vmatprep.subr.bf16.mxu0 %v21633_v5  ;;  %v21684_v60 = vld [vmem:[#allocation9 + $0x1ecc] ss:$24 sps:$4 sm:$0xff]   ;;  %v21679_v23 = vld [vmem:[#allocation9 + $0x1b30] ss:$24 sps:$4 sm:$0xff]   ;;  %v21690_v8 = vld [vmem:[#allocation9 + $0x1efc] ss:$24 sps:$4 sm:$0xff]  }
 0x977   :  { %22182 = vtanh.f32 %v14772_v18  ;;  %v21682_v27 = vld [vmem:[#allocation9 + $0x1ec8] ss:$24 sps:$4 sm:$0xff]   ;;  %v21687_v15 = vld [vmem:[#allocation9 + $0x1b64] ss:$24 sps:$4 sm:$0xff]   ;;  %v21688_v17 = vld [vmem:[#allocation9 + $0x1ef8] ss:$24 sps:$4 sm:$0xff]  }
 0x978   :  { %v21685_v5 = vld [vmem:[#allocation9 + $0x1b60] ss:$24 sps:$4 sm:$0xff]   ;;  %v21693_v25 = vld [vmem:[#allocation9 + $0x1b94] ss:$24 sps:$4 sm:$0xff]  }
 0x979   :  { %17156 = vmatpush1.bf16.msra.mxu0 %v21631_v54  ;;  %v21696_v39 = vld [vmem:[#allocation9 + $0x1f2c] ss:$24 sps:$4 sm:$0xff]   ;;  %v21691_v54 = vld [vmem:[#allocation9 + $0x1b90] ss:$24 sps:$4 sm:$0xff]  }
 0x97a   :  { %17157 = vmatprep.subr.bf16.mxu0 %v21639_v42  ;;  %v21694_v18 = vld [vmem:[#allocation9 + $0x1f28] ss:$24 sps:$4 sm:$0xff]   ;;  %v21699_v42 = vld [vmem:[#allocation9 + $0x1bc4] ss:$24 sps:$4 sm:$0xff]  }
 0x97d   :  { %17158 = vmatpush1.bf16.msra.mxu0 %v21637_v34  ;;  %v21702_v34 = vld [vmem:[#allocation9 + $0x1f5c] ss:$24 sps:$4 sm:$0xff]  }
 0x97e   :  { %v22177_v47 = vpop.eup %22176  ;;  %17159 = vmatprep.subr.bf16.mxu0 %v21645_v20  ;;  %v21697_v20 = vld [vmem:[#allocation9 + $0x1bc0] ss:$24 sps:$4 sm:$0xff]  }
 0x97f   :  { %v22179_v9 = vpop.eup %22178  ;;  %v14795_v29 = vadd.f32 1.0, %v22177_v47  ;;  %v21705_v47 = vld [vmem:[#allocation9 + $0x1bf4] ss:$24 sps:$4 sm:$0xff]  }
 0x980   :  { %v22181_v32 = vpop.eup %22180  ;;  %v14796_v55 = vadd.f32 1.0, %v22179_v9  ;;  %v21703_v9 = vld [vmem:[#allocation9 + $0x1bf0] ss:$24 sps:$4 sm:$0xff]  }
 0x981   :  { %v22183_v13 = vpop.eup %22182  ;;  %17160 = vmatpush1.bf16.msra.mxu0 %v21643_v7  ;;  %v14803_v44 = vadd.f32 1.0, %v22181_v32  ;;  %v14811_v63 = vmul.f32 %v14795_v29, %v14683_v50  ;;  %v21700_v7 = vld [vmem:[#allocation9 + $0x1f58] ss:$24 sps:$4 sm:$0xff]   ;;  %v21706_v29 = vld [vmem:[#allocation9 + $0x1f88] ss:$24 sps:$4 sm:$0xff]  }
 0x982   :  { %17161 = vmatprep.subr.bf16.mxu0 %v21651_v49  ;;  %v14804_v16 = vadd.f32 1.0, %v22183_v13  ;;  %v14812_v30 = vmul.f32 %v14796_v55, %v14684_v11  ;;  %v21708_v49 = vld [vmem:[#allocation9 + $0x1f8c] ss:$24 sps:$4 sm:$0xff]   ;;  %v21714_v55 = vld [vmem:[#allocation9 + $0x1fbc] ss:$24 sps:$4 sm:$0xff]  }
 0x983   :  { %v14819_v22 = vmul.f32 %v14803_v44, %v14691_v26  ;;  %v21711_v32 = vld [vmem:[#allocation9 + $0x1c24] ss:$24 sps:$4 sm:$0xff]   ;;  %v21709_v13 = vld [vmem:[#allocation9 + $0x1c20] ss:$24 sps:$4 sm:$0xff]   ;;  %v21717_v50 = vld [vmem:[#allocation9 + $0x1c54] ss:$24 sps:$4 sm:$0xff]  }
 0x984   :  { %v14820_v2 = vmul.f32 %v14804_v16, %v14692_v35  ;;  %v21720_v26 = vld [vmem:[#allocation9 + $0x1fec] ss:$24 sps:$4 sm:$0xff]   ;;  %v21715_v44 = vld [vmem:[#allocation9 + $0x1c50] ss:$24 sps:$4 sm:$0xff]   ;;  %v21726_v35 = vld [vmem:[#allocation9 + $0x201c] ss:$24 sps:$4 sm:$0xff]  }
 0x985   :  { %17162 = vmatpush1.bf16.msra.mxu0 %v21649_v31  ;;  %v22875_v38 = vpack.c.bf16 %v14819_v22, %v14811_v63  ;;  %v21712_v31 = vld [vmem:[#allocation9 + $0x1fb8] ss:$24 sps:$4 sm:$0xff]   ;;  %v21723_v11 = vld [vmem:[#allocation9 + $0x1c84] ss:$24 sps:$4 sm:$0xff]   ;;  %v21729_v22 = vld [vmem:[#allocation9 + $0x1cb4] ss:$24 sps:$4 sm:$0xff]  }
 0x986   :  { %17163 = vmatprep.subr.bf16.mxu0 %v21657_v36  ;;  %v22877_v28 = vpack.c.bf16 %v14820_v2, %v14812_v30  ;;  %v21718_v36 = vld [vmem:[#allocation9 + $0x1fe8] ss:$24 sps:$4 sm:$0xff]   ;;  %v21724_v63 = vld [vmem:[#allocation9 + $0x2018] ss:$24 sps:$4 sm:$0xff]   ;;  %v21732_v30 = vld [vmem:[#allocation9 + $0x204c] ss:$24 sps:$4 sm:$0xff]  }
 0x987   :  { %v21721_v16 = vld [vmem:[#allocation9 + $0x1c80] ss:$24 sps:$4 sm:$0xff]   ;;  %v21727_v2 = vld [vmem:[#allocation9 + $0x1cb0] ss:$24 sps:$4 sm:$0xff]  }
 0x988   :  { %17384 = vmatprep.mubr.bf16.mxu1 %v22877_v28 }
 0x989   :  { %17164 = vmatpush1.bf16.msra.mxu0 %v21655_v24  ;;  %17385 = vmatmul.mubr.bf16.vlgmr.msra.gmra.mrb[12].mxu1 %v22875_v38  ;;  %v21730_v24 = vld [vmem:[#allocation9 + $0x2048] ss:$24 sps:$4 sm:$0xff]  }
 0x98a   :  { %17396 = vmatpush1.bf16.msra.mxu1 %v21658_v41  ;;  %17427 = vmatprep.mubr.bf16.mxu1 %v22858_v53  ;;  %v21735_v41 = vld [vmem:[#allocation9 + $0x1ce4] ss:$24 sps:$4 sm:$0xff]  }
 0x98b   :  { %17165 = vmatprep.subr.bf16.mxu0 %v21663_v1  ;;  %17397 = vmatprep.subr.bf16.mxu1 %v21666_v52  ;;  %v21738_v1 = vld [vmem:[#allocation9 + $0x207c] ss:$24 sps:$4 sm:$0xff]   ;;  %v21733_v52 = vld [vmem:[#allocation9 + $0x1ce0] ss:$24 sps:$4 sm:$0xff]  }
 0x98d   :  { %17166 = vmatpush1.bf16.msra.mxu0 %v21661_v45  ;;  %v21736_v45 = vld [vmem:[#allocation9 + $0x2078] ss:$24 sps:$4 sm:$0xff]  }
 0x98e   :  { %17398 = vmatpush1.bf16.msra.mxu1 %v21664_v4  ;;  %17167 = vmatprep.subr.bf16.mxu0 %v21669_v56  ;;  %v21741_v4 = vld [vmem:[#allocation9 + $0x1d14] ss:$24 sps:$4 sm:$0xff]  }
 0x98f   :  { %17399 = vmatprep.subr.bf16.mxu1 %v21672_v14  ;;  %v21744_v56 = vld [vmem:[#allocation9 + $0x20ac] ss:$24 sps:$4 sm:$0xff]   ;;  %v21739_v14 = vld [vmem:[#allocation9 + $0x1d10] ss:$24 sps:$4 sm:$0xff]  }
 0x991   :  { %17168 = vmatpush1.bf16.msra.mxu0 %v21667_v12  ;;  %v21742_v12 = vld [vmem:[#allocation9 + $0x20a8] ss:$24 sps:$4 sm:$0xff]  }
 0x992   :  { %17400 = vmatpush1.bf16.msra.mxu1 %v21670_v46  ;;  %17180 = vmatprep.subr.bf16.mxu0 %v21675_v21  ;;  %v21747_v46 = vld [vmem:[#allocation9 + $0x1d44] ss:$24 sps:$4 sm:$0xff]  }
 0x993   :  { %17401 = vmatprep.subr.bf16.mxu1 %v21678_v37  ;;  %v21750_v21 = vld [vmem:[#allocation9 + $0x20dc] ss:$24 sps:$4 sm:$0xff]   ;;  %v21745_v37 = vld [vmem:[#allocation9 + $0x1d40] ss:$24 sps:$4 sm:$0xff]  }
 0x994   :  { %17170 = vmatmul.mubr.bf16.vlgmr.msra.gmra.mrb[4].mxu0 %v22833_v6 }
 0x995   :  { %17181 = vmatpush1.bf16.msra.mxu0 %v21673_v19  ;;  %17212 = vmatprep.mubr.bf16.mxu0 %v22877_v28  ;;  %v21748_v19 = vld [vmem:[#allocation9 + $0x20d8] ss:$24 sps:$4 sm:$0xff]  }
 0x996   :  { %17402 = vmatpush1.bf16.msra.mxu1 %v21676_v61  ;;  %17182 = vmatprep.subr.bf16.mxu0 %v21681_v58  ;;  %v21753_v61 = vld [vmem:[#allocation9 + $0x1d74] ss:$24 sps:$4 sm:$0xff]  }
 0x997   :  { %17403 = vmatprep.subr.bf16.mxu1 %v21684_v60  ;;  %v21804_v58 = vld [vmem:[#allocation9 + $0x210c] ss:$24 sps:$4 sm:$0xff]   ;;  %v21751_v60 = vld [vmem:[#allocation9 + $0x1d70] ss:$24 sps:$4 sm:$0xff]  }
 0x999   :  { %17183 = vmatpush1.bf16.msra.mxu0 %v21679_v23  ;;  %v21756_v23 = vld [vmem:[#allocation9 + $0x1da4] ss:$24 sps:$4 sm:$0xff]  }
 0x99a   :  { %17404 = vmatpush1.bf16.msra.mxu1 %v21682_v27  ;;  %17184 = vmatprep.subr.bf16.mxu0 %v21687_v15  ;;  %v21802_v27 = vld [vmem:[#allocation9 + $0x2108] ss:$24 sps:$4 sm:$0xff]   ;;  %v21810_v15 = vld [vmem:[#allocation9 + $0x213c] ss:$24 sps:$4 sm:$0xff]  }
 0x99b   :  { %17405 = vmatprep.subr.bf16.mxu1 %v21690_v8  ;;  %v21754_v8 = vld [vmem:[#allocation9 + $0x1da0] ss:$24 sps:$4 sm:$0xff]  }
 0x99d   :  { %17185 = vmatpush1.bf16.msra.mxu0 %v21685_v5  ;;  %v21759_v5 = vld [vmem:[#allocation9 + $0x1dd4] ss:$24 sps:$4 sm:$0xff]  }
 0x99e   :  { %17406 = vmatpush1.bf16.msra.mxu1 %v21688_v17  ;;  %17186 = vmatprep.subr.bf16.mxu0 %v21693_v25  ;;  %v21808_v17 = vld [vmem:[#allocation9 + $0x2138] ss:$24 sps:$4 sm:$0xff]   ;;  %v21816_v25 = vld [vmem:[#allocation9 + $0x216c] ss:$24 sps:$4 sm:$0xff]  }
 0x99f   :  { %17407 = vmatprep.subr.bf16.mxu1 %v21696_v39  ;;  %v21757_v39 = vld [vmem:[#allocation9 + $0x1dd0] ss:$24 sps:$4 sm:$0xff]  }
 0x9a1   :  { %17187 = vmatpush1.bf16.msra.mxu0 %v21691_v54  ;;  %v21762_v54 = vld [vmem:[#allocation9 + $0x1e04] ss:$24 sps:$4 sm:$0xff]  }
 0x9a2   :  { %17408 = vmatpush1.bf16.msra.mxu1 %v21694_v18  ;;  %17188 = vmatprep.subr.bf16.mxu0 %v21699_v42  ;;  %v21814_v18 = vld [vmem:[#allocation9 + $0x2168] ss:$24 sps:$4 sm:$0xff]   ;;  %v21822_v42 = vld [vmem:[#allocation9 + $0x219c] ss:$24 sps:$4 sm:$0xff]  }
 0x9a3   :  { %17409 = vmatprep.subr.bf16.mxu1 %v21702_v34  ;;  %v21760_v34 = vld [vmem:[#allocation9 + $0x1e00] ss:$24 sps:$4 sm:$0xff]  }
 0x9a5   :  { %17189 = vmatpush1.bf16.msra.mxu0 %v21697_v20  ;;  %v21765_v20 = vld [vmem:[#allocation9 + $0x1e34] ss:$24 sps:$4 sm:$0xff]  }
 0x9a6   :  { %17410 = vmatpush1.bf16.msra.mxu1 %v21700_v7  ;;  %17190 = vmatprep.subr.bf16.mxu0 %v21705_v47  ;;  %v21820_v7 = vld [vmem:[#allocation9 + $0x2198] ss:$24 sps:$4 sm:$0xff]   ;;  %v21828_v47 = vld [vmem:[#allocation9 + $0x21cc] ss:$24 sps:$4 sm:$0xff]  }
 0x9a7   :  { %17411 = vmatprep.subr.bf16.mxu1 %v21708_v49  ;;  %v21763_v49 = vld [vmem:[#allocation9 + $0x1e30] ss:$24 sps:$4 sm:$0xff]  }
 0x9a9   :  { %17191 = vmatpush1.bf16.msra.mxu0 %v21703_v9  ;;  %v21768_v9 = vld [vmem:[#allocation9 + $0x1e64] ss:$24 sps:$4 sm:$0xff]  }
 0x9aa   :  { %17412 = vmatpush1.bf16.msra.mxu1 %v21706_v29  ;;  %17192 = vmatprep.subr.bf16.mxu0 %v21711_v32  ;;  %v21826_v29 = vld [vmem:[#allocation9 + $0x21c8] ss:$24 sps:$4 sm:$0xff]   ;;  %v21834_v32 = vld [vmem:[#allocation9 + $0x21fc] ss:$24 sps:$4 sm:$0xff]  }
 0x9ab   :  { %17413 = vmatprep.subr.bf16.mxu1 %v21714_v55  ;;  %v21766_v55 = vld [vmem:[#allocation9 + $0x1e60] ss:$24 sps:$4 sm:$0xff]  }
 0x9ad   :  { %17193 = vmatpush1.bf16.msra.mxu0 %v21709_v13  ;;  %v21771_v13 = vld [vmem:[#allocation9 + $0x1e94] ss:$24 sps:$4 sm:$0xff]  }
 0x9ae   :  { %17414 = vmatpush1.bf16.msra.mxu1 %v21712_v31  ;;  %17194 = vmatprep.subr.bf16.mxu0 %v21717_v50  ;;  %v21832_v31 = vld [vmem:[#allocation9 + $0x21f8] ss:$24 sps:$4 sm:$0xff]   ;;  %v21840_v50 = vld [vmem:[#allocation9 + $0x222c] ss:$24 sps:$4 sm:$0xff]  }
 0x9af   :  { %17415 = vmatprep.subr.bf16.mxu1 %v21720_v26  ;;  %v21769_v26 = vld [vmem:[#allocation9 + $0x1e90] ss:$24 sps:$4 sm:$0xff]  }
 0x9b1   :  { %17195 = vmatpush1.bf16.msra.mxu0 %v21715_v44  ;;  %v21774_v44 = vld [vmem:[#allocation9 + $0x1ec4] ss:$24 sps:$4 sm:$0xff]  }
 0x9b2   :  { %17416 = vmatpush1.bf16.msra.mxu1 %v21718_v36  ;;  %17196 = vmatprep.subr.bf16.mxu0 %v21723_v11  ;;  %v21838_v36 = vld [vmem:[#allocation9 + $0x2228] ss:$24 sps:$4 sm:$0xff]   ;;  %v21846_v11 = vld [vmem:[#allocation9 + $0x225c] ss:$24 sps:$4 sm:$0xff]  }
 0x9b3   :  { %17417 = vmatprep.subr.bf16.mxu1 %v21726_v35  ;;  %v21772_v35 = vld [vmem:[#allocation9 + $0x1ec0] ss:$24 sps:$4 sm:$0xff]  }
 0x9b5   :  { %17197 = vmatpush1.bf16.msra.mxu0 %v21721_v16  ;;  %v21777_v16 = vld [vmem:[#allocation9 + $0x1ef4] ss:$24 sps:$4 sm:$0xff]  }
 0x9b6   :  { %17418 = vmatpush1.bf16.msra.mxu1 %v21724_v63  ;;  %17198 = vmatprep.subr.bf16.mxu0 %v21729_v22  ;;  %v21844_v63 = vld [vmem:[#allocation9 + $0x2258] ss:$24 sps:$4 sm:$0xff]   ;;  %v21852_v22 = vld [vmem:[#allocation9 + $0x228c] ss:$24 sps:$4 sm:$0xff]  }
 0x9b7   :  { %17419 = vmatprep.subr.bf16.mxu1 %v21732_v30  ;;  %v21775_v30 = vld [vmem:[#allocation9 + $0x1ef0] ss:$24 sps:$4 sm:$0xff]  }
 0x9b9   :  { %17199 = vmatpush1.bf16.msra.mxu0 %v21727_v2  ;;  %v21780_v2 = vld [vmem:[#allocation9 + $0x1f24] ss:$24 sps:$4 sm:$0xff]  }
 0x9ba   :  { %17420 = vmatpush1.bf16.msra.mxu1 %v21730_v24  ;;  %17200 = vmatprep.subr.bf16.mxu0 %v21735_v41  ;;  %v21850_v24 = vld [vmem:[#allocation9 + $0x2288] ss:$24 sps:$4 sm:$0xff]   ;;  %v21858_v41 = vld [vmem:[#allocation9 + $0x22bc] ss:$24 sps:$4 sm:$0xff]  }
 0x9bb   :  { %17421 = vmatprep.subr.bf16.mxu1 %v21738_v1  ;;  %v21778_v1 = vld [vmem:[#allocation9 + $0x1f20] ss:$24 sps:$4 sm:$0xff]  }
 0x9bd   :  { %17201 = vmatpush1.bf16.msra.mxu0 %v21733_v52  ;;  %v21783_v52 = vld [vmem:[#allocation9 + $0x1f54] ss:$24 sps:$4 sm:$0xff]  }
 0x9be   :  { %17422 = vmatpush1.bf16.msra.mxu1 %v21736_v45  ;;  %17202 = vmatprep.subr.bf16.mxu0 %v21741_v4  ;;  %v21856_v45 = vld [vmem:[#allocation9 + $0x22b8] ss:$24 sps:$4 sm:$0xff]   ;;  %v21864_v4 = vld [vmem:[#allocation9 + $0x22ec] ss:$24 sps:$4 sm:$0xff]  }
 0x9bf   :  { %17423 = vmatprep.subr.bf16.mxu1 %v21744_v56  ;;  %v21781_v56 = vld [vmem:[#allocation9 + $0x1f50] ss:$24 sps:$4 sm:$0xff]  }
 0x9c1   :  { %17203 = vmatpush1.bf16.msra.mxu0 %v21739_v14  ;;  %v21786_v14 = vld [vmem:[#allocation9 + $0x1f84] ss:$24 sps:$4 sm:$0xff]  }
 0x9c2   :  { %17424 = vmatpush1.bf16.msra.mxu1 %v21742_v12  ;;  %17204 = vmatprep.subr.bf16.mxu0 %v21747_v46  ;;  %v21862_v12 = vld [vmem:[#allocation9 + $0x22e8] ss:$24 sps:$4 sm:$0xff]   ;;  %v21870_v46 = vld [vmem:[#allocation9 + $0x231c] ss:$24 sps:$4 sm:$0xff]  }
 0x9c3   :  { %17425 = vmatprep.subr.bf16.mxu1 %v21750_v21  ;;  %v21784_v21 = vld [vmem:[#allocation9 + $0x1f80] ss:$24 sps:$4 sm:$0xff]  }
 0x9c5   :  { %17205 = vmatpush1.bf16.msra.mxu0 %v21745_v37  ;;  %v21789_v37 = vld [vmem:[#allocation9 + $0x1fb4] ss:$24 sps:$4 sm:$0xff]  }
 0x9c6   :  { %17426 = vmatpush1.bf16.msra.mxu1 %v21748_v19  ;;  %17206 = vmatprep.subr.bf16.mxu0 %v21753_v61  ;;  %v21868_v19 = vld [vmem:[#allocation9 + $0x2318] ss:$24 sps:$4 sm:$0xff]   ;;  %v21876_v61 = vld [vmem:[#allocation9 + $0x234c] ss:$24 sps:$4 sm:$0xff]  }
 0x9c7   :  { %17438 = vmatprep.subr.bf16.mxu1 %v21804_v58  ;;  %v21787_v58 = vld [vmem:[#allocation9 + $0x1fb0] ss:$24 sps:$4 sm:$0xff]  }
 0x9c9   :  { %17428 = vmatmul.mubr.bf16.vlgmr.msra.gmra.mrb[12].mxu1 %v22856_v0  ;;  %17207 = vmatpush1.bf16.msra.mxu0 %v21751_v60  ;;  %v21792_v60 = vld [vmem:[#allocation9 + $0x1fe4] ss:$24 sps:$4 sm:$0xff]  }
 0x9ca   :  { %17208 = vmatprep.subr.bf16.mxu0 %v21756_v23  ;;  %17439 = vmatpush1.bf16.msra.mxu1 %v21802_v27  ;;  %v21874_v23 = vld [vmem:[#allocation9 + $0x2348] ss:$24 sps:$4 sm:$0xff]   ;;  %v21882_v27 = vld [vmem:[#allocation9 + $0x237c] ss:$24 sps:$4 sm:$0xff]  }
 0x9cb   :  { %17440 = vmatprep.subr.bf16.mxu1 %v21810_v15  ;;  %v21790_v15 = vld [vmem:[#allocation9 + $0x1fe0] ss:$24 sps:$4 sm:$0xff]  }
 0x9cd   :  { %17209 = vmatpush1.bf16.msra.mxu0 %v21754_v8  ;;  %v21795_v8 = vld [vmem:[#allocation9 + $0x2014] ss:$24 sps:$4 sm:$0xff]  }
 0x9ce   :  { %17210 = vmatprep.subr.bf16.mxu0 %v21759_v5  ;;  %17441 = vmatpush1.bf16.msra.mxu1 %v21808_v17  ;;  %v21880_v5 = vld [vmem:[#allocation9 + $0x2378] ss:$24 sps:$4 sm:$0xff]   ;;  %v21888_v17 = vld [vmem:[#allocation9 + $0x23ac] ss:$24 sps:$4 sm:$0xff]  }
 0x9cf   :  { %17442 = vmatprep.subr.bf16.mxu1 %v21816_v25  ;;  %v21793_v25 = vld [vmem:[#allocation9 + $0x2010] ss:$24 sps:$4 sm:$0xff]  }
 0x9d1   :  { %17211 = vmatpush1.bf16.msra.mxu0 %v21757_v39  ;;  %v21798_v39 = vld [vmem:[#allocation9 + $0x2044] ss:$24 sps:$4 sm:$0xff]  }
 0x9d2   :  { %17223 = vmatprep.subr.bf16.mxu0 %v21762_v54  ;;  %17443 = vmatpush1.bf16.msra.mxu1 %v21814_v18  ;;  %v21886_v54 = vld [vmem:[#allocation9 + $0x23a8] ss:$24 sps:$4 sm:$0xff]   ;;  %v21894_v18 = vld [vmem:[#allocation9 + $0x23dc] ss:$24 sps:$4 sm:$0xff]  }
 0x9d3   :  { %17444 = vmatprep.subr.bf16.mxu1 %v21822_v42  ;;  %v21796_v42 = vld [vmem:[#allocation9 + $0x2040] ss:$24 sps:$4 sm:$0xff]  }
 0x9d4   :  { %17213 = vmatmul.mubr.bf16.vlgmr.msra.gmra.mrb[4].mxu0 %v22875_v38 }
 0x9d5   :  { %17224 = vmatpush1.bf16.msra.mxu0 %v21760_v34  ;;  %17255 = vmatprep.mubr.bf16.mxu0 %v22858_v53  ;;  %v21801_v34 = vld [vmem:[#allocation9 + $0x2074] ss:$24 sps:$4 sm:$0xff]  }
 0x9d6   :  { %17225 = vmatprep.subr.bf16.mxu0 %v21765_v20  ;;  %17445 = vmatpush1.bf16.msra.mxu1 %v21820_v7  ;;  %v21892_v20 = vld [vmem:[#allocation9 + $0x23d8] ss:$24 sps:$4 sm:$0xff]  }
 0x9d7   :  { %17446 = vmatprep.subr.bf16.mxu1 %v21828_v47  ;;  %v21799_v7 = vld [vmem:[#allocation9 + $0x2070] ss:$24 sps:$4 sm:$0xff]   ;;  %v21807_v47 = vld [vmem:[#allocation9 + $0x20a4] ss:$24 sps:$4 sm:$0xff]  }
 0x9d9   :  { %17226 = vmatpush1.bf16.msra.mxu0 %v21763_v49  ;;  %v21805_v49 = vld [vmem:[#allocation9 + $0x20a0] ss:$24 sps:$4 sm:$0xff]  }
 0x9da   :  { %17227 = vmatprep.subr.bf16.mxu0 %v21768_v9  ;;  %17447 = vmatpush1.bf16.msra.mxu1 %v21826_v29  ;;  %v21813_v9 = vld [vmem:[#allocation9 + $0x20d4] ss:$24 sps:$4 sm:$0xff]   ;;  %v21811_v29 = vld [vmem:[#allocation9 + $0x20d0] ss:$24 sps:$4 sm:$0xff]  }
 0x9db   :  { %17448 = vmatprep.subr.bf16.mxu1 %v21834_v32  ;;  %v21819_v32 = vld [vmem:[#allocation9 + $0x2104] ss:$24 sps:$4 sm:$0xff]  }
 0x9dd   :  { %17228 = vmatpush1.bf16.msra.mxu0 %v21766_v55  ;;  %v21817_v55 = vld [vmem:[#allocation9 + $0x2100] ss:$24 sps:$4 sm:$0xff]  }
 0x9de   :  { %17229 = vmatprep.subr.bf16.mxu0 %v21771_v13  ;;  %17449 = vmatpush1.bf16.msra.mxu1 %v21832_v31  ;;  %v21825_v13 = vld [vmem:[#allocation9 + $0x2134] ss:$24 sps:$4 sm:$0xff]   ;;  %v21823_v31 = vld [vmem:[#allocation9 + $0x2130] ss:$24 sps:$4 sm:$0xff]  }
 0x9df   :  { %17450 = vmatprep.subr.bf16.mxu1 %v21840_v50  ;;  %v21831_v50 = vld [vmem:[#allocation9 + $0x2164] ss:$24 sps:$4 sm:$0xff]  }
 0x9e1   :  { %17230 = vmatpush1.bf16.msra.mxu0 %v21769_v26  ;;  %v21829_v26 = vld [vmem:[#allocation9 + $0x2160] ss:$24 sps:$4 sm:$0xff]  }
 0x9e2   :  { %17231 = vmatprep.subr.bf16.mxu0 %v21774_v44  ;;  %17451 = vmatpush1.bf16.msra.mxu1 %v21838_v36  ;;  %v21837_v44 = vld [vmem:[#allocation9 + $0x2194] ss:$24 sps:$4 sm:$0xff]   ;;  %v21835_v36 = vld [vmem:[#allocation9 + $0x2190] ss:$24 sps:$4 sm:$0xff]  }
 0x9e3   :  { %17452 = vmatprep.subr.bf16.mxu1 %v21846_v11  ;;  %v21843_v11 = vld [vmem:[#allocation9 + $0x21c4] ss:$24 sps:$4 sm:$0xff]  }
 0x9e5   :  { %17232 = vmatpush1.bf16.msra.mxu0 %v21772_v35  ;;  %v21841_v35 = vld [vmem:[#allocation9 + $0x21c0] ss:$24 sps:$4 sm:$0xff]  }
 0x9e6   :  { %17233 = vmatprep.subr.bf16.mxu0 %v21777_v16  ;;  %17453 = vmatpush1.bf16.msra.mxu1 %v21844_v63  ;;  %v21849_v16 = vld [vmem:[#allocation9 + $0x21f4] ss:$24 sps:$4 sm:$0xff]   ;;  %v12232_v63 = vrot.slane %v22862_v51, %v22600_v40 }
 0x9e7   :  { %17454 = vmatprep.subr.bf16.mxu1 %v21852_v22  ;;  %v12236_v22 = vrot.slane %v22862_v51, %v22603_v43  ;;  %v21861_v40 = vld [vmem:[#allocation9 + $0x2254] ss:$24 sps:$4 sm:$0xff]  }
 0x9e9   :  { %17234 = vmatpush1.bf16.msra.mxu0 %v21775_v30  ;;  %v21847_v30 = vld [vmem:[#allocation9 + $0x21f0] ss:$24 sps:$4 sm:$0xff]  }
 0x9ea   :  { %17235 = vmatprep.subr.bf16.mxu0 %v21780_v2  ;;  %17455 = vmatpush1.bf16.msra.mxu1 %v21850_v24  ;;  %v21855_v2 = vld [vmem:[#allocation9 + $0x2224] ss:$24 sps:$4 sm:$0xff]  }
 0x9eb   :  { %17456 = vmatprep.subr.bf16.mxu1 %v21858_v41 }
 0x9ed   :  { %17236 = vmatpush1.bf16.msra.mxu0 %v21778_v1 }
 0x9ee   :  { %17237 = vmatprep.subr.bf16.mxu0 %v21783_v52  ;;  %17457 = vmatpush1.bf16.msra.mxu1 %v21856_v45 }
 0x9ef   :  { %17458 = vmatprep.subr.bf16.mxu1 %v21864_v4  ;;  %v21853_v4 = vld [vmem:[#allocation9 + $0x2220] ss:$24 sps:$4 sm:$0xff]  }
 0x9f1   :  { %17238 = vmatpush1.bf16.msra.mxu0 %v21781_v56 }
 0x9f2   :  { %17239 = vmatprep.subr.bf16.mxu0 %v21786_v14  ;;  %17459 = vmatpush1.bf16.msra.mxu1 %v21862_v12 }
 0x9f3   :  { %17460 = vmatprep.subr.bf16.mxu1 %v21870_v46 }
 0x9f5   :  { %17240 = vmatpush1.bf16.msra.mxu0 %v21784_v21 }
 0x9f6   :  { %17241 = vmatprep.subr.bf16.mxu0 %v21789_v37  ;;  %17461 = vmatpush1.bf16.msra.mxu1 %v21868_v19 }
 0x9f7   :  { %17462 = vmatprep.subr.bf16.mxu1 %v21876_v61  ;;  %v21859_v61 = vld [vmem:[#allocation9 + $0x2250] ss:$24 sps:$4 sm:$0xff]  }
 0x9f9   :  { %17242 = vmatpush1.bf16.msra.mxu0 %v21787_v58 }
 0x9fa   :  { %17243 = vmatprep.subr.bf16.mxu0 %v21792_v60  ;;  %17463 = vmatpush1.bf16.msra.mxu1 %v21874_v23  ;;  %v21867_v23 = vld [vmem:[#allocation9 + $0x2284] ss:$24 sps:$4 sm:$0xff]  }
 0x9fb   :  { %17464 = vmatprep.subr.bf16.mxu1 %v21882_v27 }
 0x9fd   :  { %17244 = vmatpush1.bf16.msra.mxu0 %v21790_v15 }
 0x9fe   :  { %17245 = vmatprep.subr.bf16.mxu0 %v21795_v8  ;;  %17465 = vmatpush1.bf16.msra.mxu1 %v21880_v5 }
 0x9ff   :  { %17466 = vmatprep.subr.bf16.mxu1 %v21888_v17 }
 0xa01   :  { %17246 = vmatpush1.bf16.msra.mxu0 %v21793_v25  ;;  %v21865_v25 = vld [vmem:[#allocation9 + $0x2280] ss:$24 sps:$4 sm:$0xff]  }
 0xa02   :  { %17247 = vmatprep.subr.bf16.mxu0 %v21798_v39  ;;  %17467 = vmatpush1.bf16.msra.mxu1 %v21886_v54 }
 0xa03   :  { %17468 = vmatprep.subr.bf16.mxu1 %v21894_v18 }
 0xa05   :  { %17248 = vmatpush1.bf16.msra.mxu0 %v21796_v42  ;;  %v21873_v42 = vld [vmem:[#allocation9 + $0x22b4] ss:$24 sps:$4 sm:$0xff]  }
 0xa06   :  { %17249 = vmatprep.subr.bf16.mxu0 %v21801_v34  ;;  %17469 = vmatpush1.bf16.msra.mxu1 %v21892_v20 }
 0xa09   :  { %17250 = vmatpush1.bf16.msra.mxu0 %v21799_v7 }
 0xa0a   :  { %17251 = vmatprep.subr.bf16.mxu0 %v21807_v47  ;;  %v21871_v47 = vld [vmem:[#allocation9 + $0x22b0] ss:$24 sps:$4 sm:$0xff]  }
 0xa0d   :  { %17252 = vmatpush1.bf16.msra.mxu0 %v21805_v49 }
 0xa0e   :  { %17253 = vmatprep.subr.bf16.mxu0 %v21813_v9  ;;  %v21879_v9 = vld [vmem:[#allocation9 + $0x22e4] ss:$24 sps:$4 sm:$0xff]  }
 0xa11   :  { %17254 = vmatpush1.bf16.msra.mxu0 %v21811_v29  ;;  %v21877_v29 = vld [vmem:[#allocation9 + $0x22e0] ss:$24 sps:$4 sm:$0xff]  }
 0xa12   :  { %17266 = vmatprep.subr.bf16.mxu0 %v21819_v32  ;;  %v21885_v32 = vld [vmem:[#allocation9 + $0x2314] ss:$24 sps:$4 sm:$0xff]  }
 0xa14   :  { %17256 = vmatmul.mubr.bf16.vlgmr.msra.gmra.mrb[4].mxu0 %v22856_v0 }
 0xa15   :  { %17267 = vmatpush1.bf16.msra.mxu0 %v21817_v55  ;;  %v21883_v55 = vld [vmem:[#allocation9 + $0x2310] ss:$24 sps:$4 sm:$0xff]  }
 0xa16   :  { %17268 = vmatprep.subr.bf16.mxu0 %v21825_v13 }
 0xa19   :  { %17269 = vmatpush1.bf16.msra.mxu0 %v21823_v31  ;;  %v21891_v31 = vld [vmem:[#allocation9 + $0x2344] ss:$24 sps:$4 sm:$0xff]  }
 0xa1a   :  { %17270 = vmatprep.subr.bf16.mxu0 %v21831_v50 }
 0xa1d   :  { %17271 = vmatpush1.bf16.msra.mxu0 %v21829_v26 }
 0xa1e   :  { %17272 = vmatprep.subr.bf16.mxu0 %v21837_v44 }
 0xa21   :  { %17273 = vmatpush1.bf16.msra.mxu0 %v21835_v36 }
 0xa22   :  { %17274 = vmatprep.subr.bf16.mxu0 %v21843_v11 }
 0xa25   :  { %17275 = vmatpush1.bf16.msra.mxu0 %v21841_v35  ;;  %v21889_v35 = vld [vmem:[#allocation9 + $0x2340] ss:$24 sps:$4 sm:$0xff]  }
 0xa26   :  { %17276 = vmatprep.subr.bf16.mxu0 %v21849_v16 }
 0xa27   :  { %v14672_v24 = vpop.f32.mrb[20].mxu0 }
 0xa28   :  { %v20124_v41 = vadd.f32 %v14672_v24, %v12232_v63  ;;  %v14674_v1 = vpop.f32.mrb[21].mxu0 }
 0xa29   :  { %v22892_v52 = vadd.f32 %v14674_v1, %v12236_v22  ;;  %v14676_v45 = vpop.f32.mrb[22].mxu0  ;;  %17277 = vmatpush1.bf16.msra.mxu0 %v21847_v30  ;;  %v21897_v30 = vld [vmem:[#allocation9 + $0x2374] ss:$24 sps:$4 sm:$0xff]  }
 0xa2a   :  { %v14703_v56 = vmul.f32 0.044715, %v20124_v41  ;;  %v20126_v14 = vadd.f32 %v14676_v45, %v12232_v63  ;;  %v14678_v12 = vpop.f32.mrb[23].mxu0  ;;  %17278 = vmatprep.subr.bf16.mxu0 %v21855_v2  ;;  %v14687_v16 = vmul.f32 0.5, %v20124_v41 }
 0xa2b   :  { %v14704_v46 = vmul.f32 0.044715, %v22892_v52  ;;  %v20127_v21 = vadd.f32 %v14678_v12, %v12236_v22  ;;  %v14688_v2 = vmul.f32 0.5, %v22892_v52 }
 0xa2c   :  { %v14719_v43 = vmul.f32 %v20124_v41, %v14703_v56  ;;  %v14711_v51 = vmul.f32 0.044715, %v20126_v14  ;;  %v14695_v63 = vmul.f32 0.5, %v20126_v14 }
 0xa2d   :  { %v14720_v37 = vmul.f32 %v22892_v52, %v14704_v46  ;;  %v14712_v19 = vmul.f32 0.044715, %v20127_v21  ;;  %17279 = vmatpush1.bf16.msra.mxu0 %v21853_v4  ;;  %v14696_v24 = vmul.f32 0.5, %v20127_v21 }
 0xa2e   :  { %v14735_v58 = vmul.f32 %v20124_v41, %v14719_v43  ;;  %v14727_v60 = vmul.f32 %v20126_v14, %v14711_v51  ;;  %17280 = vmatprep.subr.bf16.mxu0 %v21861_v40  ;;  %v21895_v40 = vld [vmem:[#allocation9 + $0x2370] ss:$24 sps:$4 sm:$0xff]   ;;  %v21906_v51 = vld [vmem:[#allocation9 + $0x1814] ss:$24 sps:$4 sm:$0xff]  }
 0xa2f   :  { %v14736_v27 = vmul.f32 %v22892_v52, %v14720_v37  ;;  %v14728_v15 = vmul.f32 %v20127_v21, %v14712_v19  ;;  %v21904_v37 = vld [vmem:[#allocation9 + $0x1810] ss:$24 sps:$4 sm:$0xff]   ;;  %v21909_v19 = vld [vmem:[#allocation9 + $0x1844] ss:$24 sps:$4 sm:$0xff]  }
 0xa30   :  { %v14751_v8 = vadd.f32 %v20124_v41, %v14735_v58  ;;  %v14743_v5 = vmul.f32 %v20126_v14, %v14727_v60  ;;  %v21900_v41 = vld [vmem:[#allocation9 + $0x23a4] ss:$24 sps:$4 sm:$0xff]   ;;  %v21912_v58 = vld [vmem:[#allocation9 + $0x1874] ss:$24 sps:$4 sm:$0xff]   ;;  %v21910_v60 = vld [vmem:[#allocation9 + $0x1870] ss:$24 sps:$4 sm:$0xff]  }
 0xa31   :  { %v14744_v17 = vmul.f32 %v20127_v21, %v14728_v15  ;;  %17281 = vmatpush1.bf16.msra.mxu0 %v21859_v61  ;;  %v14752_v39 = vadd.f32 %v22892_v52, %v14736_v27  ;;  %v21898_v52 = vld [vmem:[#allocation9 + $0x23a0] ss:$24 sps:$4 sm:$0xff]   ;;  %v21918_v15 = vld [vmem:[#allocation9 + $0x18d4] ss:$24 sps:$4 sm:$0xff]  }
 0xa32   :  { %v14767_v54 = vmul.f32 0.7978846, %v14751_v8  ;;  %v14759_v18 = vadd.f32 %v20126_v14, %v14743_v5  ;;  %17282 = vmatprep.subr.bf16.mxu0 %v21867_v23  ;;  %v21903_v14 = vld [vmem:[#allocation9 + $0x23d4] ss:$24 sps:$4 sm:$0xff]   ;;  %v21907_v61 = vld [vmem:[#allocation9 + $0x1840] ss:$24 sps:$4 sm:$0xff]  }
 0xa33   :  { %v14760_v34 = vadd.f32 %v20127_v21, %v14744_v17  ;;  %v14768_v20 = vmul.f32 0.7978846, %v14752_v39  ;;  %v21901_v21 = vld [vmem:[#allocation9 + $0x23d0] ss:$24 sps:$4 sm:$0xff]   ;;  %v21915_v23 = vld [vmem:[#allocation9 + $0x18a4] ss:$24 sps:$4 sm:$0xff]  }
 0xa34   :  { %22184 = vtanh.f32 %v14767_v54  ;;  %v14775_v7 = vmul.f32 0.7978846, %v14759_v18  ;;  %v21913_v27 = vld [vmem:[#allocation9 + $0x18a0] ss:$24 sps:$4 sm:$0xff]   ;;  %v21916_v8 = vld [vmem:[#allocation9 + $0x18d0] ss:$24 sps:$4 sm:$0xff]  }
 0xa35   :  { %17283 = vmatpush1.bf16.msra.mxu0 %v21865_v25  ;;  %v14776_v49 = vmul.f32 0.7978846, %v14760_v34  ;;  %22186 = vtanh.f32 %v14768_v20  ;;  %v21921_v5 = vld [vmem:[#allocation9 + $0x1904] ss:$24 sps:$4 sm:$0xff]   ;;  %v21919_v17 = vld [vmem:[#allocation9 + $0x1900] ss:$24 sps:$4 sm:$0xff]  }
 0xa36   :  { %22188 = vtanh.f32 %v14775_v7  ;;  %17284 = vmatprep.subr.bf16.mxu0 %v21873_v42  ;;  %v21924_v25 = vld [vmem:[#allocation9 + $0x1934] ss:$24 sps:$4 sm:$0xff]   ;;  %v21927_v39 = vld [vmem:[#allocation9 + $0x1964] ss:$24 sps:$4 sm:$0xff]   ;;  %v21925_v54 = vld [vmem:[#allocation9 + $0x1960] ss:$24 sps:$4 sm:$0xff]  }
 0xa37   :  { %22190 = vtanh.f32 %v14776_v49  ;;  %v21930_v18 = vld [vmem:[#allocation9 + $0x1994] ss:$24 sps:$4 sm:$0xff]   ;;  %v21928_v42 = vld [vmem:[#allocation9 + $0x1990] ss:$24 sps:$4 sm:$0xff]   ;;  %v21933_v34 = vld [vmem:[#allocation9 + $0x19c4] ss:$24 sps:$4 sm:$0xff]  }
 0xa38   :  { %v21931_v20 = vld [vmem:[#allocation9 + $0x19c0] ss:$24 sps:$4 sm:$0xff]   ;;  %v21936_v7 = vld [vmem:[#allocation9 + $0x19f4] ss:$24 sps:$4 sm:$0xff]   ;;  %v21939_v49 = vld [vmem:[#allocation9 + $0x1a24] ss:$24 sps:$4 sm:$0xff]  }
 0xa39   :  { %17285 = vmatpush1.bf16.msra.mxu0 %v21871_v47  ;;  %v21934_v47 = vld [vmem:[#allocation9 + $0x19f0] ss:$24 sps:$4 sm:$0xff]  }
 0xa3a   :  { %17286 = vmatprep.subr.bf16.mxu0 %v21879_v9  ;;  %v21937_v9 = vld [vmem:[#allocation9 + $0x1a20] ss:$24 sps:$4 sm:$0xff]  }
 0xa3d   :  { %17287 = vmatpush1.bf16.msra.mxu0 %v21877_v29  ;;  %v21942_v29 = vld [vmem:[#allocation9 + $0x1a54] ss:$24 sps:$4 sm:$0xff]  }
 0xa3e   :  { %v22185_v13 = vpop.eup %22184  ;;  %17288 = vmatprep.subr.bf16.mxu0 %v21885_v32  ;;  %v21940_v32 = vld [vmem:[#allocation9 + $0x1a50] ss:$24 sps:$4 sm:$0xff]  }
 0xa3f   :  { %v22187_v50 = vpop.eup %22186  ;;  %v14799_v26 = vadd.f32 1.0, %v22185_v13  ;;  %v21943_v13 = vld [vmem:[#allocation9 + $0x1a80] ss:$24 sps:$4 sm:$0xff]  }
 0xa40   :  { %v22189_v44 = vpop.eup %22188  ;;  %v14800_v36 = vadd.f32 1.0, %v22187_v50  ;;  %v21946_v50 = vld [vmem:[#allocation9 + $0x1ab0] ss:$24 sps:$4 sm:$0xff]  }
 0xa41   :  { %v22191_v11 = vpop.eup %22190  ;;  %17289 = vmatpush1.bf16.msra.mxu0 %v21883_v55  ;;  %v14807_v22 = vadd.f32 1.0, %v22189_v44  ;;  %v14815_v45 = vmul.f32 %v14799_v26, %v14687_v16  ;;  %v21945_v55 = vld [vmem:[#allocation9 + $0x1a84] ss:$24 sps:$4 sm:$0xff]   ;;  %v21949_v44 = vld [vmem:[#allocation9 + $0x1ae0] ss:$24 sps:$4 sm:$0xff]  }
 0xa42   :  { %17290 = vmatprep.subr.bf16.mxu0 %v21891_v31  ;;  %v14808_v1 = vadd.f32 1.0, %v22191_v11  ;;  %v14816_v56 = vmul.f32 %v14800_v36, %v14688_v2  ;;  %v21948_v31 = vld [vmem:[#allocation9 + $0x1ab4] ss:$24 sps:$4 sm:$0xff]   ;;  %v21951_v26 = vld [vmem:[#allocation9 + $0x1ae4] ss:$24 sps:$4 sm:$0xff]  }
 0xa43   :  { %v14823_v4 = vmul.f32 %v14807_v22, %v14695_v63  ;;  %v21954_v36 = vld [vmem:[#allocation9 + $0x1b14] ss:$24 sps:$4 sm:$0xff]   ;;  %v21952_v11 = vld [vmem:[#allocation9 + $0x1b10] ss:$24 sps:$4 sm:$0xff]   ;;  %v21955_v16 = vld [vmem:[#allocation9 + $0x1b40] ss:$24 sps:$4 sm:$0xff]  }
 0xa44   :  { %v14824_v12 = vmul.f32 %v14808_v1, %v14696_v24  ;;  %v21960_v63 = vld [vmem:[#allocation9 + $0x1b74] ss:$24 sps:$4 sm:$0xff]   ;;  %v21958_v22 = vld [vmem:[#allocation9 + $0x1b70] ss:$24 sps:$4 sm:$0xff]   ;;  %v21961_v2 = vld [vmem:[#allocation9 + $0x1ba0] ss:$24 sps:$4 sm:$0xff]  }
 0xa45   :  { %17291 = vmatpush1.bf16.msra.mxu0 %v21889_v35  ;;  %v22899_v46 = vpack.c.bf16 %v14823_v4, %v14815_v45  ;;  %v21957_v35 = vld [vmem:[#allocation9 + $0x1b44] ss:$24 sps:$4 sm:$0xff]   ;;  %v21966_v24 = vld [vmem:[#allocation9 + $0x1bd4] ss:$24 sps:$4 sm:$0xff]   ;;  %v21964_v1 = vld [vmem:[#allocation9 + $0x1bd0] ss:$24 sps:$4 sm:$0xff]  }
 0xa46   :  { %17292 = vmatprep.subr.bf16.mxu0 %v21897_v30  ;;  %v22901_v43 = vpack.c.bf16 %v14824_v12, %v14816_v56  ;;  %v21963_v30 = vld [vmem:[#allocation9 + $0x1ba4] ss:$24 sps:$4 sm:$0xff]   ;;  %v21972_v4 = vld [vmem:[#allocation9 + $0x1c34] ss:$24 sps:$4 sm:$0xff]   ;;  %v21973_v12 = vld [vmem:[#allocation9 + $0x1c60] ss:$24 sps:$4 sm:$0xff]  }
 0xa47   :  { %v21969_v45 = vld [vmem:[#allocation9 + $0x1c04] ss:$24 sps:$4 sm:$0xff]  }
 0xa48   :  { %17298 = vmatprep.mubr.bf16.mxu0 %v22901_v43  ;;  %17470 = vmatprep.mubr.bf16.mxu1 %v22901_v43  ;;  %v21975_v56 = vld [vmem:[#allocation9 + $0x1c64] ss:$24 sps:$4 sm:$0xff]  }
 0xa49   :  { %17293 = vmatpush1.bf16.msra.mxu0 %v21895_v40  ;;  %17471 = vmatmul.mubr.bf16.vlgmr.msra.gmra.mrb[12].mxu1 %v22899_v46  ;;  %v21978_v40 = vld [vmem:[#allocation9 + $0x1c94] ss:$24 sps:$4 sm:$0xff]  }
 0xa4a   :  { %17294 = vmatprep.subr.bf16.mxu0 %v21900_v41  ;;  %v21976_v41 = vld [vmem:[#allocation9 + $0x1c90] ss:$24 sps:$4 sm:$0xff]  }
 0xa4d   :  { %17295 = vmatpush1.bf16.msra.mxu0 %v21898_v52  ;;  %v21981_v52 = vld [vmem:[#allocation9 + $0x1cc4] ss:$24 sps:$4 sm:$0xff]  }
 0xa4e   :  { %17296 = vmatprep.subr.bf16.mxu0 %v21903_v14  ;;  %v21979_v14 = vld [vmem:[#allocation9 + $0x1cc0] ss:$24 sps:$4 sm:$0xff]  }
 0xa51   :  { %17297 = vmatpush1.bf16.msra.mxu0 %v21901_v21  ;;  %v21984_v21 = vld [vmem:[#allocation9 + $0x1cf4] ss:$24 sps:$4 sm:$0xff]  }
 0xa52   :  { %17481 = vmatprep.subr.bf16.mxu0 %v21906_v51  ;;  %v21982_v51 = vld [vmem:[#allocation9 + $0x1cf0] ss:$24 sps:$4 sm:$0xff]  }
 0xa54   :  { %17299 = vmatmul.mubr.bf16.vlgmr.msra.gmra.mrb[4].mxu0 %v22899_v46 }
 0xa55   :  { %17482 = vmatpush1.bf16.msra.mxu0 %v21904_v37  ;;  %17513 = vmatprep.mubr.bf16.mxu0 %v22835_v48  ;;  %v21922_v48 = vld [vmem:[#allocation9 + $0x1930] ss:$24 sps:$4 sm:$0xff]   ;;  %v21987_v37 = vld [vmem:[#allocation9 + $0x1d24] ss:$24 sps:$4 sm:$0xff]  }
 0xa56   :  { %17483 = vmatprep.subr.bf16.mxu0 %v21909_v19  ;;  %v21985_v19 = vld [vmem:[#allocation9 + $0x1d20] ss:$24 sps:$4 sm:$0xff]  }
 0xa59   :  { %17484 = vmatpush1.bf16.msra.mxu0 %v21907_v61  ;;  %v21990_v61 = vld [vmem:[#allocation9 + $0x1d54] ss:$24 sps:$4 sm:$0xff]  }
 0xa5a   :  { %17485 = vmatprep.subr.bf16.mxu0 %v21912_v58  ;;  %v21988_v58 = vld [vmem:[#allocation9 + $0x1d50] ss:$24 sps:$4 sm:$0xff]  }
 0xa5d   :  { %17486 = vmatpush1.bf16.msra.mxu0 %v21910_v60  ;;  %v21993_v60 = vld [vmem:[#allocation9 + $0x1d84] ss:$24 sps:$4 sm:$0xff]  }
 0xa5e   :  { %17487 = vmatprep.subr.bf16.mxu0 %v21915_v23  ;;  %v21991_v23 = vld [vmem:[#allocation9 + $0x1d80] ss:$24 sps:$4 sm:$0xff]  }
 0xa61   :  { %17488 = vmatpush1.bf16.msra.mxu0 %v21913_v27  ;;  %v21996_v27 = vld [vmem:[#allocation9 + $0x1db4] ss:$24 sps:$4 sm:$0xff]  }
 0xa62   :  { %17489 = vmatprep.subr.bf16.mxu0 %v21918_v15  ;;  %v21994_v15 = vld [vmem:[#allocation9 + $0x1db0] ss:$24 sps:$4 sm:$0xff]  }
 0xa65   :  { %17490 = vmatpush1.bf16.msra.mxu0 %v21916_v8  ;;  %v21999_v8 = vld [vmem:[#allocation9 + $0x1de4] ss:$24 sps:$4 sm:$0xff]  }
 0xa66   :  { %17491 = vmatprep.subr.bf16.mxu0 %v21921_v5  ;;  %v21997_v5 = vld [vmem:[#allocation9 + $0x1de0] ss:$24 sps:$4 sm:$0xff]  }
 0xa69   :  { %17492 = vmatpush1.bf16.msra.mxu0 %v21919_v17  ;;  %v22002_v17 = vld [vmem:[#allocation9 + $0x1e14] ss:$24 sps:$4 sm:$0xff]  }
 0xa6a   :  { %17493 = vmatprep.subr.bf16.mxu0 %v21924_v25  ;;  %v22000_v25 = vld [vmem:[#allocation9 + $0x1e10] ss:$24 sps:$4 sm:$0xff]  }
 0xa6d   :  { %17494 = vmatpush1.bf16.msra.mxu0 %v21922_v48  ;;  %v22005_v48 = vld [vmem:[#allocation9 + $0x1e44] ss:$24 sps:$4 sm:$0xff]  }
 0xa6e   :  { %17495 = vmatprep.subr.bf16.mxu0 %v21927_v39  ;;  %v22003_v39 = vld [vmem:[#allocation9 + $0x1e40] ss:$24 sps:$4 sm:$0xff]  }
 0xa71   :  { %17496 = vmatpush1.bf16.msra.mxu0 %v21925_v54  ;;  %v22008_v54 = vld [vmem:[#allocation9 + $0x1e74] ss:$24 sps:$4 sm:$0xff]  }
 0xa72   :  { %17497 = vmatprep.subr.bf16.mxu0 %v21930_v18  ;;  %v22006_v18 = vld [vmem:[#allocation9 + $0x1e70] ss:$24 sps:$4 sm:$0xff]  }
 0xa75   :  { %17498 = vmatpush1.bf16.msra.mxu0 %v21928_v42  ;;  %v22011_v42 = vld [vmem:[#allocation9 + $0x1ea4] ss:$24 sps:$4 sm:$0xff]  }
 0xa76   :  { %17499 = vmatprep.subr.bf16.mxu0 %v21933_v34  ;;  %v22009_v34 = vld [vmem:[#allocation9 + $0x1ea0] ss:$24 sps:$4 sm:$0xff]  }
 0xa79   :  { %17500 = vmatpush1.bf16.msra.mxu0 %v21931_v20  ;;  %v22014_v20 = vld [vmem:[#allocation9 + $0x1ed4] ss:$24 sps:$4 sm:$0xff]  }
 0xa7a   :  { %17501 = vmatprep.subr.bf16.mxu0 %v21936_v7  ;;  %v22012_v7 = vld [vmem:[#allocation9 + $0x1ed0] ss:$24 sps:$4 sm:$0xff]  }
 0xa7d   :  { %17502 = vmatpush1.bf16.msra.mxu0 %v21934_v47  ;;  %v22017_v47 = vld [vmem:[#allocation9 + $0x1f04] ss:$24 sps:$4 sm:$0xff]  }
 0xa7e   :  { %17503 = vmatprep.subr.bf16.mxu0 %v21939_v49  ;;  %v22020_v49 = vld [vmem:[#allocation9 + $0x1f34] ss:$24 sps:$4 sm:$0xff]  }
 0xa81   :  { %17504 = vmatpush1.bf16.msra.mxu0 %v21937_v9  ;;  %v22023_v9 = vld [vmem:[#allocation9 + $0x1f64] ss:$24 sps:$4 sm:$0xff]  }
 0xa82   :  { %17505 = vmatprep.subr.bf16.mxu0 %v21942_v29  ;;  %v22021_v29 = vld [vmem:[#allocation9 + $0x1f60] ss:$24 sps:$4 sm:$0xff]  }
 0xa85   :  { %17506 = vmatpush1.bf16.msra.mxu0 %v21940_v32  ;;  %v22026_v32 = vld [vmem:[#allocation9 + $0x1f94] ss:$24 sps:$4 sm:$0xff]  }
 0xa86   :  { %17507 = vmatprep.subr.bf16.mxu0 %v21945_v55  ;;  %v22024_v55 = vld [vmem:[#allocation9 + $0x1f90] ss:$24 sps:$4 sm:$0xff]  }
 0xa89   :  { %17508 = vmatpush1.bf16.msra.mxu0 %v21943_v13  ;;  %v22029_v13 = vld [vmem:[#allocation9 + $0x1fc4] ss:$24 sps:$4 sm:$0xff]  }
 0xa8a   :  { %17509 = vmatprep.subr.bf16.mxu0 %v21948_v31  ;;  %v22027_v31 = vld [vmem:[#allocation9 + $0x1fc0] ss:$24 sps:$4 sm:$0xff]  }
 0xa8d   :  { %17510 = vmatpush1.bf16.msra.mxu0 %v21946_v50  ;;  %v22032_v50 = vld [vmem:[#allocation9 + $0x1ff4] ss:$24 sps:$4 sm:$0xff]  }
 0xa8e   :  { %17511 = vmatprep.subr.bf16.mxu0 %v21951_v26  ;;  %v22030_v26 = vld [vmem:[#allocation9 + $0x1ff0] ss:$24 sps:$4 sm:$0xff]  }
 0xa91   :  { %17512 = vmatpush1.bf16.msra.mxu0 %v21949_v44  ;;  %v22035_v44 = vld [vmem:[#allocation9 + $0x2024] ss:$24 sps:$4 sm:$0xff]  }
 0xa92   :  { %17524 = vmatprep.subr.bf16.mxu0 %v21954_v36  ;;  %v22033_v36 = vld [vmem:[#allocation9 + $0x2020] ss:$24 sps:$4 sm:$0xff]  }
 0xa94   :  { %17514 = vmatmul.mubr.bf16.vlgmr.msra.gmra.mrb[8].mxu0 %v22833_v6  ;;  %v21967_v6 = vld [vmem:[#allocation9 + $0x1c00] ss:$24 sps:$4 sm:$0xff]  }
 0xa95   :  { %17525 = vmatpush1.bf16.msra.mxu0 %v21952_v11  ;;  %17556 = vmatprep.mubr.bf16.mxu0 %v22877_v28  ;;  %v21970_v28 = vld [vmem:[#allocation9 + $0x1c30] ss:$24 sps:$4 sm:$0xff]   ;;  %v22038_v11 = vld [vmem:[#allocation9 + $0x2054] ss:$24 sps:$4 sm:$0xff]  }
 0xa96   :  { %17526 = vmatprep.subr.bf16.mxu0 %v21957_v35  ;;  %v22036_v35 = vld [vmem:[#allocation9 + $0x2050] ss:$24 sps:$4 sm:$0xff]  }
 0xa99   :  { %17527 = vmatpush1.bf16.msra.mxu0 %v21955_v16  ;;  %v22041_v16 = vld [vmem:[#allocation9 + $0x2084] ss:$24 sps:$4 sm:$0xff]  }
 0xa9a   :  { %17528 = vmatprep.subr.bf16.mxu0 %v21960_v63  ;;  %v22039_v63 = vld [vmem:[#allocation9 + $0x2080] ss:$24 sps:$4 sm:$0xff]  }
 0xa9d   :  { %17529 = vmatpush1.bf16.msra.mxu0 %v21958_v22  ;;  %v22044_v22 = vld [vmem:[#allocation9 + $0x20b4] ss:$24 sps:$4 sm:$0xff]  }
 0xa9e   :  { %17530 = vmatprep.subr.bf16.mxu0 %v21963_v30  ;;  %v22042_v30 = vld [vmem:[#allocation9 + $0x20b0] ss:$24 sps:$4 sm:$0xff]  }
 0xaa1   :  { %17531 = vmatpush1.bf16.msra.mxu0 %v21961_v2  ;;  %v22047_v2 = vld [vmem:[#allocation9 + $0x20e4] ss:$24 sps:$4 sm:$0xff]  }
 0xaa2   :  { %17532 = vmatprep.subr.bf16.mxu0 %v21966_v24  ;;  %v22045_v24 = vld [vmem:[#allocation9 + $0x20e0] ss:$24 sps:$4 sm:$0xff]  }
 0xaa5   :  { %17533 = vmatpush1.bf16.msra.mxu0 %v21964_v1  ;;  %v22050_v1 = vld [vmem:[#allocation9 + $0x2114] ss:$24 sps:$4 sm:$0xff]  }
 0xaa6   :  { %17534 = vmatprep.subr.bf16.mxu0 %v21969_v45  ;;  %v22048_v45 = vld [vmem:[#allocation9 + $0x2110] ss:$24 sps:$4 sm:$0xff]  }
 0xaa9   :  { %17535 = vmatpush1.bf16.msra.mxu0 %v21967_v6  ;;  %v22053_v6 = vld [vmem:[#allocation9 + $0x2144] ss:$24 sps:$4 sm:$0xff]  }
 0xaaa   :  { %17536 = vmatprep.subr.bf16.mxu0 %v21972_v4  ;;  %v22051_v4 = vld [vmem:[#allocation9 + $0x2140] ss:$24 sps:$4 sm:$0xff]  }
 0xaad   :  { %17537 = vmatpush1.bf16.msra.mxu0 %v21970_v28  ;;  %v22914_v28 = vld [vmem:[#allocation11] sm:$0x3f] }
 0xaae   :  { %17538 = vmatprep.subr.bf16.mxu0 %v21975_v56  ;;  %v22056_v56 = vld [vmem:[#allocation9 + $0x2174] ss:$24 sps:$4 sm:$0xff]  }
 0xab1   :  { %17539 = vmatpush1.bf16.msra.mxu0 %v21973_v12  ;;  %v17714_v12 = vrot.slane %v22914_v28, %v22568_v62 }
 0xab2   :  { %17540 = vmatprep.subr.bf16.mxu0 %v21978_v40  ;;  %v22054_v40 = vld [vmem:[#allocation9 + $0x2170] ss:$24 sps:$4 sm:$0xff]  }
 0xab5   :  { %17541 = vmatpush1.bf16.msra.mxu0 %v21976_v41  ;;  %v17718_v41 = vrot.slane %v22914_v28, %v22571_v33  ;;  %v22065_v33 = vld [vmem:[#allocation9 + $0x2204] ss:$24 sps:$4 sm:$0xff]  }
 0xab6   :  { %17542 = vmatprep.subr.bf16.mxu0 %v21981_v52  ;;  %v22059_v52 = vld [vmem:[#allocation9 + $0x21a4] ss:$24 sps:$4 sm:$0xff]  }
 0xab9   :  { %17543 = vmatpush1.bf16.msra.mxu0 %v21979_v14 }
 0xaba   :  { %17544 = vmatprep.subr.bf16.mxu0 %v21984_v21 }
 0xabd   :  { %17545 = vmatpush1.bf16.msra.mxu0 %v21982_v51 }
 0xabe   :  { %17546 = vmatprep.subr.bf16.mxu0 %v21987_v37 }
 0xac1   :  { %17547 = vmatpush1.bf16.msra.mxu0 %v21985_v19  ;;  %v22062_v19 = vld [vmem:[#allocation9 + $0x21d4] ss:$24 sps:$4 sm:$0xff]  }
 0xac2   :  { %17548 = vmatprep.subr.bf16.mxu0 %v21990_v61 }
 0xac5   :  { %17549 = vmatpush1.bf16.msra.mxu0 %v21988_v58 }
 0xac6   :  { %17550 = vmatprep.subr.bf16.mxu0 %v21993_v60  ;;  %v22060_v60 = vld [vmem:[#allocation9 + $0x21d0] ss:$24 sps:$4 sm:$0xff]  }
 0xac9   :  { %17551 = vmatpush1.bf16.msra.mxu0 %v21991_v23  ;;  %v17706_v23 = vrot.slane %v22914_v28, %v22476_v57 }
 0xaca   :  { %17552 = vmatprep.subr.bf16.mxu0 %v21996_v27  ;;  %v17710_v27 = vrot.slane %v22914_v28, %v22479_v59  ;;  %v22069_v59 = vld [vmem:[#allocation9 + $0x2260] ss:$24 sps:$4 sm:$0xff]  }
 0xacd   :  { %17553 = vmatpush1.bf16.msra.mxu0 %v21994_v15  ;;  %v22063_v15 = vld [vmem:[#allocation9 + $0x2200] ss:$24 sps:$4 sm:$0xff]  }
 0xace   :  { %17554 = vmatprep.subr.bf16.mxu0 %v21999_v8  ;;  %v22068_v8 = vld [vmem:[#allocation9 + $0x2234] ss:$24 sps:$4 sm:$0xff]  }
 0xad1   :  { %17555 = vmatpush1.bf16.msra.mxu0 %v21997_v5 }
 0xad2   :  { %17567 = vmatprep.subr.bf16.mxu0 %v22002_v17 }
 0xad4   :  { %17557 = vmatmul.mubr.bf16.vlgmr.msra.gmra.mrb[8].mxu0 %v22875_v38  ;;  %v22015_v38 = vld [vmem:[#allocation9 + $0x1f00] ss:$24 sps:$4 sm:$0xff]  }
 0xad5   :  { %17568 = vmatpush1.bf16.msra.mxu0 %v22000_v25  ;;  %17599 = vmatprep.mubr.bf16.mxu0 %v22858_v53  ;;  %v22018_v53 = vld [vmem:[#allocation9 + $0x1f30] ss:$24 sps:$4 sm:$0xff]  }
 0xad6   :  { %17569 = vmatprep.subr.bf16.mxu0 %v22005_v48 }
 0xad9   :  { %17570 = vmatpush1.bf16.msra.mxu0 %v22003_v39 }
 0xada   :  { %17571 = vmatprep.subr.bf16.mxu0 %v22008_v54  ;;  %v22066_v54 = vld [vmem:[#allocation9 + $0x2230] ss:$24 sps:$4 sm:$0xff]  }
 0xadd   :  { %17572 = vmatpush1.bf16.msra.mxu0 %v22006_v18 }
 0xade   :  { %17573 = vmatprep.subr.bf16.mxu0 %v22011_v42 }
 0xae1   :  { %17574 = vmatpush1.bf16.msra.mxu0 %v22009_v34  ;;  %v22071_v34 = vld [vmem:[#allocation9 + $0x2264] ss:$24 sps:$4 sm:$0xff]  }
 0xae2   :  { %17575 = vmatprep.subr.bf16.mxu0 %v22014_v20  ;;  %v22074_v20 = vld [vmem:[#allocation9 + $0x2294] ss:$24 sps:$4 sm:$0xff]  }
 0xae5   :  { %17576 = vmatpush1.bf16.msra.mxu0 %v22012_v7  ;;  %v22072_v7 = vld [vmem:[#allocation9 + $0x2290] ss:$24 sps:$4 sm:$0xff]  }
 0xae6   :  { %17577 = vmatprep.subr.bf16.mxu0 %v22017_v47  ;;  %v22077_v47 = vld [vmem:[#allocation9 + $0x22c4] ss:$24 sps:$4 sm:$0xff]  }
 0xae9   :  { %17578 = vmatpush1.bf16.msra.mxu0 %v22015_v38  ;;  %v22075_v38 = vld [vmem:[#allocation9 + $0x22c0] ss:$24 sps:$4 sm:$0xff]  }
 0xaea   :  { %17579 = vmatprep.subr.bf16.mxu0 %v22020_v49  ;;  %v22080_v49 = vld [vmem:[#allocation9 + $0x22f4] ss:$24 sps:$4 sm:$0xff]  }
 0xaed   :  { %17580 = vmatpush1.bf16.msra.mxu0 %v22018_v53  ;;  %v22078_v53 = vld [vmem:[#allocation9 + $0x22f0] ss:$24 sps:$4 sm:$0xff]  }
 0xaee   :  { %17581 = vmatprep.subr.bf16.mxu0 %v22023_v9  ;;  %v22083_v9 = vld [vmem:[#allocation9 + $0x2324] ss:$24 sps:$4 sm:$0xff]  }
 0xaf1   :  { %17582 = vmatpush1.bf16.msra.mxu0 %v22021_v29  ;;  %v22081_v29 = vld [vmem:[#allocation9 + $0x2320] ss:$24 sps:$4 sm:$0xff]  }
 0xaf2   :  { %17583 = vmatprep.subr.bf16.mxu0 %v22026_v32  ;;  %v22086_v32 = vld [vmem:[#allocation9 + $0x2354] ss:$24 sps:$4 sm:$0xff]  }
 0xaf5   :  { %17584 = vmatpush1.bf16.msra.mxu0 %v22024_v55  ;;  %v22084_v55 = vld [vmem:[#allocation9 + $0x2350] ss:$24 sps:$4 sm:$0xff]  }
 0xaf6   :  { %17585 = vmatprep.subr.bf16.mxu0 %v22029_v13  ;;  %v22089_v13 = vld [vmem:[#allocation9 + $0x2384] ss:$24 sps:$4 sm:$0xff]  }
 0xaf9   :  { %17586 = vmatpush1.bf16.msra.mxu0 %v22027_v31  ;;  %v22087_v31 = vld [vmem:[#allocation9 + $0x2380] ss:$24 sps:$4 sm:$0xff]  }
 0xafa   :  { %17587 = vmatprep.subr.bf16.mxu0 %v22032_v50  ;;  %v22092_v50 = vld [vmem:[#allocation9 + $0x23b4] ss:$24 sps:$4 sm:$0xff]  }
 0xafd   :  { %17588 = vmatpush1.bf16.msra.mxu0 %v22030_v26  ;;  %v22090_v26 = vld [vmem:[#allocation9 + $0x23b0] ss:$24 sps:$4 sm:$0xff]  }
 0xafe   :  { %17589 = vmatprep.subr.bf16.mxu0 %v22035_v44  ;;  %v22095_v44 = vld [vmem:[#allocation9 + $0x23e4] ss:$24 sps:$4 sm:$0xff]  }
 0xb01   :  { %17590 = vmatpush1.bf16.msra.mxu0 %v22033_v36  ;;  %v22093_v36 = vld [vmem:[#allocation9 + $0x23e0] ss:$24 sps:$4 sm:$0xff]  }
 0xb02   :  { %17591 = vmatprep.subr.bf16.mxu0 %v22038_v11  ;;  %v17722_v11 = vrot.slane %v22914_v28, %v22522_v3 }
 0xb05   :  { %17592 = vmatpush1.bf16.msra.mxu0 %v22036_v35  ;;  %v17726_v35 = vrot.slane %v22914_v28, %v22525_v10 }
 0xb06   :  { %17593 = vmatprep.subr.bf16.mxu0 %v22041_v16 }
 0xb09   :  { %17594 = vmatpush1.bf16.msra.mxu0 %v22039_v63 }
 0xb0a   :  { %17595 = vmatprep.subr.bf16.mxu0 %v22044_v22 }
 0xb0d   :  { %17596 = vmatpush1.bf16.msra.mxu0 %v22042_v30 }
 0xb0e   :  { %17597 = vmatprep.subr.bf16.mxu0 %v22047_v2 }
 0xb11   :  { %17598 = vmatpush1.bf16.msra.mxu0 %v22045_v24 }
 0xb12   :  { %17610 = vmatprep.subr.bf16.mxu0 %v22050_v1 }
 0xb14   :  { %17600 = vmatmul.mubr.bf16.vlgmr.msra.gmra.mrb[8].mxu0 %v22856_v0 }
 0xb15   :  { %17611 = vmatpush1.bf16.msra.mxu0 %v22048_v45  ;;  %17642 = vmatprep.mubr.bf16.mxu0 %v22901_v43  ;;  %v22057_v43 = vld [vmem:[#allocation9 + $0x21a0] ss:$24 sps:$4 sm:$0xff]  }
 0xb16   :  { %17612 = vmatprep.subr.bf16.mxu0 %v22053_v6 }
 0xb19   :  { %17613 = vmatpush1.bf16.msra.mxu0 %v22051_v4 }
 0xb1a   :  { %17614 = vmatprep.subr.bf16.mxu0 %v22056_v56 }
 0xb1c   :  { %v17472_v14 = vpop.f32.mrb[12].mxu1 }
 0xb1d   :  { %v17735_v0 = vadd.f32 %v17714_v12, %v17472_v14  ;;  %v17474_v21 = vpop.f32.mrb[13].mxu1  ;;  %17615 = vmatpush1.bf16.msra.mxu0 %v22054_v40 }
 0xb1e   :  { %v17736_v51 = vadd.f32 %v17718_v41, %v17474_v21  ;;  %v17476_v37 = vpop.f32.mrb[14].mxu1  ;;  %17616 = vmatprep.subr.bf16.mxu0 %v22059_v52 }
 0xb1f   :  { %17747 = vst [vmem:[#allocation12 + $0x10] sm:$0xff] %v17735_v0  ;;  %v17741_v61 = vadd.f32 %v17714_v12, %v17476_v37  ;;  %v17478_v58 = vpop.f32.mrb[15].mxu1 }
 0xb20   :  { %17748 = vst [vmem:[#allocation12 + $0x18] sm:$0xff] %v17736_v51  ;;  %v17742_v62 = vadd.f32 %v17718_v41, %v17478_v58 }
 0xb21   :  { %17753 = vst [vmem:[#allocation12 + $0x40] sm:$0xff] %v17741_v61  ;;  %17617 = vmatpush1.bf16.msra.mxu0 %v22057_v43 }
 0xb22   :  { %17754 = vst [vmem:[#allocation12 + $0x48] sm:$0xff] %v17742_v62  ;;  %17618 = vmatprep.subr.bf16.mxu0 %v22062_v19 }
 0xb25   :  { %17619 = vmatpush1.bf16.msra.mxu0 %v22060_v60 }
 0xb26   :  { %17620 = vmatprep.subr.bf16.mxu0 %v22065_v33 }
 0xb27   :  { %v17300_v5 = vpop.f32.mrb[4].mxu0 }
 0xb28   :  { %v17733_v17 = vadd.f32 %v17706_v23, %v17300_v5  ;;  %v17302_v25 = vpop.f32.mrb[5].mxu0 }
 0xb29   :  { %v17734_v48 = vadd.f32 %v17710_v27, %v17302_v25  ;;  %v17304_v39 = vpop.f32.mrb[6].mxu0  ;;  %17621 = vmatpush1.bf16.msra.mxu0 %v22063_v15 }
 0xb2a   :  { %17745 = vst [vmem:[#allocation12] sm:$0xff] %v17733_v17  ;;  %v17739_v18 = vadd.f32 %v17706_v23, %v17304_v39  ;;  %v17306_v42 = vpop.f32.mrb[7].mxu0  ;;  %17622 = vmatprep.subr.bf16.mxu0 %v22068_v8 }
 0xb2b   :  { %17746 = vst [vmem:[#allocation12 + $0x8] sm:$0xff] %v17734_v48  ;;  %v17740_v57 = vadd.f32 %v17710_v27, %v17306_v42 }
 0xb2c   :  { %17751 = vst [vmem:[#allocation12 + $0x30] sm:$0xff] %v17739_v18 }
 0xb2d   :  { %17752 = vst [vmem:[#allocation12 + $0x38] sm:$0xff] %v17740_v57  ;;  %17623 = vmatpush1.bf16.msra.mxu0 %v22066_v54 }
 0xb2e   :  { %17624 = vmatprep.subr.bf16.mxu0 %v22071_v34 }
 0xb31   :  { %17625 = vmatpush1.bf16.msra.mxu0 %v22069_v59 }
 0xb32   :  { %17626 = vmatprep.subr.bf16.mxu0 %v22074_v20 }
 0xb35   :  { %17627 = vmatpush1.bf16.msra.mxu0 %v22072_v7 }
 0xb36   :  { %17628 = vmatprep.subr.bf16.mxu0 %v22077_v47 }
 0xb39   :  { %17629 = vmatpush1.bf16.msra.mxu0 %v22075_v38 }
 0xb3a   :  { %17630 = vmatprep.subr.bf16.mxu0 %v22080_v49 }
 0xb3d   :  { %17631 = vmatpush1.bf16.msra.mxu0 %v22078_v53 }
 0xb3e   :  { %17632 = vmatprep.subr.bf16.mxu0 %v22083_v9 }
 0xb41   :  { %17633 = vmatpush1.bf16.msra.mxu0 %v22081_v29 }
 0xb42   :  { %17634 = vmatprep.subr.bf16.mxu0 %v22086_v32 }
 0xb45   :  { %17635 = vmatpush1.bf16.msra.mxu0 %v22084_v55 }
 0xb46   :  { %17636 = vmatprep.subr.bf16.mxu0 %v22089_v13 }
 0xb49   :  { %17637 = vmatpush1.bf16.msra.mxu0 %v22087_v31 }
 0xb4a   :  { %17638 = vmatprep.subr.bf16.mxu0 %v22092_v50 }
 0xb4d   :  { %17639 = vmatpush1.bf16.msra.mxu0 %v22090_v26 }
 0xb4e   :  { %17640 = vmatprep.subr.bf16.mxu0 %v22095_v44 }
 0xb51   :  { %17641 = vmatpush1.bf16.msra.mxu0 %v22093_v36 }
 0xb54   :  { %17643 = vmatmul.mubr.bf16.vlgmr.msra.gmra.mrb[8].mxu0 %v22899_v46 }
 0xc27   :  { %v17644_v16 = vpop.f32.mrb[8].mxu0 }
 0xc28   :  { %v17737_v63 = vadd.f32 %v17722_v11, %v17644_v16  ;;  %v17646_v22 = vpop.f32.mrb[9].mxu0 }
 0xc29   :  { %v17738_v30 = vadd.f32 %v17726_v35, %v17646_v22  ;;  %v17648_v2 = vpop.f32.mrb[10].mxu0 }
 0xc2a   :  { %17749 = vst [vmem:[#allocation12 + $0x20] sm:$0xff] %v17737_v63  ;;  %v17743_v24 = vadd.f32 %v17722_v11, %v17648_v2  ;;  %v17650_v1 = vpop.f32.mrb[11].mxu0 }
 0xc2b   :  { %17750 = vst [vmem:[#allocation12 + $0x28] sm:$0xff] %v17738_v30  ;;  %v17744_v45 = vadd.f32 %v17726_v35, %v17650_v1 }
 0xc2c   :  { %17755 = vst [vmem:[#allocation12 + $0x50] sm:$0xff] %v17743_v24 }
 0xc2d   :  { %17756 = vst [vmem:[#allocation12 + $0x58] sm:$0xff] %v17744_v45 }
 0xc2e   :  { %22316 = shalt.err (!%p22313_p2)
}
 0xc2f   :  { %s22317_s9 = scalar_lea.hbm %s22949_s5, 1536 }
 0xc30   :  { %p22318_p3 = scmp.ne.s32.totalorder %s22949_s5, %s22317_s9  ;;  %p22321_p4 = scmp.lt.u32.totalorder %s22317_s9, %s22949_s5 }
 0xc32   :  { %p22323_p5 = pnand %p22321_p4, %p22318_p3 }
 0xc34   :  { %22326 = shalt.err (!%p22323_p5)
}
 0xc35   :  { %17768 = dma.vmem_to_hbm [thread:$0]  %s17763_s29, 1536, %s22949_s5, [#allocation5], %s22342_s3, %s22342_s3, %s22343_s30  }
 0xc36   :  { %22333 = dma.done.wait [#allocation5], 1536  }
 0xc37   :  { %22334 = vsyncadd [#allocation5], 4294965760 }
 0xc38   :  { %17772 = vsyncpa [#allocation4], 1 }
 0xc39   :  { %17773 = vsyncpa [#allocation7], 1 }
 0xc3a   :  { %17774 = vsyncpa [#allocation10], 1 }
 0xc3b   :  { %17775 = vsyncpa [#allocation5], 1 }

</bundles_post_ra>
